<compile_context>
chip_gen: v7x
topology: tpu7x:2x2x1
jax: 0.10.0
libtpu: 0.0.40
codegen_flags: <defaults>
</compile_context>

<pallas_src>
import jax
import jax.numpy as jnp
from jax import lax
from jax.experimental import pallas as pl
from jax.experimental.pallas import tpu as pltpu


_ROW_TILE = 1024          # TODO(synk): v5e/v6e (128 MiB VMEM) can take 2048-4096
_WIDE_ROW_TILE = 512      # row budget when the chain width reaches 512 (v7x VMEM)
_SQDIST_LANE_TILE = 512   # TODO(synk): shrink to 256 on v7x for very large N
_VMEM_LIMIT_BYTES = 48 * 1024 * 1024   # > 32 MiB scoped default, < v7x physical


def _round_up(x, m):
    return ((x + m - 1) // m) * m


def _chain_params(sem):
    return pltpu.CompilerParams(dimension_semantics=sem,
                                vmem_limit_bytes=_VMEM_LIMIT_BYTES)


def _bf16(v):
    return v if v.dtype == jnp.bfloat16 else v.astype(jnp.bfloat16)


def _chain_width(cins, layers):
    w = sum(cins)
    for layer in layers:
        if layer[0] == 'linear':
            w = max(w, int(layer[1].shape[1]))
        else:
            w = max(w, int(layer[1].shape[1]), int(layer[3].shape[1]))
    return w


def _row_budget(width):
    return _WIDE_ROW_TILE if width >= 512 else _ROW_TILE


def _pick_row_tile(m, budget):
    """Row tile: <= budget, and gives >=2 grid steps whenever m allows it so
    the 'parallel' axis can be split across v7x's two TensorCores."""
    if m <= 8:
        return m
    return min(budget, _round_up(-(-m // 2), 8))


# ----------------------------------------------------------------------------
# Shared chain math (runs inside the kernels)
# ----------------------------------------------------------------------------
def _apply_chain(ops, prm, xs):
    """ops: ('linear', relu) | ('res',).  prm: refs.  xs: loaded input tiles
    (native dtype).  Returns the f32 activation."""
    i = 0
    y = None
    for oi, op in enumerate(ops):
        if op[0] == 'linear':
            if oi == 0:
                acc = None
                for x in xs:
                    w = prm[i][...]
                    i += 1
                    p = jnp.dot(_bf16(x), w, preferred_element_type=jnp.float32)
                    acc = p if acc is None else acc + p
                y = acc + prm[i][...]
                i += 1
            else:
                w, b = prm[i][...], prm[i + 1][...]
                i += 2
                y = jnp.dot(_bf16(y), w, preferred_element_type=jnp.float32) + b
            if op[1]:
                y = jnp.maximum(y, 0.0)
        else:  # ConvBNReLURes1D: relu(W2 @ relu(W1 @ y + b1) + b2 + y)
            w1, b1 = prm[i][...], prm[i + 1][...]
            w2, b2 = prm[i + 2][...], prm[i + 3][...]
            i += 4
            if y is None:
                x0 = xs[0]
                res = x0.astype(jnp.float32)
                h = jnp.dot(_bf16(x0), w1, preferred_element_type=jnp.float32) + b1
            else:
                res = y
                h = jnp.dot(_bf16(y), w1, preferred_element_type=jnp.float32) + b1
            h = jnp.maximum(h, 0.0)
            y = jnp.dot(_bf16(h), w2, preferred_element_type=jnp.float32) + b2 + res
            y = jnp.maximum(y, 0.0)
    return y


def _pack_layers(layers, cins):
    """Builds (ops, prm, cout).  If multiple inputs, the first (linear) weight
    is split along cin so the wrapper never has to concatenate activations."""
    ops, prm, cout = [], [], None
    for li, layer in enumerate(layers):
        if layer[0] == 'linear':
            _, w, b, relu = layer
            w = w.astype(jnp.bfloat16)
            if li == 0 and len(cins) > 1:
                assert int(w.shape[0]) == sum(cins)
                off = 0
                for c in cins:
                    prm.append(w[off:off + c, :])
                    off += c
            else:
                prm.append(w)
            prm.append(jnp.asarray(b, jnp.float32).reshape(1, -1))
            ops.append(('linear', relu))
            cout = int(w.shape[1])
        else:
            _, w1, b1, w2, b2 = layer
            prm += [w1.astype(jnp.bfloat16),
                    jnp.asarray(b1, jnp.float32).reshape(1, -1),
                    w2.astype(jnp.bfloat16),
                    jnp.asarray(b2, jnp.float32).reshape(1, -1)]
            ops.append(('res',))
            cout = int(w2.shape[1])
    return tuple(ops), prm, cout


# ----------------------------------------------------------------------------
# Pallas kernels / wrappers
# ----------------------------------------------------------------------------
def _make_chain_kernel(ops, n_in):
    def kernel(*refs):
        xs = [r[...] for r in refs[:n_in]]
        o_ref = refs[-1]
        prm = refs[n_in:-1]
        y = _apply_chain(ops, prm, xs)
        o_ref[...] = y.astype(o_ref.dtype)
    return kernel


def mlp_chain(inputs, layers, *, out_dtype=jnp.bfloat16):
    """inputs: [M, Ci] array or list of row-aligned arrays (the first linear
    layer's weight is split across them).  layers: ('linear', w, b, relu) or
    ('res', w1, b1, w2, b2).  The whole chain runs in ONE row-tiled
    pallas_call; inputs are read in their native dtype."""
    if not isinstance(inputs, (list, tuple)):
        inputs = [inputs]
    inputs = list(inputs)
    assert len(inputs) == 1 or layers[0][0] == 'linear'
    M = int(inputs[0].shape[0])
    cins = [int(a.shape[-1]) for a in inputs]
    ops, prm, cout = _pack_layers(layers, cins)
    tm = _pick_row_tile(M, _row_budget(_chain_width(cins, layers)))
    grid = (pl.cdiv(M, tm),)
    in_specs = [pl.BlockSpec((tm, c), lambda i: (i, 0)) for c in cins]
    in_specs += [pl.BlockSpec(p.shape, lambda i: (0, 0)) for p in prm]
    out_spec = pl.BlockSpec((tm, cout), lambda i: (i, 0))
    return pl.pallas_call(
        _make_chain_kernel(ops, len(inputs)),
        out_shape=jax.ShapeDtypeStruct((M, cout), out_dtype),
        grid=grid,
        in_specs=in_specs,
        out_specs=out_spec,
        compiler_params=_chain_params(("parallel",)),
    )(*inputs, *prm)


def _make_chain_pool_kernel(ops):
    def kernel(*refs):
        x_ref = refs[0]
        o_ref, acc_ref = refs[-2], refs[-1]
        prm = refs[1:-2]
        x = x_ref[...]                                   # (gt, cs, cin)
        gt, cs, cin = x.shape
        y = _apply_chain(ops, prm, [x.reshape(gt * cs, cin)])
        part = jnp.max(y.reshape(gt, cs, -1), axis=1)    # (gt, cout) f32

        k = pl.program_id(1)

        @pl.when(k == 0)
        def _():
            acc_ref[...] = part

        @pl.when(k > 0)
        def _():
            acc_ref[...] = jnp.maximum(acc_ref[...], part)

        o_ref[...] = acc_ref[...][:, None, :].astype(o_ref.dtype)
    return kernel


def mlp_chain_pool(x3d, layers, *, out_dtype=jnp.bfloat16):
    """x3d: [G, S, Cin].  Runs the chain per row and max-pools over S
    (adaptive_max_pool1d).  The pooled axis is a reduction grid axis
    ("arbitrary") with a VMEM max-accumulator, so large global pools never
    force oversized blocks.  Returns [G, Cout]."""
    G, S, cin = (int(d) for d in x3d.shape)
    ops, prm, cout = _pack_layers(layers, [cin])
    budget = _row_budget(_chain_width([cin], layers))
    chunk = S
    if S > budget:
        c = (budget // 8) * 8
        while c >= 8:
            if S % c == 0:
                chunk = c
                break
            c -= 8
    n_chunks = S // chunk
    gt = min(max(1, budget // chunk), G)
    if G >= 2:
        gt = min(gt, -(-G // 2))          # >=2 steps on the parallel axis
    grid = (pl.cdiv(G, gt), n_chunks)
    in_specs = [pl.BlockSpec((gt, chunk, cin), lambda i, k: (i, k, 0))]
    in_specs += [pl.BlockSpec(p.shape, lambda i, k: (0, 0)) for p in prm]
    out_spec = pl.BlockSpec((gt, 1, cout), lambda i, k: (i, 0, 0))
    out = pl.pallas_call(
        _make_chain_pool_kernel(ops),
        out_shape=jax.ShapeDtypeStruct((G, 1, cout), out_dtype),
        grid=grid,
        in_specs=in_specs,
        out_specs=out_spec,
        scratch_shapes=[pltpu.VMEM((gt, cout), jnp.float32)],
        compiler_params=_chain_params(("parallel", "arbitrary")),
    )(x3d, *prm)
    return out.reshape(G, cout)


def _cls_head_kernel(x_ref, ctx_ref, w1_ref, w2_ref, b2_ref, o_ref):
    x = x_ref[0]                                         # (tn, C1)
    h = jnp.dot(_bf16(x), w1_ref[...], preferred_element_type=jnp.float32)
    h = h + ctx_ref[0]          # per-batch context row (gmp/cls token + bias)
    o = jnp.dot(_bf16(h), w2_ref[...],
                preferred_element_type=jnp.float32) + b2_ref[...]
    o_ref[0] = o.astype(o_ref.dtype)


def classifier_head(xcur, ctx, w1, w2, b2):
    """xcur:[B,N,C1], ctx:[B,1,H] (= gc@W1b + tok@W1c + b1), w1:[C1,H],
    w2:[H,ncls] -> [B,N,ncls] f32.  Avoids materializing the broadcast
    [B,N,gmp+cls] concat of the reference forward."""
    B, N, c1 = (int(d) for d in xcur.shape)
    H = int(w1.shape[1])
    ncls = int(w2.shape[1])
    w1 = w1.astype(jnp.bfloat16)
    w2 = w2.astype(jnp.bfloat16)
    b2 = jnp.asarray(b2, jnp.float32).reshape(1, -1)
    ctx = ctx.astype(jnp.float32)
    tn = _pick_row_tile(N, _row_budget(max(c1, H)))
    grid = (B, pl.cdiv(N, tn))
    return pl.pallas_call(
        _cls_head_kernel,
        out_shape=jax.ShapeDtypeStruct((B, N, ncls), jnp.float32),
        grid=grid,
        in_specs=[pl.BlockSpec((1, tn, c1), lambda b, i: (b, i, 0)),
                  pl.BlockSpec((1, 1, H), lambda b, i: (b, 0, 0)),
                  pl.BlockSpec((c1, H), lambda b, i: (0, 0)),
                  pl.BlockSpec((H, ncls), lambda b, i: (0, 0)),
                  pl.BlockSpec((1, ncls), lambda b, i: (0, 0))],
        out_specs=pl.BlockSpec((1, tn, ncls), lambda b, i: (b, i, 0)),
        compiler_params=_chain_params(("parallel", "parallel")),
    )(xcur, ctx, w1, w2, b2)


def _neg_sqdist_kernel(src_ref, ssq_ref, dstt_ref, o_ref):
    s = src_ref[0]                                       # [N, 3]
    ssq = ssq_ref[0]                                     # [N, 1]
    dt = dstt_ref[0]                                     # [3, TM]
    # Contraction depth is only 3: three VPU FMAs beat dragging a lane-sparse
    # [N,3] operand through the MXU; the kernel is write-bound anyway.
    cross2 = 2.0 * (s[:, 0:1] * dt[0:1, :]
                    + s[:, 1:2] * dt[1:2, :]
                    + s[:, 2:3] * dt[2:3, :])
    dsq = jnp.sum(dt * dt, axis=0, keepdims=True)        # [1, TM]
    # Negated, clamped distances: lax.top_k consumes them directly.
    o_ref[0] = jnp.minimum(cross2 - ssq - dsq, 0.0)


def pairwise_neg_sqdist(src, dst):
    """src:[B,N,3], dst:[B,M,3] -> [B,N,M] of -squared_distance (<= 0)."""
    B, N, _ = src.shape
    M = dst.shape[1]
    src = src.astype(jnp.float32)
    dst_t = jnp.swapaxes(dst.astype(jnp.float32), 1, 2)  # [B, 3, M]
    src_sq = jnp.sum(src * src, axis=-1, keepdims=True)  # once per batch
    tm = min(M, _SQDIST_LANE_TILE)
    return pl.pallas_call(
        _neg_sqdist_kernel,
        out_shape=jax.ShapeDtypeStruct((B, N, M), jnp.float32),
        grid=(B, pl.cdiv(M, tm)),
        in_specs=[pl.BlockSpec((1, N, 3), lambda b, j: (b, 0, 0)),
                  pl.BlockSpec((1, N, 1), lambda b, j: (b, 0, 0)),
                  pl.BlockSpec((1, 3, tm), lambda b, j: (b, 0, j))],
        out_specs=pl.BlockSpec((1, N, tm), lambda b, j: (b, 0, j)),
        compiler_params=_chain_params(("parallel", "parallel")),
    )(src, src_sq, dst_t)


# ----------------------------------------------------------------------------
# Parameter construction (deterministic; eval-mode BN folded into conv)
# ----------------------------------------------------------------------------
def make_conv_bn(key, cin, cout):
    kw, kb = jax.random.split(key)
    w = jax.random.normal(kw, (cin, cout), jnp.float32) / jnp.sqrt(float(cin))
    b = 0.01 * jax.random.normal(kb, (cout,), jnp.float32)
    # BatchNorm1d eval mode, fresh init: gamma=1, beta=0, mean=0, var=1.
    scale = (1.0 + 1e-5) ** -0.5
    return {'w': (w * scale).astype(jnp.bfloat16),
            'b': (b * scale).astype(jnp.float32)}


def make_conv(key, cin, cout):
    kw, kb = jax.random.split(key)
    w = jax.random.normal(kw, (cin, cout), jnp.float32) / jnp.sqrt(float(cin))
    b = 0.01 * jax.random.normal(kb, (cout,), jnp.float32)
    return {'w': w.astype(jnp.bfloat16), 'b': b}


def make_res_block(key, c):
    k1, k2 = jax.random.split(key)
    return {'n1': make_conv_bn(k1, c, c), 'n2': make_conv_bn(k2, c, c)}


def init_params(key, cfg):
    keys = iter(jax.random.split(key, 128))
    P = {}
    P['embedding'] = make_conv_bn(next(keys), 6, cfg['embed_dim'])

    last = cfg['embed_dim']
    en_dims = [last]
    P['stages'] = []
    for i in range(cfg['stages']):
        out = last * cfg['dim_expansion'][i]
        st = {
            'alpha': jnp.ones((1, 1, 1, last + 3), jnp.float32),
            'beta': jnp.zeros((1, 1, 1, last + 3), jnp.float32),
            'pre_transfer': make_conv_bn(next(keys), 3 + 2 * last, out),
            'pre_blocks': [make_res_block(next(keys), out)
                           for _ in range(cfg['pre_blocks'][i])],
            'pos_blocks': [make_res_block(next(keys), out)
                           for _ in range(cfg['pos_blocks'][i])],
        }
        P['stages'].append(st)
        last = out
        en_dims.append(last)

    en_dims = en_dims[::-1]
    de_dims = [en_dims[0]] + list(cfg['de_dims'])
    P['decode'] = []
    for i in range(len(en_dims) - 1):
        P['decode'].append({
            'fuse': make_conv_bn(next(keys), de_dims[i] + en_dims[i + 1],
                                 de_dims[i + 1]),
            'blocks': [make_res_block(next(keys), de_dims[i + 1])
                       for _ in range(cfg['de_blocks'][i])],
        })

    P['cls_map'] = [make_conv_bn(next(keys), 64, cfg['cls_dim']),
                    make_conv_bn(next(keys), cfg['cls_dim'], cfg['cls_dim'])]
    P['gmp_map'] = [make_conv_bn(next(keys), d, cfg['gmp_dim']) for d in en_dims]
    P['gmp_end'] = make_conv_bn(next(keys),
                                cfg['gmp_dim'] * len(en_dims), cfg['gmp_dim'])
    P['id_emb'] = jax.random.normal(next(keys), (32, 64), jnp.float32)
    P['cls1'] = make_conv_bn(next(keys),
                             cfg['gmp_dim'] + de_dims[-1] + cfg['cls_dim'], 128)
    P['cls2'] = make_conv(next(keys), 128, cfg['num_classes'])
    return P


# ----------------------------------------------------------------------------
# Plain-JAX glue (gathers, FPS, top-k)
# ----------------------------------------------------------------------------
def index_points(points, idx):
    """points:[B,N,C], idx:[B,...] -> [B,...,C]"""
    B = points.shape[0]
    idx_flat = idx.reshape(B, -1)
    out = jnp.take_along_axis(points, idx_flat[..., None], axis=1)
    return out.reshape(idx.shape + (points.shape[-1],))


def farthest_point_sample(xyz, npoint, key):
    # TODO(synk): inherently sequential data-dependent argmax loop; stays in
    # lax.fori_loop rather than a Pallas kernel.
    B, N, _ = xyz.shape
    farthest = jax.random.randint(key, (B,), 0, N, dtype=jnp.int32)
    distance = jnp.full((B, N), 1e10, jnp.float32)
    centroids = jnp.zeros((B, npoint), jnp.int32)

    def body(i, carry):
        centroids, distance, farthest = carry
        centroids = centroids.at[:, i].set(farthest)
        centroid = jnp.take_along_axis(xyz, farthest[:, None, None], axis=1)
        dist = jnp.sum((xyz - centroid) ** 2, axis=-1)
        distance = jnp.minimum(distance, dist)
        farthest = jnp.argmax(distance, axis=-1).astype(jnp.int32)
        return centroids, distance, farthest

    centroids, _, _ = lax.fori_loop(0, npoint, body,
                                    (centroids, distance, farthest))
    return centroids


def knn_point(nsample, xyz, new_xyz):
    neg = pairwise_neg_sqdist(new_xyz, xyz)            # [B,S,N], = -dist
    _, idx = lax.top_k(neg, nsample)                   # k smallest distances
    return idx


# ----------------------------------------------------------------------------
# Module building blocks (channels-last everywhere)
# ----------------------------------------------------------------------------
def _res_layers(blocks):
    return [('res', b['n1']['w'], b['n1']['b'], b['n2']['w'], b['n2']['b'])
            for b in blocks]


def local_grouper(st, xyz, points, groups, k, key):
    B, N, _ = xyz.shape
    d = points.shape[-1]
    fps_idx = farthest_point_sample(xyz, groups, key)
    new_xyz = index_points(xyz, fps_idx)                             # [B,S,3]
    new_points = index_points(points, fps_idx).astype(jnp.float32)   # [B,S,d]
    idx = knn_point(k, xyz, new_xyz)                                 # [B,S,K]
    grouped_xyz = index_points(xyz, idx)                             # [B,S,K,3]
    grouped_points = index_points(points, idx).astype(jnp.float32)   # [B,S,K,d]
    grouped_points = jnp.concatenate([grouped_points, grouped_xyz], -1)
    # normalize == 'anchor', use_xyz == True
    mean = jnp.concatenate([new_points, new_xyz], -1)[:, :, None, :]
    diff = grouped_points - mean
    flat = diff.reshape(B, -1)
    n = flat.shape[1]
    mu = jnp.mean(flat, axis=-1, keepdims=True)
    std = jnp.sqrt(jnp.sum((flat - mu) ** 2, axis=-1, keepdims=True) / (n - 1))
    std = std.reshape(B, 1, 1, 1)
    grouped_points = diff / (std + 1e-5)
    grouped_points = st['alpha'] * grouped_points + st['beta']
    rep = jnp.broadcast_to(new_points[:, :, None, :], (B, groups, k, d))
    return new_xyz, jnp.concatenate([grouped_points, rep], -1)       # [B,S,K,2d+3]


def pre_extraction(st, grouped):
    """[b,n,s,d] -> [b,n,Cout]: transfer + res blocks + neighbor max-pool fused."""
    b, n, s, d = grouped.shape
    layers = [('linear', st['pre_transfer']['w'], st['pre_transfer']['b'], True)]
    layers += _res_layers(st['pre_blocks'])
    pooled = mlp_chain_pool(grouped.reshape(b * n, s, d), layers)
    return pooled.reshape(b, n, -1)


def pos_extraction(blocks, x):
    B, N, C = x.shape
    return mlp_chain(x.reshape(B * N, C), _res_layers(blocks)).reshape(B, N, C)


def feature_propagation(dec, xyz1, xyz2, points1, points2):
    """xyz1:[B,N,3], xyz2:[B,S,3], points1:[B,N,D1]|None, points2:[B,S,D2]."""
    B, N, _ = xyz1.shape
    S = xyz2.shape[1]
    if S == 1:
        interp = jnp.broadcast_to(points2.astype(jnp.float32),
                                  (B, N, points2.shape[-1]))
    else:
        neg = pairwise_neg_sqdist(xyz1, xyz2)                        # [B,N,S]
        negd, idx = lax.top_k(neg, 3)                                # 3 nearest
        recip = 1.0 / (-negd + 1e-8)
        weight = recip / jnp.sum(recip, axis=2, keepdims=True)
        interp = jnp.sum(index_points(points2, idx).astype(jnp.float32)
                         * weight[..., None], axis=2)
    layers = [('linear', dec['fuse']['w'], dec['fuse']['b'], True)]
    layers += _res_layers(dec['blocks'])
    d2 = interp.shape[-1]
    if points1 is not None:
        inputs = [points1.reshape(B * N, -1), interp.reshape(B * N, d2)]
    else:
        inputs = interp.reshape(B * N, d2)
    y = mlp_chain(inputs, layers)
    return y.reshape(B, N, -1)


# ----------------------------------------------------------------------------
# Full PointMLP forward
# ----------------------------------------------------------------------------
def point_mlp_forward(P, cfg, x, norm_plt, ids, fps_key):
    B, _, N = x.shape
    xyz = jnp.swapaxes(x, 1, 2)                                      # [B,N,3]
    nrm = jnp.swapaxes(norm_plt, 1, 2)                               # [B,N,3]
    feat = mlp_chain(
        [xyz.reshape(B * N, 3), nrm.reshape(B * N, 3)],
        [('linear', P['embedding']['w'], P['embedding']['b'], True)],
    ).reshape(B, N, -1)                                              # [B,N,embed]

    xyz_list = [xyz]
    x_list = [feat]
    keys = jax.random.split(fps_key, cfg['stages'])
    anchor = cfg['points']
    for i in range(cfg['stages']):
        st = P['stages'][i]
        anchor //= cfg['reducers'][i]
        xyz, grouped = local_grouper(st, xyz, feat, anchor,
                                     cfg['k_neighbors'][i], keys[i])
        feat = pre_extraction(st, grouped)
        feat = pos_extraction(st['pos_blocks'], feat)
        xyz_list.append(xyz)
        x_list.append(feat)

    xyz_list = xyz_list[::-1]
    x_list = x_list[::-1]

    xcur = x_list[0]
    for i in range(len(P['decode'])):
        xcur = feature_propagation(P['decode'][i], xyz_list[i + 1], xyz_list[i],
                                   x_list[i + 1], xcur)

    # global max-pooled context: gmp_map conv + global max fused per scale
    gmp = []
    for i, xi in enumerate(x_list):
        gmp.append(mlp_chain_pool(
            xi, [('linear', P['gmp_map'][i]['w'], P['gmp_map'][i]['b'], True)]))
    global_context = mlp_chain(
        gmp, [('linear', P['gmp_end']['w'], P['gmp_end']['b'], True)])  # [B,gmp]

    # class-id token: embedding lookup + two ConvBNReLU1D fused in one call
    tok = mlp_chain(
        P['id_emb'][ids],
        [('linear', P['cls_map'][0]['w'], P['cls_map'][0]['b'], True),
         ('linear', P['cls_map'][1]['w'], P['cls_map'][1]['b'], True)])

    # classifier: split cls1's weight so the per-batch gmp/cls contributions
    # become a [B,128] context row (no [B,N,*] broadcast/concat in HBM);
    # Conv+BN (no act), Dropout = eval identity, Conv -> dedicated head kernel.
    de_last = xcur.shape[-1]
    w1 = P['cls1']['w']
    b1 = P['cls1']['b']
    ctx = mlp_chain([global_context, tok],
                    [('linear', w1[de_last:], b1, False)],
                    out_dtype=jnp.float32)                           # [B,128]
    out = classifier_head(xcur, ctx.reshape(B, 1, -1), w1[:de_last],
                          P['cls2']['w'], P['cls2']['b'])
    return out                                                       # [B,N,classes]


# ----------------------------------------------------------------------------
if __name__ == "__main__":
    cfg = dict(
        num_classes=3,
        points=64,
        embed_dim=16,
        stages=2,
        dim_expansion=[2, 2],
        pre_blocks=[1, 1],
        pos_blocks=[1, 1],
        k_neighbors=[8, 8],
        reducers=[2, 2],
        de_dims=[32, 32],
        de_blocks=[1, 1],
        gmp_dim=16,
        cls_dim=16,
    )

    root = jax.random.PRNGKey(0)
    kp, kx, kn, kfps = jax.random.split(root, 4)

    params = init_params(kp, cfg)

    B, N = 2, cfg['points']
    x = jax.random.normal(kx, (B, 3, N), jnp.float32)          # point coords (NCW)
    norm_plt = jax.random.normal(kn, (B, 3, N), jnp.float32)   # point normals
    ids = jnp.array([1, 7], dtype=jnp.int32)                   # shape ids in [0,32)

    fwd = jax.jit(lambda P, xx, nrm, ii, kk:
                  point_mlp_forward(P, cfg, xx, nrm, ii, kk))
    out = fwd(params, x, norm_plt, ids, kfps)
    out = jax.block_until_ready(out)
    assert out.shape == (B, N, cfg['num_classes']), out.shape
    assert bool(jnp.all(jnp.isfinite(out))), "non-finite output"
    print("KERNEL_OK")
</pallas_src>

<mosaic_0001>
module attributes {stable_mosaic.version = 11 : i64} {
  func.func @_neg_sqdist_kernel(%arg0: i32, %arg1: i32, %arg2: memref<1x32x3xf32, #tpu.memory_space<vmem>>, %arg3: memref<1x32x1xf32, #tpu.memory_space<vmem>>, %arg4: memref<1x3x64xf32, #tpu.memory_space<vmem>>, %arg5: memref<1x32x64xf32, #tpu.memory_space<vmem>>) attributes {dimension_semantics = [#tpu.dimension_semantics<parallel>, #tpu.dimension_semantics<parallel>], iteration_bounds = array<i64: 2, 1>, scalar_prefetch = 0 : i64, scratch_operands = 0 : i64, tpu.core_type = #tpu.core_type<tc>, window_params = [{transform_indices = @transform_0, window_bounds = array<i64: 1, 32, 3>}, {transform_indices = @transform_1, window_bounds = array<i64: 1, 32, 1>}, {transform_indices = @transform_2, window_bounds = array<i64: 1, 3, 64>}, {transform_indices = @transform_3, window_bounds = array<i64: 1, 32, 64>}]} {
    %c0 = arith.constant 0 : index
    %c0_0 = arith.constant 0 : index
    %c0_1 = arith.constant 0 : index
    %0 = vector.load %arg2[%c0, %c0_0, %c0_1] : memref<1x32x3xf32, #tpu.memory_space<vmem>>, vector<1x32x3xf32>
    %1 = vector.shape_cast %0 : vector<1x32x3xf32> to vector<32x3xf32>
    %c0_2 = arith.constant 0 : index
    %c0_3 = arith.constant 0 : index
    %c0_4 = arith.constant 0 : index
    %2 = vector.load %arg3[%c0_2, %c0_3, %c0_4] : memref<1x32x1xf32, #tpu.memory_space<vmem>>, vector<1x32x1xf32>
    %3 = vector.shape_cast %2 : vector<1x32x1xf32> to vector<32x1xf32>
    %c0_5 = arith.constant 0 : index
    %c0_6 = arith.constant 0 : index
    %c0_7 = arith.constant 0 : index
    %4 = vector.load %arg4[%c0_5, %c0_6, %c0_7] : memref<1x3x64xf32, #tpu.memory_space<vmem>>, vector<1x3x64xf32>
    %5 = vector.shape_cast %4 : vector<1x3x64xf32> to vector<3x64xf32>
    %6 = vector.extract_strided_slice %1 {offsets = [0, 0], sizes = [32, 1], strides = [1, 1]} : vector<32x3xf32> to vector<32x1xf32>
    %7 = vector.extract_strided_slice %5 {offsets = [0, 0], sizes = [1, 64], strides = [1, 1]} : vector<3x64xf32> to vector<1x64xf32>
    %8 = vector.broadcast %6 : vector<32x1xf32> to vector<32x64xf32>
    %9 = vector.broadcast %7 : vector<1x64xf32> to vector<32x64xf32>
    %10 = arith.mulf %8, %9 : vector<32x64xf32>
    %11 = vector.extract_strided_slice %1 {offsets = [0, 1], sizes = [32, 1], strides = [1, 1]} : vector<32x3xf32> to vector<32x1xf32>
    %12 = vector.extract_strided_slice %5 {offsets = [1, 0], sizes = [1, 64], strides = [1, 1]} : vector<3x64xf32> to vector<1x64xf32>
    %13 = vector.broadcast %11 : vector<32x1xf32> to vector<32x64xf32>
    %14 = vector.broadcast %12 : vector<1x64xf32> to vector<32x64xf32>
    %15 = arith.mulf %13, %14 : vector<32x64xf32>
    %16 = arith.addf %10, %15 : vector<32x64xf32>
    %17 = vector.extract_strided_slice %1 {offsets = [0, 2], sizes = [32, 1], strides = [1, 1]} : vector<32x3xf32> to vector<32x1xf32>
    %18 = vector.extract_strided_slice %5 {offsets = [2, 0], sizes = [1, 64], strides = [1, 1]} : vector<3x64xf32> to vector<1x64xf32>
    %19 = vector.broadcast %17 : vector<32x1xf32> to vector<32x64xf32>
    %20 = vector.broadcast %18 : vector<1x64xf32> to vector<32x64xf32>
    %21 = arith.mulf %19, %20 : vector<32x64xf32>
    %22 = arith.addf %16, %21 : vector<32x64xf32>
    %cst = arith.constant 2.000000e+00 : f32
    %23 = vector.broadcast %cst : f32 to vector<32x64xf32>
    %24 = arith.mulf %23, %22 : vector<32x64xf32>
    %25 = arith.mulf %5, %5 : vector<3x64xf32>
    %cst_8 = arith.constant dense<0.000000e+00> : vector<64xf32>
    %26 = vector.multi_reduction <add>, %25, %cst_8 [0] : vector<3x64xf32> to vector<64xf32>
    %27 = vector.shape_cast %26 : vector<64xf32> to vector<1x64xf32>
    %28 = vector.broadcast %3 : vector<32x1xf32> to vector<32x64xf32>
    %29 = arith.subf %24, %28 : vector<32x64xf32>
    %30 = vector.broadcast %27 : vector<1x64xf32> to vector<32x64xf32>
    %31 = arith.subf %29, %30 : vector<32x64xf32>
    %cst_9 = arith.constant 0.000000e+00 : f32
    %32 = vector.broadcast %cst_9 : f32 to vector<32x64xf32>
    %33 = arith.minimumf %31, %32 : vector<32x64xf32>
    %c0_10 = arith.constant 0 : index
    %c0_11 = arith.constant 0 : index
    %c0_12 = arith.constant 0 : index
    %34 = vector.load %arg5[%c0_10, %c0_11, %c0_12] : memref<1x32x64xf32, #tpu.memory_space<vmem>>, vector<1x32x64xf32>
    %35 = vector.shape_cast %34 : vector<1x32x64xf32> to vector<32x64xf32>
    %36 = vector.shape_cast %33 : vector<32x64xf32> to vector<1x32x64xf32>
    tpu.vector_store %arg5[%c0_10, %c0_11, %c0_12], %36 {strides = array<i32>} : memref<1x32x64xf32, #tpu.memory_space<vmem>>, vector<1x32x64xf32>,
    return
  }
  func.func @transform_0(%arg0: i32, %arg1: i32) -> (i32, i32, i32) {
    %c0_i32 = arith.constant 0 : i32
    %c0_i32_0 = arith.constant 0 : i32
    %c0_i32_1 = arith.constant 0 : i32
    return %arg0, %c0_i32, %c0_i32_0 : i32, i32, i32
  }
  func.func @transform_1(%arg0: i32, %arg1: i32) -> (i32, i32, i32) {
    %c0_i32 = arith.constant 0 : i32
    %c0_i32_0 = arith.constant 0 : i32
    %c0_i32_1 = arith.constant 0 : i32
    return %arg0, %c0_i32, %c0_i32_0 : i32, i32, i32
  }
  func.func @transform_2(%arg0: i32, %arg1: i32) -> (i32, i32, i32) {
    %c0_i32 = arith.constant 0 : i32
    %c0_i32_0 = arith.constant 0 : i32
    return %arg0, %c0_i32, %arg1 : i32, i32, i32
  }
  func.func @transform_3(%arg0: i32, %arg1: i32) -> (i32, i32, i32) {
    %c0_i32 = arith.constant 0 : i32
    %c0_i32_0 = arith.constant 0 : i32
    return %arg0, %c0_i32, %arg1 : i32, i32, i32
  }
}

module attributes {stable_mosaic.version = 11 : i64} {
  func.func @kernel(%arg0: i32, %arg1: memref<64x3xf32, #tpu.memory_space<vmem>>, %arg2: memref<64x3xf32, #tpu.memory_space<vmem>>, %arg3: memref<3x16xbf16, #tpu.memory_space<vmem>>, %arg4: memref<3x16xbf16, #tpu.memory_space<vmem>>, %arg5: memref<1x16xf32, #tpu.memory_space<vmem>>, %arg6: memref<64x16xbf16, #tpu.memory_space<vmem>>) attributes {dimension_semantics = [#tpu.dimension_semantics<parallel>], iteration_bounds = array<i64: 2>, scalar_prefetch = 0 : i64, scratch_operands = 0 : i64, tpu.core_type = #tpu.core_type<tc>, window_params = [{transform_indices = @transform_0, window_bounds = array<i64: 64, 3>}, {transform_indices = @transform_1, window_bounds = array<i64: 64, 3>}, {pipeline_mode = #tpu.pipeline_mode<synchronous>, transform_indices = @transform_2, window_bounds = array<i64: 3, 16>}, {pipeline_mode = #tpu.pipeline_mode<synchronous>, transform_indices = @transform_3, window_bounds = array<i64: 3, 16>}, {pipeline_mode = #tpu.pipeline_mode<synchronous>, transform_indices = @transform_4, window_bounds = array<i64: 1, 16>}, {transform_indices = @transform_5, window_bounds = array<i64: 64, 16>}]} {
    %c0 = arith.constant 0 : index
    %c0_0 = arith.constant 0 : index
    %0 = vector.load %arg1[%c0, %c0_0] : memref<64x3xf32, #tpu.memory_space<vmem>>, vector<64x3xf32>
    %c0_1 = arith.constant 0 : index
    %c0_2 = arith.constant 0 : index
    %1 = vector.load %arg2[%c0_1, %c0_2] : memref<64x3xf32, #tpu.memory_space<vmem>>, vector<64x3xf32>
    %c0_3 = arith.constant 0 : index
    %c0_4 = arith.constant 0 : index
    %2 = vector.load %arg3[%c0_3, %c0_4] : memref<3x16xbf16, #tpu.memory_space<vmem>>, vector<3x16xbf16>
    %3 = arith.truncf %0 : vector<64x3xf32> to vector<64x3xbf16>
    %cst = arith.constant dense<0.000000e+00> : vector<64x16xf32>
    %4 = tpu.matmul %3, %2, %cst {dimension_numbers = #tpu.dot_dimension_numbers<[1], [0], [0], [1], [0, 0, 1, 1], [], []>} : vector<64x3xbf16>, vector<3x16xbf16>, vector<64x16xf32> -> vector<64x16xf32>
    %c0_5 = arith.constant 0 : index
    %c0_6 = arith.constant 0 : index
    %5 = vector.load %arg4[%c0_5, %c0_6] : memref<3x16xbf16, #tpu.memory_space<vmem>>, vector<3x16xbf16>
    %6 = arith.truncf %1 : vector<64x3xf32> to vector<64x3xbf16>
    %cst_7 = arith.constant dense<0.000000e+00> : vector<64x16xf32>
    %7 = tpu.matmul %6, %5, %cst_7 {dimension_numbers = #tpu.dot_dimension_numbers<[1], [0], [0], [1], [0, 0, 1, 1], [], []>} : vector<64x3xbf16>, vector<3x16xbf16>, vector<64x16xf32> -> vector<64x16xf32>
    %8 = arith.addf %4, %7 : vector<64x16xf32>
    %c0_8 = arith.constant 0 : index
    %c0_9 = arith.constant 0 : index
    %9 = vector.load %arg5[%c0_8, %c0_9] : memref<1x16xf32, #tpu.memory_space<vmem>>, vector<1x16xf32>
    %10 = vector.broadcast %9 : vector<1x16xf32> to vector<64x16xf32>
    %11 = arith.addf %8, %10 : vector<64x16xf32>
    %cst_10 = arith.constant 0.000000e+00 : f32
    %12 = vector.broadcast %cst_10 : f32 to vector<64x16xf32>
    %13 = arith.maximumf %11, %12 : vector<64x16xf32>
    %14 = arith.truncf %13 : vector<64x16xf32> to vector<64x16xbf16>
    %c0_11 = arith.constant 0 : index
    %c0_12 = arith.constant 0 : index
    %15 = vector.load %arg6[%c0_11, %c0_12] : memref<64x16xbf16, #tpu.memory_space<vmem>>, vector<64x16xbf16>
    tpu.vector_store %arg6[%c0_11, %c0_12], %14 {strides = array<i32>} : memref<64x16xbf16, #tpu.memory_space<vmem>>, vector<64x16xbf16>,
    return
  }
  func.func @transform_0(%arg0: i32) -> (i32, i32) {
    %c0_i32 = arith.constant 0 : i32
    %c0_i32_0 = arith.constant 0 : i32
    return %arg0, %c0_i32 : i32, i32
  }
  func.func @transform_1(%arg0: i32) -> (i32, i32) {
    %c0_i32 = arith.constant 0 : i32
    %c0_i32_0 = arith.constant 0 : i32
    return %arg0, %c0_i32 : i32, i32
  }
  func.func @transform_2(%arg0: i32) -> (i32, i32) {
    %c0_i32 = arith.constant 0 : i32
    %c0_i32_0 = arith.constant 0 : i32
    %c0_i32_1 = arith.constant 0 : i32
    return %c0_i32, %c0_i32_0 : i32, i32
  }
  func.func @transform_3(%arg0: i32) -> (i32, i32) {
    %c0_i32 = arith.constant 0 : i32
    %c0_i32_0 = arith.constant 0 : i32
    %c0_i32_1 = arith.constant 0 : i32
    return %c0_i32, %c0_i32_0 : i32, i32
  }
  func.func @transform_4(%arg0: i32) -> (i32, i32) {
    %c0_i32 = arith.constant 0 : i32
    %c0_i32_0 = arith.constant 0 : i32
    %c0_i32_1 = arith.constant 0 : i32
    return %c0_i32, %c0_i32_0 : i32, i32
  }
  func.func @transform_5(%arg0: i32) -> (i32, i32) {
    %c0_i32 = arith.constant 0 : i32
    %c0_i32_0 = arith.constant 0 : i32
    return %arg0, %c0_i32 : i32, i32
  }
}

module attributes {stable_mosaic.version = 11 : i64} {
  func.func @kernel(%arg0: i32, %arg1: memref<32x32xbf16, #tpu.memory_space<vmem>>, %arg2: memref<32x32xbf16, #tpu.memory_space<vmem>>, %arg3: memref<1x32xf32, #tpu.memory_space<vmem>>, %arg4: memref<32x32xbf16, #tpu.memory_space<vmem>>, %arg5: memref<1x32xf32, #tpu.memory_space<vmem>>, %arg6: memref<32x32xbf16, #tpu.memory_space<vmem>>) attributes {dimension_semantics = [#tpu.dimension_semantics<parallel>], iteration_bounds = array<i64: 2>, scalar_prefetch = 0 : i64, scratch_operands = 0 : i64, tpu.core_type = #tpu.core_type<tc>, window_params = [{transform_indices = @transform_0, window_bounds = array<i64: 32, 32>}, {pipeline_mode = #tpu.pipeline_mode<synchronous>, transform_indices = @transform_1, window_bounds = array<i64: 32, 32>}, {pipeline_mode = #tpu.pipeline_mode<synchronous>, transform_indices = @transform_2, window_bounds = array<i64: 1, 32>}, {pipeline_mode = #tpu.pipeline_mode<synchronous>, transform_indices = @transform_3, window_bounds = array<i64: 32, 32>}, {pipeline_mode = #tpu.pipeline_mode<synchronous>, transform_indices = @transform_4, window_bounds = array<i64: 1, 32>}, {transform_indices = @transform_5, window_bounds = array<i64: 32, 32>}]} {
    %c0 = arith.constant 0 : index
    %c0_0 = arith.constant 0 : index
    %0 = vector.load %arg1[%c0, %c0_0] : memref<32x32xbf16, #tpu.memory_space<vmem>>, vector<32x32xbf16>
    %c0_1 = arith.constant 0 : index
    %c0_2 = arith.constant 0 : index
    %1 = vector.load %arg2[%c0_1, %c0_2] : memref<32x32xbf16, #tpu.memory_space<vmem>>, vector<32x32xbf16>
    %c0_3 = arith.constant 0 : index
    %c0_4 = arith.constant 0 : index
    %2 = vector.load %arg3[%c0_3, %c0_4] : memref<1x32xf32, #tpu.memory_space<vmem>>, vector<1x32xf32>
    %c0_5 = arith.constant 0 : index
    %c0_6 = arith.constant 0 : index
    %3 = vector.load %arg4[%c0_5, %c0_6] : memref<32x32xbf16, #tpu.memory_space<vmem>>, vector<32x32xbf16>
    %c0_7 = arith.constant 0 : index
    %c0_8 = arith.constant 0 : index
    %4 = vector.load %arg5[%c0_7, %c0_8] : memref<1x32xf32, #tpu.memory_space<vmem>>, vector<1x32xf32>
    %5 = arith.extf %0 : vector<32x32xbf16> to vector<32x32xf32>
    %cst = arith.constant dense<0.000000e+00> : vector<32x32xf32>
    %6 = tpu.matmul %0, %1, %cst {dimension_numbers = #tpu.dot_dimension_numbers<[1], [0], [0], [1], [0, 0, 1, 1], [], []>} : vector<32x32xbf16>, vector<32x32xbf16>, vector<32x32xf32> -> vector<32x32xf32>
    %7 = vector.broadcast %2 : vector<1x32xf32> to vector<32x32xf32>
    %8 = arith.addf %6, %7 : vector<32x32xf32>
    %cst_9 = arith.constant 0.000000e+00 : f32
    %9 = vector.broadcast %cst_9 : f32 to vector<32x32xf32>
    %10 = arith.maximumf %8, %9 : vector<32x32xf32>
    %11 = arith.truncf %10 : vector<32x32xf32> to vector<32x32xbf16>
    %cst_10 = arith.constant dense<0.000000e+00> : vector<32x32xf32>
    %12 = tpu.matmul %11, %3, %cst_10 {dimension_numbers = #tpu.dot_dimension_numbers<[1], [0], [0], [1], [0, 0, 1, 1], [], []>} : vector<32x32xbf16>, vector<32x32xbf16>, vector<32x32xf32> -> vector<32x32xf32>
    %13 = vector.broadcast %4 : vector<1x32xf32> to vector<32x32xf32>
    %14 = arith.addf %12, %13 : vector<32x32xf32>
    %15 = arith.addf %14, %5 : vector<32x32xf32>
    %cst_11 = arith.constant 0.000000e+00 : f32
    %16 = vector.broadcast %cst_11 : f32 to vector<32x32xf32>
    %17 = arith.maximumf %15, %16 : vector<32x32xf32>
    %18 = arith.truncf %17 : vector<32x32xf32> to vector<32x32xbf16>
    %c0_12 = arith.constant 0 : index
    %c0_13 = arith.constant 0 : index
    %19 = vector.load %arg6[%c0_12, %c0_13] : memref<32x32xbf16, #tpu.memory_space<vmem>>, vector<32x32xbf16>
    tpu.vector_store %arg6[%c0_12, %c0_13], %18 {strides = array<i32>} : memref<32x32xbf16, #tpu.memory_space<vmem>>, vector<32x32xbf16>,
    return
  }
  func.func @transform_0(%arg0: i32) -> (i32, i32) {
    %c0_i32 = arith.constant 0 : i32
    %c0_i32_0 = arith.constant 0 : i32
    return %arg0, %c0_i32 : i32, i32
  }
  func.func @transform_1(%arg0: i32) -> (i32, i32) {
    %c0_i32 = arith.constant 0 : i32
    %c0_i32_0 = arith.constant 0 : i32
    %c0_i32_1 = arith.constant 0 : i32
    return %c0_i32, %c0_i32_0 : i32, i32
  }
  func.func @transform_2(%arg0: i32) -> (i32, i32) {
    %c0_i32 = arith.constant 0 : i32
    %c0_i32_0 = arith.constant 0 : i32
    %c0_i32_1 = arith.constant 0 : i32
    return %c0_i32, %c0_i32_0 : i32, i32
  }
  func.func @transform_3(%arg0: i32) -> (i32, i32) {
    %c0_i32 = arith.constant 0 : i32
    %c0_i32_0 = arith.constant 0 : i32
    %c0_i32_1 = arith.constant 0 : i32
    return %c0_i32, %c0_i32_0 : i32, i32
  }
  func.func @transform_4(%arg0: i32) -> (i32, i32) {
    %c0_i32 = arith.constant 0 : i32
    %c0_i32_0 = arith.constant 0 : i32
    %c0_i32_1 = arith.constant 0 : i32
    return %c0_i32, %c0_i32_0 : i32, i32
  }
  func.func @transform_5(%arg0: i32) -> (i32, i32) {
    %c0_i32 = arith.constant 0 : i32
    %c0_i32_0 = arith.constant 0 : i32
    return %arg0, %c0_i32 : i32, i32
  }
}

module attributes {stable_mosaic.version = 11 : i64} {
  func.func @kernel(%arg0: i32, %arg1: i32, %arg2: memref<32x8x35xf32, #tpu.memory_space<vmem>>, %arg3: memref<35x32xbf16, #tpu.memory_space<vmem>>, %arg4: memref<1x32xf32, #tpu.memory_space<vmem>>, %arg5: memref<32x32xbf16, #tpu.memory_space<vmem>>, %arg6: memref<1x32xf32, #tpu.memory_space<vmem>>, %arg7: memref<32x32xbf16, #tpu.memory_space<vmem>>, %arg8: memref<1x32xf32, #tpu.memory_space<vmem>>, %arg9: memref<32x1x32xbf16, #tpu.memory_space<vmem>>, %arg10: memref<32x32xf32, #tpu.memory_space<vmem>>) attributes {dimension_semantics = [#tpu.dimension_semantics<parallel>, #tpu.dimension_semantics<arbitrary>], iteration_bounds = array<i64: 2, 1>, scalar_prefetch = 0 : i64, scratch_operands = 1 : i64, tpu.core_type = #tpu.core_type<tc>, window_params = [{transform_indices = @transform_0, window_bounds = array<i64: 32, 8, 35>}, {pipeline_mode = #tpu.pipeline_mode<synchronous>, transform_indices = @transform_1, window_bounds = array<i64: 35, 32>}, {pipeline_mode = #tpu.pipeline_mode<synchronous>, transform_indices = @transform_2, window_bounds = array<i64: 1, 32>}, {pipeline_mode = #tpu.pipeline_mode<synchronous>, transform_indices = @transform_3, window_bounds = array<i64: 32, 32>}, {pipeline_mode = #tpu.pipeline_mode<synchronous>, transform_indices = @transform_4, window_bounds = array<i64: 1, 32>}, {pipeline_mode = #tpu.pipeline_mode<synchronous>, transform_indices = @transform_5, window_bounds = array<i64: 32, 32>}, {pipeline_mode = #tpu.pipeline_mode<synchronous>, transform_indices = @transform_6, window_bounds = array<i64: 1, 32>}, {transform_indices = @transform_7, window_bounds = array<i64: 32, 1, 32>}]} {
    %c0 = arith.constant 0 : index
    %c0_0 = arith.constant 0 : index
    %c0_1 = arith.constant 0 : index
    %0 = vector.load %arg2[%c0, %c0_0, %c0_1] : memref<32x8x35xf32, #tpu.memory_space<vmem>>, vector<32x8x35xf32>
    %1 = vector.shape_cast %0 : vector<32x8x35xf32> to vector<256x35xf32>
    %c0_2 = arith.constant 0 : index
    %c0_3 = arith.constant 0 : index
    %2 = vector.load %arg3[%c0_2, %c0_3] : memref<35x32xbf16, #tpu.memory_space<vmem>>, vector<35x32xbf16>
    %3 = arith.truncf %1 : vector<256x35xf32> to vector<256x35xbf16>
    %cst = arith.constant dense<0.000000e+00> : vector<256x32xf32>
    %4 = tpu.matmul %3, %2, %cst {dimension_numbers = #tpu.dot_dimension_numbers<[1], [0], [0], [1], [0, 0, 1, 1], [], []>} : vector<256x35xbf16>, vector<35x32xbf16>, vector<256x32xf32> -> vector<256x32xf32>
    %c0_4 = arith.constant 0 : index
    %c0_5 = arith.constant 0 : index
    %5 = vector.load %arg4[%c0_4, %c0_5] : memref<1x32xf32, #tpu.memory_space<vmem>>, vector<1x32xf32>
    %6 = vector.broadcast %5 : vector<1x32xf32> to vector<256x32xf32>
    %7 = arith.addf %4, %6 : vector<256x32xf32>
    %cst_6 = arith.constant 0.000000e+00 : f32
    %8 = vector.broadcast %cst_6 : f32 to vector<256x32xf32>
    %9 = arith.maximumf %7, %8 : vector<256x32xf32>
    %c0_7 = arith.constant 0 : index
    %c0_8 = arith.constant 0 : index
    %10 = vector.load %arg5[%c0_7, %c0_8] : memref<32x32xbf16, #tpu.memory_space<vmem>>, vector<32x32xbf16>
    %c0_9 = arith.constant 0 : index
    %c0_10 = arith.constant 0 : index
    %11 = vector.load %arg6[%c0_9, %c0_10] : memref<1x32xf32, #tpu.memory_space<vmem>>, vector<1x32xf32>
    %c0_11 = arith.constant 0 : index
    %c0_12 = arith.constant 0 : index
    %12 = vector.load %arg7[%c0_11, %c0_12] : memref<32x32xbf16, #tpu.memory_space<vmem>>, vector<32x32xbf16>
    %c0_13 = arith.constant 0 : index
    %c0_14 = arith.constant 0 : index
    %13 = vector.load %arg8[%c0_13, %c0_14] : memref<1x32xf32, #tpu.memory_space<vmem>>, vector<1x32xf32>
    %14 = arith.truncf %9 : vector<256x32xf32> to vector<256x32xbf16>
    %cst_15 = arith.constant dense<0.000000e+00> : vector<256x32xf32>
    %15 = tpu.matmul %14, %10, %cst_15 {dimension_numbers = #tpu.dot_dimension_numbers<[1], [0], [0], [1], [0, 0, 1, 1], [], []>} : vector<256x32xbf16>, vector<32x32xbf16>, vector<256x32xf32> -> vector<256x32xf32>
    %16 = vector.broadcast %11 : vector<1x32xf32> to vector<256x32xf32>
    %17 = arith.addf %15, %16 : vector<256x32xf32>
    %cst_16 = arith.constant 0.000000e+00 : f32
    %18 = vector.broadcast %cst_16 : f32 to vector<256x32xf32>
    %19 = arith.maximumf %17, %18 : vector<256x32xf32>
    %20 = arith.truncf %19 : vector<256x32xf32> to vector<256x32xbf16>
    %cst_17 = arith.constant dense<0.000000e+00> : vector<256x32xf32>
    %21 = tpu.matmul %20, %12, %cst_17 {dimension_numbers = #tpu.dot_dimension_numbers<[1], [0], [0], [1], [0, 0, 1, 1], [], []>} : vector<256x32xbf16>, vector<32x32xbf16>, vector<256x32xf32> -> vector<256x32xf32>
    %22 = vector.broadcast %13 : vector<1x32xf32> to vector<256x32xf32>
    %23 = arith.addf %21, %22 : vector<256x32xf32>
    %24 = arith.addf %23, %9 : vector<256x32xf32>
    %cst_18 = arith.constant 0.000000e+00 : f32
    %25 = vector.broadcast %cst_18 : f32 to vector<256x32xf32>
    %26 = arith.maximumf %24, %25 : vector<256x32xf32>
    %27 = vector.shape_cast %26 : vector<256x32xf32> to vector<32x8x32xf32>
    %cst_19 = arith.constant dense<0xFF800000> : vector<32x32xf32>
    %28 = vector.multi_reduction <maximumf>, %27, %cst_19 [1] : vector<32x8x32xf32> to vector<32x32xf32>
    %c0_i32 = arith.constant 0 : i32
    %29 = arith.cmpi eq, %arg1, %c0_i32 : i32
    %30 = arith.extui %29 : i1 to i32
    %c0_i32_20 = arith.constant 0 : i32
    %31 = arith.cmpi ne, %30, %c0_i32_20 : i32
    scf.if %31 {
      %c0_28 = arith.constant 0 : index
      %c0_29 = arith.constant 0 : index
      %39 = vector.load %arg10[%c0_28, %c0_29] : memref<32x32xf32, #tpu.memory_space<vmem>>, vector<32x32xf32>
      tpu.vector_store %arg10[%c0_28, %c0_29], %28 {strides = array<i32>} : memref<32x32xf32, #tpu.memory_space<vmem>>, vector<32x32xf32>,
    } else {
    }
    %c0_i32_21 = arith.constant 0 : i32
    %32 = arith.cmpi sgt, %arg1, %c0_i32_21 : i32
    %33 = arith.extui %32 : i1 to i32
    %c0_i32_22 = arith.constant 0 : i32
    %34 = arith.cmpi ne, %33, %c0_i32_22 : i32
    scf.if %34 {
      %c0_28 = arith.constant 0 : index
      %c0_29 = arith.constant 0 : index
      %39 = vector.load %arg10[%c0_28, %c0_29] : memref<32x32xf32, #tpu.memory_space<vmem>>, vector<32x32xf32>
      %40 = arith.maximumf %39, %28 : vector<32x32xf32>
      %c0_30 = arith.constant 0 : index
      %c0_31 = arith.constant 0 : index
      %41 = vector.load %arg10[%c0_30, %c0_31] : memref<32x32xf32, #tpu.memory_space<vmem>>, vector<32x32xf32>
      tpu.vector_store %arg10[%c0_30, %c0_31], %40 {strides = array<i32>} : memref<32x32xf32, #tpu.memory_space<vmem>>, vector<32x32xf32>,
    } else {
    }
    %c0_23 = arith.constant 0 : index
    %c0_24 = arith.constant 0 : index
    %35 = vector.load %arg10[%c0_23, %c0_24] : memref<32x32xf32, #tpu.memory_space<vmem>>, vector<32x32xf32>
    %36 = vector.shape_cast %35 : vector<32x32xf32> to vector<32x1x32xf32>
    %37 = arith.truncf %36 : vector<32x1x32xf32> to vector<32x1x32xbf16>
    %c0_25 = arith.constant 0 : index
    %c0_26 = arith.constant 0 : index
    %c0_27 = arith.constant 0 : index
    %38 = vector.load %arg9[%c0_25, %c0_26, %c0_27] : memref<32x1x32xbf16, #tpu.memory_space<vmem>>, vector<32x1x32xbf16>
    tpu.vector_store %arg9[%c0_25, %c0_26, %c0_27], %37 {strides = array<i32>} : memref<32x1x32xbf16, #tpu.memory_space<vmem>>, vector<32x1x32xbf16>,
    return
  }
  func.func @transform_0(%arg0: i32, %arg1: i32) -> (i32, i32, i32) {
    %c0_i32 = arith.constant 0 : i32
    %c0_i32_0 = arith.constant 0 : i32
    return %arg0, %arg1, %c0_i32 : i32, i32, i32
  }
  func.func @transform_1(%arg0: i32, %arg1: i32) -> (i32, i32) {
    %c0_i32 = arith.constant 0 : i32
    %c0_i32_0 = arith.constant 0 : i32
    %c0_i32_1 = arith.constant 0 : i32
    return %c0_i32, %c0_i32_0 : i32, i32
  }
  func.func @transform_2(%arg0: i32, %arg1: i32) -> (i32, i32) {
    %c0_i32 = arith.constant 0 : i32
    %c0_i32_0 = arith.constant 0 : i32
    %c0_i32_1 = arith.constant 0 : i32
    return %c0_i32, %c0_i32_0 : i32, i32
  }
  func.func @transform_3(%arg0: i32, %arg1: i32) -> (i32, i32) {
    %c0_i32 = arith.constant 0 : i32
    %c0_i32_0 = arith.constant 0 : i32
    %c0_i32_1 = arith.constant 0 : i32
    return %c0_i32, %c0_i32_0 : i32, i32
  }
  func.func @transform_4(%arg0: i32, %arg1: i32) -> (i32, i32) {
    %c0_i32 = arith.constant 0 : i32
    %c0_i32_0 = arith.constant 0 : i32
    %c0_i32_1 = arith.constant 0 : i32
    return %c0_i32, %c0_i32_0 : i32, i32
  }
  func.func @transform_5(%arg0: i32, %arg1: i32) -> (i32, i32) {
    %c0_i32 = arith.constant 0 : i32
    %c0_i32_0 = arith.constant 0 : i32
    %c0_i32_1 = arith.constant 0 : i32
    return %c0_i32, %c0_i32_0 : i32, i32
  }
  func.func @transform_6(%arg0: i32, %arg1: i32) -> (i32, i32) {
    %c0_i32 = arith.constant 0 : i32
    %c0_i32_0 = arith.constant 0 : i32
    %c0_i32_1 = arith.constant 0 : i32
    return %c0_i32, %c0_i32_0 : i32, i32
  }
  func.func @transform_7(%arg0: i32, %arg1: i32) -> (i32, i32, i32) {
    %c0_i32 = arith.constant 0 : i32
    %c0_i32_0 = arith.constant 0 : i32
    %c0_i32_1 = arith.constant 0 : i32
    return %arg0, %c0_i32, %c0_i32_0 : i32, i32, i32
  }
}

module attributes {stable_mosaic.version = 11 : i64} {
  func.func @_neg_sqdist_kernel(%arg0: i32, %arg1: i32, %arg2: memref<1x16x3xf32, #tpu.memory_space<vmem>>, %arg3: memref<1x16x1xf32, #tpu.memory_space<vmem>>, %arg4: memref<1x3x32xf32, #tpu.memory_space<vmem>>, %arg5: memref<1x16x32xf32, #tpu.memory_space<vmem>>) attributes {dimension_semantics = [#tpu.dimension_semantics<parallel>, #tpu.dimension_semantics<parallel>], iteration_bounds = array<i64: 2, 1>, scalar_prefetch = 0 : i64, scratch_operands = 0 : i64, tpu.core_type = #tpu.core_type<tc>, window_params = [{transform_indices = @transform_0, window_bounds = array<i64: 1, 16, 3>}, {transform_indices = @transform_1, window_bounds = array<i64: 1, 16, 1>}, {transform_indices = @transform_2, window_bounds = array<i64: 1, 3, 32>}, {transform_indices = @transform_3, window_bounds = array<i64: 1, 16, 32>}]} {
    %c0 = arith.constant 0 : index
    %c0_0 = arith.constant 0 : index
    %c0_1 = arith.constant 0 : index
    %0 = vector.load %arg2[%c0, %c0_0, %c0_1] : memref<1x16x3xf32, #tpu.memory_space<vmem>>, vector<1x16x3xf32>
    %1 = vector.shape_cast %0 : vector<1x16x3xf32> to vector<16x3xf32>
    %c0_2 = arith.constant 0 : index
    %c0_3 = arith.constant 0 : index
    %c0_4 = arith.constant 0 : index
    %2 = vector.load %arg3[%c0_2, %c0_3, %c0_4] : memref<1x16x1xf32, #tpu.memory_space<vmem>>, vector<1x16x1xf32>
    %3 = vector.shape_cast %2 : vector<1x16x1xf32> to vector<16x1xf32>
    %c0_5 = arith.constant 0 : index
    %c0_6 = arith.constant 0 : index
    %c0_7 = arith.constant 0 : index
    %4 = vector.load %arg4[%c0_5, %c0_6, %c0_7] : memref<1x3x32xf32, #tpu.memory_space<vmem>>, vector<1x3x32xf32>
    %5 = vector.shape_cast %4 : vector<1x3x32xf32> to vector<3x32xf32>
    %6 = vector.extract_strided_slice %1 {offsets = [0, 0], sizes = [16, 1], strides = [1, 1]} : vector<16x3xf32> to vector<16x1xf32>
    %7 = vector.extract_strided_slice %5 {offsets = [0, 0], sizes = [1, 32], strides = [1, 1]} : vector<3x32xf32> to vector<1x32xf32>
    %8 = vector.broadcast %6 : vector<16x1xf32> to vector<16x32xf32>
    %9 = vector.broadcast %7 : vector<1x32xf32> to vector<16x32xf32>
    %10 = arith.mulf %8, %9 : vector<16x32xf32>
    %11 = vector.extract_strided_slice %1 {offsets = [0, 1], sizes = [16, 1], strides = [1, 1]} : vector<16x3xf32> to vector<16x1xf32>
    %12 = vector.extract_strided_slice %5 {offsets = [1, 0], sizes = [1, 32], strides = [1, 1]} : vector<3x32xf32> to vector<1x32xf32>
    %13 = vector.broadcast %11 : vector<16x1xf32> to vector<16x32xf32>
    %14 = vector.broadcast %12 : vector<1x32xf32> to vector<16x32xf32>
    %15 = arith.mulf %13, %14 : vector<16x32xf32>
    %16 = arith.addf %10, %15 : vector<16x32xf32>
    %17 = vector.extract_strided_slice %1 {offsets = [0, 2], sizes = [16, 1], strides = [1, 1]} : vector<16x3xf32> to vector<16x1xf32>
    %18 = vector.extract_strided_slice %5 {offsets = [2, 0], sizes = [1, 32], strides = [1, 1]} : vector<3x32xf32> to vector<1x32xf32>
    %19 = vector.broadcast %17 : vector<16x1xf32> to vector<16x32xf32>
    %20 = vector.broadcast %18 : vector<1x32xf32> to vector<16x32xf32>
    %21 = arith.mulf %19, %20 : vector<16x32xf32>
    %22 = arith.addf %16, %21 : vector<16x32xf32>
    %cst = arith.constant 2.000000e+00 : f32
    %23 = vector.broadcast %cst : f32 to vector<16x32xf32>
    %24 = arith.mulf %23, %22 : vector<16x32xf32>
    %25 = arith.mulf %5, %5 : vector<3x32xf32>
    %cst_8 = arith.constant dense<0.000000e+00> : vector<32xf32>
    %26 = vector.multi_reduction <add>, %25, %cst_8 [0] : vector<3x32xf32> to vector<32xf32>
    %27 = vector.shape_cast %26 : vector<32xf32> to vector<1x32xf32>
    %28 = vector.broadcast %3 : vector<16x1xf32> to vector<16x32xf32>
    %29 = arith.subf %24, %28 : vector<16x32xf32>
    %30 = vector.broadcast %27 : vector<1x32xf32> to vector<16x32xf32>
    %31 = arith.subf %29, %30 : vector<16x32xf32>
    %cst_9 = arith.constant 0.000000e+00 : f32
    %32 = vector.broadcast %cst_9 : f32 to vector<16x32xf32>
    %33 = arith.minimumf %31, %32 : vector<16x32xf32>
    %c0_10 = arith.constant 0 : index
    %c0_11 = arith.constant 0 : index
    %c0_12 = arith.constant 0 : index
    %34 = vector.load %arg5[%c0_10, %c0_11, %c0_12] : memref<1x16x32xf32, #tpu.memory_space<vmem>>, vector<1x16x32xf32>
    %35 = vector.shape_cast %34 : vector<1x16x32xf32> to vector<16x32xf32>
    %36 = vector.shape_cast %33 : vector<16x32xf32> to vector<1x16x32xf32>
    tpu.vector_store %arg5[%c0_10, %c0_11, %c0_12], %36 {strides = array<i32>} : memref<1x16x32xf32, #tpu.memory_space<vmem>>, vector<1x16x32xf32>,
    return
  }
  func.func @transform_0(%arg0: i32, %arg1: i32) -> (i32, i32, i32) {
    %c0_i32 = arith.constant 0 : i32
    %c0_i32_0 = arith.constant 0 : i32
    %c0_i32_1 = arith.constant 0 : i32
    return %arg0, %c0_i32, %c0_i32_0 : i32, i32, i32
  }
  func.func @transform_1(%arg0: i32, %arg1: i32) -> (i32, i32, i32) {
    %c0_i32 = arith.constant 0 : i32
    %c0_i32_0 = arith.constant 0 : i32
    %c0_i32_1 = arith.constant 0 : i32
    return %arg0, %c0_i32, %c0_i32_0 : i32, i32, i32
  }
  func.func @transform_2(%arg0: i32, %arg1: i32) -> (i32, i32, i32) {
    %c0_i32 = arith.constant 0 : i32
    %c0_i32_0 = arith.constant 0 : i32
    return %arg0, %c0_i32, %arg1 : i32, i32, i32
  }
  func.func @transform_3(%arg0: i32, %arg1: i32) -> (i32, i32, i32) {
    %c0_i32 = arith.constant 0 : i32
    %c0_i32_0 = arith.constant 0 : i32
    return %arg0, %c0_i32, %arg1 : i32, i32, i32
  }
}

module attributes {stable_mosaic.version = 11 : i64} {
  func.func @kernel(%arg0: i32, %arg1: memref<16x64xbf16, #tpu.memory_space<vmem>>, %arg2: memref<64x64xbf16, #tpu.memory_space<vmem>>, %arg3: memref<1x64xf32, #tpu.memory_space<vmem>>, %arg4: memref<64x64xbf16, #tpu.memory_space<vmem>>, %arg5: memref<1x64xf32, #tpu.memory_space<vmem>>, %arg6: memref<16x64xbf16, #tpu.memory_space<vmem>>) attributes {dimension_semantics = [#tpu.dimension_semantics<parallel>], iteration_bounds = array<i64: 2>, scalar_prefetch = 0 : i64, scratch_operands = 0 : i64, tpu.core_type = #tpu.core_type<tc>, window_params = [{transform_indices = @transform_0, window_bounds = array<i64: 16, 64>}, {pipeline_mode = #tpu.pipeline_mode<synchronous>, transform_indices = @transform_1, window_bounds = array<i64: 64, 64>}, {pipeline_mode = #tpu.pipeline_mode<synchronous>, transform_indices = @transform_2, window_bounds = array<i64: 1, 64>}, {pipeline_mode = #tpu.pipeline_mode<synchronous>, transform_indices = @transform_3, window_bounds = array<i64: 64, 64>}, {pipeline_mode = #tpu.pipeline_mode<synchronous>, transform_indices = @transform_4, window_bounds = array<i64: 1, 64>}, {transform_indices = @transform_5, window_bounds = array<i64: 16, 64>}]} {
    %c0 = arith.constant 0 : index
    %c0_0 = arith.constant 0 : index
    %0 = vector.load %arg1[%c0, %c0_0] : memref<16x64xbf16, #tpu.memory_space<vmem>>, vector<16x64xbf16>
    %c0_1 = arith.constant 0 : index
    %c0_2 = arith.constant 0 : index
    %1 = vector.load %arg2[%c0_1, %c0_2] : memref<64x64xbf16, #tpu.memory_space<vmem>>, vector<64x64xbf16>
    %c0_3 = arith.constant 0 : index
    %c0_4 = arith.constant 0 : index
    %2 = vector.load %arg3[%c0_3, %c0_4] : memref<1x64xf32, #tpu.memory_space<vmem>>, vector<1x64xf32>
    %c0_5 = arith.constant 0 : index
    %c0_6 = arith.constant 0 : index
    %3 = vector.load %arg4[%c0_5, %c0_6] : memref<64x64xbf16, #tpu.memory_space<vmem>>, vector<64x64xbf16>
    %c0_7 = arith.constant 0 : index
    %c0_8 = arith.constant 0 : index
    %4 = vector.load %arg5[%c0_7, %c0_8] : memref<1x64xf32, #tpu.memory_space<vmem>>, vector<1x64xf32>
    %5 = arith.extf %0 : vector<16x64xbf16> to vector<16x64xf32>
    %cst = arith.constant dense<0.000000e+00> : vector<16x64xf32>
    %6 = tpu.matmul %0, %1, %cst {dimension_numbers = #tpu.dot_dimension_numbers<[1], [0], [0], [1], [0, 0, 1, 1], [], []>} : vector<16x64xbf16>, vector<64x64xbf16>, vector<16x64xf32> -> vector<16x64xf32>
    %7 = vector.broadcast %2 : vector<1x64xf32> to vector<16x64xf32>
    %8 = arith.addf %6, %7 : vector<16x64xf32>
    %cst_9 = arith.constant 0.000000e+00 : f32
    %9 = vector.broadcast %cst_9 : f32 to vector<16x64xf32>
    %10 = arith.maximumf %8, %9 : vector<16x64xf32>
    %11 = arith.truncf %10 : vector<16x64xf32> to vector<16x64xbf16>
    %cst_10 = arith.constant dense<0.000000e+00> : vector<16x64xf32>
    %12 = tpu.matmul %11, %3, %cst_10 {dimension_numbers = #tpu.dot_dimension_numbers<[1], [0], [0], [1], [0, 0, 1, 1], [], []>} : vector<16x64xbf16>, vector<64x64xbf16>, vector<16x64xf32> -> vector<16x64xf32>
    %13 = vector.broadcast %4 : vector<1x64xf32> to vector<16x64xf32>
    %14 = arith.addf %12, %13 : vector<16x64xf32>
    %15 = arith.addf %14, %5 : vector<16x64xf32>
    %cst_11 = arith.constant 0.000000e+00 : f32
    %16 = vector.broadcast %cst_11 : f32 to vector<16x64xf32>
    %17 = arith.maximumf %15, %16 : vector<16x64xf32>
    %18 = arith.truncf %17 : vector<16x64xf32> to vector<16x64xbf16>
    %c0_12 = arith.constant 0 : index
    %c0_13 = arith.constant 0 : index
    %19 = vector.load %arg6[%c0_12, %c0_13] : memref<16x64xbf16, #tpu.memory_space<vmem>>, vector<16x64xbf16>
    tpu.vector_store %arg6[%c0_12, %c0_13], %18 {strides = array<i32>} : memref<16x64xbf16, #tpu.memory_space<vmem>>, vector<16x64xbf16>,
    return
  }
  func.func @transform_0(%arg0: i32) -> (i32, i32) {
    %c0_i32 = arith.constant 0 : i32
    %c0_i32_0 = arith.constant 0 : i32
    return %arg0, %c0_i32 : i32, i32
  }
  func.func @transform_1(%arg0: i32) -> (i32, i32) {
    %c0_i32 = arith.constant 0 : i32
    %c0_i32_0 = arith.constant 0 : i32
    %c0_i32_1 = arith.constant 0 : i32
    return %c0_i32, %c0_i32_0 : i32, i32
  }
  func.func @transform_2(%arg0: i32) -> (i32, i32) {
    %c0_i32 = arith.constant 0 : i32
    %c0_i32_0 = arith.constant 0 : i32
    %c0_i32_1 = arith.constant 0 : i32
    return %c0_i32, %c0_i32_0 : i32, i32
  }
  func.func @transform_3(%arg0: i32) -> (i32, i32) {
    %c0_i32 = arith.constant 0 : i32
    %c0_i32_0 = arith.constant 0 : i32
    %c0_i32_1 = arith.constant 0 : i32
    return %c0_i32, %c0_i32_0 : i32, i32
  }
  func.func @transform_4(%arg0: i32) -> (i32, i32) {
    %c0_i32 = arith.constant 0 : i32
    %c0_i32_0 = arith.constant 0 : i32
    %c0_i32_1 = arith.constant 0 : i32
    return %c0_i32, %c0_i32_0 : i32, i32
  }
  func.func @transform_5(%arg0: i32) -> (i32, i32) {
    %c0_i32 = arith.constant 0 : i32
    %c0_i32_0 = arith.constant 0 : i32
    return %arg0, %c0_i32 : i32, i32
  }
}

module attributes {stable_mosaic.version = 11 : i64} {
  func.func @kernel(%arg0: i32, %arg1: i32, %arg2: memref<16x8x67xf32, #tpu.memory_space<vmem>>, %arg3: memref<67x64xbf16, #tpu.memory_space<vmem>>, %arg4: memref<1x64xf32, #tpu.memory_space<vmem>>, %arg5: memref<64x64xbf16, #tpu.memory_space<vmem>>, %arg6: memref<1x64xf32, #tpu.memory_space<vmem>>, %arg7: memref<64x64xbf16, #tpu.memory_space<vmem>>, %arg8: memref<1x64xf32, #tpu.memory_space<vmem>>, %arg9: memref<16x1x64xbf16, #tpu.memory_space<vmem>>, %arg10: memref<16x64xf32, #tpu.memory_space<vmem>>) attributes {dimension_semantics = [#tpu.dimension_semantics<parallel>, #tpu.dimension_semantics<arbitrary>], iteration_bounds = array<i64: 2, 1>, scalar_prefetch = 0 : i64, scratch_operands = 1 : i64, tpu.core_type = #tpu.core_type<tc>, window_params = [{transform_indices = @transform_0, window_bounds = array<i64: 16, 8, 67>}, {pipeline_mode = #tpu.pipeline_mode<synchronous>, transform_indices = @transform_1, window_bounds = array<i64: 67, 64>}, {pipeline_mode = #tpu.pipeline_mode<synchronous>, transform_indices = @transform_2, window_bounds = array<i64: 1, 64>}, {pipeline_mode = #tpu.pipeline_mode<synchronous>, transform_indices = @transform_3, window_bounds = array<i64: 64, 64>}, {pipeline_mode = #tpu.pipeline_mode<synchronous>, transform_indices = @transform_4, window_bounds = array<i64: 1, 64>}, {pipeline_mode = #tpu.pipeline_mode<synchronous>, transform_indices = @transform_5, window_bounds = array<i64: 64, 64>}, {pipeline_mode = #tpu.pipeline_mode<synchronous>, transform_indices = @transform_6, window_bounds = array<i64: 1, 64>}, {transform_indices = @transform_7, window_bounds = array<i64: 16, 1, 64>}]} {
    %c0 = arith.constant 0 : index
    %c0_0 = arith.constant 0 : index
    %c0_1 = arith.constant 0 : index
    %0 = vector.load %arg2[%c0, %c0_0, %c0_1] : memref<16x8x67xf32, #tpu.memory_space<vmem>>, vector<16x8x67xf32>
    %1 = vector.shape_cast %0 : vector<16x8x67xf32> to vector<128x67xf32>
    %c0_2 = arith.constant 0 : index
    %c0_3 = arith.constant 0 : index
    %2 = vector.load %arg3[%c0_2, %c0_3] : memref<67x64xbf16, #tpu.memory_space<vmem>>, vector<67x64xbf16>
    %3 = arith.truncf %1 : vector<128x67xf32> to vector<128x67xbf16>
    %cst = arith.constant dense<0.000000e+00> : vector<128x64xf32>
    %4 = tpu.matmul %3, %2, %cst {dimension_numbers = #tpu.dot_dimension_numbers<[1], [0], [0], [1], [0, 0, 1, 1], [], []>} : vector<128x67xbf16>, vector<67x64xbf16>, vector<128x64xf32> -> vector<128x64xf32>
    %c0_4 = arith.constant 0 : index
    %c0_5 = arith.constant 0 : index
    %5 = vector.load %arg4[%c0_4, %c0_5] : memref<1x64xf32, #tpu.memory_space<vmem>>, vector<1x64xf32>
    %6 = vector.broadcast %5 : vector<1x64xf32> to vector<128x64xf32>
    %7 = arith.addf %4, %6 : vector<128x64xf32>
    %cst_6 = arith.constant 0.000000e+00 : f32
    %8 = vector.broadcast %cst_6 : f32 to vector<128x64xf32>
    %9 = arith.maximumf %7, %8 : vector<128x64xf32>
    %c0_7 = arith.constant 0 : index
    %c0_8 = arith.constant 0 : index
    %10 = vector.load %arg5[%c0_7, %c0_8] : memref<64x64xbf16, #tpu.memory_space<vmem>>, vector<64x64xbf16>
    %c0_9 = arith.constant 0 : index
    %c0_10 = arith.constant 0 : index
    %11 = vector.load %arg6[%c0_9, %c0_10] : memref<1x64xf32, #tpu.memory_space<vmem>>, vector<1x64xf32>
    %c0_11 = arith.constant 0 : index
    %c0_12 = arith.constant 0 : index
    %12 = vector.load %arg7[%c0_11, %c0_12] : memref<64x64xbf16, #tpu.memory_space<vmem>>, vector<64x64xbf16>
    %c0_13 = arith.constant 0 : index
    %c0_14 = arith.constant 0 : index
    %13 = vector.load %arg8[%c0_13, %c0_14] : memref<1x64xf32, #tpu.memory_space<vmem>>, vector<1x64xf32>
    %14 = arith.truncf %9 : vector<128x64xf32> to vector<128x64xbf16>
    %cst_15 = arith.constant dense<0.000000e+00> : vector<128x64xf32>
    %15 = tpu.matmul %14, %10, %cst_15 {dimension_numbers = #tpu.dot_dimension_numbers<[1], [0], [0], [1], [0, 0, 1, 1], [], []>} : vector<128x64xbf16>, vector<64x64xbf16>, vector<128x64xf32> -> vector<128x64xf32>
    %16 = vector.broadcast %11 : vector<1x64xf32> to vector<128x64xf32>
    %17 = arith.addf %15, %16 : vector<128x64xf32>
    %cst_16 = arith.constant 0.000000e+00 : f32
    %18 = vector.broadcast %cst_16 : f32 to vector<128x64xf32>
    %19 = arith.maximumf %17, %18 : vector<128x64xf32>
    %20 = arith.truncf %19 : vector<128x64xf32> to vector<128x64xbf16>
    %cst_17 = arith.constant dense<0.000000e+00> : vector<128x64xf32>
    %21 = tpu.matmul %20, %12, %cst_17 {dimension_numbers = #tpu.dot_dimension_numbers<[1], [0], [0], [1], [0, 0, 1, 1], [], []>} : vector<128x64xbf16>, vector<64x64xbf16>, vector<128x64xf32> -> vector<128x64xf32>
    %22 = vector.broadcast %13 : vector<1x64xf32> to vector<128x64xf32>
    %23 = arith.addf %21, %22 : vector<128x64xf32>
    %24 = arith.addf %23, %9 : vector<128x64xf32>
    %cst_18 = arith.constant 0.000000e+00 : f32
    %25 = vector.broadcast %cst_18 : f32 to vector<128x64xf32>
    %26 = arith.maximumf %24, %25 : vector<128x64xf32>
    %27 = vector.shape_cast %26 : vector<128x64xf32> to vector<16x8x64xf32>
    %cst_19 = arith.constant dense<0xFF800000> : vector<16x64xf32>
    %28 = vector.multi_reduction <maximumf>, %27, %cst_19 [1] : vector<16x8x64xf32> to vector<16x64xf32>
    %c0_i32 = arith.constant 0 : i32
    %29 = arith.cmpi eq, %arg1, %c0_i32 : i32
    %30 = arith.extui %29 : i1 to i32
    %c0_i32_20 = arith.constant 0 : i32
    %31 = arith.cmpi ne, %30, %c0_i32_20 : i32
    scf.if %31 {
      %c0_28 = arith.constant 0 : index
      %c0_29 = arith.constant 0 : index
      %39 = vector.load %arg10[%c0_28, %c0_29] : memref<16x64xf32, #tpu.memory_space<vmem>>, vector<16x64xf32>
      tpu.vector_store %arg10[%c0_28, %c0_29], %28 {strides = array<i32>} : memref<16x64xf32, #tpu.memory_space<vmem>>, vector<16x64xf32>,
    } else {
    }
    %c0_i32_21 = arith.constant 0 : i32
    %32 = arith.cmpi sgt, %arg1, %c0_i32_21 : i32
    %33 = arith.extui %32 : i1 to i32
    %c0_i32_22 = arith.constant 0 : i32
    %34 = arith.cmpi ne, %33, %c0_i32_22 : i32
    scf.if %34 {
      %c0_28 = arith.constant 0 : index
      %c0_29 = arith.constant 0 : index
      %39 = vector.load %arg10[%c0_28, %c0_29] : memref<16x64xf32, #tpu.memory_space<vmem>>, vector<16x64xf32>
      %40 = arith.maximumf %39, %28 : vector<16x64xf32>
      %c0_30 = arith.constant 0 : index
      %c0_31 = arith.constant 0 : index
      %41 = vector.load %arg10[%c0_30, %c0_31] : memref<16x64xf32, #tpu.memory_space<vmem>>, vector<16x64xf32>
      tpu.vector_store %arg10[%c0_30, %c0_31], %40 {strides = array<i32>} : memref<16x64xf32, #tpu.memory_space<vmem>>, vector<16x64xf32>,
    } else {
    }
    %c0_23 = arith.constant 0 : index
    %c0_24 = arith.constant 0 : index
    %35 = vector.load %arg10[%c0_23, %c0_24] : memref<16x64xf32, #tpu.memory_space<vmem>>, vector<16x64xf32>
    %36 = vector.shape_cast %35 : vector<16x64xf32> to vector<16x1x64xf32>
    %37 = arith.truncf %36 : vector<16x1x64xf32> to vector<16x1x64xbf16>
    %c0_25 = arith.constant 0 : index
    %c0_26 = arith.constant 0 : index
    %c0_27 = arith.constant 0 : index
    %38 = vector.load %arg9[%c0_25, %c0_26, %c0_27] : memref<16x1x64xbf16, #tpu.memory_space<vmem>>, vector<16x1x64xbf16>
    tpu.vector_store %arg9[%c0_25, %c0_26, %c0_27], %37 {strides = array<i32>} : memref<16x1x64xbf16, #tpu.memory_space<vmem>>, vector<16x1x64xbf16>,
    return
  }
  func.func @transform_0(%arg0: i32, %arg1: i32) -> (i32, i32, i32) {
    %c0_i32 = arith.constant 0 : i32
    %c0_i32_0 = arith.constant 0 : i32
    return %arg0, %arg1, %c0_i32 : i32, i32, i32
  }
  func.func @transform_1(%arg0: i32, %arg1: i32) -> (i32, i32) {
    %c0_i32 = arith.constant 0 : i32
    %c0_i32_0 = arith.constant 0 : i32
    %c0_i32_1 = arith.constant 0 : i32
    return %c0_i32, %c0_i32_0 : i32, i32
  }
  func.func @transform_2(%arg0: i32, %arg1: i32) -> (i32, i32) {
    %c0_i32 = arith.constant 0 : i32
    %c0_i32_0 = arith.constant 0 : i32
    %c0_i32_1 = arith.constant 0 : i32
    return %c0_i32, %c0_i32_0 : i32, i32
  }
  func.func @transform_3(%arg0: i32, %arg1: i32) -> (i32, i32) {
    %c0_i32 = arith.constant 0 : i32
    %c0_i32_0 = arith.constant 0 : i32
    %c0_i32_1 = arith.constant 0 : i32
    return %c0_i32, %c0_i32_0 : i32, i32
  }
  func.func @transform_4(%arg0: i32, %arg1: i32) -> (i32, i32) {
    %c0_i32 = arith.constant 0 : i32
    %c0_i32_0 = arith.constant 0 : i32
    %c0_i32_1 = arith.constant 0 : i32
    return %c0_i32, %c0_i32_0 : i32, i32
  }
  func.func @transform_5(%arg0: i32, %arg1: i32) -> (i32, i32) {
    %c0_i32 = arith.constant 0 : i32
    %c0_i32_0 = arith.constant 0 : i32
    %c0_i32_1 = arith.constant 0 : i32
    return %c0_i32, %c0_i32_0 : i32, i32
  }
  func.func @transform_6(%arg0: i32, %arg1: i32) -> (i32, i32) {
    %c0_i32 = arith.constant 0 : i32
    %c0_i32_0 = arith.constant 0 : i32
    %c0_i32_1 = arith.constant 0 : i32
    return %c0_i32, %c0_i32_0 : i32, i32
  }
  func.func @transform_7(%arg0: i32, %arg1: i32) -> (i32, i32, i32) {
    %c0_i32 = arith.constant 0 : i32
    %c0_i32_0 = arith.constant 0 : i32
    %c0_i32_1 = arith.constant 0 : i32
    return %arg0, %c0_i32, %c0_i32_0 : i32, i32, i32
  }
}

module attributes {stable_mosaic.version = 11 : i64} {
  func.func @kernel(%arg0: i32, %arg1: i32, %arg2: memref<1x32x32xbf16, #tpu.memory_space<vmem>>, %arg3: memref<32x16xbf16, #tpu.memory_space<vmem>>, %arg4: memref<1x16xf32, #tpu.memory_space<vmem>>, %arg5: memref<1x1x16xbf16, #tpu.memory_space<vmem>>, %arg6: memref<1x16xf32, #tpu.memory_space<vmem>>) attributes {dimension_semantics = [#tpu.dimension_semantics<parallel>, #tpu.dimension_semantics<arbitrary>], iteration_bounds = array<i64: 2, 1>, scalar_prefetch = 0 : i64, scratch_operands = 1 : i64, tpu.core_type = #tpu.core_type<tc>, window_params = [{transform_indices = @transform_0, window_bounds = array<i64: 1, 32, 32>}, {pipeline_mode = #tpu.pipeline_mode<synchronous>, transform_indices = @transform_1, window_bounds = array<i64: 32, 16>}, {pipeline_mode = #tpu.pipeline_mode<synchronous>, transform_indices = @transform_2, window_bounds = array<i64: 1, 16>}, {transform_indices = @transform_3, window_bounds = array<i64: 1, 1, 16>}]} {
    %c0 = arith.constant 0 : index
    %c0_0 = arith.constant 0 : index
    %c0_1 = arith.constant 0 : index
    %0 = vector.load %arg2[%c0, %c0_0, %c0_1] : memref<1x32x32xbf16, #tpu.memory_space<vmem>>, vector<1x32x32xbf16>
    %1 = vector.shape_cast %0 : vector<1x32x32xbf16> to vector<32x32xbf16>
    %c0_2 = arith.constant 0 : index
    %c0_3 = arith.constant 0 : index
    %2 = vector.load %arg3[%c0_2, %c0_3] : memref<32x16xbf16, #tpu.memory_space<vmem>>, vector<32x16xbf16>
    %cst = arith.constant dense<0.000000e+00> : vector<32x16xf32>
    %3 = tpu.matmul %1, %2, %cst {dimension_numbers = #tpu.dot_dimension_numbers<[1], [0], [0], [1], [0, 0, 1, 1], [], []>} : vector<32x32xbf16>, vector<32x16xbf16>, vector<32x16xf32> -> vector<32x16xf32>
    %c0_4 = arith.constant 0 : index
    %c0_5 = arith.constant 0 : index
    %4 = vector.load %arg4[%c0_4, %c0_5] : memref<1x16xf32, #tpu.memory_space<vmem>>, vector<1x16xf32>
    %5 = vector.broadcast %4 : vector<1x16xf32> to vector<32x16xf32>
    %6 = arith.addf %3, %5 : vector<32x16xf32>
    %cst_6 = arith.constant 0.000000e+00 : f32
    %7 = vector.broadcast %cst_6 : f32 to vector<32x16xf32>
    %8 = arith.maximumf %6, %7 : vector<32x16xf32>
    %9 = vector.shape_cast %8 : vector<32x16xf32> to vector<1x32x16xf32>
    %cst_7 = arith.constant dense<0xFF800000> : vector<1x16xf32>
    %10 = vector.multi_reduction <maximumf>, %9, %cst_7 [1] : vector<1x32x16xf32> to vector<1x16xf32>
    %c0_i32 = arith.constant 0 : i32
    %11 = arith.cmpi eq, %arg1, %c0_i32 : i32
    %12 = arith.extui %11 : i1 to i32
    %c0_i32_8 = arith.constant 0 : i32
    %13 = arith.cmpi ne, %12, %c0_i32_8 : i32
    scf.if %13 {
      %c0_16 = arith.constant 0 : index
      %c0_17 = arith.constant 0 : index
      %21 = vector.load %arg6[%c0_16, %c0_17] : memref<1x16xf32, #tpu.memory_space<vmem>>, vector<1x16xf32>
      tpu.vector_store %arg6[%c0_16, %c0_17], %10 {strides = array<i32>} : memref<1x16xf32, #tpu.memory_space<vmem>>, vector<1x16xf32>,
    } else {
    }
    %c0_i32_9 = arith.constant 0 : i32
    %14 = arith.cmpi sgt, %arg1, %c0_i32_9 : i32
    %15 = arith.extui %14 : i1 to i32
    %c0_i32_10 = arith.constant 0 : i32
    %16 = arith.cmpi ne, %15, %c0_i32_10 : i32
    scf.if %16 {
      %c0_16 = arith.constant 0 : index
      %c0_17 = arith.constant 0 : index
      %21 = vector.load %arg6[%c0_16, %c0_17] : memref<1x16xf32, #tpu.memory_space<vmem>>, vector<1x16xf32>
      %22 = arith.maximumf %21, %10 : vector<1x16xf32>
      %c0_18 = arith.constant 0 : index
      %c0_19 = arith.constant 0 : index
      %23 = vector.load %arg6[%c0_18, %c0_19] : memref<1x16xf32, #tpu.memory_space<vmem>>, vector<1x16xf32>
      tpu.vector_store %arg6[%c0_18, %c0_19], %22 {strides = array<i32>} : memref<1x16xf32, #tpu.memory_space<vmem>>, vector<1x16xf32>,
    } else {
    }
    %c0_11 = arith.constant 0 : index
    %c0_12 = arith.constant 0 : index
    %17 = vector.load %arg6[%c0_11, %c0_12] : memref<1x16xf32, #tpu.memory_space<vmem>>, vector<1x16xf32>
    %18 = vector.shape_cast %17 : vector<1x16xf32> to vector<1x1x16xf32>
    %19 = arith.truncf %18 : vector<1x1x16xf32> to vector<1x1x16xbf16>
    %c0_13 = arith.constant 0 : index
    %c0_14 = arith.constant 0 : index
    %c0_15 = arith.constant 0 : index
    %20 = vector.load %arg5[%c0_13, %c0_14, %c0_15] : memref<1x1x16xbf16, #tpu.memory_space<vmem>>, vector<1x1x16xbf16>
    tpu.vector_store %arg5[%c0_13, %c0_14, %c0_15], %19 {strides = array<i32>} : memref<1x1x16xbf16, #tpu.memory_space<vmem>>, vector<1x1x16xbf16>,
    return
  }
  func.func @transform_0(%arg0: i32, %arg1: i32) -> (i32, i32, i32) {
    %c0_i32 = arith.constant 0 : i32
    %c0_i32_0 = arith.constant 0 : i32
    return %arg0, %arg1, %c0_i32 : i32, i32, i32
  }
  func.func @transform_1(%arg0: i32, %arg1: i32) -> (i32, i32) {
    %c0_i32 = arith.constant 0 : i32
    %c0_i32_0 = arith.constant 0 : i32
    %c0_i32_1 = arith.constant 0 : i32
    return %c0_i32, %c0_i32_0 : i32, i32
  }
  func.func @transform_2(%arg0: i32, %arg1: i32) -> (i32, i32) {
    %c0_i32 = arith.constant 0 : i32
    %c0_i32_0 = arith.constant 0 : i32
    %c0_i32_1 = arith.constant 0 : i32
    return %c0_i32, %c0_i32_0 : i32, i32
  }
  func.func @transform_3(%arg0: i32, %arg1: i32) -> (i32, i32, i32) {
    %c0_i32 = arith.constant 0 : i32
    %c0_i32_0 = arith.constant 0 : i32
    %c0_i32_1 = arith.constant 0 : i32
    return %arg0, %c0_i32, %c0_i32_0 : i32, i32, i32
  }
}

module attributes {stable_mosaic.version = 11 : i64} {
  func.func @kernel(%arg0: i32, %arg1: i32, %arg2: memref<1x16x64xbf16, #tpu.memory_space<vmem>>, %arg3: memref<64x16xbf16, #tpu.memory_space<vmem>>, %arg4: memref<1x16xf32, #tpu.memory_space<vmem>>, %arg5: memref<1x1x16xbf16, #tpu.memory_space<vmem>>, %arg6: memref<1x16xf32, #tpu.memory_space<vmem>>) attributes {dimension_semantics = [#tpu.dimension_semantics<parallel>, #tpu.dimension_semantics<arbitrary>], iteration_bounds = array<i64: 2, 1>, scalar_prefetch = 0 : i64, scratch_operands = 1 : i64, tpu.core_type = #tpu.core_type<tc>, window_params = [{transform_indices = @transform_0, window_bounds = array<i64: 1, 16, 64>}, {pipeline_mode = #tpu.pipeline_mode<synchronous>, transform_indices = @transform_1, window_bounds = array<i64: 64, 16>}, {pipeline_mode = #tpu.pipeline_mode<synchronous>, transform_indices = @transform_2, window_bounds = array<i64: 1, 16>}, {transform_indices = @transform_3, window_bounds = array<i64: 1, 1, 16>}]} {
    %c0 = arith.constant 0 : index
    %c0_0 = arith.constant 0 : index
    %c0_1 = arith.constant 0 : index
    %0 = vector.load %arg2[%c0, %c0_0, %c0_1] : memref<1x16x64xbf16, #tpu.memory_space<vmem>>, vector<1x16x64xbf16>
    %1 = vector.shape_cast %0 : vector<1x16x64xbf16> to vector<16x64xbf16>
    %c0_2 = arith.constant 0 : index
    %c0_3 = arith.constant 0 : index
    %2 = vector.load %arg3[%c0_2, %c0_3] : memref<64x16xbf16, #tpu.memory_space<vmem>>, vector<64x16xbf16>
    %cst = arith.constant dense<0.000000e+00> : vector<16x16xf32>
    %3 = tpu.matmul %1, %2, %cst {dimension_numbers = #tpu.dot_dimension_numbers<[1], [0], [0], [1], [0, 0, 1, 1], [], []>} : vector<16x64xbf16>, vector<64x16xbf16>, vector<16x16xf32> -> vector<16x16xf32>
    %c0_4 = arith.constant 0 : index
    %c0_5 = arith.constant 0 : index
    %4 = vector.load %arg4[%c0_4, %c0_5] : memref<1x16xf32, #tpu.memory_space<vmem>>, vector<1x16xf32>
    %5 = vector.broadcast %4 : vector<1x16xf32> to vector<16x16xf32>
    %6 = arith.addf %3, %5 : vector<16x16xf32>
    %cst_6 = arith.constant 0.000000e+00 : f32
    %7 = vector.broadcast %cst_6 : f32 to vector<16x16xf32>
    %8 = arith.maximumf %6, %7 : vector<16x16xf32>
    %9 = vector.shape_cast %8 : vector<16x16xf32> to vector<1x16x16xf32>
    %cst_7 = arith.constant dense<0xFF800000> : vector<1x16xf32>
    %10 = vector.multi_reduction <maximumf>, %9, %cst_7 [1] : vector<1x16x16xf32> to vector<1x16xf32>
    %c0_i32 = arith.constant 0 : i32
    %11 = arith.cmpi eq, %arg1, %c0_i32 : i32
    %12 = arith.extui %11 : i1 to i32
    %c0_i32_8 = arith.constant 0 : i32
    %13 = arith.cmpi ne, %12, %c0_i32_8 : i32
    scf.if %13 {
      %c0_16 = arith.constant 0 : index
      %c0_17 = arith.constant 0 : index
      %21 = vector.load %arg6[%c0_16, %c0_17] : memref<1x16xf32, #tpu.memory_space<vmem>>, vector<1x16xf32>
      tpu.vector_store %arg6[%c0_16, %c0_17], %10 {strides = array<i32>} : memref<1x16xf32, #tpu.memory_space<vmem>>, vector<1x16xf32>,
    } else {
    }
    %c0_i32_9 = arith.constant 0 : i32
    %14 = arith.cmpi sgt, %arg1, %c0_i32_9 : i32
    %15 = arith.extui %14 : i1 to i32
    %c0_i32_10 = arith.constant 0 : i32
    %16 = arith.cmpi ne, %15, %c0_i32_10 : i32
    scf.if %16 {
      %c0_16 = arith.constant 0 : index
      %c0_17 = arith.constant 0 : index
      %21 = vector.load %arg6[%c0_16, %c0_17] : memref<1x16xf32, #tpu.memory_space<vmem>>, vector<1x16xf32>
      %22 = arith.maximumf %21, %10 : vector<1x16xf32>
      %c0_18 = arith.constant 0 : index
      %c0_19 = arith.constant 0 : index
      %23 = vector.load %arg6[%c0_18, %c0_19] : memref<1x16xf32, #tpu.memory_space<vmem>>, vector<1x16xf32>
      tpu.vector_store %arg6[%c0_18, %c0_19], %22 {strides = array<i32>} : memref<1x16xf32, #tpu.memory_space<vmem>>, vector<1x16xf32>,
    } else {
    }
    %c0_11 = arith.constant 0 : index
    %c0_12 = arith.constant 0 : index
    %17 = vector.load %arg6[%c0_11, %c0_12] : memref<1x16xf32, #tpu.memory_space<vmem>>, vector<1x16xf32>
    %18 = vector.shape_cast %17 : vector<1x16xf32> to vector<1x1x16xf32>
    %19 = arith.truncf %18 : vector<1x1x16xf32> to vector<1x1x16xbf16>
    %c0_13 = arith.constant 0 : index
    %c0_14 = arith.constant 0 : index
    %c0_15 = arith.constant 0 : index
    %20 = vector.load %arg5[%c0_13, %c0_14, %c0_15] : memref<1x1x16xbf16, #tpu.memory_space<vmem>>, vector<1x1x16xbf16>
    tpu.vector_store %arg5[%c0_13, %c0_14, %c0_15], %19 {strides = array<i32>} : memref<1x1x16xbf16, #tpu.memory_space<vmem>>, vector<1x1x16xbf16>,
    return
  }
  func.func @transform_0(%arg0: i32, %arg1: i32) -> (i32, i32, i32) {
    %c0_i32 = arith.constant 0 : i32
    %c0_i32_0 = arith.constant 0 : i32
    return %arg0, %arg1, %c0_i32 : i32, i32, i32
  }
  func.func @transform_1(%arg0: i32, %arg1: i32) -> (i32, i32) {
    %c0_i32 = arith.constant 0 : i32
    %c0_i32_0 = arith.constant 0 : i32
    %c0_i32_1 = arith.constant 0 : i32
    return %c0_i32, %c0_i32_0 : i32, i32
  }
  func.func @transform_2(%arg0: i32, %arg1: i32) -> (i32, i32) {
    %c0_i32 = arith.constant 0 : i32
    %c0_i32_0 = arith.constant 0 : i32
    %c0_i32_1 = arith.constant 0 : i32
    return %c0_i32, %c0_i32_0 : i32, i32
  }
  func.func @transform_3(%arg0: i32, %arg1: i32) -> (i32, i32, i32) {
    %c0_i32 = arith.constant 0 : i32
    %c0_i32_0 = arith.constant 0 : i32
    %c0_i32_1 = arith.constant 0 : i32
    return %arg0, %c0_i32, %c0_i32_0 : i32, i32, i32
  }
}

module attributes {stable_mosaic.version = 11 : i64} {
  func.func @kernel(%arg0: i32, %arg1: i32, %arg2: memref<1x64x16xbf16, #tpu.memory_space<vmem>>, %arg3: memref<16x16xbf16, #tpu.memory_space<vmem>>, %arg4: memref<1x16xf32, #tpu.memory_space<vmem>>, %arg5: memref<1x1x16xbf16, #tpu.memory_space<vmem>>, %arg6: memref<1x16xf32, #tpu.memory_space<vmem>>) attributes {dimension_semantics = [#tpu.dimension_semantics<parallel>, #tpu.dimension_semantics<arbitrary>], iteration_bounds = array<i64: 2, 1>, scalar_prefetch = 0 : i64, scratch_operands = 1 : i64, tpu.core_type = #tpu.core_type<tc>, window_params = [{transform_indices = @transform_0, window_bounds = array<i64: 1, 64, 16>}, {pipeline_mode = #tpu.pipeline_mode<synchronous>, transform_indices = @transform_1, window_bounds = array<i64: 16, 16>}, {pipeline_mode = #tpu.pipeline_mode<synchronous>, transform_indices = @transform_2, window_bounds = array<i64: 1, 16>}, {transform_indices = @transform_3, window_bounds = array<i64: 1, 1, 16>}]} {
    %c0 = arith.constant 0 : index
    %c0_0 = arith.constant 0 : index
    %c0_1 = arith.constant 0 : index
    %0 = vector.load %arg2[%c0, %c0_0, %c0_1] : memref<1x64x16xbf16, #tpu.memory_space<vmem>>, vector<1x64x16xbf16>
    %1 = vector.shape_cast %0 : vector<1x64x16xbf16> to vector<64x16xbf16>
    %c0_2 = arith.constant 0 : index
    %c0_3 = arith.constant 0 : index
    %2 = vector.load %arg3[%c0_2, %c0_3] : memref<16x16xbf16, #tpu.memory_space<vmem>>, vector<16x16xbf16>
    %cst = arith.constant dense<0.000000e+00> : vector<64x16xf32>
    %3 = tpu.matmul %1, %2, %cst {dimension_numbers = #tpu.dot_dimension_numbers<[1], [0], [0], [1], [0, 0, 1, 1], [], []>} : vector<64x16xbf16>, vector<16x16xbf16>, vector<64x16xf32> -> vector<64x16xf32>
    %c0_4 = arith.constant 0 : index
    %c0_5 = arith.constant 0 : index
    %4 = vector.load %arg4[%c0_4, %c0_5] : memref<1x16xf32, #tpu.memory_space<vmem>>, vector<1x16xf32>
    %5 = vector.broadcast %4 : vector<1x16xf32> to vector<64x16xf32>
    %6 = arith.addf %3, %5 : vector<64x16xf32>
    %cst_6 = arith.constant 0.000000e+00 : f32
    %7 = vector.broadcast %cst_6 : f32 to vector<64x16xf32>
    %8 = arith.maximumf %6, %7 : vector<64x16xf32>
    %9 = vector.shape_cast %8 : vector<64x16xf32> to vector<1x64x16xf32>
    %cst_7 = arith.constant dense<0xFF800000> : vector<1x16xf32>
    %10 = vector.multi_reduction <maximumf>, %9, %cst_7 [1] : vector<1x64x16xf32> to vector<1x16xf32>
    %c0_i32 = arith.constant 0 : i32
    %11 = arith.cmpi eq, %arg1, %c0_i32 : i32
    %12 = arith.extui %11 : i1 to i32
    %c0_i32_8 = arith.constant 0 : i32
    %13 = arith.cmpi ne, %12, %c0_i32_8 : i32
    scf.if %13 {
      %c0_16 = arith.constant 0 : index
      %c0_17 = arith.constant 0 : index
      %21 = vector.load %arg6[%c0_16, %c0_17] : memref<1x16xf32, #tpu.memory_space<vmem>>, vector<1x16xf32>
      tpu.vector_store %arg6[%c0_16, %c0_17], %10 {strides = array<i32>} : memref<1x16xf32, #tpu.memory_space<vmem>>, vector<1x16xf32>,
    } else {
    }
    %c0_i32_9 = arith.constant 0 : i32
    %14 = arith.cmpi sgt, %arg1, %c0_i32_9 : i32
    %15 = arith.extui %14 : i1 to i32
    %c0_i32_10 = arith.constant 0 : i32
    %16 = arith.cmpi ne, %15, %c0_i32_10 : i32
    scf.if %16 {
      %c0_16 = arith.constant 0 : index
      %c0_17 = arith.constant 0 : index
      %21 = vector.load %arg6[%c0_16, %c0_17] : memref<1x16xf32, #tpu.memory_space<vmem>>, vector<1x16xf32>
      %22 = arith.maximumf %21, %10 : vector<1x16xf32>
      %c0_18 = arith.constant 0 : index
      %c0_19 = arith.constant 0 : index
      %23 = vector.load %arg6[%c0_18, %c0_19] : memref<1x16xf32, #tpu.memory_space<vmem>>, vector<1x16xf32>
      tpu.vector_store %arg6[%c0_18, %c0_19], %22 {strides = array<i32>} : memref<1x16xf32, #tpu.memory_space<vmem>>, vector<1x16xf32>,
    } else {
    }
    %c0_11 = arith.constant 0 : index
    %c0_12 = arith.constant 0 : index
    %17 = vector.load %arg6[%c0_11, %c0_12] : memref<1x16xf32, #tpu.memory_space<vmem>>, vector<1x16xf32>
    %18 = vector.shape_cast %17 : vector<1x16xf32> to vector<1x1x16xf32>
    %19 = arith.truncf %18 : vector<1x1x16xf32> to vector<1x1x16xbf16>
    %c0_13 = arith.constant 0 : index
    %c0_14 = arith.constant 0 : index
    %c0_15 = arith.constant 0 : index
    %20 = vector.load %arg5[%c0_13, %c0_14, %c0_15] : memref<1x1x16xbf16, #tpu.memory_space<vmem>>, vector<1x1x16xbf16>
    tpu.vector_store %arg5[%c0_13, %c0_14, %c0_15], %19 {strides = array<i32>} : memref<1x1x16xbf16, #tpu.memory_space<vmem>>, vector<1x1x16xbf16>,
    return
  }
  func.func @transform_0(%arg0: i32, %arg1: i32) -> (i32, i32, i32) {
    %c0_i32 = arith.constant 0 : i32
    %c0_i32_0 = arith.constant 0 : i32
    return %arg0, %arg1, %c0_i32 : i32, i32, i32
  }
  func.func @transform_1(%arg0: i32, %arg1: i32) -> (i32, i32) {
    %c0_i32 = arith.constant 0 : i32
    %c0_i32_0 = arith.constant 0 : i32
    %c0_i32_1 = arith.constant 0 : i32
    return %c0_i32, %c0_i32_0 : i32, i32
  }
  func.func @transform_2(%arg0: i32, %arg1: i32) -> (i32, i32) {
    %c0_i32 = arith.constant 0 : i32
    %c0_i32_0 = arith.constant 0 : i32
    %c0_i32_1 = arith.constant 0 : i32
    return %c0_i32, %c0_i32_0 : i32, i32
  }
  func.func @transform_3(%arg0: i32, %arg1: i32) -> (i32, i32, i32) {
    %c0_i32 = arith.constant 0 : i32
    %c0_i32_0 = arith.constant 0 : i32
    %c0_i32_1 = arith.constant 0 : i32
    return %arg0, %c0_i32, %c0_i32_0 : i32, i32, i32
  }
}

module attributes {stable_mosaic.version = 11 : i64} {
  func.func @kernel(%arg0: i32, %arg1: memref<2x16xbf16, #tpu.memory_space<vmem>>, %arg2: memref<2x16xbf16, #tpu.memory_space<vmem>>, %arg3: memref<16x128xbf16, #tpu.memory_space<vmem>>, %arg4: memref<16x128xbf16, #tpu.memory_space<vmem>>, %arg5: memref<1x128xf32, #tpu.memory_space<vmem>>, %arg6: memref<2x128xf32, #tpu.memory_space<vmem>>) attributes {dimension_semantics = [#tpu.dimension_semantics<parallel>], iteration_bounds = array<i64: 1>, scalar_prefetch = 0 : i64, scratch_operands = 0 : i64, tpu.core_type = #tpu.core_type<tc>, window_params = [{transform_indices = @transform_0, window_bounds = array<i64: 2, 16>}, {transform_indices = @transform_1, window_bounds = array<i64: 2, 16>}, {pipeline_mode = #tpu.pipeline_mode<synchronous>, transform_indices = @transform_2, window_bounds = array<i64: 16, 128>}, {pipeline_mode = #tpu.pipeline_mode<synchronous>, transform_indices = @transform_3, window_bounds = array<i64: 16, 128>}, {pipeline_mode = #tpu.pipeline_mode<synchronous>, transform_indices = @transform_4, window_bounds = array<i64: 1, 128>}, {transform_indices = @transform_5, window_bounds = array<i64: 2, 128>}]} {
    %c0 = arith.constant 0 : index
    %c0_0 = arith.constant 0 : index
    %0 = vector.load %arg1[%c0, %c0_0] : memref<2x16xbf16, #tpu.memory_space<vmem>>, vector<2x16xbf16>
    %c0_1 = arith.constant 0 : index
    %c0_2 = arith.constant 0 : index
    %1 = vector.load %arg2[%c0_1, %c0_2] : memref<2x16xbf16, #tpu.memory_space<vmem>>, vector<2x16xbf16>
    %c0_3 = arith.constant 0 : index
    %c0_4 = arith.constant 0 : index
    %2 = vector.load %arg3[%c0_3, %c0_4] : memref<16x128xbf16, #tpu.memory_space<vmem>>, vector<16x128xbf16>
    %cst = arith.constant dense<0.000000e+00> : vector<2x128xf32>
    %3 = tpu.matmul %0, %2, %cst {dimension_numbers = #tpu.dot_dimension_numbers<[1], [0], [0], [1], [0, 0, 1, 1], [], []>} : vector<2x16xbf16>, vector<16x128xbf16>, vector<2x128xf32> -> vector<2x128xf32>
    %c0_5 = arith.constant 0 : index
    %c0_6 = arith.constant 0 : index
    %4 = vector.load %arg4[%c0_5, %c0_6] : memref<16x128xbf16, #tpu.memory_space<vmem>>, vector<16x128xbf16>
    %cst_7 = arith.constant dense<0.000000e+00> : vector<2x128xf32>
    %5 = tpu.matmul %1, %4, %cst_7 {dimension_numbers = #tpu.dot_dimension_numbers<[1], [0], [0], [1], [0, 0, 1, 1], [], []>} : vector<2x16xbf16>, vector<16x128xbf16>, vector<2x128xf32> -> vector<2x128xf32>
    %6 = arith.addf %3, %5 : vector<2x128xf32>
    %c0_8 = arith.constant 0 : index
    %c0_9 = arith.constant 0 : index
    %7 = vector.load %arg5[%c0_8, %c0_9] : memref<1x128xf32, #tpu.memory_space<vmem>>, vector<1x128xf32>
    %8 = vector.broadcast %7 : vector<1x128xf32> to vector<2x128xf32>
    %9 = arith.addf %6, %8 : vector<2x128xf32>
    %c0_10 = arith.constant 0 : index
    %c0_11 = arith.constant 0 : index
    %10 = vector.load %arg6[%c0_10, %c0_11] : memref<2x128xf32, #tpu.memory_space<vmem>>, vector<2x128xf32>
    tpu.vector_store %arg6[%c0_10, %c0_11], %9 {strides = array<i32>} : memref<2x128xf32, #tpu.memory_space<vmem>>, vector<2x128xf32>,
    return
  }
  func.func @transform_0(%arg0: i32) -> (i32, i32) {
    %c0_i32 = arith.constant 0 : i32
    %c0_i32_0 = arith.constant 0 : i32
    return %arg0, %c0_i32 : i32, i32
  }
  func.func @transform_1(%arg0: i32) -> (i32, i32) {
    %c0_i32 = arith.constant 0 : i32
    %c0_i32_0 = arith.constant 0 : i32
    return %arg0, %c0_i32 : i32, i32
  }
  func.func @transform_2(%arg0: i32) -> (i32, i32) {
    %c0_i32 = arith.constant 0 : i32
    %c0_i32_0 = arith.constant 0 : i32
    %c0_i32_1 = arith.constant 0 : i32
    return %c0_i32, %c0_i32_0 : i32, i32
  }
  func.func @transform_3(%arg0: i32) -> (i32, i32) {
    %c0_i32 = arith.constant 0 : i32
    %c0_i32_0 = arith.constant 0 : i32
    %c0_i32_1 = arith.constant 0 : i32
    return %c0_i32, %c0_i32_0 : i32, i32
  }
  func.func @transform_4(%arg0: i32) -> (i32, i32) {
    %c0_i32 = arith.constant 0 : i32
    %c0_i32_0 = arith.constant 0 : i32
    %c0_i32_1 = arith.constant 0 : i32
    return %c0_i32, %c0_i32_0 : i32, i32
  }
  func.func @transform_5(%arg0: i32) -> (i32, i32) {
    %c0_i32 = arith.constant 0 : i32
    %c0_i32_0 = arith.constant 0 : i32
    return %arg0, %c0_i32 : i32, i32
  }
}

module attributes {stable_mosaic.version = 11 : i64} {
  func.func @kernel(%arg0: i32, %arg1: memref<2x16xbf16, #tpu.memory_space<vmem>>, %arg2: memref<2x16xbf16, #tpu.memory_space<vmem>>, %arg3: memref<2x16xbf16, #tpu.memory_space<vmem>>, %arg4: memref<16x16xbf16, #tpu.memory_space<vmem>>, %arg5: memref<16x16xbf16, #tpu.memory_space<vmem>>, %arg6: memref<16x16xbf16, #tpu.memory_space<vmem>>, %arg7: memref<1x16xf32, #tpu.memory_space<vmem>>, %arg8: memref<2x16xbf16, #tpu.memory_space<vmem>>) attributes {dimension_semantics = [#tpu.dimension_semantics<parallel>], iteration_bounds = array<i64: 1>, scalar_prefetch = 0 : i64, scratch_operands = 0 : i64, tpu.core_type = #tpu.core_type<tc>, window_params = [{transform_indices = @transform_0, window_bounds = array<i64: 2, 16>}, {transform_indices = @transform_1, window_bounds = array<i64: 2, 16>}, {transform_indices = @transform_2, window_bounds = array<i64: 2, 16>}, {pipeline_mode = #tpu.pipeline_mode<synchronous>, transform_indices = @transform_3, window_bounds = array<i64: 16, 16>}, {pipeline_mode = #tpu.pipeline_mode<synchronous>, transform_indices = @transform_4, window_bounds = array<i64: 16, 16>}, {pipeline_mode = #tpu.pipeline_mode<synchronous>, transform_indices = @transform_5, window_bounds = array<i64: 16, 16>}, {pipeline_mode = #tpu.pipeline_mode<synchronous>, transform_indices = @transform_6, window_bounds = array<i64: 1, 16>}, {transform_indices = @transform_7, window_bounds = array<i64: 2, 16>}]} {
    %c0 = arith.constant 0 : index
    %c0_0 = arith.constant 0 : index
    %0 = vector.load %arg1[%c0, %c0_0] : memref<2x16xbf16, #tpu.memory_space<vmem>>, vector<2x16xbf16>
    %c0_1 = arith.constant 0 : index
    %c0_2 = arith.constant 0 : index
    %1 = vector.load %arg2[%c0_1, %c0_2] : memref<2x16xbf16, #tpu.memory_space<vmem>>, vector<2x16xbf16>
    %c0_3 = arith.constant 0 : index
    %c0_4 = arith.constant 0 : index
    %2 = vector.load %arg3[%c0_3, %c0_4] : memref<2x16xbf16, #tpu.memory_space<vmem>>, vector<2x16xbf16>
    %c0_5 = arith.constant 0 : index
    %c0_6 = arith.constant 0 : index
    %3 = vector.load %arg4[%c0_5, %c0_6] : memref<16x16xbf16, #tpu.memory_space<vmem>>, vector<16x16xbf16>
    %cst = arith.constant dense<0.000000e+00> : vector<2x16xf32>
    %4 = tpu.matmul %0, %3, %cst {dimension_numbers = #tpu.dot_dimension_numbers<[1], [0], [0], [1], [0, 0, 1, 1], [], []>} : vector<2x16xbf16>, vector<16x16xbf16>, vector<2x16xf32> -> vector<2x16xf32>
    %c0_7 = arith.constant 0 : index
    %c0_8 = arith.constant 0 : index
    %5 = vector.load %arg5[%c0_7, %c0_8] : memref<16x16xbf16, #tpu.memory_space<vmem>>, vector<16x16xbf16>
    %cst_9 = arith.constant dense<0.000000e+00> : vector<2x16xf32>
    %6 = tpu.matmul %1, %5, %cst_9 {dimension_numbers = #tpu.dot_dimension_numbers<[1], [0], [0], [1], [0, 0, 1, 1], [], []>} : vector<2x16xbf16>, vector<16x16xbf16>, vector<2x16xf32> -> vector<2x16xf32>
    %7 = arith.addf %4, %6 : vector<2x16xf32>
    %c0_10 = arith.constant 0 : index
    %c0_11 = arith.constant 0 : index
    %8 = vector.load %arg6[%c0_10, %c0_11] : memref<16x16xbf16, #tpu.memory_space<vmem>>, vector<16x16xbf16>
    %cst_12 = arith.constant dense<0.000000e+00> : vector<2x16xf32>
    %9 = tpu.matmul %2, %8, %cst_12 {dimension_numbers = #tpu.dot_dimension_numbers<[1], [0], [0], [1], [0, 0, 1, 1], [], []>} : vector<2x16xbf16>, vector<16x16xbf16>, vector<2x16xf32> -> vector<2x16xf32>
    %10 = arith.addf %7, %9 : vector<2x16xf32>
    %c0_13 = arith.constant 0 : index
    %c0_14 = arith.constant 0 : index
    %11 = vector.load %arg7[%c0_13, %c0_14] : memref<1x16xf32, #tpu.memory_space<vmem>>, vector<1x16xf32>
    %12 = vector.broadcast %11 : vector<1x16xf32> to vector<2x16xf32>
    %13 = arith.addf %10, %12 : vector<2x16xf32>
    %cst_15 = arith.constant 0.000000e+00 : f32
    %14 = vector.broadcast %cst_15 : f32 to vector<2x16xf32>
    %15 = arith.maximumf %13, %14 : vector<2x16xf32>
    %16 = arith.truncf %15 : vector<2x16xf32> to vector<2x16xbf16>
    %c0_16 = arith.constant 0 : index
    %c0_17 = arith.constant 0 : index
    %17 = vector.load %arg8[%c0_16, %c0_17] : memref<2x16xbf16, #tpu.memory_space<vmem>>, vector<2x16xbf16>
    tpu.vector_store %arg8[%c0_16, %c0_17], %16 {strides = array<i32>} : memref<2x16xbf16, #tpu.memory_space<vmem>>, vector<2x16xbf16>,
    return
  }
  func.func @transform_0(%arg0: i32) -> (i32, i32) {
    %c0_i32 = arith.constant 0 : i32
    %c0_i32_0 = arith.constant 0 : i32
    return %arg0, %c0_i32 : i32, i32
  }
  func.func @transform_1(%arg0: i32) -> (i32, i32) {
    %c0_i32 = arith.constant 0 : i32
    %c0_i32_0 = arith.constant 0 : i32
    return %arg0, %c0_i32 : i32, i32
  }
  func.func @transform_2(%arg0: i32) -> (i32, i32) {
    %c0_i32 = arith.constant 0 : i32
    %c0_i32_0 = arith.constant 0 : i32
    return %arg0, %c0_i32 : i32, i32
  }
  func.func @transform_3(%arg0: i32) -> (i32, i32) {
    %c0_i32 = arith.constant 0 : i32
    %c0_i32_0 = arith.constant 0 : i32
    %c0_i32_1 = arith.constant 0 : i32
    return %c0_i32, %c0_i32_0 : i32, i32
  }
  func.func @transform_4(%arg0: i32) -> (i32, i32) {
    %c0_i32 = arith.constant 0 : i32
    %c0_i32_0 = arith.constant 0 : i32
    %c0_i32_1 = arith.constant 0 : i32
    return %c0_i32, %c0_i32_0 : i32, i32
  }
  func.func @transform_5(%arg0: i32) -> (i32, i32) {
    %c0_i32 = arith.constant 0 : i32
    %c0_i32_0 = arith.constant 0 : i32
    %c0_i32_1 = arith.constant 0 : i32
    return %c0_i32, %c0_i32_0 : i32, i32
  }
  func.func @transform_6(%arg0: i32) -> (i32, i32) {
    %c0_i32 = arith.constant 0 : i32
    %c0_i32_0 = arith.constant 0 : i32
    %c0_i32_1 = arith.constant 0 : i32
    return %c0_i32, %c0_i32_0 : i32, i32
  }
  func.func @transform_7(%arg0: i32) -> (i32, i32) {
    %c0_i32 = arith.constant 0 : i32
    %c0_i32_0 = arith.constant 0 : i32
    return %arg0, %c0_i32 : i32, i32
  }
}

module attributes {stable_mosaic.version = 11 : i64} {
  func.func @kernel(%arg0: i32, %arg1: memref<2x64xf32, #tpu.memory_space<vmem>>, %arg2: memref<64x16xbf16, #tpu.memory_space<vmem>>, %arg3: memref<1x16xf32, #tpu.memory_space<vmem>>, %arg4: memref<16x16xbf16, #tpu.memory_space<vmem>>, %arg5: memref<1x16xf32, #tpu.memory_space<vmem>>, %arg6: memref<2x16xbf16, #tpu.memory_space<vmem>>) attributes {dimension_semantics = [#tpu.dimension_semantics<parallel>], iteration_bounds = array<i64: 1>, scalar_prefetch = 0 : i64, scratch_operands = 0 : i64, tpu.core_type = #tpu.core_type<tc>, window_params = [{transform_indices = @transform_0, window_bounds = array<i64: 2, 64>}, {pipeline_mode = #tpu.pipeline_mode<synchronous>, transform_indices = @transform_1, window_bounds = array<i64: 64, 16>}, {pipeline_mode = #tpu.pipeline_mode<synchronous>, transform_indices = @transform_2, window_bounds = array<i64: 1, 16>}, {pipeline_mode = #tpu.pipeline_mode<synchronous>, transform_indices = @transform_3, window_bounds = array<i64: 16, 16>}, {pipeline_mode = #tpu.pipeline_mode<synchronous>, transform_indices = @transform_4, window_bounds = array<i64: 1, 16>}, {transform_indices = @transform_5, window_bounds = array<i64: 2, 16>}]} {
    %c0 = arith.constant 0 : index
    %c0_0 = arith.constant 0 : index
    %0 = vector.load %arg1[%c0, %c0_0] : memref<2x64xf32, #tpu.memory_space<vmem>>, vector<2x64xf32>
    %c0_1 = arith.constant 0 : index
    %c0_2 = arith.constant 0 : index
    %1 = vector.load %arg2[%c0_1, %c0_2] : memref<64x16xbf16, #tpu.memory_space<vmem>>, vector<64x16xbf16>
    %2 = arith.truncf %0 : vector<2x64xf32> to vector<2x64xbf16>
    %cst = arith.constant dense<0.000000e+00> : vector<2x16xf32>
    %3 = tpu.matmul %2, %1, %cst {dimension_numbers = #tpu.dot_dimension_numbers<[1], [0], [0], [1], [0, 0, 1, 1], [], []>} : vector<2x64xbf16>, vector<64x16xbf16>, vector<2x16xf32> -> vector<2x16xf32>
    %c0_3 = arith.constant 0 : index
    %c0_4 = arith.constant 0 : index
    %4 = vector.load %arg3[%c0_3, %c0_4] : memref<1x16xf32, #tpu.memory_space<vmem>>, vector<1x16xf32>
    %5 = vector.broadcast %4 : vector<1x16xf32> to vector<2x16xf32>
    %6 = arith.addf %3, %5 : vector<2x16xf32>
    %cst_5 = arith.constant 0.000000e+00 : f32
    %7 = vector.broadcast %cst_5 : f32 to vector<2x16xf32>
    %8 = arith.maximumf %6, %7 : vector<2x16xf32>
    %c0_6 = arith.constant 0 : index
    %c0_7 = arith.constant 0 : index
    %9 = vector.load %arg4[%c0_6, %c0_7] : memref<16x16xbf16, #tpu.memory_space<vmem>>, vector<16x16xbf16>
    %c0_8 = arith.constant 0 : index
    %c0_9 = arith.constant 0 : index
    %10 = vector.load %arg5[%c0_8, %c0_9] : memref<1x16xf32, #tpu.memory_space<vmem>>, vector<1x16xf32>
    %11 = arith.truncf %8 : vector<2x16xf32> to vector<2x16xbf16>
    %cst_10 = arith.constant dense<0.000000e+00> : vector<2x16xf32>
    %12 = tpu.matmul %11, %9, %cst_10 {dimension_numbers = #tpu.dot_dimension_numbers<[1], [0], [0], [1], [0, 0, 1, 1], [], []>} : vector<2x16xbf16>, vector<16x16xbf16>, vector<2x16xf32> -> vector<2x16xf32>
    %13 = vector.broadcast %10 : vector<1x16xf32> to vector<2x16xf32>
    %14 = arith.addf %12, %13 : vector<2x16xf32>
    %cst_11 = arith.constant 0.000000e+00 : f32
    %15 = vector.broadcast %cst_11 : f32 to vector<2x16xf32>
    %16 = arith.maximumf %14, %15 : vector<2x16xf32>
    %17 = arith.truncf %16 : vector<2x16xf32> to vector<2x16xbf16>
    %c0_12 = arith.constant 0 : index
    %c0_13 = arith.constant 0 : index
    %18 = vector.load %arg6[%c0_12, %c0_13] : memref<2x16xbf16, #tpu.memory_space<vmem>>, vector<2x16xbf16>
    tpu.vector_store %arg6[%c0_12, %c0_13], %17 {strides = array<i32>} : memref<2x16xbf16, #tpu.memory_space<vmem>>, vector<2x16xbf16>,
    return
  }
  func.func @transform_0(%arg0: i32) -> (i32, i32) {
    %c0_i32 = arith.constant 0 : i32
    %c0_i32_0 = arith.constant 0 : i32
    return %arg0, %c0_i32 : i32, i32
  }
  func.func @transform_1(%arg0: i32) -> (i32, i32) {
    %c0_i32 = arith.constant 0 : i32
    %c0_i32_0 = arith.constant 0 : i32
    %c0_i32_1 = arith.constant 0 : i32
    return %c0_i32, %c0_i32_0 : i32, i32
  }
  func.func @transform_2(%arg0: i32) -> (i32, i32) {
    %c0_i32 = arith.constant 0 : i32
    %c0_i32_0 = arith.constant 0 : i32
    %c0_i32_1 = arith.constant 0 : i32
    return %c0_i32, %c0_i32_0 : i32, i32
  }
  func.func @transform_3(%arg0: i32) -> (i32, i32) {
    %c0_i32 = arith.constant 0 : i32
    %c0_i32_0 = arith.constant 0 : i32
    %c0_i32_1 = arith.constant 0 : i32
    return %c0_i32, %c0_i32_0 : i32, i32
  }
  func.func @transform_4(%arg0: i32) -> (i32, i32) {
    %c0_i32 = arith.constant 0 : i32
    %c0_i32_0 = arith.constant 0 : i32
    %c0_i32_1 = arith.constant 0 : i32
    return %c0_i32, %c0_i32_0 : i32, i32
  }
  func.func @transform_5(%arg0: i32) -> (i32, i32) {
    %c0_i32 = arith.constant 0 : i32
    %c0_i32_0 = arith.constant 0 : i32
    return %arg0, %c0_i32 : i32, i32
  }
}

module attributes {stable_mosaic.version = 11 : i64} {
  func.func @_neg_sqdist_kernel(%arg0: i32, %arg1: i32, %arg2: memref<1x32x3xf32, #tpu.memory_space<vmem>>, %arg3: memref<1x32x1xf32, #tpu.memory_space<vmem>>, %arg4: memref<1x3x16xf32, #tpu.memory_space<vmem>>, %arg5: memref<1x32x16xf32, #tpu.memory_space<vmem>>) attributes {dimension_semantics = [#tpu.dimension_semantics<parallel>, #tpu.dimension_semantics<parallel>], iteration_bounds = array<i64: 2, 1>, scalar_prefetch = 0 : i64, scratch_operands = 0 : i64, tpu.core_type = #tpu.core_type<tc>, window_params = [{transform_indices = @transform_0, window_bounds = array<i64: 1, 32, 3>}, {transform_indices = @transform_1, window_bounds = array<i64: 1, 32, 1>}, {transform_indices = @transform_2, window_bounds = array<i64: 1, 3, 16>}, {transform_indices = @transform_3, window_bounds = array<i64: 1, 32, 16>}]} {
    %c0 = arith.constant 0 : index
    %c0_0 = arith.constant 0 : index
    %c0_1 = arith.constant 0 : index
    %0 = vector.load %arg2[%c0, %c0_0, %c0_1] : memref<1x32x3xf32, #tpu.memory_space<vmem>>, vector<1x32x3xf32>
    %1 = vector.shape_cast %0 : vector<1x32x3xf32> to vector<32x3xf32>
    %c0_2 = arith.constant 0 : index
    %c0_3 = arith.constant 0 : index
    %c0_4 = arith.constant 0 : index
    %2 = vector.load %arg3[%c0_2, %c0_3, %c0_4] : memref<1x32x1xf32, #tpu.memory_space<vmem>>, vector<1x32x1xf32>
    %3 = vector.shape_cast %2 : vector<1x32x1xf32> to vector<32x1xf32>
    %c0_5 = arith.constant 0 : index
    %c0_6 = arith.constant 0 : index
    %c0_7 = arith.constant 0 : index
    %4 = vector.load %arg4[%c0_5, %c0_6, %c0_7] : memref<1x3x16xf32, #tpu.memory_space<vmem>>, vector<1x3x16xf32>
    %5 = vector.shape_cast %4 : vector<1x3x16xf32> to vector<3x16xf32>
    %6 = vector.extract_strided_slice %1 {offsets = [0, 0], sizes = [32, 1], strides = [1, 1]} : vector<32x3xf32> to vector<32x1xf32>
    %7 = vector.extract_strided_slice %5 {offsets = [0, 0], sizes = [1, 16], strides = [1, 1]} : vector<3x16xf32> to vector<1x16xf32>
    %8 = vector.broadcast %6 : vector<32x1xf32> to vector<32x16xf32>
    %9 = vector.broadcast %7 : vector<1x16xf32> to vector<32x16xf32>
    %10 = arith.mulf %8, %9 : vector<32x16xf32>
    %11 = vector.extract_strided_slice %1 {offsets = [0, 1], sizes = [32, 1], strides = [1, 1]} : vector<32x3xf32> to vector<32x1xf32>
    %12 = vector.extract_strided_slice %5 {offsets = [1, 0], sizes = [1, 16], strides = [1, 1]} : vector<3x16xf32> to vector<1x16xf32>
    %13 = vector.broadcast %11 : vector<32x1xf32> to vector<32x16xf32>
    %14 = vector.broadcast %12 : vector<1x16xf32> to vector<32x16xf32>
    %15 = arith.mulf %13, %14 : vector<32x16xf32>
    %16 = arith.addf %10, %15 : vector<32x16xf32>
    %17 = vector.extract_strided_slice %1 {offsets = [0, 2], sizes = [32, 1], strides = [1, 1]} : vector<32x3xf32> to vector<32x1xf32>
    %18 = vector.extract_strided_slice %5 {offsets = [2, 0], sizes = [1, 16], strides = [1, 1]} : vector<3x16xf32> to vector<1x16xf32>
    %19 = vector.broadcast %17 : vector<32x1xf32> to vector<32x16xf32>
    %20 = vector.broadcast %18 : vector<1x16xf32> to vector<32x16xf32>
    %21 = arith.mulf %19, %20 : vector<32x16xf32>
    %22 = arith.addf %16, %21 : vector<32x16xf32>
    %cst = arith.constant 2.000000e+00 : f32
    %23 = vector.broadcast %cst : f32 to vector<32x16xf32>
    %24 = arith.mulf %23, %22 : vector<32x16xf32>
    %25 = arith.mulf %5, %5 : vector<3x16xf32>
    %cst_8 = arith.constant dense<0.000000e+00> : vector<16xf32>
    %26 = vector.multi_reduction <add>, %25, %cst_8 [0] : vector<3x16xf32> to vector<16xf32>
    %27 = vector.shape_cast %26 : vector<16xf32> to vector<1x16xf32>
    %28 = vector.broadcast %3 : vector<32x1xf32> to vector<32x16xf32>
    %29 = arith.subf %24, %28 : vector<32x16xf32>
    %30 = vector.broadcast %27 : vector<1x16xf32> to vector<32x16xf32>
    %31 = arith.subf %29, %30 : vector<32x16xf32>
    %cst_9 = arith.constant 0.000000e+00 : f32
    %32 = vector.broadcast %cst_9 : f32 to vector<32x16xf32>
    %33 = arith.minimumf %31, %32 : vector<32x16xf32>
    %c0_10 = arith.constant 0 : index
    %c0_11 = arith.constant 0 : index
    %c0_12 = arith.constant 0 : index
    %34 = vector.load %arg5[%c0_10, %c0_11, %c0_12] : memref<1x32x16xf32, #tpu.memory_space<vmem>>, vector<1x32x16xf32>
    %35 = vector.shape_cast %34 : vector<1x32x16xf32> to vector<32x16xf32>
    %36 = vector.shape_cast %33 : vector<32x16xf32> to vector<1x32x16xf32>
    tpu.vector_store %arg5[%c0_10, %c0_11, %c0_12], %36 {strides = array<i32>} : memref<1x32x16xf32, #tpu.memory_space<vmem>>, vector<1x32x16xf32>,
    return
  }
  func.func @transform_0(%arg0: i32, %arg1: i32) -> (i32, i32, i32) {
    %c0_i32 = arith.constant 0 : i32
    %c0_i32_0 = arith.constant 0 : i32
    %c0_i32_1 = arith.constant 0 : i32
    return %arg0, %c0_i32, %c0_i32_0 : i32, i32, i32
  }
  func.func @transform_1(%arg0: i32, %arg1: i32) -> (i32, i32, i32) {
    %c0_i32 = arith.constant 0 : i32
    %c0_i32_0 = arith.constant 0 : i32
    %c0_i32_1 = arith.constant 0 : i32
    return %arg0, %c0_i32, %c0_i32_0 : i32, i32, i32
  }
  func.func @transform_2(%arg0: i32, %arg1: i32) -> (i32, i32, i32) {
    %c0_i32 = arith.constant 0 : i32
    %c0_i32_0 = arith.constant 0 : i32
    return %arg0, %c0_i32, %arg1 : i32, i32, i32
  }
  func.func @transform_3(%arg0: i32, %arg1: i32) -> (i32, i32, i32) {
    %c0_i32 = arith.constant 0 : i32
    %c0_i32_0 = arith.constant 0 : i32
    return %arg0, %c0_i32, %arg1 : i32, i32, i32
  }
}

module attributes {stable_mosaic.version = 11 : i64} {
  func.func @_neg_sqdist_kernel(%arg0: i32, %arg1: i32, %arg2: memref<1x64x3xf32, #tpu.memory_space<vmem>>, %arg3: memref<1x64x1xf32, #tpu.memory_space<vmem>>, %arg4: memref<1x3x32xf32, #tpu.memory_space<vmem>>, %arg5: memref<1x64x32xf32, #tpu.memory_space<vmem>>) attributes {dimension_semantics = [#tpu.dimension_semantics<parallel>, #tpu.dimension_semantics<parallel>], iteration_bounds = array<i64: 2, 1>, scalar_prefetch = 0 : i64, scratch_operands = 0 : i64, tpu.core_type = #tpu.core_type<tc>, window_params = [{transform_indices = @transform_0, window_bounds = array<i64: 1, 64, 3>}, {transform_indices = @transform_1, window_bounds = array<i64: 1, 64, 1>}, {transform_indices = @transform_2, window_bounds = array<i64: 1, 3, 32>}, {transform_indices = @transform_3, window_bounds = array<i64: 1, 64, 32>}]} {
    %c0 = arith.constant 0 : index
    %c0_0 = arith.constant 0 : index
    %c0_1 = arith.constant 0 : index
    %0 = vector.load %arg2[%c0, %c0_0, %c0_1] : memref<1x64x3xf32, #tpu.memory_space<vmem>>, vector<1x64x3xf32>
    %1 = vector.shape_cast %0 : vector<1x64x3xf32> to vector<64x3xf32>
    %c0_2 = arith.constant 0 : index
    %c0_3 = arith.constant 0 : index
    %c0_4 = arith.constant 0 : index
    %2 = vector.load %arg3[%c0_2, %c0_3, %c0_4] : memref<1x64x1xf32, #tpu.memory_space<vmem>>, vector<1x64x1xf32>
    %3 = vector.shape_cast %2 : vector<1x64x1xf32> to vector<64x1xf32>
    %c0_5 = arith.constant 0 : index
    %c0_6 = arith.constant 0 : index
    %c0_7 = arith.constant 0 : index
    %4 = vector.load %arg4[%c0_5, %c0_6, %c0_7] : memref<1x3x32xf32, #tpu.memory_space<vmem>>, vector<1x3x32xf32>
    %5 = vector.shape_cast %4 : vector<1x3x32xf32> to vector<3x32xf32>
    %6 = vector.extract_strided_slice %1 {offsets = [0, 0], sizes = [64, 1], strides = [1, 1]} : vector<64x3xf32> to vector<64x1xf32>
    %7 = vector.extract_strided_slice %5 {offsets = [0, 0], sizes = [1, 32], strides = [1, 1]} : vector<3x32xf32> to vector<1x32xf32>
    %8 = vector.broadcast %6 : vector<64x1xf32> to vector<64x32xf32>
    %9 = vector.broadcast %7 : vector<1x32xf32> to vector<64x32xf32>
    %10 = arith.mulf %8, %9 : vector<64x32xf32>
    %11 = vector.extract_strided_slice %1 {offsets = [0, 1], sizes = [64, 1], strides = [1, 1]} : vector<64x3xf32> to vector<64x1xf32>
    %12 = vector.extract_strided_slice %5 {offsets = [1, 0], sizes = [1, 32], strides = [1, 1]} : vector<3x32xf32> to vector<1x32xf32>
    %13 = vector.broadcast %11 : vector<64x1xf32> to vector<64x32xf32>
    %14 = vector.broadcast %12 : vector<1x32xf32> to vector<64x32xf32>
    %15 = arith.mulf %13, %14 : vector<64x32xf32>
    %16 = arith.addf %10, %15 : vector<64x32xf32>
    %17 = vector.extract_strided_slice %1 {offsets = [0, 2], sizes = [64, 1], strides = [1, 1]} : vector<64x3xf32> to vector<64x1xf32>
    %18 = vector.extract_strided_slice %5 {offsets = [2, 0], sizes = [1, 32], strides = [1, 1]} : vector<3x32xf32> to vector<1x32xf32>
    %19 = vector.broadcast %17 : vector<64x1xf32> to vector<64x32xf32>
    %20 = vector.broadcast %18 : vector<1x32xf32> to vector<64x32xf32>
    %21 = arith.mulf %19, %20 : vector<64x32xf32>
    %22 = arith.addf %16, %21 : vector<64x32xf32>
    %cst = arith.constant 2.000000e+00 : f32
    %23 = vector.broadcast %cst : f32 to vector<64x32xf32>
    %24 = arith.mulf %23, %22 : vector<64x32xf32>
    %25 = arith.mulf %5, %5 : vector<3x32xf32>
    %cst_8 = arith.constant dense<0.000000e+00> : vector<32xf32>
    %26 = vector.multi_reduction <add>, %25, %cst_8 [0] : vector<3x32xf32> to vector<32xf32>
    %27 = vector.shape_cast %26 : vector<32xf32> to vector<1x32xf32>
    %28 = vector.broadcast %3 : vector<64x1xf32> to vector<64x32xf32>
    %29 = arith.subf %24, %28 : vector<64x32xf32>
    %30 = vector.broadcast %27 : vector<1x32xf32> to vector<64x32xf32>
    %31 = arith.subf %29, %30 : vector<64x32xf32>
    %cst_9 = arith.constant 0.000000e+00 : f32
    %32 = vector.broadcast %cst_9 : f32 to vector<64x32xf32>
    %33 = arith.minimumf %31, %32 : vector<64x32xf32>
    %c0_10 = arith.constant 0 : index
    %c0_11 = arith.constant 0 : index
    %c0_12 = arith.constant 0 : index
    %34 = vector.load %arg5[%c0_10, %c0_11, %c0_12] : memref<1x64x32xf32, #tpu.memory_space<vmem>>, vector<1x64x32xf32>
    %35 = vector.shape_cast %34 : vector<1x64x32xf32> to vector<64x32xf32>
    %36 = vector.shape_cast %33 : vector<64x32xf32> to vector<1x64x32xf32>
    tpu.vector_store %arg5[%c0_10, %c0_11, %c0_12], %36 {strides = array<i32>} : memref<1x64x32xf32, #tpu.memory_space<vmem>>, vector<1x64x32xf32>,
    return
  }
  func.func @transform_0(%arg0: i32, %arg1: i32) -> (i32, i32, i32) {
    %c0_i32 = arith.constant 0 : i32
    %c0_i32_0 = arith.constant 0 : i32
    %c0_i32_1 = arith.constant 0 : i32
    return %arg0, %c0_i32, %c0_i32_0 : i32, i32, i32
  }
  func.func @transform_1(%arg0: i32, %arg1: i32) -> (i32, i32, i32) {
    %c0_i32 = arith.constant 0 : i32
    %c0_i32_0 = arith.constant 0 : i32
    %c0_i32_1 = arith.constant 0 : i32
    return %arg0, %c0_i32, %c0_i32_0 : i32, i32, i32
  }
  func.func @transform_2(%arg0: i32, %arg1: i32) -> (i32, i32, i32) {
    %c0_i32 = arith.constant 0 : i32
    %c0_i32_0 = arith.constant 0 : i32
    return %arg0, %c0_i32, %arg1 : i32, i32, i32
  }
  func.func @transform_3(%arg0: i32, %arg1: i32) -> (i32, i32, i32) {
    %c0_i32 = arith.constant 0 : i32
    %c0_i32_0 = arith.constant 0 : i32
    return %arg0, %c0_i32, %arg1 : i32, i32, i32
  }
}

module attributes {stable_mosaic.version = 11 : i64} {
  func.func @kernel(%arg0: i32, %arg1: memref<32x32xbf16, #tpu.memory_space<vmem>>, %arg2: memref<32x64xf32, #tpu.memory_space<vmem>>, %arg3: memref<32x32xbf16, #tpu.memory_space<vmem>>, %arg4: memref<64x32xbf16, #tpu.memory_space<vmem>>, %arg5: memref<1x32xf32, #tpu.memory_space<vmem>>, %arg6: memref<32x32xbf16, #tpu.memory_space<vmem>>, %arg7: memref<1x32xf32, #tpu.memory_space<vmem>>, %arg8: memref<32x32xbf16, #tpu.memory_space<vmem>>, %arg9: memref<1x32xf32, #tpu.memory_space<vmem>>, %arg10: memref<32x32xbf16, #tpu.memory_space<vmem>>) attributes {dimension_semantics = [#tpu.dimension_semantics<parallel>], iteration_bounds = array<i64: 2>, scalar_prefetch = 0 : i64, scratch_operands = 0 : i64, tpu.core_type = #tpu.core_type<tc>, window_params = [{transform_indices = @transform_0, window_bounds = array<i64: 32, 32>}, {transform_indices = @transform_1, window_bounds = array<i64: 32, 64>}, {pipeline_mode = #tpu.pipeline_mode<synchronous>, transform_indices = @transform_2, window_bounds = array<i64: 32, 32>}, {pipeline_mode = #tpu.pipeline_mode<synchronous>, transform_indices = @transform_3, window_bounds = array<i64: 64, 32>}, {pipeline_mode = #tpu.pipeline_mode<synchronous>, transform_indices = @transform_4, window_bounds = array<i64: 1, 32>}, {pipeline_mode = #tpu.pipeline_mode<synchronous>, transform_indices = @transform_5, window_bounds = array<i64: 32, 32>}, {pipeline_mode = #tpu.pipeline_mode<synchronous>, transform_indices = @transform_6, window_bounds = array<i64: 1, 32>}, {pipeline_mode = #tpu.pipeline_mode<synchronous>, transform_indices = @transform_7, window_bounds = array<i64: 32, 32>}, {pipeline_mode = #tpu.pipeline_mode<synchronous>, transform_indices = @transform_8, window_bounds = array<i64: 1, 32>}, {transform_indices = @transform_9, window_bounds = array<i64: 32, 32>}]} {
    %c0 = arith.constant 0 : index
    %c0_0 = arith.constant 0 : index
    %0 = vector.load %arg1[%c0, %c0_0] : memref<32x32xbf16, #tpu.memory_space<vmem>>, vector<32x32xbf16>
    %c0_1 = arith.constant 0 : index
    %c0_2 = arith.constant 0 : index
    %1 = vector.load %arg2[%c0_1, %c0_2] : memref<32x64xf32, #tpu.memory_space<vmem>>, vector<32x64xf32>
    %c0_3 = arith.constant 0 : index
    %c0_4 = arith.constant 0 : index
    %2 = vector.load %arg3[%c0_3, %c0_4] : memref<32x32xbf16, #tpu.memory_space<vmem>>, vector<32x32xbf16>
    %cst = arith.constant dense<0.000000e+00> : vector<32x32xf32>
    %3 = tpu.matmul %0, %2, %cst {dimension_numbers = #tpu.dot_dimension_numbers<[1], [0], [0], [1], [0, 0, 1, 1], [], []>} : vector<32x32xbf16>, vector<32x32xbf16>, vector<32x32xf32> -> vector<32x32xf32>
    %c0_5 = arith.constant 0 : index
    %c0_6 = arith.constant 0 : index
    %4 = vector.load %arg4[%c0_5, %c0_6] : memref<64x32xbf16, #tpu.memory_space<vmem>>, vector<64x32xbf16>
    %5 = arith.truncf %1 : vector<32x64xf32> to vector<32x64xbf16>
    %cst_7 = arith.constant dense<0.000000e+00> : vector<32x32xf32>
    %6 = tpu.matmul %5, %4, %cst_7 {dimension_numbers = #tpu.dot_dimension_numbers<[1], [0], [0], [1], [0, 0, 1, 1], [], []>} : vector<32x64xbf16>, vector<64x32xbf16>, vector<32x32xf32> -> vector<32x32xf32>
    %7 = arith.addf %3, %6 : vector<32x32xf32>
    %c0_8 = arith.constant 0 : index
    %c0_9 = arith.constant 0 : index
    %8 = vector.load %arg5[%c0_8, %c0_9] : memref<1x32xf32, #tpu.memory_space<vmem>>, vector<1x32xf32>
    %9 = vector.broadcast %8 : vector<1x32xf32> to vector<32x32xf32>
    %10 = arith.addf %7, %9 : vector<32x32xf32>
    %cst_10 = arith.constant 0.000000e+00 : f32
    %11 = vector.broadcast %cst_10 : f32 to vector<32x32xf32>
    %12 = arith.maximumf %10, %11 : vector<32x32xf32>
    %c0_11 = arith.constant 0 : index
    %c0_12 = arith.constant 0 : index
    %13 = vector.load %arg6[%c0_11, %c0_12] : memref<32x32xbf16, #tpu.memory_space<vmem>>, vector<32x32xbf16>
    %c0_13 = arith.constant 0 : index
    %c0_14 = arith.constant 0 : index
    %14 = vector.load %arg7[%c0_13, %c0_14] : memref<1x32xf32, #tpu.memory_space<vmem>>, vector<1x32xf32>
    %c0_15 = arith.constant 0 : index
    %c0_16 = arith.constant 0 : index
    %15 = vector.load %arg8[%c0_15, %c0_16] : memref<32x32xbf16, #tpu.memory_space<vmem>>, vector<32x32xbf16>
    %c0_17 = arith.constant 0 : index
    %c0_18 = arith.constant 0 : index
    %16 = vector.load %arg9[%c0_17, %c0_18] : memref<1x32xf32, #tpu.memory_space<vmem>>, vector<1x32xf32>
    %17 = arith.truncf %12 : vector<32x32xf32> to vector<32x32xbf16>
    %cst_19 = arith.constant dense<0.000000e+00> : vector<32x32xf32>
    %18 = tpu.matmul %17, %13, %cst_19 {dimension_numbers = #tpu.dot_dimension_numbers<[1], [0], [0], [1], [0, 0, 1, 1], [], []>} : vector<32x32xbf16>, vector<32x32xbf16>, vector<32x32xf32> -> vector<32x32xf32>
    %19 = vector.broadcast %14 : vector<1x32xf32> to vector<32x32xf32>
    %20 = arith.addf %18, %19 : vector<32x32xf32>
    %cst_20 = arith.constant 0.000000e+00 : f32
    %21 = vector.broadcast %cst_20 : f32 to vector<32x32xf32>
    %22 = arith.maximumf %20, %21 : vector<32x32xf32>
    %23 = arith.truncf %22 : vector<32x32xf32> to vector<32x32xbf16>
    %cst_21 = arith.constant dense<0.000000e+00> : vector<32x32xf32>
    %24 = tpu.matmul %23, %15, %cst_21 {dimension_numbers = #tpu.dot_dimension_numbers<[1], [0], [0], [1], [0, 0, 1, 1], [], []>} : vector<32x32xbf16>, vector<32x32xbf16>, vector<32x32xf32> -> vector<32x32xf32>
    %25 = vector.broadcast %16 : vector<1x32xf32> to vector<32x32xf32>
    %26 = arith.addf %24, %25 : vector<32x32xf32>
    %27 = arith.addf %26, %12 : vector<32x32xf32>
    %cst_22 = arith.constant 0.000000e+00 : f32
    %28 = vector.broadcast %cst_22 : f32 to vector<32x32xf32>
    %29 = arith.maximumf %27, %28 : vector<32x32xf32>
    %30 = arith.truncf %29 : vector<32x32xf32> to vector<32x32xbf16>
    %c0_23 = arith.constant 0 : index
    %c0_24 = arith.constant 0 : index
    %31 = vector.load %arg10[%c0_23, %c0_24] : memref<32x32xbf16, #tpu.memory_space<vmem>>, vector<32x32xbf16>
    tpu.vector_store %arg10[%c0_23, %c0_24], %30 {strides = array<i32>} : memref<32x32xbf16, #tpu.memory_space<vmem>>, vector<32x32xbf16>,
    return
  }
  func.func @transform_0(%arg0: i32) -> (i32, i32) {
    %c0_i32 = arith.constant 0 : i32
    %c0_i32_0 = arith.constant 0 : i32
    return %arg0, %c0_i32 : i32, i32
  }
  func.func @transform_1(%arg0: i32) -> (i32, i32) {
    %c0_i32 = arith.constant 0 : i32
    %c0_i32_0 = arith.constant 0 : i32
    return %arg0, %c0_i32 : i32, i32
  }
  func.func @transform_2(%arg0: i32) -> (i32, i32) {
    %c0_i32 = arith.constant 0 : i32
    %c0_i32_0 = arith.constant 0 : i32
    %c0_i32_1 = arith.constant 0 : i32
    return %c0_i32, %c0_i32_0 : i32, i32
  }
  func.func @transform_3(%arg0: i32) -> (i32, i32) {
    %c0_i32 = arith.constant 0 : i32
    %c0_i32_0 = arith.constant 0 : i32
    %c0_i32_1 = arith.constant 0 : i32
    return %c0_i32, %c0_i32_0 : i32, i32
  }
  func.func @transform_4(%arg0: i32) -> (i32, i32) {
    %c0_i32 = arith.constant 0 : i32
    %c0_i32_0 = arith.constant 0 : i32
    %c0_i32_1 = arith.constant 0 : i32
    return %c0_i32, %c0_i32_0 : i32, i32
  }
  func.func @transform_5(%arg0: i32) -> (i32, i32) {
    %c0_i32 = arith.constant 0 : i32
    %c0_i32_0 = arith.constant 0 : i32
    %c0_i32_1 = arith.constant 0 : i32
    return %c0_i32, %c0_i32_0 : i32, i32
  }
  func.func @transform_6(%arg0: i32) -> (i32, i32) {
    %c0_i32 = arith.constant 0 : i32
    %c0_i32_0 = arith.constant 0 : i32
    %c0_i32_1 = arith.constant 0 : i32
    return %c0_i32, %c0_i32_0 : i32, i32
  }
  func.func @transform_7(%arg0: i32) -> (i32, i32) {
    %c0_i32 = arith.constant 0 : i32
    %c0_i32_0 = arith.constant 0 : i32
    %c0_i32_1 = arith.constant 0 : i32
    return %c0_i32, %c0_i32_0 : i32, i32
  }
  func.func @transform_8(%arg0: i32) -> (i32, i32) {
    %c0_i32 = arith.constant 0 : i32
    %c0_i32_0 = arith.constant 0 : i32
    %c0_i32_1 = arith.constant 0 : i32
    return %c0_i32, %c0_i32_0 : i32, i32
  }
  func.func @transform_9(%arg0: i32) -> (i32, i32) {
    %c0_i32 = arith.constant 0 : i32
    %c0_i32_0 = arith.constant 0 : i32
    return %arg0, %c0_i32 : i32, i32
  }
}

module attributes {stable_mosaic.version = 11 : i64} {
  func.func @kernel(%arg0: i32, %arg1: memref<64x16xbf16, #tpu.memory_space<vmem>>, %arg2: memref<64x32xf32, #tpu.memory_space<vmem>>, %arg3: memref<16x32xbf16, #tpu.memory_space<vmem>>, %arg4: memref<32x32xbf16, #tpu.memory_space<vmem>>, %arg5: memref<1x32xf32, #tpu.memory_space<vmem>>, %arg6: memref<32x32xbf16, #tpu.memory_space<vmem>>, %arg7: memref<1x32xf32, #tpu.memory_space<vmem>>, %arg8: memref<32x32xbf16, #tpu.memory_space<vmem>>, %arg9: memref<1x32xf32, #tpu.memory_space<vmem>>, %arg10: memref<64x32xbf16, #tpu.memory_space<vmem>>) attributes {dimension_semantics = [#tpu.dimension_semantics<parallel>], iteration_bounds = array<i64: 2>, scalar_prefetch = 0 : i64, scratch_operands = 0 : i64, tpu.core_type = #tpu.core_type<tc>, window_params = [{transform_indices = @transform_0, window_bounds = array<i64: 64, 16>}, {transform_indices = @transform_1, window_bounds = array<i64: 64, 32>}, {pipeline_mode = #tpu.pipeline_mode<synchronous>, transform_indices = @transform_2, window_bounds = array<i64: 16, 32>}, {pipeline_mode = #tpu.pipeline_mode<synchronous>, transform_indices = @transform_3, window_bounds = array<i64: 32, 32>}, {pipeline_mode = #tpu.pipeline_mode<synchronous>, transform_indices = @transform_4, window_bounds = array<i64: 1, 32>}, {pipeline_mode = #tpu.pipeline_mode<synchronous>, transform_indices = @transform_5, window_bounds = array<i64: 32, 32>}, {pipeline_mode = #tpu.pipeline_mode<synchronous>, transform_indices = @transform_6, window_bounds = array<i64: 1, 32>}, {pipeline_mode = #tpu.pipeline_mode<synchronous>, transform_indices = @transform_7, window_bounds = array<i64: 32, 32>}, {pipeline_mode = #tpu.pipeline_mode<synchronous>, transform_indices = @transform_8, window_bounds = array<i64: 1, 32>}, {transform_indices = @transform_9, window_bounds = array<i64: 64, 32>}]} {
    %c0 = arith.constant 0 : index
    %c0_0 = arith.constant 0 : index
    %0 = vector.load %arg1[%c0, %c0_0] : memref<64x16xbf16, #tpu.memory_space<vmem>>, vector<64x16xbf16>
    %c0_1 = arith.constant 0 : index
    %c0_2 = arith.constant 0 : index
    %1 = vector.load %arg2[%c0_1, %c0_2] : memref<64x32xf32, #tpu.memory_space<vmem>>, vector<64x32xf32>
    %c0_3 = arith.constant 0 : index
    %c0_4 = arith.constant 0 : index
    %2 = vector.load %arg3[%c0_3, %c0_4] : memref<16x32xbf16, #tpu.memory_space<vmem>>, vector<16x32xbf16>
    %cst = arith.constant dense<0.000000e+00> : vector<64x32xf32>
    %3 = tpu.matmul %0, %2, %cst {dimension_numbers = #tpu.dot_dimension_numbers<[1], [0], [0], [1], [0, 0, 1, 1], [], []>} : vector<64x16xbf16>, vector<16x32xbf16>, vector<64x32xf32> -> vector<64x32xf32>
    %c0_5 = arith.constant 0 : index
    %c0_6 = arith.constant 0 : index
    %4 = vector.load %arg4[%c0_5, %c0_6] : memref<32x32xbf16, #tpu.memory_space<vmem>>, vector<32x32xbf16>
    %5 = arith.truncf %1 : vector<64x32xf32> to vector<64x32xbf16>
    %cst_7 = arith.constant dense<0.000000e+00> : vector<64x32xf32>
    %6 = tpu.matmul %5, %4, %cst_7 {dimension_numbers = #tpu.dot_dimension_numbers<[1], [0], [0], [1], [0, 0, 1, 1], [], []>} : vector<64x32xbf16>, vector<32x32xbf16>, vector<64x32xf32> -> vector<64x32xf32>
    %7 = arith.addf %3, %6 : vector<64x32xf32>
    %c0_8 = arith.constant 0 : index
    %c0_9 = arith.constant 0 : index
    %8 = vector.load %arg5[%c0_8, %c0_9] : memref<1x32xf32, #tpu.memory_space<vmem>>, vector<1x32xf32>
    %9 = vector.broadcast %8 : vector<1x32xf32> to vector<64x32xf32>
    %10 = arith.addf %7, %9 : vector<64x32xf32>
    %cst_10 = arith.constant 0.000000e+00 : f32
    %11 = vector.broadcast %cst_10 : f32 to vector<64x32xf32>
    %12 = arith.maximumf %10, %11 : vector<64x32xf32>
    %c0_11 = arith.constant 0 : index
    %c0_12 = arith.constant 0 : index
    %13 = vector.load %arg6[%c0_11, %c0_12] : memref<32x32xbf16, #tpu.memory_space<vmem>>, vector<32x32xbf16>
    %c0_13 = arith.constant 0 : index
    %c0_14 = arith.constant 0 : index
    %14 = vector.load %arg7[%c0_13, %c0_14] : memref<1x32xf32, #tpu.memory_space<vmem>>, vector<1x32xf32>
    %c0_15 = arith.constant 0 : index
    %c0_16 = arith.constant 0 : index
    %15 = vector.load %arg8[%c0_15, %c0_16] : memref<32x32xbf16, #tpu.memory_space<vmem>>, vector<32x32xbf16>
    %c0_17 = arith.constant 0 : index
    %c0_18 = arith.constant 0 : index
    %16 = vector.load %arg9[%c0_17, %c0_18] : memref<1x32xf32, #tpu.memory_space<vmem>>, vector<1x32xf32>
    %17 = arith.truncf %12 : vector<64x32xf32> to vector<64x32xbf16>
    %cst_19 = arith.constant dense<0.000000e+00> : vector<64x32xf32>
    %18 = tpu.matmul %17, %13, %cst_19 {dimension_numbers = #tpu.dot_dimension_numbers<[1], [0], [0], [1], [0, 0, 1, 1], [], []>} : vector<64x32xbf16>, vector<32x32xbf16>, vector<64x32xf32> -> vector<64x32xf32>
    %19 = vector.broadcast %14 : vector<1x32xf32> to vector<64x32xf32>
    %20 = arith.addf %18, %19 : vector<64x32xf32>
    %cst_20 = arith.constant 0.000000e+00 : f32
    %21 = vector.broadcast %cst_20 : f32 to vector<64x32xf32>
    %22 = arith.maximumf %20, %21 : vector<64x32xf32>
    %23 = arith.truncf %22 : vector<64x32xf32> to vector<64x32xbf16>
    %cst_21 = arith.constant dense<0.000000e+00> : vector<64x32xf32>
    %24 = tpu.matmul %23, %15, %cst_21 {dimension_numbers = #tpu.dot_dimension_numbers<[1], [0], [0], [1], [0, 0, 1, 1], [], []>} : vector<64x32xbf16>, vector<32x32xbf16>, vector<64x32xf32> -> vector<64x32xf32>
    %25 = vector.broadcast %16 : vector<1x32xf32> to vector<64x32xf32>
    %26 = arith.addf %24, %25 : vector<64x32xf32>
    %27 = arith.addf %26, %12 : vector<64x32xf32>
    %cst_22 = arith.constant 0.000000e+00 : f32
    %28 = vector.broadcast %cst_22 : f32 to vector<64x32xf32>
    %29 = arith.maximumf %27, %28 : vector<64x32xf32>
    %30 = arith.truncf %29 : vector<64x32xf32> to vector<64x32xbf16>
    %c0_23 = arith.constant 0 : index
    %c0_24 = arith.constant 0 : index
    %31 = vector.load %arg10[%c0_23, %c0_24] : memref<64x32xbf16, #tpu.memory_space<vmem>>, vector<64x32xbf16>
    tpu.vector_store %arg10[%c0_23, %c0_24], %30 {strides = array<i32>} : memref<64x32xbf16, #tpu.memory_space<vmem>>, vector<64x32xbf16>,
    return
  }
  func.func @transform_0(%arg0: i32) -> (i32, i32) {
    %c0_i32 = arith.constant 0 : i32
    %c0_i32_0 = arith.constant 0 : i32
    return %arg0, %c0_i32 : i32, i32
  }
  func.func @transform_1(%arg0: i32) -> (i32, i32) {
    %c0_i32 = arith.constant 0 : i32
    %c0_i32_0 = arith.constant 0 : i32
    return %arg0, %c0_i32 : i32, i32
  }
  func.func @transform_2(%arg0: i32) -> (i32, i32) {
    %c0_i32 = arith.constant 0 : i32
    %c0_i32_0 = arith.constant 0 : i32
    %c0_i32_1 = arith.constant 0 : i32
    return %c0_i32, %c0_i32_0 : i32, i32
  }
  func.func @transform_3(%arg0: i32) -> (i32, i32) {
    %c0_i32 = arith.constant 0 : i32
    %c0_i32_0 = arith.constant 0 : i32
    %c0_i32_1 = arith.constant 0 : i32
    return %c0_i32, %c0_i32_0 : i32, i32
  }
  func.func @transform_4(%arg0: i32) -> (i32, i32) {
    %c0_i32 = arith.constant 0 : i32
    %c0_i32_0 = arith.constant 0 : i32
    %c0_i32_1 = arith.constant 0 : i32
    return %c0_i32, %c0_i32_0 : i32, i32
  }
  func.func @transform_5(%arg0: i32) -> (i32, i32) {
    %c0_i32 = arith.constant 0 : i32
    %c0_i32_0 = arith.constant 0 : i32
    %c0_i32_1 = arith.constant 0 : i32
    return %c0_i32, %c0_i32_0 : i32, i32
  }
  func.func @transform_6(%arg0: i32) -> (i32, i32) {
    %c0_i32 = arith.constant 0 : i32
    %c0_i32_0 = arith.constant 0 : i32
    %c0_i32_1 = arith.constant 0 : i32
    return %c0_i32, %c0_i32_0 : i32, i32
  }
  func.func @transform_7(%arg0: i32) -> (i32, i32) {
    %c0_i32 = arith.constant 0 : i32
    %c0_i32_0 = arith.constant 0 : i32
    %c0_i32_1 = arith.constant 0 : i32
    return %c0_i32, %c0_i32_0 : i32, i32
  }
  func.func @transform_8(%arg0: i32) -> (i32, i32) {
    %c0_i32 = arith.constant 0 : i32
    %c0_i32_0 = arith.constant 0 : i32
    %c0_i32_1 = arith.constant 0 : i32
    return %c0_i32, %c0_i32_0 : i32, i32
  }
  func.func @transform_9(%arg0: i32) -> (i32, i32) {
    %c0_i32 = arith.constant 0 : i32
    %c0_i32_0 = arith.constant 0 : i32
    return %arg0, %c0_i32 : i32, i32
  }
}

module attributes {stable_mosaic.version = 11 : i64} {
  func.func @_cls_head_kernel(%arg0: i32, %arg1: i32, %arg2: memref<1x32x32xbf16, #tpu.memory_space<vmem>>, %arg3: memref<1x1x128xf32, #tpu.memory_space<vmem>>, %arg4: memref<32x128xbf16, #tpu.memory_space<vmem>>, %arg5: memref<128x3xbf16, #tpu.memory_space<vmem>>, %arg6: memref<1x3xf32, #tpu.memory_space<vmem>>, %arg7: memref<1x32x3xf32, #tpu.memory_space<vmem>>) attributes {dimension_semantics = [#tpu.dimension_semantics<parallel>, #tpu.dimension_semantics<parallel>], iteration_bounds = array<i64: 2, 2>, scalar_prefetch = 0 : i64, scratch_operands = 0 : i64, tpu.core_type = #tpu.core_type<tc>, window_params = [{transform_indices = @transform_0, window_bounds = array<i64: 1, 32, 32>}, {transform_indices = @transform_1, window_bounds = array<i64: 1, 1, 128>}, {pipeline_mode = #tpu.pipeline_mode<synchronous>, transform_indices = @transform_2, window_bounds = array<i64: 32, 128>}, {pipeline_mode = #tpu.pipeline_mode<synchronous>, transform_indices = @transform_3, window_bounds = array<i64: 128, 3>}, {pipeline_mode = #tpu.pipeline_mode<synchronous>, transform_indices = @transform_4, window_bounds = array<i64: 1, 3>}, {transform_indices = @transform_5, window_bounds = array<i64: 1, 32, 3>}]} {
    %c0 = arith.constant 0 : index
    %c0_0 = arith.constant 0 : index
    %c0_1 = arith.constant 0 : index
    %0 = vector.load %arg2[%c0, %c0_0, %c0_1] : memref<1x32x32xbf16, #tpu.memory_space<vmem>>, vector<1x32x32xbf16>
    %1 = vector.shape_cast %0 : vector<1x32x32xbf16> to vector<32x32xbf16>
    %c0_2 = arith.constant 0 : index
    %c0_3 = arith.constant 0 : index
    %2 = vector.load %arg4[%c0_2, %c0_3] : memref<32x128xbf16, #tpu.memory_space<vmem>>, vector<32x128xbf16>
    %cst = arith.constant dense<0.000000e+00> : vector<32x128xf32>
    %3 = tpu.matmul %1, %2, %cst {dimension_numbers = #tpu.dot_dimension_numbers<[1], [0], [0], [1], [0, 0, 1, 1], [], []>} : vector<32x32xbf16>, vector<32x128xbf16>, vector<32x128xf32> -> vector<32x128xf32>
    %c0_4 = arith.constant 0 : index
    %c0_5 = arith.constant 0 : index
    %c0_6 = arith.constant 0 : index
    %4 = vector.load %arg3[%c0_4, %c0_5, %c0_6] : memref<1x1x128xf32, #tpu.memory_space<vmem>>, vector<1x1x128xf32>
    %5 = vector.shape_cast %4 : vector<1x1x128xf32> to vector<1x128xf32>
    %6 = vector.broadcast %5 : vector<1x128xf32> to vector<32x128xf32>
    %7 = arith.addf %3, %6 : vector<32x128xf32>
    %8 = arith.truncf %7 : vector<32x128xf32> to vector<32x128xbf16>
    %c0_7 = arith.constant 0 : index
    %c0_8 = arith.constant 0 : index
    %9 = vector.load %arg5[%c0_7, %c0_8] : memref<128x3xbf16, #tpu.memory_space<vmem>>, vector<128x3xbf16>
    %cst_9 = arith.constant dense<0.000000e+00> : vector<32x3xf32>
    %10 = tpu.matmul %8, %9, %cst_9 {dimension_numbers = #tpu.dot_dimension_numbers<[1], [0], [0], [1], [0, 0, 1, 1], [], []>} : vector<32x128xbf16>, vector<128x3xbf16>, vector<32x3xf32> -> vector<32x3xf32>
    %c0_10 = arith.constant 0 : index
    %c0_11 = arith.constant 0 : index
    %11 = vector.load %arg6[%c0_10, %c0_11] : memref<1x3xf32, #tpu.memory_space<vmem>>, vector<1x3xf32>
    %12 = vector.broadcast %11 : vector<1x3xf32> to vector<32x3xf32>
    %13 = arith.addf %10, %12 : vector<32x3xf32>
    %c0_12 = arith.constant 0 : index
    %c0_13 = arith.constant 0 : index
    %c0_14 = arith.constant 0 : index
    %14 = vector.load %arg7[%c0_12, %c0_13, %c0_14] : memref<1x32x3xf32, #tpu.memory_space<vmem>>, vector<1x32x3xf32>
    %15 = vector.shape_cast %14 : vector<1x32x3xf32> to vector<32x3xf32>
    %16 = vector.shape_cast %13 : vector<32x3xf32> to vector<1x32x3xf32>
    tpu.vector_store %arg7[%c0_12, %c0_13, %c0_14], %16 {strides = array<i32>} : memref<1x32x3xf32, #tpu.memory_space<vmem>>, vector<1x32x3xf32>,
    return
  }
  func.func @transform_0(%arg0: i32, %arg1: i32) -> (i32, i32, i32) {
    %c0_i32 = arith.constant 0 : i32
    %c0_i32_0 = arith.constant 0 : i32
    return %arg0, %arg1, %c0_i32 : i32, i32, i32
  }
  func.func @transform_1(%arg0: i32, %arg1: i32) -> (i32, i32, i32) {
    %c0_i32 = arith.constant 0 : i32
    %c0_i32_0 = arith.constant 0 : i32
    %c0_i32_1 = arith.constant 0 : i32
    return %arg0, %c0_i32, %c0_i32_0 : i32, i32, i32
  }
  func.func @transform_2(%arg0: i32, %arg1: i32) -> (i32, i32) {
    %c0_i32 = arith.constant 0 : i32
    %c0_i32_0 = arith.constant 0 : i32
    %c0_i32_1 = arith.constant 0 : i32
    return %c0_i32, %c0_i32_0 : i32, i32
  }
  func.func @transform_3(%arg0: i32, %arg1: i32) -> (i32, i32) {
    %c0_i32 = arith.constant 0 : i32
    %c0_i32_0 = arith.constant 0 : i32
    %c0_i32_1 = arith.constant 0 : i32
    return %c0_i32, %c0_i32_0 : i32, i32
  }
  func.func @transform_4(%arg0: i32, %arg1: i32) -> (i32, i32) {
    %c0_i32 = arith.constant 0 : i32
    %c0_i32_0 = arith.constant 0 : i32
    %c0_i32_1 = arith.constant 0 : i32
    return %c0_i32, %c0_i32_0 : i32, i32
  }
  func.func @transform_5(%arg0: i32, %arg1: i32) -> (i32, i32, i32) {
    %c0_i32 = arith.constant 0 : i32
    %c0_i32_0 = arith.constant 0 : i32
    return %arg0, %arg1, %c0_i32 : i32, i32, i32
  }
}

</mosaic_0001>

<bundles_post_ra>
// kernel: custom-call.24
= control target key start
LH: loop header
LB: loop body
LE: loop exit
PB: predicated region body
PF: predicated region fallthrough
CT: control target
= control target key end

     0   :  { %s6_s0 = inlined_call_operand.vmem [shape: f32[2,64], index: 0, kind: output, shape index: {}]  }

// kernel: _lambda_.20
= control target key start
LH: loop header
LB: loop body
LE: loop exit
PB: predicated region body
PF: predicated region fallthrough
CT: control target
= control target key end

     0   :  { %s584_s12 = smov 0   ;;  %s586_s13 = smov 0   ;;  %s636_s0 = inlined_call_operand.vmem [shape: f32[2,32,3], index: 0, kind: input, shape index: {}]   ;;  %s637_s1 = inlined_call_operand.vmem [shape: f32[2,32,1], index: 1, kind: input, shape index: {}]   ;;  %s638_s2 = inlined_call_operand.vmem [shape: f32[2,3,64], index: 2, kind: input, shape index: {}]   ;;  %s639_s3 = inlined_call_operand.vmem [shape: f32[2,32,64], index: 3, kind: output, shape index: {}]  }
   0x1   :  { %s588_s14 = smov 0  }
   0x2 LB: > { %s25_s15 = sadd.s32 1, %s555_s13  ;;  %p490_p0 = scmp.ge.s32.totalorder %s559_s14, 1  ;;  %s559_s14 = sphi %s588_s14, %s13_s14   ;;  %s555_s13 = sphi %s586_s13, %s641_s13   ;;  %s551_s12 = sphi %s584_s12, %s640_s12  }
   0x3   : > { %p27_p1 = scmp.ge.s32.totalorder %s25_s15, 2  ;;  %p175_p2 = scmp.lt.s32.totalorder %s559_s14, 3 }
   0x5   : > { %s643_s15 = smov (%p27_p1, %s25_s15), 0  ;;  %p176_p3 = pnand %p490_p0, %p175_p2 }
   0x6   : > { %p214_p4 = scmp.lt.s32.totalorder (!%p176_p3), %s551_s12, 1  ;;  %v561_v0 = vmov (!%p176_p3), 1   ;;  %v562_v1 = vmov (!%p176_p3), 0   ;;  %v563_v6 = vmov (!%p176_p3), 2   ;;  %vm337_vm0 = vcmask (!%p176_p3), 518144  }
   0x7   : > { %179 = sbr.rel (%p176_p3) target bundleno = 188 (0xbc), region = 32  ;;  %531 = vset.pattern.permute.xlu0 (!%p176_p3), %v561_v0  ;;  %530 = vset.pattern.permute.xlu1 (!%p176_p3), %v562_v1  ;;  %v268_v16 = vlaneseq (!%p176_p3)  ;;  %vm377_vm1 = vcmask (!%p176_p3), 523264  }
   0x9   : > { %v269_v19 = vshrl.u32 (!%p176_p3), %v268_v16, 7 }
   0xb   : > { %v270_v22 = vsub.s32 (!%p176_p3), 0, %v269_v19  ;;  %v294_v25 = vsub.s32 (!%p176_p3), 1, %v269_v19  ;;  %v322_v26 = vsub.s32 (!%p176_p3), 2, %v269_v19 }
   0xe   : > { %s645_s12 = smov (!%p214_p4, %s551_s12), 1 }
   0xf   : > { %s605_s16 = sshll.u32 %s645_s12, 5  ;;  %s495_s23 = sshll.u32 %s645_s12, 2 }
  0x10   : > { %s218_s19 = scalar_lea.vmem %s636_s0, %s605_s16  ;;  %s223_s22 = scalar_lea.vmem %s637_s1, %s605_s16 }
  0x11   : > { %v241_v2 = vld [vmem:[%s218_s19 + $0x10] sm:$0xff]  ;;  %v239_v3 = vld [vmem:[%s218_s19] sm:$0xff]  ;;  %v242_v4 = vld [vmem:[%s218_s19 + $0x18] sm:$0xff]  ;;  %s230_s26 = scalar_lea.vmem %s638_s2, %s495_s23  ;;  %s238_s29 = scalar_lea.vmem %s639_s3, %s605_s16 }
  0x12   : > { %260 = vperm.xlu1 %530, %v241_v2   ;;  %277 = vperm.xlu0 %531, %v239_v3   ;;  %v240_v5 = vld [vmem:[%s218_s19 + $0x8] sm:$0xff]  ;;  %v243_v7 = vld [vmem:[%s223_s22] sm:$0xff]  ;;  %v246_v8 = vld [vmem:[%s223_s22 + $0x18] sm:$0xff] }
  0x13   : > { %v244_v9 = vld [vmem:[%s223_s22 + $0x8] sm:$0xff]  ;;  %v245_v10 = vld [vmem:[%s223_s22 + $0x10] sm:$0xff]  ;;  %v247_v11 = vld [vmem:[%s230_s26] sm:$0x7] }
  0x14   : > { %v336_v12 = vmul.f32 %v247_v11, %v247_v11  ;;  %v271_v28 = vrot.slane %v247_v11, %v270_v22  ;;  %v295_v31 = vrot.slane %v247_v11, %v294_v25  ;;  %v323_v32 = vrot.slane %v247_v11, %v322_v26 }
  0x16   : > { %265 = vperm.xlu1 %530, %v242_v4   ;;  %289 = vperm.xlu0 %531, %v242_v4   ;;  %v338_v15 = vsel %vm337_vm0, %v336_v12, 0.0 }
  0x17   : > { %v339_v17 = vrot.slane %v338_v15, 4 }
  0x19   : > { %v340_v21 = vadd.f32 %v339_v17, %v338_v15 }
  0x1a   : > { %532 = vset.pattern.permute.xlu1 %v561_v0  ;;  %534 = vset.pattern.permute.xlu0 %v563_v6 }
  0x1b   : > { %281 = vperm.xlu1 %532, %v240_v5   ;;  %309 = vperm.xlu0 %534, %v240_v5   ;;  %v341_v27 = vrot.slane %v340_v21, 2 }
  0x1d   : > { %v342_v34 = vadd.f32 %v341_v27, %v340_v21 }
  0x1f   : > { %285 = vperm.xlu1 %532, %v241_v2   ;;  %535 = vset.pattern.permute.xlu0 %v562_v1  ;;  %v343_v41 = vrot.slane %v342_v34, 1 }
  0x20   : > { %250 = vperm.xlu0 %535, %v239_v3  }
  0x21   : > { %v344_v49 = vadd.f32 %v343_v41, %v342_v34 }
  0x23   : > { %533 = vset.pattern.permute.xlu1 %v563_v6 }
  0x24   : > { %305 = vperm.xlu1 %533, %v239_v3   ;;  %255 = vperm.xlu0 %535, %v240_v5  }
  0x28   : > { %313 = vperm.xlu1 %533, %v241_v2   ;;  %347 = vperm.xlu0 %535, %v243_v7  }
  0x2c   : > { %317 = vperm.xlu1 %533, %v242_v4   ;;  %362 = vperm.xlu0 %535, %v246_v8  }
  0x30   : > { %536 = vset.pattern.permute.xlu1 %v562_v1 }
  0x31   : > { %352 = vperm.xlu1 %536, %v244_v9  }
  0x35   : > { %357 = vperm.xlu1 %536, %v245_v10  }
  0x91   : > { %v261_v13 = vpop.permute.xlu1 %260  ;;  %v278_v14 = vpop.permute.xlu0 %277 }
  0x92   : > { %v296_v35 = vmul.f32 %v295_v31, %v278_v14  ;;  %v274_v54 = vmul.f32 %v271_v28, %v261_v13 }
  0x95   : > { %v266_v18 = vpop.permute.xlu1 %265  ;;  %v290_v20 = vpop.permute.xlu0 %289 }
  0x96   : > { %v275_v46 = vmul.f32 %v271_v28, %v266_v18  ;;  %v299_v47 = vmul.f32 %v295_v31, %v290_v20 }
  0x98   : > { %v303_v58 = vadd.f32 %v299_v47, %v275_v46 }
  0x9a   : > { %v282_v23 = vpop.permute.xlu1 %281  ;;  %v310_v24 = vpop.permute.xlu0 %309 }
  0x9b   : > { %v297_v42 = vmul.f32 %v295_v31, %v282_v23  ;;  %v325_v50 = vmul.f32 %v323_v32, %v310_v24 }
  0x9e   : > { %v286_v29 = vpop.permute.xlu1 %285 }
  0x9f   : > { %v251_v30 = vpop.permute.xlu0 %250  ;;  %v298_v51 = vmul.f32 %v295_v31, %v286_v29 }
  0xa0   : > { %v272_v33 = vmul.f32 %v271_v28, %v251_v30 }
  0xa1   : > { %v302_v61 = vadd.f32 %v298_v51, %v274_v54 }
  0xa2   : > { %v300_v38 = vadd.f32 %v296_v35, %v272_v33 }
  0xa3   : > { %v306_v36 = vpop.permute.xlu1 %305  ;;  %v256_v37 = vpop.permute.xlu0 %255 }
  0xa4   : > { %v324_v39 = vmul.f32 %v323_v32, %v306_v36  ;;  %v273_v40 = vmul.f32 %v271_v28, %v256_v37 }
  0xa6   : > { %v328_v43 = vadd.f32 %v324_v39, %v300_v38  ;;  %v301_v44 = vadd.f32 %v297_v42, %v273_v40 }
  0xa7   : > { %v314_v45 = vpop.permute.xlu1 %313  ;;  %v348_v52 = vpop.permute.xlu0 %347 }
  0xa8   : > { %v332_v48 = vmul.f32 2.0, %v328_v43  ;;  %v326_v55 = vmul.f32 %v323_v32, %v314_v45  ;;  %v329_v57 = vadd.f32 %v325_v50, %v301_v44 }
  0xaa   : > { %v365_v53 = vsub.f32 %v332_v48, %v348_v52  ;;  %v330_v0 = vadd.f32 %v326_v55, %v302_v61  ;;  %v333_v1 = vmul.f32 2.0, %v329_v57 }
  0xab   : > { %v318_v56 = vpop.permute.xlu1 %317  ;;  %v363_v4 = vpop.permute.xlu0 %362 }
  0xac   : > { %v369_v59 = vsub.f32 %v365_v53, %v344_v49  ;;  %v327_v60 = vmul.f32 %v323_v32, %v318_v56  ;;  %v334_v8 = vmul.f32 2.0, %v330_v0 }
  0xae   : > { %v373_v62 = vmin.f32 %v369_v59, 0.0  ;;  %v331_v63 = vadd.f32 %v327_v60, %v303_v58 }
  0xb0   : > { %378 = vst.msk [vmem:[%s238_s29] sm:$0xff] %vm377_vm1, %v373_v62  ;;  %v335_v2 = vmul.f32 2.0, %v331_v63  ;;  %v353_v3 = vpop.permute.xlu1 %352 }
  0xb1   : > { %v366_v5 = vsub.f32 %v333_v1, %v353_v3 }
  0xb2   : > { %v368_v6 = vsub.f32 %v335_v2, %v363_v4 }
  0xb3   : > { %v370_v7 = vsub.f32 %v366_v5, %v344_v49 }
  0xb4   : > { %v372_v9 = vsub.f32 %v368_v6, %v344_v49  ;;  %v358_v10 = vpop.permute.xlu1 %357 }
  0xb5   : > { %v374_v11 = vmin.f32 %v370_v7, 0.0  ;;  %v367_v12 = vsub.f32 %v334_v8, %v358_v10 }
  0xb6   : > { %v376_v13 = vmin.f32 %v372_v9, 0.0 }
  0xb7   : > { %379 = vst.msk [vmem:[%s238_s29 + $0x8] sm:$0xff] %vm377_vm1, %v374_v11  ;;  %v371_v14 = vsub.f32 %v367_v12, %v344_v49 }
  0xb8   : > { %381 = vst.msk [vmem:[%s238_s29 + $0x18] sm:$0xff] %vm377_vm1, %v376_v13 }
  0xb9   : > { %v375_v15 = vmin.f32 %v371_v14, 0.0 }
  0xbb   : > { %380 = vst.msk [vmem:[%s238_s29 + $0x10] sm:$0xff] %vm377_vm1, %v375_v15 }
  0xbc PF: > { %s13_s14 = sadd.s32 1, %s559_s14   ;;  %s640_s12 = smov %s555_s13 }
  0xbd   : > { %p10_p5 = scmp.ge.s32.totalorder %s13_s14, 4   ;;  %s641_s13 = smov %s643_s15 }
  0xbf   :  { %12 = sbr.rel (!%p10_p5) target bundleno = 2 (0x2), region = 68 }

// kernel: _lambda_.18
= control target key start
LH: loop header
LB: loop body
LE: loop exit
PB: predicated region body
PF: predicated region fallthrough
CT: control target
= control target key end

     0   :  { %s698_s18 = smov 0   ;;  %s757_s0 = inlined_call_operand.vmem [shape: f32[128,3], index: 0, kind: input, shape index: {}]   ;;  %s758_s1 = inlined_call_operand.vmem [shape: f32[128,3], index: 1, kind: input, shape index: {}]   ;;  %s759_s2 = inlined_call_operand.vmem [shape: bf16[3,16], index: 2, kind: input, shape index: {}]   ;;  %s760_s3 = inlined_call_operand.vmem [shape: bf16[3,16], index: 3, kind: input, shape index: {}]   ;;  %s761_s4 = inlined_call_operand.vmem [shape: f32[1,16], index: 4, kind: input, shape index: {}]   ;;  %s762_s5 = inlined_call_operand.vmem [shape: bf16[128,16], index: 5, kind: output, shape index: {}]  }
   0x1 LB: > { %s574_s19 = sadd.s32 4294967295, %s665_s18   ;;  %p578_p0 = scmp.ge.s32.totalorder %s665_s18, 1  ;;  %s665_s18 = sphi %s698_s18, %s15_s18  }
   0x2   : > { %p199_p1 = scmp.lt.s32.totalorder %s665_s18, 3 }
   0x4   : > { %p200_p2 = pnand %p578_p0, %p199_p1 }
   0x5   : > { %v272_v0 = vld [vmem:[%s760_s3] sm:$0x3] (!%p200_p2)  ;;  %vm290_vm0 = vcmask (!%p200_p2), 1040384   ;;  %vm291_vm1 = vcmask (!%p200_p2), 1041408   ;;  %s579_s22 = sshll.u32 (!%p200_p2), %s574_s19, 3  ;;  %v667_v1 = vmov (!%p200_p2), 65535  }
   0x6   : > { %203 = sbr.rel (%p200_p2) target bundleno = 253 (0xfd), region = 40  ;;  %v292_v2 = vsel (!%p200_p2), %vm290_vm0, 4294967295, %v667_v1  ;;  %v267_v3 = vld [vmem:[%s759_s2] sm:$0x3] (!%p200_p2)  ;;  %p233_p3 = scmp.lt.s32.totalorder (!%p200_p2), %s579_s22, 15  ;;  %vm277_vm2 = vcmask (!%p200_p2), 23552  }
   0x7   : > { %v293_v4 = vsel (!%p200_p2), %vm291_vm1, %v292_v2, 0  ;;  %v593_v33 = vld [vmem:[%s761_s4] ss:$0 sm:$0xff] (!%p200_p2)  ;;  %vm497_vm3 = vcmask (!%p200_p2), 125952  }
   0x8   : > { %v295_v5 = vand.u32 (!%p200_p2), %v293_v4, %v272_v0  ;;  %v375_v6 = vand.u32 (!%p200_p2), %v293_v4, %v267_v3 }
   0xa   : > { %622 = vmatprep.subr.bf16.mxu1 (!%p200_p2), %v295_v5  ;;  %632 = vmatprep.subr.bf16.mxu0 (!%p200_p2), %v375_v6 }
   0xb   : > { %623 = vmatpush3.bf16.msra.mxu1 (!%p200_p2), %v295_v5  ;;  %633 = vmatpush3.bf16.msra.mxu0 (!%p200_p2), %v375_v6 }
   0xd   : > { %s764_s22 = smov (!%p233_p3, %s579_s22), 15 }
   0xe   : > { %s580_s25 = sshll.u32 %s764_s22, 3  ;;  %s584_s9 = sshll.u32 %s764_s22, 2 }
   0xf   : > { %s242_s28 = scalar_lea.vmem %s758_s1, %s580_s25  ;;  %s236_s6 = scalar_lea.vmem %s757_s0, %s580_s25 }
  0x10   : > { %v259_v7 = vld [vmem:[%s242_s28] sm:$0xff]  ;;  %v260_v8 = vld [vmem:[%s242_s28 + $0x8] sm:$0xff]  ;;  %v261_v9 = vld [vmem:[%s242_s28 + $0x10] sm:$0xff]  ;;  %s736_s12 = scalar_lea.vmem %s762_s5, %s584_s9 }
  0x11   : > { %v273_v10 = vpack.c.bf16 %v260_v8, %v259_v7  ;;  %v251_v11 = vld [vmem:[%s236_s6] sm:$0xff]  ;;  %v252_v12 = vld [vmem:[%s236_s6 + $0x8] sm:$0xff]  ;;  %v262_v13 = vld [vmem:[%s242_s28 + $0x18] sm:$0xff] }
  0x12   : > { %v268_v14 = vpack.c.bf16 %v252_v12, %v251_v11  ;;  %v274_v15 = vpack.c.bf16 %v262_v13, %v261_v9  ;;  %v253_v16 = vld [vmem:[%s236_s6 + $0x10] sm:$0xff]  ;;  %v254_v17 = vld [vmem:[%s236_s6 + $0x18] sm:$0xff]  ;;  %v263_v18 = vld [vmem:[%s242_s28 + $0x20] sm:$0xff] }
  0x13   : > { %624 = vmatprep.mubr.msk.bf16.mxu1 %vm277_vm2, %v273_v10  ;;  %v269_v19 = vpack.c.bf16 %v254_v17, %v253_v16  ;;  %v264_v20 = vld [vmem:[%s242_s28 + $0x28] sm:$0xff]  ;;  %v255_v21 = vld [vmem:[%s236_s6 + $0x20] sm:$0xff]  ;;  %v265_v25 = vld [vmem:[%s242_s28 + $0x30] sm:$0xff] }
  0x14   : > { %v256_v22 = vld [vmem:[%s236_s6 + $0x28] sm:$0xff]  ;;  %634 = vmatprep.mubr.msk.bf16.mxu0 %vm277_vm2, %v268_v14  ;;  %625 = vmatmul.mubr.msk.bf16.vlgmr.msra.gmra.mrb[0].mxu1 %vm277_vm2, %v274_v15  ;;  %v275_v23 = vpack.c.bf16 %v264_v20, %v263_v18  ;;  %v266_v26 = vld [vmem:[%s242_s28 + $0x38] sm:$0xff]  ;;  %v257_v27 = vld [vmem:[%s236_s6 + $0x30] sm:$0xff] }
  0x15   : > { %v270_v24 = vpack.c.bf16 %v256_v22, %v255_v21  ;;  %635 = vmatmul.mubr.msk.bf16.vlgmr.msra.gmra.mrb[0].mxu0 %vm277_vm2, %v269_v19  ;;  %v258_v28 = vld [vmem:[%s236_s6 + $0x38] sm:$0xff]  ;;  %v276_v29 = vpack.c.bf16 %v266_v26, %v265_v25 }
  0x16   : > { %628 = vmatprep.mubr.msk.bf16.mxu1 %vm277_vm2, %v275_v23  ;;  %v271_v30 = vpack.c.bf16 %v258_v28, %v257_v27 }
  0x17   : > { %638 = vmatprep.mubr.msk.bf16.mxu0 %vm277_vm2, %v270_v24 }
  0x1c   : > { %629 = vmatmul.mubr.msk.bf16.gmra.mrb[4].mxu1 %vm277_vm2, %v276_v29 }
  0x1d   : > { %639 = vmatmul.mubr.msk.bf16.gmra.mrb[4].mxu0 %vm277_vm2, %v271_v30 }
  0xe7   : > { %v626_v31 = vpop.f32.mrb[0].mxu1 }
  0xe8   : > { %v636_v32 = vpop.f32.mrb[0].mxu0  ;;  %v331_v34 = vpop.f32.mrb[1].mxu1 }
  0xe9   : > { %v420_v35 = vadd.f32 %v636_v32, %v626_v31  ;;  %v411_v36 = vpop.f32.mrb[1].mxu0  ;;  %v627_v37 = vpop.f32.mrb[2].mxu1 }
  0xea   : > { %v412_v38 = vadd.f32 %v411_v36, %v331_v34  ;;  %v637_v39 = vpop.f32.mrb[2].mxu0  ;;  %v334_v40 = vpop.f32.mrb[3].mxu1 }
  0xeb   : > { %v451_v41 = vadd.f32 %v593_v33, %v420_v35  ;;  %v423_v42 = vadd.f32 %v637_v39, %v627_v37  ;;  %v414_v43 = vpop.f32.mrb[3].mxu0 }
  0xec   : > { %v449_v44 = vadd.f32 %v593_v33, %v412_v38  ;;  %v415_v45 = vadd.f32 %v414_v43, %v334_v40 }
  0xed   : > { %v459_v46 = vmax.f32 %v451_v41, 0.0  ;;  %v452_v47 = vadd.f32 %v593_v33, %v423_v42 }
  0xee   : > { %v457_v48 = vmax.f32 %v449_v44, 0.0  ;;  %v450_v49 = vadd.f32 %v593_v33, %v415_v45 }
  0xef   : > { %v606_v50 = vpack.c.bf16 %v459_v46, %v459_v46  ;;  %v460_v51 = vmax.f32 %v452_v47, 0.0  ;;  %v630_v52 = vpop.f32.mrb[4].mxu1 }
  0xf0   : > { %v604_v53 = vpack.c.bf16 %v457_v48, %v457_v48  ;;  %v458_v54 = vmax.f32 %v450_v49, 0.0  ;;  %v640_v55 = vpop.f32.mrb[4].mxu0  ;;  %v347_v56 = vpop.f32.mrb[5].mxu1 }
  0xf1   : > { %500 = vst.msk [vmem:[%s736_s12 + $0x8] sm:$0xf] %vm497_vm3, %v606_v50  ;;  %v607_v57 = vpack.c.bf16 %v460_v51, %v460_v51  ;;  %v436_v58 = vadd.f32 %v640_v55, %v630_v52  ;;  %v427_v59 = vpop.f32.mrb[5].mxu0  ;;  %v631_v60 = vpop.f32.mrb[6].mxu1 }
  0xf2   : > { %498 = vst.msk [vmem:[%s736_s12] sm:$0xf] %vm497_vm3, %v604_v53  ;;  %v605_v61 = vpack.c.bf16 %v458_v54, %v458_v54  ;;  %v428_v62 = vadd.f32 %v427_v59, %v347_v56  ;;  %v641_v63 = vpop.f32.mrb[6].mxu0  ;;  %v350_v0 = vpop.f32.mrb[7].mxu1 }
  0xf3   : > { %501 = vst.msk [vmem:[%s736_s12 + $0xc] sm:$0xf] %vm497_vm3, %v607_v57  ;;  %v455_v1 = vadd.f32 %v593_v33, %v436_v58  ;;  %v439_v2 = vadd.f32 %v641_v63, %v631_v60  ;;  %v430_v3 = vpop.f32.mrb[7].mxu0 }
  0xf4   : > { %499 = vst.msk [vmem:[%s736_s12 + $0x4] sm:$0xf] %vm497_vm3, %v605_v61  ;;  %v453_v4 = vadd.f32 %v593_v33, %v428_v62  ;;  %v431_v5 = vadd.f32 %v430_v3, %v350_v0 }
  0xf5   : > { %v463_v6 = vmax.f32 %v455_v1, 0.0  ;;  %v456_v7 = vadd.f32 %v593_v33, %v439_v2 }
  0xf6   : > { %v461_v8 = vmax.f32 %v453_v4, 0.0  ;;  %v454_v9 = vadd.f32 %v593_v33, %v431_v5 }
  0xf7   : > { %v610_v10 = vpack.c.bf16 %v463_v6, %v463_v6  ;;  %v464_v11 = vmax.f32 %v456_v7, 0.0 }
  0xf8   : > { %v608_v12 = vpack.c.bf16 %v461_v8, %v461_v8  ;;  %v462_v13 = vmax.f32 %v454_v9, 0.0 }
  0xf9   : > { %504 = vst.msk [vmem:[%s736_s12 + $0x18] sm:$0xf] %vm497_vm3, %v610_v10  ;;  %v611_v14 = vpack.c.bf16 %v464_v11, %v464_v11 }
  0xfa   : > { %502 = vst.msk [vmem:[%s736_s12 + $0x10] sm:$0xf] %vm497_vm3, %v608_v12  ;;  %v609_v15 = vpack.c.bf16 %v462_v13, %v462_v13 }
  0xfb   : > { %505 = vst.msk [vmem:[%s736_s12 + $0x1c] sm:$0xf] %vm497_vm3, %v611_v14 }
  0xfc   : > { %503 = vst.msk [vmem:[%s736_s12 + $0x14] sm:$0xf] %vm497_vm3, %v609_v15 }
  0xfd PF: > { %s15_s18 = sadd.s32 1, %s665_s18  }
  0xfe   : > { %p12_p4 = scmp.ge.s32.totalorder %s15_s18, 4  }
 0x100   :  { %14 = sbr.rel (!%p12_p4) target bundleno = 1 (0x1), region = 73 }

// kernel: custom-call.25
= control target key start
LH: loop header
LB: loop body
LE: loop exit
PB: predicated region body
PF: predicated region fallthrough
CT: control target
= control target key end

     0   :  { %s6_s0 = inlined_call_operand.vmem [shape: f32[2,32], index: 0, kind: output, shape index: {}]  }

// kernel: _lambda_.22
= control target key start
LH: loop header
LB: loop body
LE: loop exit
PB: predicated region body
PF: predicated region fallthrough
CT: control target
= control target key end

     0   :  { %s604_s18 = smov 0   ;;  %s650_s0 = inlined_call_operand.vmem [shape: bf16[64,32], index: 0, kind: input, shape index: {}]   ;;  %s651_s1 = inlined_call_operand.vmem [shape: bf16[32,32], index: 1, kind: input, shape index: {}]   ;;  %s652_s2 = inlined_call_operand.vmem [shape: f32[1,32], index: 2, kind: input, shape index: {}]   ;;  %s653_s3 = inlined_call_operand.vmem [shape: bf16[32,32], index: 3, kind: input, shape index: {}]   ;;  %s654_s4 = inlined_call_operand.vmem [shape: f32[1,32], index: 4, kind: input, shape index: {}]   ;;  %s655_s5 = inlined_call_operand.vmem [shape: bf16[64,32], index: 5, kind: output, shape index: {}]  }
   0x1 LB: > { %s495_s19 = sadd.s32 4294967295, %s572_s18   ;;  %p499_p0 = scmp.ge.s32.totalorder %s572_s18, 1  ;;  %s572_s18 = sphi %s604_s18, %s15_s18  }
   0x2   : > { %p188_p1 = scmp.lt.s32.totalorder %s572_s18, 3 }
   0x4   : > { %p189_p2 = pnand %p499_p0, %p188_p1 }
   0x5   : > { %v558_v0 = vld [vmem:[%s651_s1] sm:$0xff] (!%p189_p2)   ;;  %s500_s22 = sshll.u32 (!%p189_p2), %s495_s19, 2  ;;  %v559_v1 = vld [vmem:[%s651_s1 + $0x8] sm:$0xff] (!%p189_p2)   ;;  %vm275_vm0 = vcmask (!%p189_p2), 261120   ;;  %vm434_vm1 = vcmask (!%p189_p2), 257024  }
   0x6   : > { %192 = sbr.rel (%p189_p2) target bundleno = 464 (0x1d0), region = 40  ;;  %p217_p3 = scmp.lt.s32.totalorder (!%p189_p2), %s500_s22, 7  ;;  %534 = vmatprep.subr.bf16.mxu0 (!%p189_p2), %v558_v0  ;;  %v562_v4 = vld [vmem:[%s653_s3] sm:$0xff] (!%p189_p2)   ;;  %v563_v5 = vld [vmem:[%s653_s3 + $0x8] sm:$0xff] (!%p189_p2)  }
   0x7   : > { %535 = vmatpush3.bf16.msra.mxu0 (!%p189_p2), %v558_v0  ;;  %542 = vmatprep.subr.bf16.mxu1 (!%p189_p2), %v562_v4  ;;  %v504_v6 = vld [vmem:[%s652_s2] ss:$0 sm:$0xff] (!%p189_p2) }
   0x8   : > { %536 = vmatprep.subr.bf16.mxu0 (!%p189_p2), %v559_v1  ;;  %543 = vmatpush3.bf16.msra.mxu1 (!%p189_p2), %v562_v4  ;;  %v511_v21 = vld [vmem:[%s654_s4] ss:$0 sm:$0xff] (!%p189_p2) }
   0x9   : > { %544 = vmatprep.subr.bf16.mxu1 (!%p189_p2), %v563_v5 }
   0xb   : > { %537 = vmatpush3.bf16.msra.mxu0 (!%p189_p2), %v559_v1 }
   0xc   : > { %545 = vmatpush3.bf16.msra.mxu1 (!%p189_p2), %v563_v5 }
   0xd   : > { %s657_s22 = smov (!%p217_p3, %s500_s22), 7 }
   0xe   : > { %s501_s25 = sshll.u32 %s657_s22, 2 }
   0xf   : > { %s220_s28 = scalar_lea.vmem %s650_s0, %s501_s25  ;;  %s226_s14 = scalar_lea.vmem %s655_s5, %s501_s25 }
  0x10   : > { %v229_v2 = vld [vmem:[%s220_s28] sm:$0xff]   ;;  %v231_v3 = vld [vmem:[%s220_s28 + $0x8] sm:$0xff]  }
  0x11   : > { %538 = vmatprep.mubr.msk.bf16.mxu0 %vm275_vm0, %v229_v2  ;;  %v245_v22 = vunpack.c.l.bf16 %v231_v3  ;;  %v243_v23 = vunpack.c.l.bf16 %v229_v2  ;;  %v246_v27 = vunpack.c.h.bf16 %v231_v3  ;;  %v244_v28 = vunpack.c.h.bf16 %v229_v2 }
  0x12   : > { %539 = vmatmul.mubr.msk.bf16.vlgmr.msra.gmra.mrb[0].mxu0 %vm275_vm0, %v231_v3 }
  0xe5   : > { %v540_v7 = vpop.f32.mrb[0].mxu0 }
  0xe6   : > { %v325_v8 = vadd.f32 %v540_v7, %v504_v6  ;;  %v316_v9 = vpop.f32.mrb[1].mxu0 }
  0xe7   : > { %v317_v10 = vadd.f32 %v504_v6, %v316_v9  ;;  %v541_v11 = vpop.f32.mrb[2].mxu0 }
  0xe8   : > { %v328_v12 = vadd.f32 %v541_v11, %v504_v6  ;;  %v319_v13 = vpop.f32.mrb[3].mxu0  ;;  %v333_v15 = vmax.f32 %v325_v8, 0.0 }
  0xe9   : > { %v320_v14 = vadd.f32 %v504_v6, %v319_v13  ;;  %v331_v17 = vmax.f32 %v317_v10, 0.0 }
  0xea   : > { %v334_v16 = vmax.f32 %v328_v12, 0.0 }
  0xeb   : > { %v332_v18 = vmax.f32 %v320_v14, 0.0 }
  0xec   : > { %v336_v19 = vpack.c.bf16 %v334_v16, %v333_v15 }
  0xed   : > { %v335_v20 = vpack.c.bf16 %v332_v18, %v331_v17 }
  0xef   : > { %546 = vmatprep.mubr.msk.bf16.mxu1 %vm275_vm0, %v335_v20 }
  0xf0   : > { %547 = vmatmul.mubr.msk.bf16.vlgmr.msra.gmra.mrb[0].mxu1 %vm275_vm0, %v336_v19 }
 0x1c3   : > { %v548_v24 = vpop.f32.mrb[0].mxu1 }
 0x1c4   : > { %v404_v25 = vadd.f32 %v548_v24, %v511_v21  ;;  %v395_v26 = vpop.f32.mrb[1].mxu1 }
 0x1c5   : > { %v396_v29 = vadd.f32 %v511_v21, %v395_v26  ;;  %v549_v30 = vpop.f32.mrb[2].mxu1 }
 0x1c6   : > { %v412_v31 = vadd.f32 %v404_v25, %v245_v22  ;;  %v407_v32 = vadd.f32 %v549_v30, %v511_v21  ;;  %v398_v33 = vpop.f32.mrb[3].mxu1 }
 0x1c7   : > { %v410_v34 = vadd.f32 %v396_v29, %v243_v23  ;;  %v399_v35 = vadd.f32 %v511_v21, %v398_v33 }
 0x1c8   : > { %v413_v36 = vadd.f32 %v407_v32, %v246_v27  ;;  %v416_v39 = vmax.f32 %v412_v31, 0.0 }
 0x1c9   : > { %v414_v37 = vmax.f32 %v410_v34, 0.0  ;;  %v411_v38 = vadd.f32 %v399_v35, %v244_v28 }
 0x1ca   : > { %v417_v41 = vmax.f32 %v413_v36, 0.0  ;;  %v524_v44 = vpack.c.bf16 %v416_v39, %v416_v39 }
 0x1cb   : > { %v522_v40 = vpack.c.bf16 %v414_v37, %v414_v37  ;;  %v415_v42 = vmax.f32 %v411_v38, 0.0 }
 0x1cc   : > { %v525_v45 = vpack.c.bf16 %v417_v41, %v417_v41  ;;  %437 = vst.msk [vmem:[%s226_s14 + $0x8] sm:$0xf] %vm434_vm1, %v524_v44 }
 0x1cd   : > { %435 = vst.msk [vmem:[%s226_s14] sm:$0xf] %vm434_vm1, %v522_v40  ;;  %v523_v43 = vpack.c.bf16 %v415_v42, %v415_v42 }
 0x1ce   : > { %438 = vst.msk [vmem:[%s226_s14 + $0xc] sm:$0xf] %vm434_vm1, %v525_v45 }
 0x1cf   : > { %436 = vst.msk [vmem:[%s226_s14 + $0x4] sm:$0xf] %vm434_vm1, %v523_v43 }
 0x1d0 PF: > { %s15_s18 = sadd.s32 1, %s572_s18  }
 0x1d1   : > { %p12_p4 = scmp.ge.s32.totalorder %s15_s18, 4  }
 0x1d3   :  { %14 = sbr.rel (!%p12_p4) target bundleno = 1 (0x1), region = 70 }

// kernel: _lambda_.24
= control target key start
LH: loop header
LB: loop body
LE: loop exit
PB: predicated region body
PF: predicated region fallthrough
CT: control target
= control target key end

     0   :  { %s523_s12 = smov 0   ;;  %s525_s13 = smov 0   ;;  %s567_s0 = inlined_call_operand.vmem [shape: f32[2,16,3], index: 0, kind: input, shape index: {}]   ;;  %s568_s1 = inlined_call_operand.vmem [shape: f32[2,16,1], index: 1, kind: input, shape index: {}]   ;;  %s569_s2 = inlined_call_operand.vmem [shape: f32[2,3,32], index: 2, kind: input, shape index: {}]   ;;  %s570_s3 = inlined_call_operand.vmem [shape: f32[2,16,32], index: 3, kind: output, shape index: {}]  }
   0x1   :  { %s527_s14 = smov 0  }
   0x2 LB: > { %s25_s15 = sadd.s32 1, %s494_s13  ;;  %p430_p0 = scmp.ge.s32.totalorder %s498_s14, 1  ;;  %s498_s14 = sphi %s527_s14, %s13_s14   ;;  %s494_s13 = sphi %s525_s13, %s572_s13   ;;  %s490_s12 = sphi %s523_s12, %s571_s12  }
   0x3   : > { %p27_p1 = scmp.ge.s32.totalorder %s25_s15, 2  ;;  %p175_p2 = scmp.lt.s32.totalorder %s498_s14, 3 }
   0x5   : > { %s574_s15 = smov (%p27_p1, %s25_s15), 0  ;;  %p176_p3 = pnand %p430_p0, %p175_p2 }
   0x6   : > { %p214_p4 = scmp.lt.s32.totalorder (!%p176_p3), %s490_s12, 1  ;;  %v500_v0 = vmov (!%p176_p3), 1   ;;  %v501_v1 = vmov (!%p176_p3), 0   ;;  %v502_v4 = vmov (!%p176_p3), 2   ;;  %vm295_vm0 = vcmask (!%p176_p3), 256000  }
   0x7   : > { %179 = sbr.rel (%p176_p3) target bundleno = 168 (0xa8), region = 32  ;;  %471 = vset.pattern.permute.xlu1 (!%p176_p3), %v500_v0  ;;  %470 = vset.pattern.permute.xlu0 (!%p176_p3), %v501_v1  ;;  %v254_v9 = vlaneseq (!%p176_p3)  ;;  %vm319_vm1 = vcmask (!%p176_p3), 261120  }
   0x9   : > { %v255_v12 = vshrl.u32 (!%p176_p3), %v254_v9, 7 }
   0xb   : > { %v270_v14 = vsub.s32 (!%p176_p3), 1, %v255_v12  ;;  %v256_v15 = vsub.s32 (!%p176_p3), 0, %v255_v12  ;;  %v286_v18 = vsub.s32 (!%p176_p3), 2, %v255_v12 }
   0xe   : > { %s576_s12 = smov (!%p214_p4, %s490_s12), 1 }
   0xf   : > { %s541_s16 = sshll.u32 %s576_s12, 4  ;;  %s435_s23 = sshll.u32 %s576_s12, 2 }
  0x10   : > { %s218_s19 = scalar_lea.vmem %s567_s0, %s541_s16  ;;  %s223_s22 = scalar_lea.vmem %s568_s1, %s541_s16 }
  0x11   : > { %v239_v2 = vld [vmem:[%s218_s19] sm:$0xff]  ;;  %v240_v3 = vld [vmem:[%s218_s19 + $0x8] sm:$0xff]  ;;  %s230_s26 = scalar_lea.vmem %s569_s2, %s435_s23  ;;  %s238_s29 = scalar_lea.vmem %s570_s3, %s541_s16 }
  0x12   : > { %261 = vperm.xlu1 %471, %v239_v2   ;;  %246 = vperm.xlu0 %470, %v239_v2   ;;  %v241_v5 = vld [vmem:[%s223_s22] sm:$0xff]  ;;  %v242_v6 = vld [vmem:[%s223_s22 + $0x8] sm:$0xff] }
  0x13   : > { %v243_v7 = vld [vmem:[%s230_s26] sm:$0x7] }
  0x14   : > { %v294_v8 = vmul.f32 %v243_v7, %v243_v7  ;;  %v271_v20 = vrot.slane %v243_v7, %v270_v14  ;;  %v257_v21 = vrot.slane %v243_v7, %v256_v15  ;;  %v287_v24 = vrot.slane %v243_v7, %v286_v18 }
  0x16   : > { %265 = vperm.xlu1 %471, %v240_v3   ;;  %251 = vperm.xlu0 %470, %v240_v3   ;;  %v296_v10 = vsel %vm295_vm0, %v294_v8, 0.0 }
  0x17   : > { %v297_v11 = vrot.slane %v296_v10, 4 }
  0x19   : > { %v298_v13 = vadd.f32 %v297_v11, %v296_v10 }
  0x1a   : > { %473 = vset.pattern.permute.xlu1 %v502_v4  ;;  %472 = vset.pattern.permute.xlu0 %v502_v4 }
  0x1b   : > { %281 = vperm.xlu1 %473, %v240_v3   ;;  %277 = vperm.xlu0 %472, %v239_v2   ;;  %v299_v19 = vrot.slane %v298_v13, 2 }
  0x1d   : > { %v300_v25 = vadd.f32 %v299_v19, %v298_v13 }
  0x1f   : > { %474 = vset.pattern.permute.xlu1 %v501_v1  ;;  %475 = vset.pattern.permute.xlu0 %v501_v1  ;;  %v301_v32 = vrot.slane %v300_v25, 1 }
  0x20   : > { %305 = vperm.xlu1 %474, %v241_v5   ;;  %310 = vperm.xlu0 %475, %v242_v6  }
  0x21   : > { %v302_v39 = vadd.f32 %v301_v32, %v300_v25 }
  0x91   : > { %v262_v16 = vpop.permute.xlu1 %261  ;;  %v247_v17 = vpop.permute.xlu0 %246 }
  0x92   : > { %v272_v26 = vmul.f32 %v271_v20, %v262_v16  ;;  %v258_v27 = vmul.f32 %v257_v21, %v247_v17 }
  0x94   : > { %v274_v33 = vadd.f32 %v272_v26, %v258_v27 }
  0x95   : > { %v266_v22 = vpop.permute.xlu1 %265  ;;  %v252_v23 = vpop.permute.xlu0 %251 }
  0x96   : > { %v273_v28 = vmul.f32 %v271_v20, %v266_v22  ;;  %v259_v29 = vmul.f32 %v257_v21, %v252_v23 }
  0x98   : > { %v275_v34 = vadd.f32 %v273_v28, %v259_v29 }
  0x9a   : > { %v282_v30 = vpop.permute.xlu1 %281  ;;  %v278_v31 = vpop.permute.xlu0 %277 }
  0x9b   : > { %v289_v35 = vmul.f32 %v287_v24, %v282_v30  ;;  %v288_v36 = vmul.f32 %v287_v24, %v278_v31 }
  0x9d   : > { %v291_v37 = vadd.f32 %v289_v35, %v275_v34  ;;  %v290_v38 = vadd.f32 %v288_v36, %v274_v33 }
  0x9f   : > { %v306_v40 = vpop.permute.xlu1 %305  ;;  %v292_v41 = vmul.f32 2.0, %v290_v38  ;;  %v293_v42 = vmul.f32 2.0, %v291_v37  ;;  %v311_v43 = vpop.permute.xlu0 %310 }
  0xa1   : > { %v313_v44 = vsub.f32 %v292_v41, %v306_v40  ;;  %v314_v45 = vsub.f32 %v293_v42, %v311_v43 }
  0xa3   : > { %v315_v46 = vsub.f32 %v313_v44, %v302_v39  ;;  %v316_v47 = vsub.f32 %v314_v45, %v302_v39 }
  0xa5   : > { %v317_v48 = vmin.f32 %v315_v46, 0.0  ;;  %v318_v49 = vmin.f32 %v316_v47, 0.0 }
  0xa7   : > { %320 = vst.msk [vmem:[%s238_s29] sm:$0xff] %vm319_vm1, %v317_v48  ;;  %321 = vst.msk [vmem:[%s238_s29 + $0x8] sm:$0xff] %vm319_vm1, %v318_v49 }
  0xa8 PF: > { %s13_s14 = sadd.s32 1, %s498_s14   ;;  %s571_s12 = smov %s494_s13 }
  0xa9   : > { %p10_p5 = scmp.ge.s32.totalorder %s13_s14, 4   ;;  %s572_s13 = smov %s574_s15 }
  0xab   :  { %12 = sbr.rel (!%p10_p5) target bundleno = 2 (0x2), region = 68 }

// kernel: _lambda_.21
= control target key start
LH: loop header
LB: loop body
LE: loop exit
PB: predicated region body
PF: predicated region fallthrough
CT: control target
= control target key end

     0   :  { %s2380_s24 = smov 0   ;;  %s2382_s25 = smov 0   ;;  %s3157_s0 = inlined_call_operand.vmem [shape: f32[64,8,35], index: 0, kind: input, shape index: {}]   ;;  %s3158_s1 = inlined_call_operand.vmem [shape: bf16[35,32], index: 1, kind: input, shape index: {}]   ;;  %s3159_s2 = inlined_call_operand.vmem [shape: f32[1,32], index: 2, kind: input, shape index: {}]   ;;  %s3160_s3 = inlined_call_operand.vmem [shape: bf16[32,32], index: 3, kind: input, shape index: {}]   ;;  %s3161_s4 = inlined_call_operand.vmem [shape: f32[1,32], index: 4, kind: input, shape index: {}]   ;;  %s3162_s5 = inlined_call_operand.vmem [shape: bf16[32,32], index: 5, kind: input, shape index: {}]   ;;  %s3163_s6 = inlined_call_operand.vmem [shape: f32[1,32], index: 6, kind: input, shape index: {}]   ;;  %s3164_s7 = inlined_call_operand.vmem [shape: bf16[64,1,32], index: 7, kind: output, shape index: {}]  }
   0x1   :  { %s2384_s26 = smov 0  }
   0x2 LB: > { %s29_s27 = sadd.s32 1, %s2332_s25  ;;  %p2044_p0 = scmp.ge.s32.totalorder %s2336_s26, 1  ;;  %s2336_s26 = sphi %s2384_s26, %s17_s26   ;;  %s2332_s25 = sphi %s2382_s25, %s3206_s25   ;;  %s2328_s24 = sphi %s2380_s24, %s3205_s24  }
   0x3   : > { %p31_p1 = scmp.ge.s32.totalorder %s29_s27, 2  ;;  %p255_p2 = scmp.lt.s32.totalorder %s2336_s26, 3 }
   0x5   : > { %s3208_s27 = smov (%p31_p1, %s29_s27), 0  ;;  %p256_p3 = pnand %p2044_p0, %p255_p2 }
   0x6   : > { %v2303_v0 = vld [vmem:[%s3158_s1] sm:$0xff] (!%p256_p3)   ;;  %vm428_vm0 = vcmask (!%p256_p3), 1040384   ;;  %v2304_v1 = vld [vmem:[%s3158_s1 + $0x8] sm:$0xff] (!%p256_p3)   ;;  %vm429_vm1 = vcmask (!%p256_p3), 1041408   ;;  %v2338_v3 = vmov (!%p256_p3), 65535   ;;  %s2045_s11 = sshll.u32 (!%p256_p3), %s2328_s24, 5 }
   0x7   : > { %259 = sbr.rel (%p256_p3) target bundleno = 826 (0x33a), region = 48  ;;  %2163 = vmatprep.subr.bf16.mxu0 (!%p256_p3), %v2303_v0  ;;  %v2305_v2 = vld [vmem:[%s3158_s1 + $0x10] ss:$0 sps:$4 sm:$0x33] (!%p256_p3)   ;;  %v430_v4 = vsel (!%p256_p3), %vm428_vm0, 4294967295, %v2338_v3  ;;  %v2306_v5 = vld [vmem:[%s3160_s3] sm:$0xff] (!%p256_p3)  }
   0x8   : > { %2164 = vmatpush3.bf16.msra.mxu0 (!%p256_p3), %v2303_v0  ;;  %v431_v6 = vsel (!%p256_p3), %vm429_vm1, %v430_v4, 0  ;;  %p290_p4 = scmp.lt.s32.totalorder (!%p256_p3), %s2045_s11, 63  ;;  %v2307_v8 = vld [vmem:[%s3160_s3 + $0x8] sm:$0xff] (!%p256_p3)   ;;  %2273 = vmatprep.subr.bf16.mxu1 (!%p256_p3), %v2306_v5  ;;  %vm379_vm2 = vcmask (!%p256_p3), 285696   ;;  %v2472_v57 = vld [vmem:[%s3162_s5] sm:$0xff] (!%p256_p3)   ;;  %vm672_vm3 = vcmask (!%p256_p3), 261120  }
   0x9   : > { %2165 = vmatprep.subr.bf16.mxu0 (!%p256_p3), %v2304_v1  ;;  %v433_v7 = vand.u32 (!%p256_p3), %v2305_v2, %v431_v6  ;;  %2275 = vmatpush3.bf16.msra.mxu1 (!%p256_p3), %v2306_v5  ;;  %v2478_v58 = vld [vmem:[%s3159_s2] ss:$0 sm:$0xff] (!%p256_p3)  ;;  %vm1481_vm4 = vcmask (!%p256_p3), 1041409   ;;  %vm1483_vm5 = vcmask (!%p256_p3), 1042434   ;;  %vm1485_vm6 = vcmask (!%p256_p3), 1043459  }
   0xa   : > { %2274 = vmatprep.subr.bf16.mxu1 (!%p256_p3), %v2307_v8  ;;  %vm1487_vm7 = vcmask (!%p256_p3), 1044484   ;;  %vm1489_vm8 = vcmask (!%p256_p3), 1045509   ;;  %vm1491_vm9 = vcmask (!%p256_p3), 1046534   ;;  %vm1493_vm10 = vcmask (!%p256_p3), 1047559  }
   0xb   : > { %vm1879_vm11 = vcmask (!%p256_p3), 253952   ;;  %vm1880_vm12 = vsmask.f32 (!%p256_p3), 256 }
   0xc   : > { %2166 = vmatpush3.bf16.msra.mxu0 (!%p256_p3), %v2304_v1  ;;  %vm2867_vm13 = vmand (!%p256_p3), %vm1879_vm11, %vm1880_vm12 }
   0xd   : > { %2167 = vmatprep.subr.bf16.mxu0 (!%p256_p3), %v433_v7  ;;  %2276 = vmatpush3.bf16.msra.mxu1 (!%p256_p3), %v2307_v8 }
   0xe   : > { %s3210_s11 = smov (!%p290_p4, %s2045_s11), 63  ;;  %2237 = vmatprep.subr.bf16.mxu1 %v2472_v57 }
   0xf   : > { %s2046_s16 = sshll.u32 %s3210_s11, 3  ;;  %s2849_s13 = scalar_lea.vmem %s3164_s7, %s3210_s11 }
  0x10   : > { %s2419_s19 = scalar_lea.vmem %s3157_s0, %s2046_s16  ;;  %2168 = vmatpush3.bf16.msra.mxu0 %v433_v7 }
  0x11   : > { %v304_v9 = vld [vmem:[%s2419_s19] sm:$0xff]  ;;  %v305_v10 = vld [vmem:[%s2419_s19 + $0x8] sm:$0xff]  ;;  %v306_v11 = vld [vmem:[%s2419_s19 + $0x10] sm:$0xff]  ;;  %2201 = vmatprep.subr.bf16.mxu0 %v2306_v5 }
  0x12   : > { %v341_v12 = vpack.c.bf16 %v305_v10, %v304_v9  ;;  %v307_v13 = vld [vmem:[%s2419_s19 + $0x18] sm:$0xff]  ;;  %v308_v14 = vld [vmem:[%s2419_s19 + $0x20] sm:$0xff]  ;;  %v309_v15 = vld [vmem:[%s2419_s19 + $0x28] sm:$0xff] }
  0x13   : > { %v342_v16 = vpack.c.bf16 %v307_v13, %v306_v11  ;;  %v343_v17 = vpack.c.bf16 %v309_v15, %v308_v14  ;;  %v310_v18 = vld [vmem:[%s2419_s19 + $0x30] sm:$0xff]  ;;  %v311_v19 = vld [vmem:[%s2419_s19 + $0x38] sm:$0xff]  ;;  %v312_v20 = vld [vmem:[%s2419_s19 + $0x40] sm:$0xff] }
  0x14   : > { %2169 = vmatprep.mubr.msk.bf16.mxu0 %vm379_vm2, %v341_v12  ;;  %v313_v21 = vld [vmem:[%s2419_s19 + $0x48] sm:$0xff]  ;;  %v344_v22 = vpack.c.bf16 %v311_v19, %v310_v18  ;;  %v314_v24 = vld [vmem:[%s2419_s19 + $0x50] sm:$0xff]  ;;  %v315_v25 = vld [vmem:[%s2419_s19 + $0x58] sm:$0xff] }
  0x15   : > { %2170 = vmatmul.mubr.msk.bf16.vlgmr.msra.gmra.mrb[0].mxu0 %vm379_vm2, %v342_v16  ;;  %v345_v23 = vpack.c.bf16 %v313_v21, %v312_v20  ;;  %v316_v26 = vld [vmem:[%s2419_s19 + $0x60] sm:$0xff]  ;;  %v317_v27 = vld [vmem:[%s2419_s19 + $0x68] sm:$0xff]  ;;  %v346_v28 = vpack.c.bf16 %v315_v25, %v314_v24  ;;  %v318_v30 = vld [vmem:[%s2419_s19 + $0x70] sm:$0xff] }
  0x16   : > { %2173 = vmatprep.mubr.msk.bf16.mxu0 %vm379_vm2, %v343_v17  ;;  %2202 = vmatpush3.bf16.msra.mxu0 %v2306_v5  ;;  %v347_v29 = vpack.c.bf16 %v317_v27, %v316_v26  ;;  %v319_v31 = vld [vmem:[%s2419_s19 + $0x78] sm:$0xff]  ;;  %v320_v32 = vld [vmem:[%s2419_s19 + $0x80] sm:$0xff]  ;;  %v321_v33 = vld [vmem:[%s2419_s19 + $0x88] sm:$0xff] }
  0x17   : > { %2203 = vmatprep.subr.bf16.mxu0 %v2307_v8  ;;  %v348_v34 = vpack.c.bf16 %v319_v31, %v318_v30  ;;  %v349_v35 = vpack.c.bf16 %v321_v33, %v320_v32  ;;  %v322_v36 = vld [vmem:[%s2419_s19 + $0x90] sm:$0xff]  ;;  %v323_v37 = vld [vmem:[%s2419_s19 + $0x98] sm:$0xff]  ;;  %v324_v38 = vld [vmem:[%s2419_s19 + $0xa0] sm:$0xff] }
  0x18   : > { %v325_v39 = vld [vmem:[%s2419_s19 + $0xa8] sm:$0xff]  ;;  %v350_v40 = vpack.c.bf16 %v323_v37, %v322_v36  ;;  %v326_v42 = vld [vmem:[%s2419_s19 + $0xb0] sm:$0xff]  ;;  %v327_v43 = vld [vmem:[%s2419_s19 + $0xb8] sm:$0xff] }
  0x19   : > { %v351_v41 = vpack.c.bf16 %v325_v39, %v324_v38  ;;  %v328_v44 = vld [vmem:[%s2419_s19 + $0xc0] sm:$0xff]  ;;  %v329_v45 = vld [vmem:[%s2419_s19 + $0xc8] sm:$0xff]  ;;  %v352_v46 = vpack.c.bf16 %v327_v43, %v326_v42  ;;  %v330_v48 = vld [vmem:[%s2419_s19 + $0xd0] sm:$0xff] }
  0x1a   : > { %2204 = vmatpush3.bf16.msra.mxu0 %v2307_v8  ;;  %v353_v47 = vpack.c.bf16 %v329_v45, %v328_v44  ;;  %v331_v49 = vld [vmem:[%s2419_s19 + $0xd8] sm:$0xff]  ;;  %v332_v50 = vld [vmem:[%s2419_s19 + $0xe0] sm:$0xff]  ;;  %v333_v51 = vld [vmem:[%s2419_s19 + $0xe8] sm:$0xff] }
  0x1b   : > { %v354_v52 = vpack.c.bf16 %v331_v49, %v330_v48  ;;  %v355_v53 = vpack.c.bf16 %v333_v51, %v332_v50  ;;  %v334_v54 = vld [vmem:[%s2419_s19 + $0xf0] sm:$0xff]  ;;  %v335_v55 = vld [vmem:[%s2419_s19 + $0xf8] sm:$0xff] }
  0x1c   : > { %v356_v56 = vpack.c.bf16 %v335_v55, %v334_v54 }
  0x1d   : > { %2174 = vmatmul.mubr.msk.bf16.gmra.mrb[4].mxu0 %vm379_vm2, %v344_v22 }
  0x1e   : > { %2177 = vmatprep.mubr.msk.bf16.mxu0 %vm379_vm2, %v345_v23 }
  0x25   : > { %2178 = vmatmul.mubr.msk.bf16.gmra.mrb[8].mxu0 %vm379_vm2, %v346_v28 }
  0x26   : > { %2181 = vmatprep.mubr.msk.bf16.mxu0 %vm379_vm2, %v347_v29 }
  0x2d   : > { %2182 = vmatmul.mubr.msk.bf16.gmra.mrb[12].mxu0 %vm379_vm2, %v348_v34 }
  0x2e   : > { %2185 = vmatprep.mubr.msk.bf16.mxu0 %vm379_vm2, %v349_v35 }
  0x35   : > { %2186 = vmatmul.mubr.msk.bf16.gmra.mrb[16].mxu0 %vm379_vm2, %v350_v40 }
  0x36   : > { %2189 = vmatprep.mubr.msk.bf16.mxu0 %vm379_vm2, %v351_v41 }
  0x3d   : > { %2190 = vmatmul.mubr.msk.bf16.gmra.mrb[20].mxu0 %vm379_vm2, %v352_v46 }
  0x3e   : > { %2193 = vmatprep.mubr.msk.bf16.mxu0 %vm379_vm2, %v353_v47 }
  0x45   : > { %2194 = vmatmul.mubr.msk.bf16.gmra.mrb[24].mxu0 %vm379_vm2, %v354_v52 }
  0x46   : > { %2197 = vmatprep.mubr.msk.bf16.mxu0 %vm379_vm2, %v355_v53  ;;  %v2309_v53 = vld [vmem:[%s3162_s5 + $0x8] sm:$0xff]  }
  0x4d   : > { %2198 = vmatmul.mubr.msk.bf16.gmra.mrb[28].mxu0 %vm379_vm2, %v356_v56 }
  0xe8   : > { %v2171_v59 = vpop.f32.mrb[0].mxu0 }
  0xe9   : > { %v469_v60 = vpop.f32.mrb[1].mxu0  ;;  %v2484_v63 = vadd.f32 %v2171_v59, %v2478_v58 }
  0xea   : > { %v2481_v61 = vadd.f32 %v2478_v58, %v469_v60  ;;  %v2172_v62 = vpop.f32.mrb[2].mxu0 }
  0xeb   : > { %v2487_v0 = vadd.f32 %v2172_v62, %v2478_v58  ;;  %v472_v1 = vpop.f32.mrb[3].mxu0  ;;  %v598_v6 = vmax.f32 %v2484_v63, 0.0 }
  0xec   : > { %v2490_v2 = vadd.f32 %v2478_v58, %v472_v1  ;;  %v596_v4 = vmax.f32 %v2481_v61, 0.0 }
  0xed   : > { %v599_v3 = vmax.f32 %v2487_v0, 0.0 }
  0xee   : > { %v597_v5 = vmax.f32 %v2490_v2, 0.0 }
  0xef   : > { %v639_v9 = vpack.c.bf16 %v599_v3, %v598_v6 }
  0xf0   : > { %v638_v7 = vpack.c.bf16 %v597_v5, %v596_v4  ;;  %v2175_v8 = vpop.f32.mrb[4].mxu0 }
  0xf1   : > { %v485_v10 = vpop.f32.mrb[5].mxu0  ;;  %v2509_v13 = vadd.f32 %v2175_v8, %v2478_v58 }
  0xf2   : > { %v2505_v11 = vadd.f32 %v2478_v58, %v485_v10  ;;  %v2176_v12 = vpop.f32.mrb[6].mxu0  ;;  %2205 = vmatprep.mubr.msk.bf16.mxu0 %vm672_vm3, %v638_v7 }
  0xf3   : > { %v2512_v14 = vadd.f32 %v2176_v12, %v2478_v58  ;;  %v488_v15 = vpop.f32.mrb[7].mxu0  ;;  %2206 = vmatmul.mubr.msk.bf16.vlgmr.msra.gmra.mrb[32].mxu0 %vm672_vm3, %v639_v9  ;;  %v602_v20 = vmax.f32 %v2509_v13, 0.0 }
  0xf4   : > { %v2516_v16 = vadd.f32 %v2478_v58, %v488_v15  ;;  %v600_v18 = vmax.f32 %v2505_v11, 0.0 }
  0xf5   : > { %v603_v17 = vmax.f32 %v2512_v14, 0.0 }
  0xf6   : > { %v601_v19 = vmax.f32 %v2516_v16, 0.0 }
  0xf7   : > { %v641_v23 = vpack.c.bf16 %v603_v17, %v602_v20 }
  0xf8   : > { %v640_v21 = vpack.c.bf16 %v601_v19, %v600_v18  ;;  %v2179_v22 = vpop.f32.mrb[8].mxu0 }
  0xf9   : > { %v501_v24 = vpop.f32.mrb[9].mxu0  ;;  %v2535_v27 = vadd.f32 %v2179_v22, %v2478_v58 }
  0xfa   : > { %v2531_v25 = vadd.f32 %v2478_v58, %v501_v24  ;;  %v2180_v26 = vpop.f32.mrb[10].mxu0  ;;  %2209 = vmatprep.mubr.msk.bf16.mxu0 %vm672_vm3, %v640_v21 }
  0xfb   : > { %v2538_v28 = vadd.f32 %v2180_v26, %v2478_v58  ;;  %v504_v29 = vpop.f32.mrb[11].mxu0  ;;  %2210 = vmatmul.mubr.msk.bf16.gmra.mrb[36].mxu0 %vm672_vm3, %v641_v23  ;;  %v606_v34 = vmax.f32 %v2535_v27, 0.0 }
  0xfc   : > { %v2542_v30 = vadd.f32 %v2478_v58, %v504_v29  ;;  %v604_v32 = vmax.f32 %v2531_v25, 0.0 }
  0xfd   : > { %v607_v31 = vmax.f32 %v2538_v28, 0.0 }
  0xfe   : > { %v605_v33 = vmax.f32 %v2542_v30, 0.0 }
  0xff   : > { %v643_v37 = vpack.c.bf16 %v607_v31, %v606_v34 }
 0x100   : > { %v642_v35 = vpack.c.bf16 %v605_v33, %v604_v32  ;;  %v2183_v36 = vpop.f32.mrb[12].mxu0 }
 0x101   : > { %v517_v38 = vpop.f32.mrb[13].mxu0  ;;  %v2561_v41 = vadd.f32 %v2183_v36, %v2478_v58 }
 0x102   : > { %v2557_v39 = vadd.f32 %v2478_v58, %v517_v38  ;;  %v2184_v40 = vpop.f32.mrb[14].mxu0  ;;  %2213 = vmatprep.mubr.msk.bf16.mxu0 %vm672_vm3, %v642_v35 }
 0x103   : > { %v2564_v42 = vadd.f32 %v2184_v40, %v2478_v58  ;;  %v520_v43 = vpop.f32.mrb[15].mxu0  ;;  %2214 = vmatmul.mubr.msk.bf16.gmra.mrb[40].mxu0 %vm672_vm3, %v643_v37  ;;  %v610_v48 = vmax.f32 %v2561_v41, 0.0 }
 0x104   : > { %v2568_v44 = vadd.f32 %v2478_v58, %v520_v43  ;;  %v3183_v46 = vmax.f32 %v2557_v39, 0.0 }
 0x105   : > { %v3182_v45 = vmax.f32 %v2564_v42, 0.0 }
 0x106   : > { %v3181_v47 = vmax.f32 %v2568_v44, 0.0 }
 0x107   : > { %v645_v51 = vpack.c.bf16 %v3182_v45, %v610_v48 }
 0x108   : > { %v2187_v49 = vpop.f32.mrb[16].mxu0  ;;  %v644_v50 = vpack.c.bf16 %v3181_v47, %v3183_v46 }
 0x109   : > { %v533_v52 = vpop.f32.mrb[17].mxu0  ;;  %v2590_v56 = vadd.f32 %v2187_v49, %v2478_v58 }
 0x10a   : > { %v2586_v54 = vadd.f32 %v2478_v58, %v533_v52  ;;  %v2188_v55 = vpop.f32.mrb[18].mxu0  ;;  %2217 = vmatprep.mubr.msk.bf16.mxu1 %vm672_vm3, %v644_v50 }
 0x10b   : > { %v2593_v59 = vadd.f32 %v2188_v55, %v2478_v58  ;;  %v536_v60 = vpop.f32.mrb[19].mxu0  ;;  %2218 = vmatmul.mubr.msk.bf16.vlgmr.msra.gmra.mrb[0].mxu1 %vm672_vm3, %v645_v51  ;;  %v3180_v9 = vmax.f32 %v2590_v56, 0.0 }
 0x10c   : > { %v2597_v62 = vadd.f32 %v2478_v58, %v536_v60  ;;  %2238 = vmatpush3.bf16.msra.mxu1 %v2472_v57  ;;  %v3179_v7 = vmax.f32 %v2586_v54, 0.0 }
 0x10d   : > { %v3178_v1 = vmax.f32 %v2593_v59, 0.0  ;;  %2239 = vmatprep.subr.bf16.mxu1 %v2309_v53 }
 0x10e   : > { %v3177_v8 = vmax.f32 %v2597_v62, 0.0 }
 0x10f   : > { %v647_v57 = vpack.c.bf16 %v3178_v1, %v3180_v9 }
 0x110   : > { %v646_v10 = vpack.c.bf16 %v3177_v8, %v3179_v7  ;;  %v2191_v12 = vpop.f32.mrb[20].mxu0  ;;  %2240 = vmatpush3.bf16.msra.mxu1 %v2309_v53 }
 0x111   : > { %v549_v15 = vpop.f32.mrb[21].mxu0  ;;  %v2617_v23 = vadd.f32 %v2191_v12, %v2478_v58 }
 0x112   : > { %v2613_v21 = vadd.f32 %v2478_v58, %v549_v15  ;;  %v2192_v22 = vpop.f32.mrb[22].mxu0  ;;  %2221 = vmatprep.mubr.msk.bf16.mxu1 %vm672_vm3, %v646_v10 }
 0x113   : > { %v2620_v24 = vadd.f32 %v2192_v22, %v2478_v58  ;;  %v552_v26 = vpop.f32.mrb[23].mxu0  ;;  %2222 = vmatmul.mubr.msk.bf16.gmra.mrb[4].mxu1 %vm672_vm3, %v647_v57  ;;  %v3174_v38 = vmax.f32 %v2617_v23, 0.0 }
 0x114   : > { %v2624_v29 = vadd.f32 %v2478_v58, %v552_v26  ;;  %v3173_v36 = vmax.f32 %v2613_v21, 0.0 }
 0x115   : > { %v3170_v35 = vmax.f32 %v2620_v24, 0.0 }
 0x116   : > { %v3165_v37 = vmax.f32 %v2624_v29, 0.0 }
 0x117   : > { %v649_v49 = vpack.c.bf16 %v3170_v35, %v3174_v38 }
 0x118   : > { %v648_v40 = vpack.c.bf16 %v3165_v37, %v3173_v36  ;;  %v2195_v43 = vpop.f32.mrb[24].mxu0 }
 0x119   : > { %v565_v50 = vpop.f32.mrb[25].mxu0  ;;  %v2643_v53 = vadd.f32 %v2195_v43, %v2478_v58 }
 0x11a   : > { %v2639_v51 = vadd.f32 %v2478_v58, %v565_v50  ;;  %v2196_v52 = vpop.f32.mrb[26].mxu0  ;;  %2225 = vmatprep.mubr.msk.bf16.mxu1 %vm672_vm3, %v648_v40 }
 0x11b   : > { %v2646_v55 = vadd.f32 %v2196_v52, %v2478_v58  ;;  %v568_v60 = vpop.f32.mrb[27].mxu0  ;;  %2226 = vmatmul.mubr.msk.bf16.gmra.mrb[8].mxu1 %vm672_vm3, %v649_v49  ;;  %v3169_v22 = vmax.f32 %v2643_v53, 0.0 }
 0x11c   : > { %v2650_v10 = vadd.f32 %v2478_v58, %v568_v60  ;;  %v3167_v57 = vmax.f32 %v2639_v51, 0.0 }
 0x11d   : > { %v3168_v12 = vmax.f32 %v2646_v55, 0.0 }
 0x11e   : > { %v3166_v15 = vmax.f32 %v2650_v10, 0.0 }
 0x11f   : > { %v651_v43 = vpack.c.bf16 %v3168_v12, %v3169_v22 }
 0x120   : > { %v650_v26 = vpack.c.bf16 %v3166_v15, %v3167_v57  ;;  %v2199_v40 = vpop.f32.mrb[28].mxu0 }
 0x121   : > { %v581_v49 = vpop.f32.mrb[29].mxu0  ;;  %v2669_v60 = vadd.f32 %v2199_v40, %v2478_v58 }
 0x122   : > { %v2665_v50 = vadd.f32 %v2478_v58, %v581_v49  ;;  %v2200_v52 = vpop.f32.mrb[30].mxu0  ;;  %2229 = vmatprep.mubr.msk.bf16.mxu1 %vm672_vm3, %v650_v26 }
 0x123   : > { %v2672_v37 = vadd.f32 %v2200_v52, %v2478_v58  ;;  %v584_v15 = vpop.f32.mrb[31].mxu0  ;;  %2230 = vmatmul.mubr.msk.bf16.gmra.mrb[12].mxu1 %vm672_vm3, %v651_v43  ;;  %v3176_v26 = vmax.f32 %v2669_v60, 0.0 }
 0x124   : > { %v2676_v57 = vadd.f32 %v2478_v58, %v584_v15  ;;  %v3172_v49 = vmax.f32 %v2665_v50, 0.0  ;;  %v2695_v58 = vld [vmem:[%s3161_s4] ss:$0 sm:$0xff] }
 0x125   : > { %v3175_v12 = vmax.f32 %v2672_v37, 0.0 }
 0x126   : > { %v3171_v22 = vmax.f32 %v2676_v57, 0.0 }
 0x127   : > { %v653_v43 = vpack.c.bf16 %v3175_v12, %v3176_v26 }
 0x128   : > { %v652_v40 = vpack.c.bf16 %v3171_v22, %v3172_v49 }
 0x12a   : > { %2233 = vmatprep.mubr.msk.bf16.mxu1 %vm672_vm3, %v652_v40 }
 0x12b   : > { %2234 = vmatmul.mubr.msk.bf16.gmra.mrb[16].mxu1 %vm672_vm3, %v653_v43 }
 0x1c6   : > { %v2207_v15 = vpop.f32.mrb[32].mxu0 }
 0x1c7   : > { %v764_v52 = vadd.f32 %v2207_v15, %v2695_v58  ;;  %v755_v35 = vpop.f32.mrb[33].mxu0 }
 0x1c8   : > { %v756_v22 = vadd.f32 %v2695_v58, %v755_v35  ;;  %v2208_v49 = vpop.f32.mrb[34].mxu0 }
 0x1c9   : > { %v767_v36 = vadd.f32 %v2208_v49, %v2695_v58  ;;  %v758_v38 = vpop.f32.mrb[35].mxu0  ;;  %v884_v40 = vmax.f32 %v764_v52, 0.0 }
 0x1ca   : > { %v759_v12 = vadd.f32 %v2695_v58, %v758_v38  ;;  %v882_v43 = vmax.f32 %v756_v22, 0.0 }
 0x1cb   : > { %v885_v26 = vmax.f32 %v767_v36, 0.0 }
 0x1cc   : > { %v883_v8 = vmax.f32 %v759_v12, 0.0 }
 0x1cd   : > { %v915_v1 = vpack.c.bf16 %v885_v26, %v884_v40 }
 0x1ce   : > { %v914_v7 = vpack.c.bf16 %v883_v8, %v882_v43  ;;  %v2211_v9 = vpop.f32.mrb[36].mxu0 }
 0x1cf   : > { %v780_v47 = vadd.f32 %v2211_v9, %v2695_v58  ;;  %v771_v45 = vpop.f32.mrb[37].mxu0 }
 0x1d0   : > { %v772_v15 = vadd.f32 %v2695_v58, %v771_v45  ;;  %v2212_v46 = vpop.f32.mrb[38].mxu0  ;;  %2241 = vmatprep.mubr.msk.bf16.mxu1 %vm672_vm3, %v914_v7 }
 0x1d1   : > { %v783_v35 = vadd.f32 %v2212_v46, %v2695_v58  ;;  %v774_v49 = vpop.f32.mrb[39].mxu0  ;;  %2242 = vmatmul.mubr.msk.bf16.vlgmr.msra.gmra.mrb[20].mxu1 %vm672_vm3, %v915_v1  ;;  %v888_v38 = vmax.f32 %v780_v47, 0.0 }
 0x1d2   : > { %v775_v36 = vadd.f32 %v2695_v58, %v774_v49  ;;  %v886_v22 = vmax.f32 %v772_v15, 0.0 }
 0x1d3   : > { %v889_v12 = vmax.f32 %v783_v35, 0.0 }
 0x1d4   : > { %v887_v8 = vmax.f32 %v775_v36, 0.0 }
 0x1d5   : > { %v917_v26 = vpack.c.bf16 %v889_v12, %v888_v38 }
 0x1d6   : > { %v916_v52 = vpack.c.bf16 %v887_v8, %v886_v22  ;;  %v2215_v9 = vpop.f32.mrb[40].mxu0 }
 0x1d7   : > { %v796_v40 = vadd.f32 %v2215_v9, %v2695_v58  ;;  %v787_v45 = vpop.f32.mrb[41].mxu0 }
 0x1d8   : > { %v788_v43 = vadd.f32 %v2695_v58, %v787_v45  ;;  %v2216_v7 = vpop.f32.mrb[42].mxu0  ;;  %2245 = vmatprep.mubr.msk.bf16.mxu1 %vm672_vm3, %v916_v52 }
 0x1d9   : > { %v799_v46 = vadd.f32 %v2216_v7, %v2695_v58  ;;  %v790_v1 = vpop.f32.mrb[43].mxu0  ;;  %2246 = vmatmul.mubr.msk.bf16.gmra.mrb[24].mxu1 %vm672_vm3, %v917_v26  ;;  %v892_v15 = vmax.f32 %v796_v40, 0.0 }
 0x1da   : > { %v791_v47 = vadd.f32 %v2695_v58, %v790_v1  ;;  %v890_v49 = vmax.f32 %v788_v43, 0.0 }
 0x1db   : > { %v893_v35 = vmax.f32 %v799_v46, 0.0 }
 0x1dc   : > { %v891_v36 = vmax.f32 %v791_v47, 0.0 }
 0x1dd   : > { %v919_v38 = vpack.c.bf16 %v893_v35, %v892_v15 }
 0x1de   : > { %v918_v12 = vpack.c.bf16 %v891_v36, %v890_v49  ;;  %v2219_v22 = vpop.f32.mrb[0].mxu1 }
 0x1df   : > { %v812_v8 = vadd.f32 %v2219_v22, %v2695_v58  ;;  %v803_v9 = vpop.f32.mrb[1].mxu1 }
 0x1e0   : > { %v804_v45 = vadd.f32 %v2695_v58, %v803_v9  ;;  %v2220_v52 = vpop.f32.mrb[2].mxu1  ;;  %2249 = vmatprep.mubr.msk.bf16.mxu1 %vm672_vm3, %v918_v12 }
 0x1e1   : > { %v815_v7 = vadd.f32 %v2220_v52, %v2695_v58  ;;  %v806_v26 = vpop.f32.mrb[3].mxu1  ;;  %2250 = vmatmul.mubr.msk.bf16.gmra.mrb[28].mxu1 %vm672_vm3, %v919_v38  ;;  %v896_v43 = vmax.f32 %v812_v8, 0.0 }
 0x1e2   : > { %v807_v40 = vadd.f32 %v2695_v58, %v806_v26  ;;  %v894_v1 = vmax.f32 %v804_v45, 0.0 }
 0x1e3   : > { %v897_v46 = vmax.f32 %v815_v7, 0.0 }
 0x1e4   : > { %v895_v47 = vmax.f32 %v807_v40, 0.0 }
 0x1e5   : > { %v921_v15 = vpack.c.bf16 %v897_v46, %v896_v43 }
 0x1e6   : > { %v920_v35 = vpack.c.bf16 %v895_v47, %v894_v1  ;;  %v2223_v49 = vpop.f32.mrb[4].mxu1 }
 0x1e7   : > { %v828_v36 = vadd.f32 %v2223_v49, %v2695_v58  ;;  %v819_v22 = vpop.f32.mrb[5].mxu1 }
 0x1e8   : > { %v820_v9 = vadd.f32 %v2695_v58, %v819_v22  ;;  %v2224_v12 = vpop.f32.mrb[6].mxu1  ;;  %2253 = vmatprep.mubr.msk.bf16.mxu1 %vm672_vm3, %v920_v35 }
 0x1e9   : > { %v831_v52 = vadd.f32 %v2224_v12, %v2695_v58  ;;  %v822_v38 = vpop.f32.mrb[7].mxu1  ;;  %2254 = vmatmul.mubr.msk.bf16.gmra.mrb[32].mxu1 %vm672_vm3, %v921_v15  ;;  %v900_v45 = vmax.f32 %v828_v36, 0.0 }
 0x1ea   : > { %v823_v8 = vadd.f32 %v2695_v58, %v822_v38  ;;  %v898_v26 = vmax.f32 %v820_v9, 0.0 }
 0x1eb   : > { %v901_v7 = vmax.f32 %v831_v52, 0.0 }
 0x1ec   : > { %v899_v40 = vmax.f32 %v823_v8, 0.0 }
 0x1ed   : > { %v923_v43 = vpack.c.bf16 %v901_v7, %v900_v45 }
 0x1ee   : > { %v922_v46 = vpack.c.bf16 %v899_v40, %v898_v26  ;;  %v2227_v1 = vpop.f32.mrb[8].mxu1 }
 0x1ef   : > { %v844_v47 = vadd.f32 %v2227_v1, %v2695_v58  ;;  %v835_v49 = vpop.f32.mrb[9].mxu1 }
 0x1f0   : > { %v836_v22 = vadd.f32 %v2695_v58, %v835_v49  ;;  %v2228_v35 = vpop.f32.mrb[10].mxu1  ;;  %2257 = vmatprep.mubr.msk.bf16.mxu1 %vm672_vm3, %v922_v46 }
 0x1f1   : > { %v847_v12 = vadd.f32 %v2228_v35, %v2695_v58  ;;  %v838_v15 = vpop.f32.mrb[11].mxu1  ;;  %2258 = vmatmul.mubr.msk.bf16.gmra.mrb[36].mxu1 %vm672_vm3, %v923_v43  ;;  %v904_v9 = vmax.f32 %v844_v47, 0.0 }
 0x1f2   : > { %v839_v36 = vadd.f32 %v2695_v58, %v838_v15  ;;  %v902_v38 = vmax.f32 %v836_v22, 0.0 }
 0x1f3   : > { %v905_v52 = vmax.f32 %v847_v12, 0.0 }
 0x1f4   : > { %v903_v8 = vmax.f32 %v839_v36, 0.0 }
 0x1f5   : > { %v925_v45 = vpack.c.bf16 %v905_v52, %v904_v9 }
 0x1f6   : > { %v924_v7 = vpack.c.bf16 %v903_v8, %v902_v38  ;;  %v2231_v26 = vpop.f32.mrb[12].mxu1 }
 0x1f7   : > { %v860_v40 = vadd.f32 %v2231_v26, %v2695_v58  ;;  %v851_v1 = vpop.f32.mrb[13].mxu1 }
 0x1f8   : > { %v852_v49 = vadd.f32 %v2695_v58, %v851_v1  ;;  %v2232_v46 = vpop.f32.mrb[14].mxu1  ;;  %2261 = vmatprep.mubr.msk.bf16.mxu1 %vm672_vm3, %v924_v7 }
 0x1f9   : > { %v863_v35 = vadd.f32 %v2232_v46, %v2695_v58  ;;  %v854_v43 = vpop.f32.mrb[15].mxu1  ;;  %2262 = vmatmul.mubr.msk.bf16.gmra.mrb[40].mxu1 %vm672_vm3, %v925_v45  ;;  %v908_v22 = vmax.f32 %v860_v40, 0.0 }
 0x1fa   : > { %v855_v47 = vadd.f32 %v2695_v58, %v854_v43  ;;  %v906_v15 = vmax.f32 %v852_v49, 0.0 }
 0x1fb   : > { %v909_v12 = vmax.f32 %v863_v35, 0.0 }
 0x1fc   : > { %v907_v36 = vmax.f32 %v855_v47, 0.0 }
 0x1fd   : > { %v927_v9 = vpack.c.bf16 %v909_v12, %v908_v22 }
 0x1fe   : > { %v926_v52 = vpack.c.bf16 %v907_v36, %v906_v15  ;;  %v2235_v38 = vpop.f32.mrb[16].mxu1  ;;  %v2748_v15 = vld [vmem:[%s3163_s6] ss:$0 sm:$0xff] }
 0x1ff   : > { %v876_v8 = vadd.f32 %v2235_v38, %v2695_v58  ;;  %v867_v26 = vpop.f32.mrb[17].mxu1 }
 0x200   : > { %v868_v1 = vadd.f32 %v2695_v58, %v867_v26  ;;  %v2236_v7 = vpop.f32.mrb[18].mxu1  ;;  %2265 = vmatprep.mubr.msk.bf16.mxu1 %vm672_vm3, %v926_v52 }
 0x201   : > { %v879_v46 = vadd.f32 %v2236_v7, %v2695_v58  ;;  %v870_v45 = vpop.f32.mrb[19].mxu1  ;;  %2266 = vmatmul.mubr.msk.bf16.gmra.mrb[44].mxu1 %vm672_vm3, %v927_v9  ;;  %v912_v49 = vmax.f32 %v876_v8, 0.0  ;;  %v1623_v8 = vlaneseq }
 0x202   : > { %v871_v40 = vadd.f32 %v2695_v58, %v870_v45  ;;  %v910_v43 = vmax.f32 %v868_v1, 0.0  ;;  %v2339_v58 = vmov 1966171168  }
 0x203   : > { %v913_v35 = vmax.f32 %v879_v46, 0.0  ;;  %v1621_v38 = vunpack.c.l.s4 %v2339_v58 }
 0x204   : > { %v911_v47 = vmax.f32 %v871_v40, 0.0 }
 0x205   : > { %v929_v22 = vpack.c.bf16 %v913_v35, %v912_v49 }
 0x206   : > { %v928_v12 = vpack.c.bf16 %v911_v47, %v910_v43  ;;  %v1622_v47 = vunpack.c.0.s8 %v1621_v38 }
 0x208   : > { %2269 = vmatprep.mubr.msk.bf16.mxu1 %vm672_vm3, %v928_v12 }
 0x209   : > { %2270 = vmatmul.mubr.msk.bf16.gmra.mrb[48].mxu1 %vm672_vm3, %v929_v22  ;;  %v1624_v22 = vshrl.u32 %v1623_v8, 7 }
 0x20b   : > { %v2766_v38 = vsub.s32 %v1622_v47, %v1624_v22 }
 0x2a4   : > { %v2243_v36 = vpop.f32.mrb[20].mxu1 }
 0x2a5   : > { %v1039_v9 = vadd.f32 %v2243_v36, %v2748_v15  ;;  %v1030_v52 = vpop.f32.mrb[21].mxu1 }
 0x2a6   : > { %v1031_v26 = vadd.f32 %v2748_v15, %v1030_v52  ;;  %v2244_v1 = vpop.f32.mrb[22].mxu1 }
 0x2a7   : > { %v1159_v7 = vadd.f32 %v1039_v9, %v598_v6  ;;  %v1042_v46 = vadd.f32 %v2244_v1, %v2748_v15  ;;  %v1033_v45 = vpop.f32.mrb[23].mxu1 }
 0x2a8   : > { %v1157_v40 = vadd.f32 %v1031_v26, %v596_v4  ;;  %v1034_v49 = vadd.f32 %v2748_v15, %v1033_v45 }
 0x2a9   : > { %v1191_v35 = vmax.f32 %v1159_v7, 0.0  ;;  %v1160_v43 = vadd.f32 %v1042_v46, %v599_v3 }
 0x2aa   : > { %v1189_v12 = vmax.f32 %v1157_v40, 0.0  ;;  %v1158_v36 = vadd.f32 %v1034_v49, %v597_v5 }
 0x2ab   : > { %v1235_v63 = vsel %vm672_vm3, %v1191_v35, -inf  ;;  %v1192_v6 = vmax.f32 %v1160_v43, 0.0 }
 0x2ac   : > { %v1236_v9 = vrot.slane %v1235_v63, 4  ;;  %v1221_v52 = vsel %vm672_vm3, %v1189_v12, -inf  ;;  %v1190_v61 = vmax.f32 %v1158_v36, 0.0  ;;  %v2247_v4 = vpop.f32.mrb[24].mxu1 }
 0x2ad   : > { %v1222_v58 = vrot.slane %v1221_v52, 4  ;;  %v1242_v26 = vsel %vm672_vm3, %v1192_v6, -inf  ;;  %v1055_v0 = vadd.f32 %v2247_v4, %v2748_v15  ;;  %v1046_v3 = vpop.f32.mrb[25].mxu1 }
 0x2ae   : > { %v1237_v8 = vmax.f32 %v1235_v63, %v1236_v9  ;;  %v1243_v1 = vrot.slane %v1242_v26, 4  ;;  %v1228_v2 = vsel %vm672_vm3, %v1190_v61, -inf  ;;  %v1047_v5 = vadd.f32 %v2748_v15, %v1046_v3  ;;  %v2248_v7 = vpop.f32.mrb[26].mxu1 }
 0x2af   : > { %v1223_v46 = vmax.f32 %v1221_v52, %v1222_v58  ;;  %v1229_v45 = vrot.slane %v1228_v2, 4  ;;  %v1163_v40 = vadd.f32 %v1055_v0, %v602_v20  ;;  %v1058_v49 = vadd.f32 %v2248_v7, %v2748_v15  ;;  %v1049_v35 = vpop.f32.mrb[27].mxu1 }
 0x2b0   : > { %v1238_v43 = vrot.slane %v1237_v8, 2  ;;  %v1244_v12 = vmax.f32 %v1242_v26, %v1243_v1  ;;  %v1161_v47 = vadd.f32 %v1047_v5, %v600_v18  ;;  %v1050_v22 = vadd.f32 %v2748_v15, %v1049_v35 }
 0x2b1   : > { %v1224_v36 = vrot.slane %v1223_v46, 2  ;;  %v1230_v63 = vmax.f32 %v1228_v2, %v1229_v45  ;;  %v1195_v6 = vmax.f32 %v1163_v40, 0.0  ;;  %v1164_v9 = vadd.f32 %v1058_v49, %v603_v17 }
 0x2b2   : > { %v1239_v13 = vmax.f32 %v1237_v8, %v1238_v43  ;;  %v1245_v20 = vrot.slane %v1244_v12, 2  ;;  %v1193_v52 = vmax.f32 %v1161_v47, 0.0  ;;  %v1162_v61 = vadd.f32 %v1050_v22, %v601_v19 }
 0x2b3   : > { %v1225_v4 = vmax.f32 %v1223_v46, %v1224_v36  ;;  %v1231_v58 = vrot.slane %v1230_v63, 2  ;;  %v1263_v11 = vsel %vm672_vm3, %v1195_v6, -inf  ;;  %v1196_v18 = vmax.f32 %v1164_v9, 0.0 }
 0x2b4   : > { %v1240_v26 = vrot.slane %v1239_v13, 1  ;;  %v1246_v0 = vmax.f32 %v1244_v12, %v1245_v20  ;;  %v1264_v3 = vrot.slane %v1263_v11, 4  ;;  %v1249_v1 = vsel %vm672_vm3, %v1193_v52, -inf  ;;  %v2251_v2 = vpop.f32.mrb[28].mxu1 }
 0x2b5   : > { %v1226_v14 = vrot.slane %v1225_v4, 1  ;;  %v1232_v17 = vmax.f32 %v1230_v63, %v1231_v58  ;;  %v1250_v8 = vrot.slane %v1249_v1, 4  ;;  %v1270_v5 = vsel %vm672_vm3, %v1196_v18, -inf  ;;  %v1062_v7 = vpop.f32.mrb[29].mxu1 }
 0x2b6   : > { %v1241_v45 = vmax.f32 %v1239_v13, %v1240_v26  ;;  %v1247_v16 = vrot.slane %v1246_v0, 1  ;;  %v1265_v19 = vmax.f32 %v1263_v11, %v1264_v3  ;;  %v1271_v46 = vrot.slane %v1270_v5, 4  ;;  %v2252_v40 = vpop.f32.mrb[30].mxu1 }
 0x2b7   : > { %v1227_v49 = vmax.f32 %v1225_v4, %v1226_v14  ;;  %v1233_v35 = vrot.slane %v1232_v17, 1  ;;  %v1251_v43 = vmax.f32 %v1249_v1, %v1250_v8  ;;  %v1194_v12 = vmax.f32 %v1162_v61, 0.0  ;;  %v1065_v47 = vpop.f32.mrb[31].mxu1 }
 0x2b8   : > { %v1248_v22 = vmax.f32 %v1246_v0, %v1247_v16  ;;  %v1266_v36 = vrot.slane %v1265_v19, 2  ;;  %v1272_v6 = vmax.f32 %v1270_v5, %v1271_v46  ;;  %v1071_v63 = vadd.f32 %v2251_v2, %v2748_v15 }
 0x2b9   : > { %v1234_v9 = vmax.f32 %v1232_v17, %v1233_v35  ;;  %v1252_v20 = vrot.slane %v1251_v43, 2  ;;  %v1256_v52 = vsel %vm672_vm3, %v1194_v12, -inf  ;;  %v1063_v13 = vadd.f32 %v2748_v15, %v1062_v7 }
 0x2ba   : > { %v1267_v58 = vmax.f32 %v1265_v19, %v1266_v36  ;;  %v1273_v11 = vrot.slane %v1272_v6, 2  ;;  %v1257_v18 = vrot.slane %v1256_v52, 4  ;;  %v1167_v4 = vadd.f32 %v1071_v63, %v606_v34 }
 0x2bb   : > { %v1482_v61 = vsel %vm1481_vm4, %v1234_v9, %v1227_v49  ;;  %v1253_v26 = vmax.f32 %v1251_v43, %v1252_v20  ;;  %v1165_v0 = vadd.f32 %v1063_v13, %v604_v32  ;;  %v1074_v3 = vadd.f32 %v2252_v40, %v2748_v15 }
 0x2bc   : > { %v1484_v1 = vsel %vm1483_vm5, %v1241_v45, %v1482_v61  ;;  %v1268_v2 = vrot.slane %v1267_v58, 1  ;;  %v1274_v14 = vmax.f32 %v1272_v6, %v1273_v11  ;;  %v1258_v17 = vmax.f32 %v1256_v52, %v1257_v18  ;;  %v2255_v8 = vpop.f32.mrb[32].mxu1 }
 0x2bd   : > { %v1254_v5 = vrot.slane %v1253_v26, 1  ;;  %v1486_v27 = vsel %vm1485_vm6, %v1248_v22, %v1484_v1  ;;  %v1199_v34 = vmax.f32 %v1167_v4, 0.0  ;;  %v1197_v7 = vmax.f32 %v1165_v0, 0.0  ;;  %v1078_v16 = vpop.f32.mrb[33].mxu1 }
 0x2be   : > { %v1269_v19 = vmax.f32 %v1267_v58, %v1268_v2  ;;  %v1275_v46 = vrot.slane %v1274_v14, 1  ;;  %v1259_v25 = vrot.slane %v1258_v17, 2  ;;  %v1168_v32 = vadd.f32 %v1074_v3, %v607_v31  ;;  %v2256_v40 = vpop.f32.mrb[34].mxu1 }
 0x2bf   : > { %v1255_v45 = vmax.f32 %v1253_v26, %v1254_v5  ;;  %v1291_v49 = vsel %vm672_vm3, %v1199_v34, -inf  ;;  %v1277_v35 = vsel %vm672_vm3, %v1197_v7, -inf  ;;  %v1066_v43 = vadd.f32 %v2748_v15, %v1065_v47  ;;  %v1081_v12 = vpop.f32.mrb[35].mxu1 }
 0x2c0   : > { %v1276_v22 = vmax.f32 %v1274_v14, %v1275_v46  ;;  %v1260_v36 = vmax.f32 %v1258_v17, %v1259_v25  ;;  %v1292_v6 = vrot.slane %v1291_v49, 4  ;;  %v1278_v63 = vrot.slane %v1277_v35, 4 }
 0x2c1   : > { %v1488_v9 = vsel %vm1487_vm7, %v1255_v45, %v1486_v27  ;;  %v1200_v20 = vmax.f32 %v1168_v32, 0.0  ;;  %v1166_v28 = vadd.f32 %v1066_v43, %v605_v33  ;;  %v1087_v31 = vadd.f32 %v2255_v8, %v2748_v15 }
 0x2c2   : > { %v1261_v52 = vrot.slane %v1260_v36, 1  ;;  %v1293_v13 = vmax.f32 %v1291_v49, %v1292_v6  ;;  %v1279_v58 = vmax.f32 %v1277_v35, %v1278_v63  ;;  %v1079_v11 = vadd.f32 %v2748_v15, %v1078_v16 }
 0x2c3   : > { %v1298_v47 = vsel %vm672_vm3, %v1200_v20, -inf  ;;  %v1198_v18 = vmax.f32 %v1166_v28, 0.0  ;;  %v1171_v4 = vadd.f32 %v1087_v31, %v610_v48  ;;  %v1090_v61 = vadd.f32 %v2256_v40, %v2748_v15 }
 0x2c4   : > { %v1262_v26 = vmax.f32 %v1260_v36, %v1261_v52  ;;  %v1294_v0 = vrot.slane %v1293_v13, 2  ;;  %v1280_v3 = vrot.slane %v1279_v58, 2  ;;  %v1299_v30 = vrot.slane %v1298_v47, 4  ;;  %v2259_v33 = vpop.f32.mrb[36].mxu1 }
 0x2c5   : > { %v1284_v1 = vsel %vm672_vm3, %v1198_v18, -inf  ;;  %v1203_v2 = vmax.f32 %v1171_v4, 0.0  ;;  %v3184_v14 = vmax.f32 %v2557_v39, 0.0  ;;  %v3185_v8 = vmax.f32 %v2564_v42, 0.0  ;;  %v1094_v27 = vpop.f32.mrb[37].mxu1 }
 0x2c6   : > { %v1490_v41 = vsel %vm1489_vm8, %v1262_v26, %v1488_v9  ;;  %v1295_v48 = vmax.f32 %v1293_v13, %v1294_v0  ;;  %v1281_v34 = vmax.f32 %v1279_v58, %v1280_v3  ;;  %v1300_v7 = vmax.f32 %v1298_v47, %v1299_v30  ;;  %v2260_v16 = vpop.f32.mrb[38].mxu1 }
 0x2c7   : > { %v1169_v17 = vadd.f32 %v1079_v11, %v3184_v14  ;;  %v1172_v5 = vadd.f32 %v1090_v61, %v3185_v8  ;;  %v1492_v46 = vsel %vm1491_vm9, %v1269_v19, %v1490_v41  ;;  %v1285_v25 = vrot.slane %v1284_v1, 4  ;;  %v2816_v45 = vpop.f32.mrb[39].mxu1 }
 0x2c8   : > { %v1319_v32 = vsel %vm672_vm3, %v1203_v2, -inf  ;;  %v1494_v39 = vsel %vm1493_vm10, %v1276_v22, %v1492_v46  ;;  %v1296_v49 = vrot.slane %v1295_v48, 1  ;;  %v1282_v42 = vrot.slane %v1281_v34, 1 }
 0x2c9   : > { %v1201_v40 = vmax.f32 %v1169_v17, 0.0  ;;  %v1301_v35 = vrot.slane %v1300_v7, 2  ;;  %1520 = vst.msk [vmem:[#allocation2] sm:$0xff] %vm672_vm3, %v1494_v39  ;;  %v1286_v43 = vmax.f32 %v1284_v1, %v1285_v25  ;;  %v1320_v36 = vrot.slane %v1319_v32, 4 }
 0x2ca   : > { %v1204_v63 = vmax.f32 %v1172_v5, 0.0  ;;  %v1297_v19 = vmax.f32 %v1295_v48, %v1296_v49  ;;  %v1283_v9 = vmax.f32 %v1281_v34, %v1282_v42  ;;  %v1082_v13 = vadd.f32 %v2748_v15, %v1081_v12 }
 0x2cb   : > { %v1305_v6 = vsel %vm672_vm3, %v1201_v40, -inf  ;;  %v1302_v20 = vmax.f32 %v1300_v7, %v1301_v35  ;;  %v1287_v31 = vrot.slane %v1286_v43, 2  ;;  %v1321_v52 = vmax.f32 %v1319_v32, %v1320_v36 }
 0x2cc   : > { %v1306_v28 = vrot.slane %v1305_v6, 4  ;;  %v1326_v22 = vsel %vm672_vm3, %v1204_v63, -inf  ;;  %v1103_v18 = vadd.f32 %v2259_v33, %v2748_v15  ;;  %v2824_v4 = vpop.f32.mrb[40].mxu1  ;;  %v3186_v0 = vmax.f32 %v2568_v44, 0.0 }
 0x2cd   : > { %v1303_v58 = vrot.slane %v1302_v20, 1  ;;  %v1327_v47 = vrot.slane %v1326_v22, 4  ;;  %v1288_v61 = vmax.f32 %v1286_v43, %v1287_v31  ;;  %v1322_v26 = vrot.slane %v1321_v52, 2  ;;  %v2829_v1 = vpop.f32.mrb[41].mxu1 }
 0x2ce   : > { %v1307_v11 = vmax.f32 %v1305_v6, %v1306_v28  ;;  %v1170_v3 = vadd.f32 %v1082_v13, %v3186_v0  ;;  %v1095_v30 = vadd.f32 %v2748_v15, %v1094_v27  ;;  %v3187_v12 = vmax.f32 %v2590_v56, 0.0  ;;  %v2833_v5 = vpop.f32.mrb[42].mxu1  ;;  %v1885_v0 = vld [vmem:[%s2849_s13 + $0x1] sm:$0x1] }
 0x2cf   : > { %v1304_v2 = vmax.f32 %v1302_v20, %v1303_v58  ;;  %v1328_v17 = vmax.f32 %v1326_v22, %v1327_v47  ;;  %v1289_v33 = vrot.slane %v1288_v61, 1  ;;  %v1323_v41 = vmax.f32 %v1321_v52, %v1322_v26  ;;  %v2839_v7 = vpop.f32.mrb[43].mxu1 }
 0x2d0   : > { %v1308_v14 = vrot.slane %v1307_v11, 2  ;;  %v1175_v8 = vadd.f32 %v1103_v18, %v3187_v12  ;;  %v1202_v48 = vmax.f32 %v1170_v3, 0.0  ;;  %v3188_v34 = vmax.f32 %v2586_v54, 0.0  ;;  %v1611_v27 = vld [vmem:[#allocation2] sm:$0xff] }
 0x2d1   : > { %v1329_v25 = vrot.slane %v1328_v17, 2  ;;  %v2842_v40 = vadd.f32 %v2260_v16, %v2748_v15  ;;  %v1619_v56 = vcombine.high %v1611_v27, %v1611_v27  ;;  %v1626_v39 = vrot.slane %v1611_v27, %v2766_v38 }
 0x2d2   : > { %v2837_v44 = vadd.f32 %v1095_v30, %v3188_v34  ;;  %v1309_v46 = vmax.f32 %v1307_v11, %v1308_v14  ;;  %v1207_v32 = vmax.f32 %v1175_v8, 0.0  ;;  %v1290_v49 = vmax.f32 %v1288_v61, %v1289_v33  ;;  %v1894_v34 = vld [vmem:[%s2849_s13 + $0x4] sm:$0x1] }
 0x2d3   : > { %v1324_v42 = vrot.slane %v1323_v41, 1  ;;  %v1330_v35 = vmax.f32 %v1328_v17, %v1329_v25  ;;  %v1312_v43 = vsel %vm672_vm3, %v1202_v48, -inf  ;;  %v1633_v16 = vrot.slane %v1619_v56, %v2766_v38  ;;  %v1888_v48 = vld [vmem:[%s2849_s13 + $0x2] sm:$0x1]  ;;  %v1897_v56 = vld [vmem:[%s2849_s13 + $0x5] sm:$0x1] }
 0x2d4   : > { %v1310_v54 = vrot.slane %v1309_v46, 1  ;;  %v2853_v36 = vsel %vm672_vm3, %v1207_v32, -inf  ;;  %v1634_v6 = vcombine.high %v1626_v39, %v1626_v39  ;;  %v1642_v63 = vrot.slane %v1626_v39, %v2766_v38  ;;  %v2861_v13 = vpop.f32.mrb[44].mxu1  ;;  %v1891_v32 = vld [vmem:[%s2849_s13 + $0x3] sm:$0x1] }
 0x2d5   : > { %v1495_v20 = vsel %vm1481_vm4, %v1290_v49, %v1283_v9  ;;  %v2859_v31 = vmax.f32 %v1323_v41, %v1324_v42  ;;  %v1331_v22 = vrot.slane %v1330_v35, 1  ;;  %v1635_v58 = vcombine.high %v1633_v16, %v1633_v16  ;;  %v2872_v61 = vpop.f32.mrb[45].mxu1  ;;  %v1900_v39 = vld [vmem:[%s2849_s13 + $0x6] sm:$0x1] }
 0x2d6   : > { %v1496_v28 = vsel %vm1483_vm5, %v1297_v19, %v1495_v20  ;;  %v1311_v52 = vmax.f32 %v1309_v46, %v1310_v54  ;;  %v1649_v11 = vrot.slane %v1633_v16, %v2766_v38  ;;  %v1656_v47 = vrot.slane %v1634_v6, %v2766_v38  ;;  %v1882_v19 = vld [vmem:[%s2849_s13] sm:$0x1]  ;;  %v2878_v17 = vpop.f32.mrb[46].mxu1 }
 0x2d7   : > { %v1664_v18 = vcombine.high %v1642_v63, %v1642_v63  ;;  %v1847_v26 = vpack.c.bf16 %v1642_v63, %v1642_v63  ;;  %v1497_v3 = vsel %vm1485_vm6, %v1304_v2, %v1496_v28  ;;  %v2876_v30 = vmax.f32 %v1330_v35, %v1331_v22  ;;  %v2883_v27 = vpop.f32.mrb[47].mxu1  ;;  %v1903_v28 = vld [vmem:[%s2849_s13 + $0x7] sm:$0x1] }
 0x2d8   : > { %v1313_v14 = vrot.slane %v1312_v43, 4  ;;  %v1663_v12 = vrot.slane %v1635_v58, %v2766_v38  ;;  %v1665_v8 = vcombine.high %v1649_v11, %v1649_v11  ;;  %v1666_v33 = vcombine.high %v1656_v47, %v1656_v47 }
 0x2d9   : > { %v1848_v41 = vpack.c.bf16 %v1656_v47, %v1656_v47  ;;  %v1849_v46 = vpack.c.bf16 %v1664_v18, %v1664_v18  ;;  %v1851_v25 = vpack.c.bf16 %v1649_v11, %v1649_v11  ;;  %v1883_v2 = vsel %vm2867_vm13, %v1847_v26, %v1882_v19 }
 0x2da   : > { %v1498_v49 = vsel %vm1487_vm7, %v1311_v52, %v1497_v3  ;;  %v1667_v42 = vcombine.high %v1663_v12, %v1663_v12  ;;  %v1850_v54 = vpack.c.bf16 %v1666_v33, %v1666_v33  ;;  %v1852_v35 = vpack.c.bf16 %v1663_v12, %v1663_v12  ;;  %1884 = vst [vmem:[%s2849_s13] sm:$0x1] %v1883_v2 }
 0x2db   : > { %v1853_v16 = vpack.c.bf16 %v1665_v8, %v1665_v8  ;;  %v1886_v6 = vsel %vm2867_vm13, %v1848_v41, %v1885_v0  ;;  %v1889_v63 = vsel %vm2867_vm13, %v1849_v46, %v1888_v48  ;;  %v1895_v20 = vsel %vm2867_vm13, %v1851_v25, %v1894_v34 }
 0x2dc   : > { %v1314_v22 = vmax.f32 %v1312_v43, %v1313_v14  ;;  %v1854_v52 = vpack.c.bf16 %v1667_v42, %v1667_v42  ;;  %1887 = vst [vmem:[%s2849_s13 + $0x1] sm:$0x1] %v1886_v6  ;;  %1890 = vst [vmem:[%s2849_s13 + $0x2] sm:$0x1] %v1889_v63  ;;  %v1892_v58 = vsel %vm2867_vm13, %v1850_v54, %v1891_v32  ;;  %v1348_v43 = vrot.slane %v2853_v36, 4  ;;  %v2916_v3 = vpop.f32.mrb[48].mxu1 }
 0x2dd   : > { %1896 = vst [vmem:[%s2849_s13 + $0x4] sm:$0x1] %v1895_v20  ;;  %v1898_v11 = vsel %vm2867_vm13, %v1852_v35, %v1897_v56  ;;  %v1901_v47 = vsel %vm2867_vm13, %v1853_v16, %v1900_v39  ;;  %1893 = vst [vmem:[%s2849_s13 + $0x3] sm:$0x1] %v1892_v58  ;;  %v1205_v19 = vmax.f32 %v2837_v44, 0.0  ;;  %v3191_v26 = vmax.f32 %v2593_v59, 0.0 }
 0x2de   : > { %1899 = vst [vmem:[%s2849_s13 + $0x5] sm:$0x1] %v1898_v11  ;;  %1902 = vst [vmem:[%s2849_s13 + $0x6] sm:$0x1] %v1901_v47  ;;  %v1315_v18 = vrot.slane %v1314_v22, 2  ;;  %v1904_v14 = vsel %vm2867_vm13, %v1854_v52, %v1903_v28  ;;  %v1098_v12 = vadd.f32 %v2748_v15, %v2816_v45  ;;  %v1119_v8 = vadd.f32 %v2824_v4, %v2748_v15  ;;  %v2926_v41 = vpop.f32.mrb[49].mxu1 }
 0x2df   : > { %v1176_v0 = vadd.f32 %v2842_v40, %v3191_v26  ;;  %v1111_v33 = vadd.f32 %v2748_v15, %v2829_v1  ;;  %1905 = vst [vmem:[%s2849_s13 + $0x7] sm:$0x1] %v1904_v14  ;;  %v1349_v44 = vmax.f32 %v2853_v36, %v1348_v43  ;;  %v1333_v40 = vsel %vm672_vm3, %v1205_v19, -inf  ;;  %v2931_v34 = vpop.f32.mrb[50].mxu1 }
 0x2e0   : > { %v1316_v59 = vmax.f32 %v1314_v22, %v1315_v18  ;;  %v1334_v46 = vrot.slane %v1333_v40, 4  ;;  %v3192_v45 = vmax.f32 %v2597_v62, 0.0  ;;  %v3193_v4 = vmax.f32 %v2617_v23, 0.0  ;;  %v2939_v56 = vpop.f32.mrb[51].mxu1 }
 0x2e1   : > { %v1208_v48 = vmax.f32 %v1176_v0, 0.0  ;;  %v3194_v1 = vmax.f32 %v2613_v21, 0.0  ;;  %v1350_v42 = vrot.slane %v1349_v44, 2  ;;  %v1122_v54 = vadd.f32 %v2833_v5, %v2748_v15 }
 0x2e2   : > { %v1174_v25 = vadd.f32 %v1098_v12, %v3192_v45  ;;  %v1179_v2 = vadd.f32 %v1119_v8, %v3193_v4  ;;  %v1317_v39 = vrot.slane %v1316_v59, 1  ;;  %v1335_v35 = vmax.f32 %v1333_v40, %v1334_v46 }
 0x2e3   : > { %v1177_v32 = vadd.f32 %v1111_v33, %v3194_v1  ;;  %v1354_v36 = vsel %vm672_vm3, %v1208_v48, -inf  ;;  %v1351_v20 = vmax.f32 %v1349_v44, %v1350_v42  ;;  %v3195_v28 = vmax.f32 %v2620_v24, 0.0 }
 0x2e4   : > { %v1355_v16 = vrot.slane %v1354_v36, 4  ;;  %v1206_v6 = vmax.f32 %v1174_v25, 0.0  ;;  %v1211_v62 = vmax.f32 %v1179_v2, 0.0  ;;  %v1318_v63 = vmax.f32 %v1316_v59, %v1317_v39 }
 0x2e5   : > { %v1209_v23 = vmax.f32 %v1177_v32, 0.0  ;;  %v1180_v21 = vadd.f32 %v1122_v54, %v3195_v28  ;;  %v1336_v22 = vrot.slane %v1335_v35, 2  ;;  %v1352_v18 = vrot.slane %v1351_v20, 1 }
 0x2e6   : > { %v1356_v52 = vmax.f32 %v1354_v36, %v1355_v16  ;;  %v1340_v58 = vsel %vm672_vm3, %v1206_v6, -inf  ;;  %v1375_v11 = vsel %vm672_vm3, %v1211_v62, -inf  ;;  %v1499_v47 = vsel %vm1489_vm8, %v1318_v63, %v1498_v49 }
 0x2e7   : > { %v1341_v5 = vrot.slane %v1340_v58, 4  ;;  %v1376_v43 = vrot.slane %v1375_v11, 4  ;;  %v1500_v19 = vsel %vm1491_vm9, %v2859_v31, %v1499_v47  ;;  %v1337_v26 = vmax.f32 %v1335_v35, %v1336_v22 }
 0x2e8   : > { %v1357_v0 = vrot.slane %v1356_v52, 2  ;;  %v1361_v14 = vsel %vm672_vm3, %v1209_v23, -inf  ;;  %v1501_v24 = vsel %vm1493_vm10, %v2876_v30, %v1500_v19  ;;  %v1353_v12 = vmax.f32 %v1351_v20, %v1352_v18 }
 0x2e9   : > { %v1342_v8 = vmax.f32 %v1340_v58, %v1341_v5  ;;  %v1377_v33 = vmax.f32 %v1375_v11, %v1376_v43  ;;  %1521 = vst.msk [vmem:[#allocation2 + $0x8] sm:$0xff] %vm672_vm3, %v1501_v24  ;;  %v1338_v59 = vrot.slane %v1337_v26, 1  ;;  %v1362_v44 = vrot.slane %v1361_v14, 4 }
 0x2ea   : > { %v1358_v49 = vmax.f32 %v1356_v52, %v1357_v0  ;;  %v1212_v40 = vmax.f32 %v1180_v21, 0.0  ;;  %v1114_v31 = vadd.f32 %v2748_v15, %v2839_v7  ;;  %v1135_v45 = vadd.f32 %v2861_v13, %v2748_v15 }
 0x2eb   : > { %v1343_v48 = vrot.slane %v1342_v8, 2  ;;  %v1378_v46 = vrot.slane %v1377_v33, 2  ;;  %v1339_v25 = vmax.f32 %v1337_v26, %v1338_v59  ;;  %v1363_v30 = vmax.f32 %v1361_v14, %v1362_v44 }
 0x2ec   : > { %v1359_v4 = vrot.slane %v1358_v49, 1  ;;  %v1382_v2 = vsel %vm672_vm3, %v1212_v40, -inf  ;;  %v3196_v42 = vmax.f32 %v2624_v29, 0.0  ;;  %v3197_v16 = vmax.f32 %v2643_v53, 0.0 }
 0x2ed   : > { %v1344_v1 = vmax.f32 %v1342_v8, %v1343_v48  ;;  %v1379_v32 = vmax.f32 %v1377_v33, %v1378_v46  ;;  %v1383_v39 = vrot.slane %v1382_v2, 4  ;;  %v1364_v35 = vrot.slane %v1363_v30, 2 }
 0x2ee   : > { %v1178_v36 = vadd.f32 %v1114_v31, %v3196_v42  ;;  %v1360_v54 = vmax.f32 %v1358_v49, %v1359_v4  ;;  %v1183_v6 = vadd.f32 %v1135_v45, %v3197_v16  ;;  %v1127_v7 = vadd.f32 %v2748_v15, %v2872_v61  ;;  %v1906_v45 = vld [vmem:[%s2849_s13 + $0x8] sm:$0x1]  ;;  %v1909_v42 = vld [vmem:[%s2849_s13 + $0x9] sm:$0x1] }
 0x2ef   : > { %v1345_v13 = vrot.slane %v1344_v1, 1  ;;  %v1380_v62 = vrot.slane %v1379_v32, 1  ;;  %v1384_v63 = vmax.f32 %v1382_v2, %v1383_v39  ;;  %v1365_v23 = vmax.f32 %v1363_v30, %v1364_v35 }
 0x2f0   : > { %v1210_v20 = vmax.f32 %v1178_v36, 0.0  ;;  %v1215_v28 = vmax.f32 %v1183_v6, 0.0  ;;  %v3198_v21 = vmax.f32 %v2639_v51, 0.0  ;;  %v2972_v29 = vadd.f32 %v2878_v17, %v2748_v15  ;;  %v1612_v52 = vld [vmem:[#allocation2 + $0x8] sm:$0xff] }
 0x2f1   : > { %v1346_v53 = vmax.f32 %v1344_v1, %v1345_v13  ;;  %v2974_v58 = vmax.f32 %v1379_v32, %v1380_v62  ;;  %v1385_v11 = vrot.slane %v1384_v63, 2  ;;  %v1668_v47 = vcombine.high %v1612_v52, %v1612_v52  ;;  %v1912_v36 = vld [vmem:[%s2849_s13 + $0xa] sm:$0x1]  ;;  %v1921_v13 = vld [vmem:[%s2849_s13 + $0xd] sm:$0x1] }
 0x2f2   : > { %v2968_v22 = vadd.f32 %v1127_v7, %v3198_v21  ;;  %v1368_v61 = vsel %vm672_vm3, %v1210_v20, -inf  ;;  %v1675_v18 = vrot.slane %v1612_v52, %v2766_v38  ;;  %v1366_v5 = vrot.slane %v1365_v23, 1  ;;  %v1915_v7 = vld [vmem:[%s2849_s13 + $0xb] sm:$0x1]  ;;  %v1924_v62 = vld [vmem:[%s2849_s13 + $0xe] sm:$0x1] }
 0x2f3   : > { %v1369_v43 = vrot.slane %v1368_v61, 4  ;;  %v1502_v51 = vsel %vm1481_vm4, %v1346_v53, %v1339_v25  ;;  %v1386_v19 = vmax.f32 %v1384_v63, %v1385_v11  ;;  %v2980_v26 = vsel %vm672_vm3, %v1215_v28, -inf  ;;  %v1927_v11 = vld [vmem:[%s2849_s13 + $0xf] sm:$0x1] }
 0x2f4   : > { %v1213_v17 = vmax.f32 %v2968_v22, 0.0  ;;  %v1682_v0 = vrot.slane %v1668_v47, %v2766_v38  ;;  %v1683_v14 = vcombine.high %v1675_v18, %v1675_v18  ;;  %v1691_v24 = vrot.slane %v1675_v18, %v2766_v38 }
 0x2f5   : > { %v1503_v8 = vsel %vm1483_vm5, %v1353_v12, %v1502_v51  ;;  %v1367_v33 = vmax.f32 %v1365_v23, %v1366_v5  ;;  %v1387_v49 = vrot.slane %v1386_v19, 1  ;;  %v1370_v44 = vmax.f32 %v1368_v61, %v1369_v43 }
 0x2f6   : > { %v1504_v59 = vsel %vm1485_vm6, %v1360_v54, %v1503_v8  ;;  %v1684_v40 = vcombine.high %v1682_v0, %v1682_v0  ;;  %v1698_v48 = vrot.slane %v1682_v0, %v2766_v38  ;;  %v1705_v46 = vrot.slane %v1683_v14, %v2766_v38  ;;  %v1918_v54 = vld [vmem:[%s2849_s13 + $0xc] sm:$0x1] }
 0x2f7   : > { %v1713_v31 = vcombine.high %v1691_v24, %v1691_v24  ;;  %v1855_v25 = vpack.c.bf16 %v1691_v24, %v1691_v24  ;;  %v1505_v12 = vsel %vm1487_vm7, %v1367_v33, %v1504_v59  ;;  %v1388_v4 = vmax.f32 %v1386_v19, %v1387_v49 }
 0x2f8   : > { %v1371_v30 = vrot.slane %v1370_v44, 2  ;;  %v1712_v2 = vrot.slane %v1684_v40, %v2766_v38  ;;  %v1714_v1 = vcombine.high %v1698_v48, %v1698_v48  ;;  %v1715_v32 = vcombine.high %v1705_v46, %v1705_v46 }
 0x2f9   : > { %v1856_v39 = vpack.c.bf16 %v1705_v46, %v1705_v46  ;;  %v1857_v35 = vpack.c.bf16 %v1713_v31, %v1713_v31  ;;  %v1859_v16 = vpack.c.bf16 %v1698_v48, %v1698_v48  ;;  %v1907_v6 = vsel %vm2867_vm13, %v1855_v25, %v1906_v45 }
 0x2fa   : > { %v1372_v63 = vmax.f32 %v1370_v44, %v1371_v30  ;;  %v1716_v20 = vcombine.high %v1712_v2, %v1712_v2  ;;  %v1858_v23 = vpack.c.bf16 %v1715_v32, %v1715_v32  ;;  %v1860_v28 = vpack.c.bf16 %v1712_v2, %v1712_v2  ;;  %1908 = vst [vmem:[%s2849_s13 + $0x8] sm:$0x1] %v1907_v6 }
 0x2fb   : > { %v1861_v21 = vpack.c.bf16 %v1714_v1, %v1714_v1  ;;  %v1910_v22 = vsel %vm2867_vm13, %v1856_v39, %v1909_v42  ;;  %v1913_v52 = vsel %vm2867_vm13, %v1857_v35, %v1912_v36  ;;  %v1919_v53 = vsel %vm2867_vm13, %v1859_v16, %v1918_v54 }
 0x2fc   : > { %v1373_v61 = vrot.slane %v1372_v63, 1  ;;  %v1862_v47 = vpack.c.bf16 %v1716_v20, %v1716_v20  ;;  %1911 = vst [vmem:[%s2849_s13 + $0x9] sm:$0x1] %v1910_v22  ;;  %1914 = vst [vmem:[%s2849_s13 + $0xa] sm:$0x1] %v1913_v52  ;;  %v1916_v18 = vsel %vm2867_vm13, %v1858_v23, %v1915_v7  ;;  %v1922_v5 = vsel %vm2867_vm13, %v1860_v28, %v1921_v13 }
 0x2fd   : > { %1920 = vst [vmem:[%s2849_s13 + $0xc] sm:$0x1] %v1919_v53  ;;  %v1925_v43 = vsel %vm2867_vm13, %v1861_v21, %v1924_v62  ;;  %1917 = vst [vmem:[%s2849_s13 + $0xb] sm:$0x1] %v1916_v18  ;;  %v1404_v19 = vrot.slane %v2980_v26, 4  ;;  %v1389_v0 = vsel %vm672_vm3, %v1213_v17, -inf  ;;  %v1130_v59 = vadd.f32 %v2748_v15, %v2883_v27 }
 0x2fe   : > { %1923 = vst [vmem:[%s2849_s13 + $0xd] sm:$0x1] %v1922_v5  ;;  %1926 = vst [vmem:[%s2849_s13 + $0xe] sm:$0x1] %v1925_v43  ;;  %v1374_v51 = vmax.f32 %v1372_v63, %v1373_v61  ;;  %v3199_v14 = vmax.f32 %v2646_v55, 0.0  ;;  %v1928_v8 = vsel %vm2867_vm13, %v1862_v47, %v1927_v11  ;;  %v1390_v33 = vrot.slane %v1389_v0, 4 }
 0x2ff   : > { %v1151_v49 = vadd.f32 %v2916_v3, %v2748_v15  ;;  %1929 = vst [vmem:[%s2849_s13 + $0xf] sm:$0x1] %v1928_v8  ;;  %v1405_v40 = vmax.f32 %v2980_v26, %v1404_v19  ;;  %v1143_v55 = vadd.f32 %v2748_v15, %v2926_v41  ;;  %v3200_v46 = vmax.f32 %v2650_v10, 0.0 }
 0x300   : > { %v1184_v24 = vadd.f32 %v2972_v29, %v3199_v14  ;;  %v1506_v44 = vsel %vm1489_vm8, %v1374_v51, %v1505_v12  ;;  %v1391_v48 = vmax.f32 %v1389_v0, %v1390_v33  ;;  %v3201_v27 = vmax.f32 %v2669_v60, 0.0 }
 0x301   : > { %v1507_v29 = vsel %vm1491_vm9, %v2974_v58, %v1506_v44  ;;  %v1182_v31 = vadd.f32 %v1130_v59, %v3200_v46  ;;  %v1406_v25 = vrot.slane %v1405_v40, 2  ;;  %v3202_v26 = vmax.f32 %v2665_v50, 0.0 }
 0x302   : > { %v1216_v17 = vmax.f32 %v1184_v24, 0.0  ;;  %v1187_v45 = vadd.f32 %v1151_v49, %v3201_v27  ;;  %v1508_v3 = vsel %vm1493_vm10, %v1388_v4, %v1507_v29  ;;  %v1392_v41 = vrot.slane %v1391_v48, 2  ;;  %v1930_v29 = vld [vmem:[%s2849_s13 + $0x10] sm:$0x1] }
 0x303   : > { %v1185_v30 = vadd.f32 %v1143_v55, %v3202_v26  ;;  %1522 = vst.msk [vmem:[#allocation2 + $0x10] sm:$0xff] %vm672_vm3, %v1508_v3  ;;  %v1214_v58 = vmax.f32 %v1182_v31, 0.0  ;;  %v1407_v32 = vmax.f32 %v1405_v40, %v1406_v25  ;;  %v1154_v60 = vadd.f32 %v2931_v34, %v2748_v15  ;;  %v1933_v26 = vld [vmem:[%s2849_s13 + $0x11] sm:$0x1] }
 0x304   : > { %v1410_v12 = vsel %vm672_vm3, %v1216_v17, -inf  ;;  %v1219_v1 = vmax.f32 %v1187_v45, 0.0  ;;  %v1146_v4 = vadd.f32 %v2748_v15, %v2939_v56  ;;  %v1393_v39 = vmax.f32 %v1391_v48, %v1392_v41  ;;  %v1942_v41 = vld [vmem:[%s2849_s13 + $0x14] sm:$0x1] }
 0x305   : > { %v1411_v2 = vrot.slane %v1410_v12, 4  ;;  %v1217_v10 = vmax.f32 %v1185_v30, 0.0  ;;  %v1396_v36 = vsel %vm672_vm3, %v1214_v58, -inf  ;;  %v1408_v6 = vrot.slane %v1407_v32, 1  ;;  %v1936_v30 = vld [vmem:[%s2849_s13 + $0x12] sm:$0x1] }
 0x306   : > { %v1431_v50 = vsel %vm672_vm3, %v1219_v1, -inf  ;;  %v1397_v54 = vrot.slane %v1396_v36, 4  ;;  %v3203_v62 = vmax.f32 %v2672_v37, 0.0  ;;  %v1394_v34 = vrot.slane %v1393_v39, 1 }
 0x307   : > { %v1412_v42 = vmax.f32 %v1410_v12, %v1411_v2  ;;  %v1432_v35 = vrot.slane %v1431_v50, 4  ;;  %v1417_v16 = vsel %vm672_vm3, %v1217_v10, -inf  ;;  %v3204_v15 = vmax.f32 %v2676_v57, 0.0  ;;  %v1945_v10 = vld [vmem:[%s2849_s13 + $0x15] sm:$0x1] }
 0x308   : > { %v1418_v13 = vrot.slane %v1417_v16, 4  ;;  %v1188_v63 = vadd.f32 %v1154_v60, %v3203_v62  ;;  %v1398_v20 = vmax.f32 %v1396_v36, %v1397_v54  ;;  %v1409_v37 = vmax.f32 %v1407_v32, %v1408_v6  ;;  %v1939_v32 = vld [vmem:[%s2849_s13 + $0x13] sm:$0x1]  ;;  %v1948_v60 = vld [vmem:[%s2849_s13 + $0x16] sm:$0x1] }
 0x309   : > { %v1413_v7 = vrot.slane %v1412_v42, 2  ;;  %v3056_v23 = vmax.f32 %v1431_v50, %v1432_v35  ;;  %v1186_v56 = vadd.f32 %v1146_v4, %v3204_v15  ;;  %v1395_v43 = vmax.f32 %v1393_v39, %v1394_v34  ;;  %v1951_v6 = vld [vmem:[%s2849_s13 + $0x17] sm:$0x1] }
 0x30a   : > { %v1419_v21 = vmax.f32 %v1417_v16, %v1418_v13  ;;  %v1220_v22 = vmax.f32 %v1188_v63, 0.0  ;;  %v1613_v52 = vld [vmem:[#allocation2 + $0x10] sm:$0xff]  ;;  %v1399_v53 = vrot.slane %v1398_v20, 2 }
 0x30b   : > { %v1414_v28 = vmax.f32 %v1412_v42, %v1413_v7  ;;  %v1218_v11 = vmax.f32 %v1186_v56, 0.0  ;;  %v1717_v61 = vcombine.high %v1613_v52, %v1613_v52  ;;  %v1724_v47 = vrot.slane %v1613_v52, %v2766_v38 }
 0x30c   : > { %v1420_v5 = vrot.slane %v1419_v21, 2  ;;  %v1400_v51 = vmax.f32 %v1398_v20, %v1399_v53  ;;  %v1434_v19 = vrot.slane %v3056_v23, 2  ;;  %v1438_v24 = vsel %vm672_vm3, %v1220_v22, -inf }
 0x30d   : > { %v1415_v18 = vrot.slane %v1414_v28, 1  ;;  %v1731_v57 = vrot.slane %v1717_v61, %v2766_v38  ;;  %v1732_v0 = vcombine.high %v1724_v47, %v1724_v47  ;;  %v1740_v14 = vrot.slane %v1724_v47, %v2766_v38 }
 0x30e   : > { %v1401_v33 = vrot.slane %v1400_v51, 1  ;;  %v1421_v59 = vmax.f32 %v1419_v21, %v1420_v5  ;;  %v1424_v49 = vsel %vm672_vm3, %v1218_v11, -inf  ;;  %v1439_v27 = vrot.slane %v1438_v24, 4 }
 0x30f   : > { %v1416_v8 = vmax.f32 %v1414_v28, %v1415_v18  ;;  %v1733_v44 = vcombine.high %v1731_v57, %v1731_v57  ;;  %v1747_v40 = vrot.slane %v1731_v57, %v2766_v38  ;;  %v1754_v17 = vrot.slane %v1732_v0, %v2766_v38 }
 0x310   : > { %v1762_v55 = vcombine.high %v1740_v14, %v1740_v14  ;;  %v1863_v48 = vpack.c.bf16 %v1740_v14, %v1740_v14  ;;  %v1402_v46 = vmax.f32 %v1400_v51, %v1401_v33  ;;  %v1422_v31 = vrot.slane %v1421_v59, 1 }
 0x311   : > { %v1761_v45 = vrot.slane %v1733_v44, %v2766_v38  ;;  %v1763_v3 = vcombine.high %v1747_v40, %v1747_v40  ;;  %v1764_v25 = vcombine.high %v1754_v17, %v1754_v17  ;;  %v1864_v12 = vpack.c.bf16 %v1754_v17, %v1754_v17 }
 0x312   : > { %v1865_v2 = vpack.c.bf16 %v1762_v55, %v1762_v55  ;;  %v1867_v58 = vpack.c.bf16 %v1747_v40, %v1747_v40  ;;  %v1931_v1 = vsel %vm2867_vm13, %v1863_v48, %v1930_v29  ;;  %v1509_v4 = vsel %vm1481_vm4, %v1402_v46, %v1395_v43  ;;  %v1954_v48 = vld [vmem:[%s2849_s13 + $0x18] sm:$0x1] }
 0x313   : > { %v1765_v39 = vcombine.high %v1761_v45, %v1761_v45  ;;  %v1866_v42 = vpack.c.bf16 %v1764_v25, %v1764_v25  ;;  %v1868_v36 = vpack.c.bf16 %v1761_v45, %v1761_v45  ;;  %v1869_v50 = vpack.c.bf16 %v1763_v3, %v1763_v3  ;;  %1932 = vst [vmem:[%s2849_s13 + $0x10] sm:$0x1] %v1931_v1  ;;  %v1957_v25 = vld [vmem:[%s2849_s13 + $0x19] sm:$0x1]  ;;  %v1969_v1 = vld [vmem:[%s2849_s13 + $0x1d] sm:$0x1] }
 0x314   : > { %v1934_v54 = vsel %vm2867_vm13, %v1864_v12, %v1933_v26  ;;  %v1937_v35 = vsel %vm2867_vm13, %v1865_v2, %v1936_v30  ;;  %v1943_v16 = vsel %vm2867_vm13, %v1867_v58, %v1942_v41  ;;  %v1510_v7 = vsel %vm1483_vm5, %v1409_v37, %v1509_v4  ;;  %v1960_v12 = vld [vmem:[%s2849_s13 + $0x1a] sm:$0x1]  ;;  %v1966_v26 = vld [vmem:[%s2849_s13 + $0x1c] sm:$0x1]  ;;  %v1963_v58 = vld [vmem:[%s2849_s13 + $0x1b] sm:$0x1] }
 0x315   : > { %v1870_v13 = vpack.c.bf16 %v1765_v39, %v1765_v39  ;;  %1935 = vst [vmem:[%s2849_s13 + $0x11] sm:$0x1] %v1934_v54  ;;  %1938 = vst [vmem:[%s2849_s13 + $0x12] sm:$0x1] %v1937_v35  ;;  %v1940_v62 = vsel %vm2867_vm13, %v1866_v42, %v1939_v32  ;;  %v1946_v63 = vsel %vm2867_vm13, %v1868_v36, %v1945_v10  ;;  %v1425_v28 = vrot.slane %v1424_v49, 4 }
 0x316   : > { %1944 = vst [vmem:[%s2849_s13 + $0x14] sm:$0x1] %v1943_v16  ;;  %v1949_v34 = vsel %vm2867_vm13, %v1869_v50, %v1948_v60  ;;  %1941 = vst [vmem:[%s2849_s13 + $0x13] sm:$0x1] %v1940_v62  ;;  %v1423_v20 = vmax.f32 %v1421_v59, %v1422_v31  ;;  %v1511_v15 = vsel %vm1485_vm6, %v1416_v8, %v1510_v7  ;;  %v1972_v32 = vld [vmem:[%s2849_s13 + $0x1e] sm:$0x1] }
 0x317   : > { %1947 = vst [vmem:[%s2849_s13 + $0x15] sm:$0x1] %v1946_v63  ;;  %1950 = vst [vmem:[%s2849_s13 + $0x16] sm:$0x1] %v1949_v34  ;;  %v1440_v56 = vmax.f32 %v1438_v24, %v1439_v27  ;;  %v1952_v21 = vsel %vm2867_vm13, %v1870_v13, %v1951_v6  ;;  %v1426_v53 = vmax.f32 %v1424_v49, %v1425_v28  ;;  %v1975_v50 = vld [vmem:[%s2849_s13 + $0x1f] sm:$0x1] }
 0x318   : > { %1953 = vst [vmem:[%s2849_s13 + $0x17] sm:$0x1] %v1952_v21  ;;  %v1512_v22 = vsel %vm1487_vm7, %v1423_v20, %v1511_v15  ;;  %v1435_v11 = vmax.f32 %v3056_v23, %v1434_v19 }
 0x319   : > { %v1441_v52 = vrot.slane %v1440_v56, 2  ;;  %v1427_v47 = vrot.slane %v1426_v53, 2 }
 0x31a   : > { %v1436_v5 = vrot.slane %v1435_v11, 1 }
 0x31b   : > { %v1442_v61 = vmax.f32 %v1440_v56, %v1441_v52  ;;  %v1428_v18 = vmax.f32 %v1426_v53, %v1427_v47 }
 0x31c   : > { %v1437_v57 = vmax.f32 %v1435_v11, %v1436_v5 }
 0x31d   : > { %v1443_v37 = vrot.slane %v1442_v61, 1  ;;  %v1429_v43 = vrot.slane %v1428_v18, 1 }
 0x31f   : > { %v1430_v51 = vmax.f32 %v1428_v18, %v1429_v43  ;;  %v1444_v0 = vmax.f32 %v1442_v61, %v1443_v37 }
 0x321   : > { %v1513_v14 = vsel %vm1489_vm8, %v1430_v51, %v1512_v22 }
 0x322   : > { %v1514_v24 = vsel %vm1491_vm9, %v1437_v57, %v1513_v14 }
 0x323   : > { %v1515_v8 = vsel %vm1493_vm10, %v1444_v0, %v1514_v24 }
 0x324   : > { %1523 = vst.msk [vmem:[#allocation2 + $0x18] sm:$0xff] %vm672_vm3, %v1515_v8 }
 0x32b   : > { %v1614_v33 = vld [vmem:[#allocation2 + $0x18] sm:$0xff] }
 0x32c   : > { %v1766_v23 = vcombine.high %v1614_v33, %v1614_v33  ;;  %v1773_v19 = vrot.slane %v1614_v33, %v2766_v38 }
 0x32e   : > { %v1780_v59 = vrot.slane %v1766_v23, %v2766_v38  ;;  %v1781_v49 = vcombine.high %v1773_v19, %v1773_v19  ;;  %v1789_v44 = vrot.slane %v1773_v19, %v2766_v38 }
 0x330   : > { %v1782_v40 = vcombine.high %v1780_v59, %v1780_v59  ;;  %v1796_v17 = vrot.slane %v1780_v59, %v2766_v38  ;;  %v1803_v55 = vrot.slane %v1781_v49, %v2766_v38  ;;  %v1811_v29 = vcombine.high %v1789_v44, %v1789_v44 }
 0x331   : > { %v1871_v46 = vpack.c.bf16 %v1789_v44, %v1789_v44 }
 0x332   : > { %v1810_v31 = vrot.slane %v1782_v40, %v2766_v38  ;;  %v1812_v27 = vcombine.high %v1796_v17, %v1796_v17  ;;  %v1813_v45 = vcombine.high %v1803_v55, %v1803_v55  ;;  %v1872_v3 = vpack.c.bf16 %v1803_v55, %v1803_v55 }
 0x333   : > { %v1873_v30 = vpack.c.bf16 %v1811_v29, %v1811_v29  ;;  %v1875_v41 = vpack.c.bf16 %v1796_v17, %v1796_v17  ;;  %v1955_v2 = vsel %vm2867_vm13, %v1871_v46, %v1954_v48 }
 0x334   : > { %v1814_v38 = vcombine.high %v1810_v31, %v1810_v31  ;;  %v1874_v10 = vpack.c.bf16 %v1813_v45, %v1813_v45  ;;  %v1876_v60 = vpack.c.bf16 %v1810_v31, %v1810_v31  ;;  %v1877_v4 = vpack.c.bf16 %v1812_v27, %v1812_v27  ;;  %1956 = vst [vmem:[%s2849_s13 + $0x18] sm:$0x1] %v1955_v2 }
 0x335   : > { %v1958_v39 = vsel %vm2867_vm13, %v1872_v3, %v1957_v25  ;;  %v1961_v42 = vsel %vm2867_vm13, %v1873_v30, %v1960_v12  ;;  %v1967_v36 = vsel %vm2867_vm13, %v1875_v41, %v1966_v26 }
 0x336   : > { %v1878_v54 = vpack.c.bf16 %v1814_v38, %v1814_v38  ;;  %1959 = vst [vmem:[%s2849_s13 + $0x19] sm:$0x1] %v1958_v39  ;;  %1962 = vst [vmem:[%s2849_s13 + $0x1a] sm:$0x1] %v1961_v42  ;;  %v1964_v35 = vsel %vm2867_vm13, %v1874_v10, %v1963_v58  ;;  %v1970_v16 = vsel %vm2867_vm13, %v1876_v60, %v1969_v1 }
 0x337   : > { %1968 = vst [vmem:[%s2849_s13 + $0x1c] sm:$0x1] %v1967_v36  ;;  %v1973_v6 = vsel %vm2867_vm13, %v1877_v4, %v1972_v32  ;;  %1965 = vst [vmem:[%s2849_s13 + $0x1b] sm:$0x1] %v1964_v35 }
 0x338   : > { %1971 = vst [vmem:[%s2849_s13 + $0x1d] sm:$0x1] %v1970_v16  ;;  %1974 = vst [vmem:[%s2849_s13 + $0x1e] sm:$0x1] %v1973_v6  ;;  %v1976_v7 = vsel %vm2867_vm13, %v1878_v54, %v1975_v50 }
 0x339   : > { %1977 = vst [vmem:[%s2849_s13 + $0x1f] sm:$0x1] %v1976_v7 }
 0x33a PF: > { %s17_s26 = sadd.s32 1, %s2336_s26   ;;  %s3205_s24 = smov %s2332_s25 }
 0x33b   : > { %p14_p5 = scmp.ge.s32.totalorder %s17_s26, 4   ;;  %s3206_s25 = smov %s3208_s27 }
 0x33d   :  { %16 = sbr.rel (!%p14_p5) target bundleno = 2 (0x2), region = 86 }

// kernel: _lambda_.26
= control target key start
LH: loop header
LB: loop body
LE: loop exit
PB: predicated region body
PF: predicated region fallthrough
CT: control target
= control target key end

     0   :  { %s601_s18 = smov 0   ;;  %s657_s0 = inlined_call_operand.vmem [shape: bf16[32,64], index: 0, kind: input, shape index: {}]   ;;  %s658_s1 = inlined_call_operand.vmem [shape: bf16[64,64], index: 1, kind: input, shape index: {}]   ;;  %s659_s2 = inlined_call_operand.vmem [shape: f32[1,64], index: 2, kind: input, shape index: {}]   ;;  %s660_s3 = inlined_call_operand.vmem [shape: bf16[64,64], index: 3, kind: input, shape index: {}]   ;;  %s661_s4 = inlined_call_operand.vmem [shape: f32[1,64], index: 4, kind: input, shape index: {}]   ;;  %s662_s5 = inlined_call_operand.vmem [shape: bf16[32,64], index: 5, kind: output, shape index: {}]  }
   0x1 LB: > { %s479_s19 = sadd.s32 4294967295, %s567_s18   ;;  %p483_p0 = scmp.ge.s32.totalorder %s567_s18, 1  ;;  %s567_s18 = sphi %s601_s18, %s15_s18  }
   0x2   : > { %p188_p1 = scmp.lt.s32.totalorder %s567_s18, 3 }
   0x4   : > { %p189_p2 = pnand %p483_p0, %p188_p1 }
   0x5   : > { %v551_v0 = vld [vmem:[%s658_s1] sm:$0xff] (!%p189_p2)   ;;  %v569_v1 = vmov (!%p189_p2), 0.0   ;;  %v552_v2 = vld [vmem:[%s658_s1 + $0x8] sm:$0xff] (!%p189_p2)   ;;  %vm570_vm0 = vmmov (!%p189_p2), 0   ;;  %s484_s24 = sshll.u32 (!%p189_p2), %s479_s19, 1  ;;  %v553_v4 = vld [vmem:[%s658_s1 + $0x10] sm:$0xff] (!%p189_p2)  }
   0x6   : > { %192 = sbr.rel (%p189_p2) target bundleno = 465 (0x1d1), region = 40  ;;  %517 = vmatprep.subr.bf16.mxu0 (!%p189_p2), %v569_v1  ;;  %529 = vmatprep.subr.bf16.mxu1 (!%p189_p2), %v569_v1  ;;  %p217_p3 = scmp.lt.s32.totalorder (!%p189_p2), %s484_s24, 3  ;;  %v556_v3 = vld [vmem:[%s660_s3] sm:$0xff] (!%p189_p2)   ;;  %v557_v5 = vld [vmem:[%s660_s3 + $0x8] sm:$0xff] (!%p189_p2)   ;;  %v554_v6 = vld [vmem:[%s658_s1 + $0x18] sm:$0xff] (!%p189_p2)   ;;  %vm286_vm1 = vcmask (!%p189_p2), 523264  }
   0x7   : > { %518 = vmatpush3.bf16.msra.mxu0 (!%p189_p2), %v551_v0  ;;  %525 = vmatprep.mubr.msk.bf16.mxu0 (!%p189_p2), %vm570_vm0, %v569_v1  ;;  %v558_v8 = vld [vmem:[%s660_s3 + $0x10] sm:$0xff] (!%p189_p2)   ;;  %v559_v9 = vld [vmem:[%s660_s3 + $0x18] sm:$0xff] (!%p189_p2)   ;;  %v488_v10 = vld [vmem:[%s659_s2] ss:$0 sm:$0xff] (!%p189_p2)  ;;  %vm420_vm2 = vcmask (!%p189_p2), 519168  }
   0x8   : > { %519 = vmatprep.subr.bf16.mxu0 (!%p189_p2), %v569_v1  ;;  %537 = vmatprep.mubr.msk.bf16.mxu1 (!%p189_p2), %vm570_vm0, %v569_v1  ;;  %v495_v20 = vld [vmem:[%s661_s4] ss:$0 sm:$0xff] (!%p189_p2) }
   0x9   : > { %530 = vmatpush3.bf16.msra.mxu1 (!%p189_p2), %v556_v3 }
   0xa   : > { %531 = vmatprep.subr.bf16.mxu1 (!%p189_p2), %v569_v1 }
   0xb   : > { %520 = vmatpush3.bf16.msra.mxu0 (!%p189_p2), %v552_v2 }
   0xc   : > { %521 = vmatprep.subr.bf16.mxu0 (!%p189_p2), %v569_v1 }
   0xd   : > { %s664_s24 = smov (!%p217_p3, %s484_s24), 3  ;;  %532 = vmatpush3.bf16.msra.mxu1 %v557_v5 }
   0xe   : > { %s485_s6 = sshll.u32 %s664_s24, 2  ;;  %533 = vmatprep.subr.bf16.mxu1 %v569_v1 }
   0xf   : > { %s220_s9 = scalar_lea.vmem %s657_s0, %s485_s6  ;;  %522 = vmatpush3.bf16.msra.mxu0 %v553_v4  ;;  %s226_s23 = scalar_lea.vmem %s662_s5, %s485_s6 }
  0x10   : > { %v229_v7 = vld [vmem:[%s220_s9] sm:$0xff]   ;;  %523 = vmatprep.subr.bf16.mxu0 %v569_v1 }
  0x11   : > { %534 = vmatpush3.bf16.msra.mxu1 %v558_v8  ;;  %v249_v21 = vunpack.c.l.bf16 %v229_v7  ;;  %v250_v25 = vunpack.c.h.bf16 %v229_v7 }
  0x12   : > { %535 = vmatprep.subr.bf16.mxu1 %v569_v1 }
  0x13   : > { %524 = vmatpush3.bf16.msra.mxu0 %v554_v6 }
  0x15   : > { %536 = vmatpush3.bf16.msra.mxu1 %v559_v9 }
  0x16   : > { %526 = vmatmul.mubr.msk.bf16.vlgmr.msra.gmra.mrb[0].mxu0 %vm286_vm1, %v229_v7 }
  0xe9   : > { %v324_v11 = vpop.f32.mrb[0].mxu0 }
  0xea   : > { %v325_v12 = vadd.f32 %v488_v10, %v324_v11  ;;  %v527_v13 = vpop.f32.mrb[1].mxu0 }
  0xeb   : > { %v327_v14 = vpop.f32.mrb[2].mxu0 }
  0xec   : > { %v328_v15 = vadd.f32 %v488_v10, %v327_v14  ;;  %v528_v16 = vpop.f32.mrb[3].mxu0  ;;  %v331_v17 = vmax.f32 %v325_v12, 0.0 }
  0xee   : > { %v332_v18 = vmax.f32 %v328_v15, 0.0 }
  0xf0   : > { %v333_v19 = vpack.c.bf16 %v332_v18, %v331_v17 }
  0xf2   : > { %538 = vmatmul.mubr.msk.bf16.vlgmr.msra.gmra.mrb[0].mxu1 %vm286_vm1, %v333_v19 }
 0x1c5   : > { %v401_v22 = vpop.f32.mrb[0].mxu1 }
 0x1c6   : > { %v402_v23 = vadd.f32 %v495_v20, %v401_v22  ;;  %v539_v24 = vpop.f32.mrb[1].mxu1 }
 0x1c7   : > { %v404_v26 = vpop.f32.mrb[2].mxu1 }
 0x1c8   : > { %v408_v27 = vadd.f32 %v402_v23, %v249_v21  ;;  %v405_v28 = vadd.f32 %v495_v20, %v404_v26  ;;  %v540_v29 = vpop.f32.mrb[3].mxu1 }
 0x1ca   : > { %v410_v30 = vmax.f32 %v408_v27, 0.0  ;;  %v409_v31 = vadd.f32 %v405_v28, %v250_v25 }
 0x1cc   : > { %v505_v32 = vpack.c.bf16 %v410_v30, %v410_v30  ;;  %v411_v33 = vmax.f32 %v409_v31, 0.0 }
 0x1ce   : > { %421 = vst.msk [vmem:[%s226_s23] sm:$0xf] %vm420_vm2, %v505_v32  ;;  %v506_v34 = vpack.c.bf16 %v411_v33, %v411_v33 }
 0x1d0   : > { %422 = vst.msk [vmem:[%s226_s23 + $0x4] sm:$0xf] %vm420_vm2, %v506_v34 }
 0x1d1 PF: > { %s15_s18 = sadd.s32 1, %s567_s18  }
 0x1d2   : > { %p12_p4 = scmp.ge.s32.totalorder %s15_s18, 4  }
 0x1d4   :  { %14 = sbr.rel (!%p12_p4) target bundleno = 1 (0x1), region = 70 }

// kernel: _lambda_.30
= control target key start
LH: loop header
LB: loop body
LE: loop exit
PB: predicated region body
PF: predicated region fallthrough
CT: control target
= control target key end

     0   :  { %s491_s12 = smov 0   ;;  %s493_s13 = smov 0   ;;  %s537_s0 = inlined_call_operand.vmem [shape: bf16[2,32,32], index: 0, kind: input, shape index: {}]   ;;  %s538_s1 = inlined_call_operand.vmem [shape: bf16[32,16], index: 1, kind: input, shape index: {}]   ;;  %s539_s2 = inlined_call_operand.vmem [shape: f32[1,16], index: 2, kind: input, shape index: {}]   ;;  %s540_s3 = inlined_call_operand.vmem [shape: bf16[2,1,16], index: 3, kind: output, shape index: {}]  }
   0x1   :  { %s495_s14 = smov 0  }
   0x2 LB: > { %s25_s15 = sadd.s32 1, %s465_s13  ;;  %p394_p0 = scmp.ge.s32.totalorder %s469_s14, 1  ;;  %s469_s14 = sphi %s495_s14, %s13_s14   ;;  %s465_s13 = sphi %s493_s13, %s542_s13   ;;  %s461_s12 = sphi %s491_s12, %s541_s12  }
   0x3   : > { %p27_p1 = scmp.ge.s32.totalorder %s25_s15, 2  ;;  %p156_p2 = scmp.lt.s32.totalorder %s469_s14, 3 }
   0x5   : > { %s544_s15 = smov (%p27_p1, %s25_s15), 0  ;;  %p157_p3 = pnand %p394_p0, %p156_p2 }
   0x6   : > { %v443_v0 = vld [vmem:[%s538_s1] sm:$0xff] (!%p157_p3)   ;;  %p183_p4 = scmp.lt.s32.totalorder (!%p157_p3), %s461_s12, 1  ;;  %v444_v1 = vld [vmem:[%s538_s1 + $0x8] sm:$0xff] (!%p157_p3)   ;;  %vm233_vm0 = vcmask (!%p157_p3), 261120   ;;  %vm293_vm1 = vcmask (!%p157_p3), 130048   ;;  %vm311_vm2 = vcmask (!%p157_p3), 122880  }
   0x7   : > { %160 = sbr.rel (%p157_p3) target bundleno = 267 (0x10b), region = 32  ;;  %411 = vmatprep.subr.bf16.mxu0 (!%p157_p3), %v443_v0  ;;  %v397_v4 = vld [vmem:[%s539_s2] ss:$0 sm:$0xff] (!%p157_p3)  ;;  %vm324_vm3 = vsmask.f32 (!%p157_p3), 256 }
   0x8   : > { %412 = vmatpush3.bf16.msra.mxu0 (!%p157_p3), %v443_v0  ;;  %vm325_vm4 = vmand (!%p157_p3), %vm311_vm2, %vm324_vm3 }
   0x9   : > { %413 = vmatprep.subr.bf16.mxu0 (!%p157_p3), %v444_v1 }
   0xc   : > { %414 = vmatpush3.bf16.msra.mxu0 (!%p157_p3), %v444_v1 }
   0xe   : > { %s546_s12 = smov (!%p183_p4, %s461_s12), 1 }
   0xf   : > { %s406_s20 = sshll.u32 %s546_s12, 4  ;;  %s194_s28 = scalar_lea.vmem %s540_s3, %s546_s12 }
  0x10   : > { %s190_s23 = scalar_lea.vmem %s537_s0, %s406_s20  ;;  %v326_v30 = vld [vmem:[%s194_s28] sm:$0x1] }
  0x11   : > { %v445_v2 = vld [vmem:[%s190_s23] sm:$0xff]   ;;  %v446_v3 = vld [vmem:[%s190_s23 + $0x8] sm:$0xff]  }
  0x12   : > { %415 = vmatprep.mubr.msk.bf16.mxu0 %vm233_vm0, %v445_v2 }
  0x13   : > { %416 = vmatmul.mubr.msk.bf16.vlgmr.msra.gmra.mrb[0].mxu0 %vm233_vm0, %v446_v3 }
  0xe6   : > { %v417_v5 = vpop.f32.mrb[0].mxu0 }
  0xe7   : > { %v283_v6 = vadd.f32 %v417_v5, %v397_v4  ;;  %v274_v7 = vpop.f32.mrb[1].mxu0 }
  0xe8   : > { %v275_v8 = vadd.f32 %v397_v4, %v274_v7  ;;  %v418_v9 = vpop.f32.mrb[2].mxu0 }
  0xe9   : > { %v291_v10 = vmax.f32 %v283_v6, 0.0  ;;  %v286_v11 = vadd.f32 %v418_v9, %v397_v4  ;;  %v277_v12 = vpop.f32.mrb[3].mxu0 }
  0xea   : > { %v289_v13 = vmax.f32 %v275_v8, 0.0  ;;  %v278_v14 = vadd.f32 %v397_v4, %v277_v12 }
  0xeb   : > { %v292_v15 = vmax.f32 %v286_v11, 0.0  ;;  %v296_v17 = vsel %vm293_vm1, %v291_v10, -inf }
  0xec   : > { %v290_v16 = vmax.f32 %v278_v14, 0.0  ;;  %v294_v19 = vsel %vm293_vm1, %v289_v13, -inf }
  0xed   : > { %v297_v18 = vsel %vm293_vm1, %v292_v15, -inf }
  0xee   : > { %v299_v20 = vmax.f32 %v296_v17, %v297_v18  ;;  %v295_v21 = vsel %vm293_vm1, %v290_v16, -inf }
  0xef   : > { %v298_v22 = vmax.f32 %v294_v19, %v295_v21 }
  0xf1   : > { %v300_v23 = vmax.f32 %v298_v22, %v299_v20 }
  0xf3   : > { %v301_v24 = vrot.slane %v300_v23, 4 }
  0xf5   : > { %v302_v25 = vmax.f32 %v300_v23, %v301_v24 }
  0xf7   : > { %v303_v26 = vrot.slane %v302_v25, 2 }
  0xf9   : > { %v304_v27 = vmax.f32 %v302_v25, %v303_v26 }
  0xfb   : > { %v305_v28 = vrot.slane %v304_v27, 1 }
  0xfd   : > { %v306_v29 = vmax.f32 %v304_v27, %v305_v28 }
  0xff   : > { %312 = vst.msk [vmem:[#allocation2] sm:$0x1] %vm311_vm2, %v306_v29 }
 0x106   : > { %v321_v31 = vld [vmem:[#allocation2] sm:$0x1] }
 0x107   : > { %v322_v32 = vpack.c.bf16 %v321_v31, %v321_v31 }
 0x109   : > { %v327_v33 = vsel %vm325_vm4, %v322_v32, %v326_v30 }
 0x10a   : > { %328 = vst [vmem:[%s194_s28] sm:$0x1] %v327_v33 }
 0x10b PF: > { %s13_s14 = sadd.s32 1, %s469_s14   ;;  %s541_s12 = smov %s465_s13 }
 0x10c   : > { %p10_p5 = scmp.ge.s32.totalorder %s13_s14, 4   ;;  %s542_s13 = smov %s544_s15 }
 0x10e   :  { %12 = sbr.rel (!%p10_p5) target bundleno = 2 (0x2), region = 70 }

// kernel: _lambda_.25
= control target key start
LH: loop header
LB: loop body
LE: loop exit
PB: predicated region body
PF: predicated region fallthrough
CT: control target
= control target key end

     0   :  { %s1630_s24 = smov 0   ;;  %s1632_s25 = smov 0   ;;  %s2008_s0 = inlined_call_operand.vmem [shape: f32[32,8,67], index: 0, kind: input, shape index: {}]   ;;  %s2009_s1 = inlined_call_operand.vmem [shape: bf16[67,64], index: 1, kind: input, shape index: {}]   ;;  %s2010_s2 = inlined_call_operand.vmem [shape: f32[1,64], index: 2, kind: input, shape index: {}]   ;;  %s2011_s3 = inlined_call_operand.vmem [shape: bf16[64,64], index: 3, kind: input, shape index: {}]   ;;  %s2012_s4 = inlined_call_operand.vmem [shape: f32[1,64], index: 4, kind: input, shape index: {}]   ;;  %s2013_s5 = inlined_call_operand.vmem [shape: bf16[64,64], index: 5, kind: input, shape index: {}]   ;;  %s2014_s6 = inlined_call_operand.vmem [shape: f32[1,64], index: 6, kind: input, shape index: {}]   ;;  %s2015_s7 = inlined_call_operand.vmem [shape: bf16[32,1,64], index: 7, kind: output, shape index: {}]  }
   0x1   :  { %s1634_s26 = smov 0  }
   0x2 LB: > { %s29_s27 = sadd.s32 1, %s1582_s25  ;;  %p1358_p0 = scmp.ge.s32.totalorder %s1586_s26, 1  ;;  %s1586_s26 = sphi %s1634_s26, %s17_s26   ;;  %s1582_s25 = sphi %s1632_s25, %s2019_s25   ;;  %s1578_s24 = sphi %s1630_s24, %s2018_s24  }
   0x3   : > { %p31_p1 = scmp.ge.s32.totalorder %s29_s27, 2  ;;  %p255_p2 = scmp.lt.s32.totalorder %s1586_s26, 3 }
   0x5   : > { %s2021_s27 = smov (%p31_p1, %s29_s27), 0  ;;  %p256_p3 = pnand %p1358_p0, %p255_p2 }
   0x6   : > { %v1549_v0 = vld [vmem:[%s2009_s1] sm:$0xff] (!%p256_p3)   ;;  %v1550_v1 = vld [vmem:[%s2009_s1 + $0x8] sm:$0xff] (!%p256_p3)   ;;  %vm396_vm0 = vcmask (!%p256_p3), 1040384   ;;  %v1551_v2 = vld [vmem:[%s2009_s1 + $0x10] sm:$0xff] (!%p256_p3)   ;;  %vm397_vm1 = vcmask (!%p256_p3), 1041408   ;;  %v1588_v3 = vmov (!%p256_p3), 65535  }
   0x7   : > { %259 = sbr.rel (%p256_p3) target bundleno = 765 (0x2fd), region = 48  ;;  %1441 = vmatprep.subr.bf16.mxu0 (!%p256_p3), %v1549_v0  ;;  %v398_v4 = vsel (!%p256_p3), %vm396_vm0, 4294967295, %v1588_v3  ;;  %s1359_s11 = sshll.u32 (!%p256_p3), %s1578_s24, 4  ;;  %v1553_v5 = vld [vmem:[%s2009_s1 + $0x20] ss:$0 sps:$4 sm:$0x33] (!%p256_p3)  }
   0x8   : > { %1442 = vmatpush3.bf16.msra.mxu0 (!%p256_p3), %v1549_v0  ;;  %p290_p4 = scmp.lt.s32.totalorder (!%p256_p3), %s1359_s11, 31  ;;  %v1554_v6 = vld [vmem:[%s2011_s3] sm:$0xff] (!%p256_p3)   ;;  %v1552_v7 = vld [vmem:[%s2009_s1 + $0x18] sm:$0xff] (!%p256_p3)   ;;  %v399_v8 = vsel (!%p256_p3), %vm397_vm1, %v398_v4, 0  ;;  %v1555_v9 = vld [vmem:[%s2011_s3 + $0x8] sm:$0xff] (!%p256_p3)   ;;  %vm371_vm2 = vcmask (!%p256_p3), 547840  }
   0x9   : > { %1443 = vmatprep.subr.bf16.mxu0 (!%p256_p3), %v1550_v1  ;;  %1515 = vmatprep.subr.bf16.mxu1 (!%p256_p3), %v1554_v6  ;;  %v401_v10 = vand.u32 (!%p256_p3), %v1553_v5, %v399_v8  ;;  %v1556_v13 = vld [vmem:[%s2011_s3 + $0x10] sm:$0xff] (!%p256_p3)   ;;  %v1557_v36 = vld [vmem:[%s2011_s3 + $0x18] sm:$0xff] (!%p256_p3)   ;;  %v1558_v37 = vld [vmem:[%s2013_s5] sm:$0xff] (!%p256_p3)   ;;  %vm572_vm3 = vcmask (!%p256_p3), 523264   ;;  %vm1033_vm4 = vcmask (!%p256_p3), 1041409   ;;  %vm1035_vm5 = vcmask (!%p256_p3), 1042434  }
   0xa   : > { %1519 = vmatpush3.bf16.msra.mxu1 (!%p256_p3), %v1554_v6  ;;  %v1362_v38 = vld [vmem:[%s2010_s2] ss:$0 sm:$0xff] (!%p256_p3)  ;;  %vm1037_vm6 = vcmask (!%p256_p3), 1043459   ;;  %vm1039_vm7 = vcmask (!%p256_p3), 1044484   ;;  %vm1041_vm8 = vcmask (!%p256_p3), 1045509   ;;  %vm1043_vm9 = vcmask (!%p256_p3), 1046534  }
   0xb   : > { %1516 = vmatprep.subr.bf16.mxu1 (!%p256_p3), %v1555_v9  ;;  %vm1045_vm10 = vcmask (!%p256_p3), 1047559   ;;  %vm1241_vm11 = vcmask (!%p256_p3), 516096   ;;  %vm1242_vm12 = vsmask.f32 (!%p256_p3), 256 }
   0xc   : > { %1444 = vmatpush3.bf16.msra.mxu0 (!%p256_p3), %v1550_v1  ;;  %vm1918_vm13 = vmand (!%p256_p3), %vm1241_vm11, %vm1242_vm12 }
   0xd   : > { %1445 = vmatprep.subr.bf16.mxu0 (!%p256_p3), %v1551_v2 }
   0xe   : > { %s2023_s11 = smov (!%p290_p4, %s1359_s11), 31  ;;  %1520 = vmatpush3.bf16.msra.mxu1 %v1555_v9 }
   0xf   : > { %s1360_s20 = sshll.u32 %s2023_s11, 3  ;;  %1517 = vmatprep.subr.bf16.mxu1 %v1556_v13  ;;  %s1907_s28 = scalar_lea.vmem %s2015_s7, %s2023_s11 }
  0x10   : > { %1446 = vmatpush3.bf16.msra.mxu0 %v1551_v2  ;;  %s1675_s23 = scalar_lea.vmem %s2008_s0, %s1360_s20 }
  0x11   : > { %1447 = vmatprep.subr.bf16.mxu0 %v1552_v7  ;;  %v304_v11 = vld [vmem:[%s1675_s23] sm:$0xff]  ;;  %v305_v12 = vld [vmem:[%s1675_s23 + $0x8] sm:$0xff]  ;;  %v306_v15 = vld [vmem:[%s1675_s23 + $0x10] sm:$0xff] }
  0x12   : > { %v329_v14 = vpack.c.bf16 %v305_v12, %v304_v11  ;;  %v307_v16 = vld [vmem:[%s1675_s23 + $0x18] sm:$0xff]  ;;  %v308_v17 = vld [vmem:[%s1675_s23 + $0x20] sm:$0xff]  ;;  %v309_v18 = vld [vmem:[%s1675_s23 + $0x28] sm:$0xff]  ;;  %1521 = vmatpush3.bf16.msra.mxu1 %v1556_v13 }
  0x13   : > { %v330_v19 = vpack.c.bf16 %v307_v16, %v306_v15  ;;  %v331_v20 = vpack.c.bf16 %v309_v18, %v308_v17  ;;  %v310_v21 = vld [vmem:[%s1675_s23 + $0x30] sm:$0xff]  ;;  %v311_v22 = vld [vmem:[%s1675_s23 + $0x38] sm:$0xff]  ;;  %v312_v23 = vld [vmem:[%s1675_s23 + $0x40] sm:$0xff]  ;;  %1518 = vmatprep.subr.bf16.mxu1 %v1557_v36 }
  0x14   : > { %1448 = vmatpush3.bf16.msra.mxu0 %v1552_v7  ;;  %1451 = vmatprep.mubr.msk.bf16.mxu0 %vm371_vm2, %v329_v14  ;;  %v313_v24 = vld [vmem:[%s1675_s23 + $0x48] sm:$0xff]  ;;  %v332_v25 = vpack.c.bf16 %v311_v22, %v310_v21  ;;  %v314_v27 = vld [vmem:[%s1675_s23 + $0x50] sm:$0xff]  ;;  %v315_v28 = vld [vmem:[%s1675_s23 + $0x58] sm:$0xff] }
  0x15   : > { %1449 = vmatprep.subr.bf16.mxu0 %v401_v10  ;;  %v333_v26 = vpack.c.bf16 %v313_v24, %v312_v23  ;;  %v316_v29 = vld [vmem:[%s1675_s23 + $0x60] sm:$0xff]  ;;  %v317_v30 = vld [vmem:[%s1675_s23 + $0x68] sm:$0xff]  ;;  %v334_v31 = vpack.c.bf16 %v315_v28, %v314_v27  ;;  %v318_v33 = vld [vmem:[%s1675_s23 + $0x70] sm:$0xff] }
  0x16   : > { %v335_v32 = vpack.c.bf16 %v317_v30, %v316_v29  ;;  %v319_v34 = vld [vmem:[%s1675_s23 + $0x78] sm:$0xff]  ;;  %1522 = vmatpush3.bf16.msra.mxu1 %v1557_v36 }
  0x17   : > { %v336_v35 = vpack.c.bf16 %v319_v34, %v318_v33  ;;  %1491 = vmatprep.subr.bf16.mxu1 %v1558_v37  ;;  %v1561_v33 = vld [vmem:[%s2013_s5 + $0x18] sm:$0xff]   ;;  %v1376_v34 = vld [vmem:[%s2012_s4] ss:$0 sm:$0xff] }
  0x18   : > { %1450 = vmatpush3.bf16.msra.mxu0 %v401_v10 }
  0x19   : > { %1467 = vmatprep.subr.bf16.mxu0 %v1554_v6 }
  0x1b   : > { %1452 = vmatmul.mubr.msk.bf16.vlgmr.msra.gmra.mrb[0].mxu0 %vm371_vm2, %v330_v19  ;;  %v1559_v19 = vld [vmem:[%s2013_s5 + $0x8] sm:$0xff]  }
  0x1c   : > { %1455 = vmatprep.mubr.msk.bf16.mxu0 %vm371_vm2, %v331_v20  ;;  %1468 = vmatpush3.bf16.msra.mxu0 %v1554_v6 }
  0x1d   : > { %1469 = vmatprep.subr.bf16.mxu0 %v1555_v9 }
  0x20   : > { %1470 = vmatpush3.bf16.msra.mxu0 %v1555_v9 }
  0x21   : > { %1471 = vmatprep.subr.bf16.mxu0 %v1556_v13 }
  0x23   : > { %1456 = vmatmul.mubr.msk.bf16.gmra.mrb[4].mxu0 %vm371_vm2, %v332_v25 }
  0x24   : > { %1459 = vmatprep.mubr.msk.bf16.mxu0 %vm371_vm2, %v333_v26  ;;  %1472 = vmatpush3.bf16.msra.mxu0 %v1556_v13 }
  0x25   : > { %1473 = vmatprep.subr.bf16.mxu0 %v1557_v36 }
  0x28   : > { %1474 = vmatpush3.bf16.msra.mxu0 %v1557_v36 }
  0x2b   : > { %1460 = vmatmul.mubr.msk.bf16.gmra.mrb[8].mxu0 %vm371_vm2, %v334_v31 }
  0x2c   : > { %1463 = vmatprep.mubr.msk.bf16.mxu0 %vm371_vm2, %v335_v32  ;;  %v1560_v32 = vld [vmem:[%s2013_s5 + $0x10] sm:$0xff]  }
  0x33   : > { %1464 = vmatmul.mubr.msk.bf16.gmra.mrb[12].mxu0 %vm371_vm2, %v336_v35 }
  0xee   : > { %v1453_v39 = vpop.f32.mrb[0].mxu0 }
  0xef   : > { %v437_v40 = vpop.f32.mrb[1].mxu0  ;;  %v1715_v43 = vadd.f32 %v1453_v39, %v1362_v38 }
  0xf0   : > { %v1713_v41 = vadd.f32 %v1362_v38, %v437_v40  ;;  %v1454_v42 = vpop.f32.mrb[2].mxu0 }
  0xf1   : > { %v1717_v44 = vadd.f32 %v1454_v42, %v1362_v38  ;;  %v440_v45 = vpop.f32.mrb[3].mxu0  ;;  %v502_v50 = vmax.f32 %v1715_v43, 0.0 }
  0xf2   : > { %v1719_v46 = vadd.f32 %v1362_v38, %v440_v45  ;;  %v500_v48 = vmax.f32 %v1713_v41, 0.0 }
  0xf3   : > { %v503_v47 = vmax.f32 %v1717_v44, 0.0  ;;  %v1589_v44 = vmov 1966171168  }
  0xf4   : > { %v501_v49 = vmax.f32 %v1719_v46, 0.0 }
  0xf5   : > { %v535_v53 = vpack.c.bf16 %v503_v47, %v502_v50 }
  0xf6   : > { %v534_v51 = vpack.c.bf16 %v501_v49, %v500_v48  ;;  %v1457_v52 = vpop.f32.mrb[4].mxu0 }
  0xf7   : > { %v453_v54 = vpop.f32.mrb[5].mxu0  ;;  %v1736_v57 = vadd.f32 %v1457_v52, %v1362_v38 }
  0xf8   : > { %v1733_v55 = vadd.f32 %v1362_v38, %v453_v54  ;;  %v1458_v56 = vpop.f32.mrb[6].mxu0  ;;  %1475 = vmatprep.mubr.msk.bf16.mxu0 %vm572_vm3, %v534_v51 }
  0xf9   : > { %v1738_v58 = vadd.f32 %v1458_v56, %v1362_v38  ;;  %v456_v59 = vpop.f32.mrb[7].mxu0  ;;  %1476 = vmatmul.mubr.msk.bf16.vlgmr.msra.gmra.mrb[16].mxu0 %vm572_vm3, %v535_v53  ;;  %v506_v0 = vmax.f32 %v1736_v57, 0.0 }
  0xfa   : > { %v1741_v60 = vadd.f32 %v1362_v38, %v456_v59  ;;  %v504_v62 = vmax.f32 %v1733_v55, 0.0 }
  0xfb   : > { %v507_v61 = vmax.f32 %v1738_v58, 0.0 }
  0xfc   : > { %v505_v63 = vmax.f32 %v1741_v60, 0.0 }
  0xfd   : > { %v537_v3 = vpack.c.bf16 %v507_v61, %v506_v0 }
  0xfe   : > { %v536_v1 = vpack.c.bf16 %v505_v63, %v504_v62  ;;  %v1461_v2 = vpop.f32.mrb[8].mxu0 }
  0xff   : > { %v469_v4 = vpop.f32.mrb[9].mxu0  ;;  %v1758_v7 = vadd.f32 %v1461_v2, %v1362_v38 }
 0x100   : > { %v1755_v5 = vadd.f32 %v1362_v38, %v469_v4  ;;  %v1462_v6 = vpop.f32.mrb[10].mxu0  ;;  %1479 = vmatprep.mubr.msk.bf16.mxu0 %vm572_vm3, %v536_v1 }
 0x101   : > { %v1760_v8 = vadd.f32 %v1462_v6, %v1362_v38  ;;  %v472_v9 = vpop.f32.mrb[11].mxu0  ;;  %1480 = vmatmul.mubr.msk.bf16.gmra.mrb[20].mxu0 %vm572_vm3, %v537_v3  ;;  %v510_v14 = vmax.f32 %v1758_v7, 0.0 }
 0x102   : > { %v1763_v10 = vadd.f32 %v1362_v38, %v472_v9  ;;  %v508_v12 = vmax.f32 %v1755_v5, 0.0 }
 0x103   : > { %v511_v11 = vmax.f32 %v1760_v8, 0.0 }
 0x104   : > { %v509_v13 = vmax.f32 %v1763_v10, 0.0 }
 0x105   : > { %v539_v17 = vpack.c.bf16 %v511_v11, %v510_v14 }
 0x106   : > { %v1465_v15 = vpop.f32.mrb[12].mxu0  ;;  %v538_v16 = vpack.c.bf16 %v509_v13, %v508_v12 }
 0x107   : > { %v485_v18 = vpop.f32.mrb[13].mxu0  ;;  %v1783_v22 = vadd.f32 %v1465_v15, %v1362_v38 }
 0x108   : > { %v1780_v20 = vadd.f32 %v1362_v38, %v485_v18  ;;  %v1466_v21 = vpop.f32.mrb[14].mxu0  ;;  %1483 = vmatprep.mubr.msk.bf16.mxu1 %vm572_vm3, %v538_v16 }
 0x109   : > { %v1785_v23 = vadd.f32 %v1466_v21, %v1362_v38  ;;  %v488_v24 = vpop.f32.mrb[15].mxu0  ;;  %1484 = vmatmul.mubr.msk.bf16.vlgmr.msra.gmra.mrb[0].mxu1 %vm572_vm3, %v539_v17  ;;  %v514_v29 = vmax.f32 %v1783_v22, 0.0 }
 0x10a   : > { %v1788_v25 = vadd.f32 %v1362_v38, %v488_v24  ;;  %1492 = vmatpush3.bf16.msra.mxu1 %v1558_v37  ;;  %v512_v27 = vmax.f32 %v1780_v20, 0.0 }
 0x10b   : > { %v515_v26 = vmax.f32 %v1785_v23, 0.0  ;;  %1493 = vmatprep.subr.bf16.mxu1 %v1559_v19 }
 0x10c   : > { %v513_v28 = vmax.f32 %v1788_v25, 0.0 }
 0x10d   : > { %v541_v31 = vpack.c.bf16 %v515_v26, %v514_v29 }
 0x10e   : > { %v540_v30 = vpack.c.bf16 %v513_v28, %v512_v27  ;;  %1494 = vmatpush3.bf16.msra.mxu1 %v1559_v19 }
 0x10f   : > { %1495 = vmatprep.subr.bf16.mxu1 %v1560_v32 }
 0x110   : > { %1487 = vmatprep.mubr.msk.bf16.mxu1 %vm572_vm3, %v540_v30 }
 0x111   : > { %1488 = vmatmul.mubr.msk.bf16.gmra.mrb[4].mxu1 %vm572_vm3, %v541_v31 }
 0x112   : > { %1496 = vmatpush3.bf16.msra.mxu1 %v1560_v32 }
 0x113   : > { %1497 = vmatprep.subr.bf16.mxu1 %v1561_v33 }
 0x116   : > { %1498 = vmatpush3.bf16.msra.mxu1 %v1561_v33 }
 0x1cc   : > { %v1477_v35 = vpop.f32.mrb[16].mxu0 }
 0x1cd   : > { %v640_v36 = vadd.f32 %v1477_v35, %v1376_v34  ;;  %v631_v37 = vpop.f32.mrb[17].mxu0 }
 0x1ce   : > { %v632_v38 = vadd.f32 %v1376_v34, %v631_v37  ;;  %v1478_v39 = vpop.f32.mrb[18].mxu0 }
 0x1cf   : > { %v643_v40 = vadd.f32 %v1478_v39, %v1376_v34  ;;  %v634_v42 = vpop.f32.mrb[19].mxu0  ;;  %v696_v51 = vmax.f32 %v640_v36, 0.0 }
 0x1d0   : > { %v635_v45 = vadd.f32 %v1376_v34, %v634_v42  ;;  %v694_v53 = vmax.f32 %v632_v38, 0.0 }
 0x1d1   : > { %v697_v52 = vmax.f32 %v643_v40, 0.0 }
 0x1d2   : > { %v695_v54 = vmax.f32 %v635_v45, 0.0 }
 0x1d3   : > { %v711_v56 = vpack.c.bf16 %v697_v52, %v696_v51 }
 0x1d4   : > { %v710_v59 = vpack.c.bf16 %v695_v54, %v694_v53  ;;  %v1481_v1 = vpop.f32.mrb[20].mxu0 }
 0x1d5   : > { %v656_v2 = vadd.f32 %v1481_v1, %v1376_v34  ;;  %v647_v3 = vpop.f32.mrb[21].mxu0 }
 0x1d6   : > { %v648_v4 = vadd.f32 %v1376_v34, %v647_v3  ;;  %v1482_v6 = vpop.f32.mrb[22].mxu0  ;;  %1499 = vmatprep.mubr.msk.bf16.mxu1 %vm572_vm3, %v710_v59 }
 0x1d7   : > { %v659_v9 = vadd.f32 %v1482_v6, %v1376_v34  ;;  %v650_v15 = vpop.f32.mrb[23].mxu0  ;;  %1500 = vmatmul.mubr.msk.bf16.vlgmr.msra.gmra.mrb[8].mxu1 %vm572_vm3, %v711_v56  ;;  %v700_v17 = vmax.f32 %v656_v2, 0.0 }
 0x1d8   : > { %v651_v16 = vadd.f32 %v1376_v34, %v650_v15  ;;  %v698_v19 = vmax.f32 %v648_v4, 0.0 }
 0x1d9   : > { %v701_v18 = vmax.f32 %v659_v9, 0.0 }
 0x1da   : > { %v699_v21 = vmax.f32 %v651_v16, 0.0 }
 0x1db   : > { %v713_v24 = vpack.c.bf16 %v701_v18, %v700_v17 }
 0x1dc   : > { %v712_v30 = vpack.c.bf16 %v699_v21, %v698_v19  ;;  %v1485_v31 = vpop.f32.mrb[0].mxu1  ;;  %v1824_v21 = vld [vmem:[%s2014_s6] ss:$0 sm:$0xff] }
 0x1dd   : > { %v672_v32 = vadd.f32 %v1485_v31, %v1376_v34  ;;  %v663_v33 = vpop.f32.mrb[1].mxu1 }
 0x1de   : > { %v664_v35 = vadd.f32 %v1376_v34, %v663_v33  ;;  %v1486_v36 = vpop.f32.mrb[2].mxu1  ;;  %1503 = vmatprep.mubr.msk.bf16.mxu1 %vm572_vm3, %v712_v30 }
 0x1df   : > { %v675_v37 = vadd.f32 %v1486_v36, %v1376_v34  ;;  %v666_v38 = vpop.f32.mrb[3].mxu1  ;;  %1504 = vmatmul.mubr.msk.bf16.gmra.mrb[12].mxu1 %vm572_vm3, %v713_v24  ;;  %v704_v40 = vmax.f32 %v672_v32, 0.0 }
 0x1e0   : > { %v667_v39 = vadd.f32 %v1376_v34, %v666_v38  ;;  %v702_v45 = vmax.f32 %v664_v35, 0.0 }
 0x1e1   : > { %v705_v42 = vmax.f32 %v675_v37, 0.0 }
 0x1e2   : > { %v703_v51 = vmax.f32 %v667_v39, 0.0 }
 0x1e3   : > { %v715_v52 = vpack.c.bf16 %v705_v42, %v704_v40 }
 0x1e4   : > { %v714_v53 = vpack.c.bf16 %v703_v51, %v702_v45  ;;  %v1489_v54 = vpop.f32.mrb[4].mxu1 }
 0x1e5   : > { %v688_v56 = vadd.f32 %v1489_v54, %v1376_v34  ;;  %v679_v59 = vpop.f32.mrb[5].mxu1 }
 0x1e6   : > { %v680_v1 = vadd.f32 %v1376_v34, %v679_v59  ;;  %v1490_v2 = vpop.f32.mrb[6].mxu1  ;;  %1507 = vmatprep.mubr.msk.bf16.mxu1 %vm572_vm3, %v714_v53 }
 0x1e7   : > { %v691_v3 = vadd.f32 %v1490_v2, %v1376_v34  ;;  %v682_v4 = vpop.f32.mrb[7].mxu1  ;;  %1508 = vmatmul.mubr.msk.bf16.gmra.mrb[16].mxu1 %vm572_vm3, %v715_v52  ;;  %v708_v9 = vmax.f32 %v688_v56, 0.0 }
 0x1e8   : > { %v683_v6 = vadd.f32 %v1376_v34, %v682_v4  ;;  %v706_v16 = vmax.f32 %v680_v1, 0.0 }
 0x1e9   : > { %v709_v15 = vmax.f32 %v691_v3, 0.0 }
 0x1ea   : > { %v707_v17 = vmax.f32 %v683_v6, 0.0 }
 0x1eb   : > { %v717_v18 = vpack.c.bf16 %v709_v15, %v708_v9 }
 0x1ec   : > { %v716_v19 = vpack.c.bf16 %v707_v17, %v706_v16 }
 0x1ee   : > { %1511 = vmatprep.mubr.msk.bf16.mxu1 %vm572_vm3, %v716_v19 }
 0x1ef   : > { %1512 = vmatmul.mubr.msk.bf16.gmra.mrb[20].mxu1 %vm572_vm3, %v717_v18 }
 0x2aa   : > { %v1501_v24 = vpop.f32.mrb[8].mxu1 }
 0x2ab   : > { %v815_v30 = vadd.f32 %v1501_v24, %v1824_v21  ;;  %v806_v31 = vpop.f32.mrb[9].mxu1 }
 0x2ac   : > { %v807_v34 = vadd.f32 %v1824_v21, %v806_v31  ;;  %v1502_v32 = vpop.f32.mrb[10].mxu1 }
 0x2ad   : > { %v871_v33 = vadd.f32 %v815_v30, %v502_v50  ;;  %v818_v35 = vadd.f32 %v1502_v32, %v1824_v21  ;;  %v809_v36 = vpop.f32.mrb[11].mxu1 }
 0x2ae   : > { %v869_v37 = vadd.f32 %v807_v34, %v500_v48  ;;  %v810_v38 = vadd.f32 %v1824_v21, %v809_v36 }
 0x2af   : > { %v887_v39 = vmax.f32 %v871_v33, 0.0  ;;  %v872_v40 = vadd.f32 %v818_v35, %v503_v47  ;;  %v1842_v47 = vunpack.c.l.s4 %v1589_v44 }
 0x2b0   : > { %v885_v42 = vmax.f32 %v869_v37, 0.0  ;;  %v870_v45 = vadd.f32 %v810_v38, %v501_v49 }
 0x2b1   : > { %v915_v51 = vsel %vm572_vm3, %v887_v39, -inf  ;;  %v888_v43 = vmax.f32 %v872_v40, 0.0  ;;  %v1114_v5 = vunpack.c.0.s8 %v1842_v47 }
 0x2b2   : > { %v916_v50 = vrot.slane %v915_v51, 4  ;;  %v901_v52 = vsel %vm572_vm3, %v885_v42, -inf  ;;  %v886_v53 = vmax.f32 %v870_v45, 0.0  ;;  %v1505_v54 = vpop.f32.mrb[12].mxu1 }
 0x2b3   : > { %v902_v41 = vrot.slane %v901_v52, 4  ;;  %v922_v48 = vsel %vm572_vm3, %v888_v43, -inf  ;;  %v831_v56 = vadd.f32 %v1505_v54, %v1824_v21  ;;  %v822_v59 = vpop.f32.mrb[13].mxu1 }
 0x2b4   : > { %v917_v1 = vmax.f32 %v915_v51, %v916_v50  ;;  %v923_v46 = vrot.slane %v922_v48, 4  ;;  %v908_v49 = vsel %vm572_vm3, %v886_v53, -inf  ;;  %v823_v2 = vadd.f32 %v1824_v21, %v822_v59  ;;  %v1506_v3 = vpop.f32.mrb[14].mxu1 }
 0x2b5   : > { %v903_v4 = vmax.f32 %v901_v52, %v902_v41  ;;  %v909_v6 = vrot.slane %v908_v49, 4  ;;  %v875_v9 = vadd.f32 %v831_v56, %v506_v0  ;;  %v834_v15 = vadd.f32 %v1506_v3, %v1824_v21  ;;  %v825_v16 = vpop.f32.mrb[15].mxu1 }
 0x2b6   : > { %v918_v17 = vrot.slane %v917_v1, 2  ;;  %v924_v18 = vmax.f32 %v922_v48, %v923_v46  ;;  %v873_v19 = vadd.f32 %v823_v2, %v504_v62  ;;  %v826_v24 = vadd.f32 %v1824_v21, %v825_v16 }
 0x2b7   : > { %v904_v30 = vrot.slane %v903_v4, 2  ;;  %v910_v31 = vmax.f32 %v908_v49, %v909_v6  ;;  %v891_v34 = vmax.f32 %v875_v9, 0.0  ;;  %v876_v32 = vadd.f32 %v834_v15, %v507_v61 }
 0x2b8   : > { %v919_v57 = vmax.f32 %v917_v1, %v918_v17  ;;  %v925_v0 = vrot.slane %v924_v18, 2  ;;  %v889_v33 = vmax.f32 %v873_v19, 0.0  ;;  %v874_v35 = vadd.f32 %v826_v24, %v505_v63 }
 0x2b9   : > { %v905_v36 = vmax.f32 %v903_v4, %v904_v30  ;;  %v911_v37 = vrot.slane %v910_v31, 2  ;;  %v943_v55 = vsel %vm572_vm3, %v891_v34, -inf  ;;  %v892_v62 = vmax.f32 %v876_v32, 0.0 }
 0x2ba   : > { %v920_v38 = vrot.slane %v919_v57, 1  ;;  %v926_v39 = vmax.f32 %v924_v18, %v925_v0  ;;  %v944_v40 = vrot.slane %v943_v55, 4  ;;  %v929_v42 = vsel %vm572_vm3, %v889_v33, -inf  ;;  %v1509_v45 = vpop.f32.mrb[16].mxu1 }
 0x2bb   : > { %v906_v58 = vrot.slane %v905_v36, 1  ;;  %v912_v61 = vmax.f32 %v910_v31, %v911_v37  ;;  %v930_v51 = vrot.slane %v929_v42, 4  ;;  %v950_v43 = vsel %vm572_vm3, %v892_v62, -inf  ;;  %v838_v50 = vpop.f32.mrb[17].mxu1 }
 0x2bc   : > { %v921_v52 = vmax.f32 %v919_v57, %v920_v38  ;;  %v927_v60 = vrot.slane %v926_v39, 1  ;;  %v945_v63 = vmax.f32 %v943_v55, %v944_v40  ;;  %v951_v53 = vrot.slane %v950_v43, 4  ;;  %v1510_v54 = vpop.f32.mrb[18].mxu1 }
 0x2bd   : > { %v907_v41 = vmax.f32 %v905_v36, %v906_v58  ;;  %v913_v48 = vrot.slane %v912_v61, 1  ;;  %v931_v56 = vmax.f32 %v929_v42, %v930_v51  ;;  %v890_v59 = vmax.f32 %v874_v35, 0.0  ;;  %v841_v44 = vpop.f32.mrb[19].mxu1 }
 0x2be   : > { %v928_v1 = vmax.f32 %v926_v39, %v927_v60  ;;  %v946_v46 = vrot.slane %v945_v63, 2  ;;  %v952_v49 = vmax.f32 %v950_v43, %v951_v53  ;;  %v847_v2 = vadd.f32 %v1509_v45, %v1824_v21 }
 0x2bf   : > { %v914_v3 = vmax.f32 %v912_v61, %v913_v48  ;;  %v932_v4 = vrot.slane %v931_v56, 2  ;;  %v936_v6 = vsel %vm572_vm3, %v890_v59, -inf  ;;  %v839_v9 = vadd.f32 %v1824_v21, %v838_v50 }
 0x2c0   : > { %v947_v15 = vmax.f32 %v945_v63, %v946_v46  ;;  %v953_v16 = vrot.slane %v952_v49, 2  ;;  %v937_v17 = vrot.slane %v936_v6, 4  ;;  %v879_v18 = vadd.f32 %v847_v2, %v510_v14 }
 0x2c1   : > { %v1034_v19 = vsel %vm1033_vm4, %v914_v3, %v907_v41  ;;  %v933_v24 = vmax.f32 %v931_v56, %v932_v4  ;;  %v877_v30 = vadd.f32 %v839_v9, %v508_v12  ;;  %v850_v31 = vadd.f32 %v1510_v54, %v1824_v21 }
 0x2c2   : > { %v1036_v34 = vsel %vm1035_vm5, %v921_v52, %v1034_v19  ;;  %v954_v32 = vmax.f32 %v952_v49, %v953_v16  ;;  %v938_v57 = vmax.f32 %v936_v6, %v937_v17  ;;  %v1115_v0 = vlaneseq  ;;  %v1513_v33 = vpop.f32.mrb[20].mxu1 }
 0x2c3   : > { %v934_v35 = vrot.slane %v933_v24, 1  ;;  %v1038_v7 = vsel %vm1037_vm6, %v928_v1, %v1036_v34  ;;  %v895_v14 = vmax.f32 %v879_v18, 0.0  ;;  %v893_v36 = vmax.f32 %v877_v30, 0.0  ;;  %v854_v37 = vpop.f32.mrb[21].mxu1 }
 0x2c4   : > { %v948_v55 = vrot.slane %v947_v15, 1  ;;  %v939_v62 = vrot.slane %v938_v57, 2  ;;  %v880_v12 = vadd.f32 %v850_v31, %v511_v11  ;;  %v1514_v38 = vpop.f32.mrb[22].mxu1  ;;  %v842_v45 = vadd.f32 %v1824_v21, %v841_v44 }
 0x2c5   : > { %v935_v39 = vmax.f32 %v933_v24, %v934_v35  ;;  %v971_v40 = vsel %vm572_vm3, %v895_v14, -inf  ;;  %v957_v42 = vsel %vm572_vm3, %v893_v36, -inf  ;;  %v857_v58 = vpop.f32.mrb[23].mxu1  ;;  %v955_v61 = vrot.slane %v954_v32, 1 }
 0x2c6   : > { %v940_v51 = vmax.f32 %v938_v57, %v939_v62  ;;  %v972_v43 = vrot.slane %v971_v40, 4  ;;  %v958_v50 = vrot.slane %v957_v42, 4  ;;  %v896_v60 = vmax.f32 %v880_v12, 0.0 }
 0x2c7   : > { %v1040_v52 = vsel %vm1039_vm7, %v935_v39, %v1038_v7  ;;  %v878_v8 = vadd.f32 %v842_v45, %v509_v13  ;;  %v863_v11 = vadd.f32 %v1513_v33, %v1824_v21  ;;  %v855_v54 = vadd.f32 %v1824_v21, %v854_v37 }
 0x2c8   : > { %v941_v47 = vrot.slane %v940_v51, 1  ;;  %v973_v63 = vmax.f32 %v971_v40, %v972_v43  ;;  %v959_v53 = vmax.f32 %v957_v42, %v958_v50  ;;  %v978_v41 = vsel %vm572_vm3, %v896_v60, -inf }
 0x2c9   : > { %v894_v48 = vmax.f32 %v878_v8, 0.0  ;;  %v883_v56 = vadd.f32 %v863_v11, %v514_v29  ;;  %v866_v59 = vadd.f32 %v1514_v38, %v1824_v21  ;;  %v949_v44 = vmax.f32 %v947_v15, %v948_v55 }
 0x2ca   : > { %v942_v1 = vmax.f32 %v940_v51, %v941_v47  ;;  %v960_v46 = vrot.slane %v959_v53, 2  ;;  %v979_v10 = vrot.slane %v978_v41, 4  ;;  %v881_v2 = vadd.f32 %v855_v54, %v512_v27 }
 0x2cb   : > { %v964_v13 = vsel %vm572_vm3, %v894_v48, -inf  ;;  %v899_v49 = vmax.f32 %v883_v56, 0.0  ;;  %v884_v3 = vadd.f32 %v866_v59, %v515_v26  ;;  %v956_v4 = vmax.f32 %v954_v32, %v955_v61 }
 0x2cc   : > { %v1042_v6 = vsel %vm1041_vm8, %v942_v1, %v1040_v52  ;;  %v974_v22 = vrot.slane %v973_v63, 2  ;;  %v980_v29 = vmax.f32 %v978_v41, %v979_v10  ;;  %v965_v15 = vrot.slane %v964_v13, 4 }
 0x2cd   : > { %v1044_v9 = vsel %vm1043_vm9, %v949_v44, %v1042_v6  ;;  %v999_v16 = vsel %vm572_vm3, %v899_v49, -inf  ;;  %v897_v17 = vmax.f32 %v881_v2, 0.0  ;;  %v1116_v19 = vshrl.u32 %v1115_v0, 7 }
 0x2ce   : > { %v1046_v18 = vsel %vm1045_vm10, %v956_v4, %v1044_v9  ;;  %v961_v24 = vmax.f32 %v959_v53, %v960_v46  ;;  %v981_v20 = vrot.slane %v980_v29, 2  ;;  %v966_v23 = vmax.f32 %v964_v13, %v965_v15  ;;  %v1244_v46 = vld [vmem:[%s1907_s28] sm:$0x1]  ;;  %v1250_v9 = vld [vmem:[%s1907_s28 + $0x2] sm:$0x1] }
 0x2cf   : > { %1056 = vst.msk [vmem:[#allocation2] sm:$0xff] %vm572_vm3, %v1046_v18  ;;  %v1000_v26 = vrot.slane %v999_v16, 4  ;;  %v985_v27 = vsel %vm572_vm3, %v897_v17, -inf  ;;  %v900_v30 = vmax.f32 %v884_v3, 0.0  ;;  %v975_v31 = vmax.f32 %v973_v63, %v974_v22  ;;  %v1256_v15 = vld [vmem:[%s1907_s28 + $0x4] sm:$0x1] }
 0x2d0   : > { %v986_v34 = vrot.slane %v985_v27, 4  ;;  %v967_v32 = vrot.slane %v966_v23, 2  ;;  %v858_v33 = vadd.f32 %v1824_v21, %v857_v58  ;;  %v982_v35 = vmax.f32 %v980_v29, %v981_v20  ;;  %v1247_v29 = vld [vmem:[%s1907_s28 + $0x1] sm:$0x1]  ;;  %v1262_v20 = vld [vmem:[%s1907_s28 + $0x6] sm:$0x1] }
 0x2d1   : > { %v1006_v57 = vsel %vm572_vm3, %v900_v30, -inf  ;;  %v1001_v7 = vmax.f32 %v999_v16, %v1000_v26  ;;  %v1898_v0 = vsub.s32 %v1114_v5, %v1116_v19  ;;  %v962_v36 = vrot.slane %v961_v24, 1  ;;  %v1253_v19 = vld [vmem:[%s1907_s28 + $0x3] sm:$0x1] }
 0x2d2   : > { %v987_v14 = vmax.f32 %v985_v27, %v986_v34  ;;  %v968_v37 = vmax.f32 %v966_v23, %v967_v32  ;;  %v882_v55 = vadd.f32 %v858_v33, %v513_v28  ;;  %v976_v62 = vrot.slane %v975_v31, 1  ;;  %v1265_v33 = vld [vmem:[%s1907_s28 + $0x7] sm:$0x1] }
 0x2d3   : > { %v1007_v38 = vrot.slane %v1006_v57, 4  ;;  %v983_v21 = vrot.slane %v982_v35, 1  ;;  %v1002_v45 = vrot.slane %v1001_v7, 2  ;;  %v963_v51 = vmax.f32 %v961_v24, %v962_v36  ;;  %v1259_v24 = vld [vmem:[%s1907_s28 + $0x5] sm:$0x1] }
 0x2d4   : > { %v988_v12 = vrot.slane %v987_v14, 2  ;;  %v969_v39 = vrot.slane %v968_v37, 1  ;;  %v898_v40 = vmax.f32 %v882_v55, 0.0  ;;  %v977_v25 = vmax.f32 %v975_v31, %v976_v62 }
 0x2d5   : > { %v1008_v50 = vmax.f32 %v1006_v57, %v1007_v38  ;;  %v984_v63 = vmax.f32 %v982_v35, %v983_v21  ;;  %v1003_v54 = vmax.f32 %v1001_v7, %v1002_v45 }
 0x2d6   : > { %v1107_v42 = vld [vmem:[#allocation2] sm:$0xff]  ;;  %v989_v58 = vmax.f32 %v987_v14, %v988_v12  ;;  %v970_v43 = vmax.f32 %v968_v37, %v969_v39  ;;  %v992_v52 = vsel %vm572_vm3, %v898_v40, -inf }
 0x2d7   : > { %v1111_v61 = vcombine.high %v1107_v42, %v1107_v42  ;;  %v1118_v5 = vrot.slane %v1107_v42, %v1898_v0  ;;  %v1009_v49 = vrot.slane %v1008_v50, 2  ;;  %v993_v2 = vrot.slane %v992_v52, 4 }
 0x2d8   : > { %v990_v28 = vrot.slane %v989_v58, 1  ;;  %v1047_v47 = vsel %vm1033_vm4, %v970_v43, %v963_v51  ;;  %v1004_v39 = vrot.slane %v1003_v54, 1 }
 0x2d9   : > { %v1125_v60 = vrot.slane %v1111_v61, %v1898_v0  ;;  %v1126_v8 = vcombine.high %v1118_v5, %v1118_v5  ;;  %v1134_v11 = vrot.slane %v1118_v5, %v1898_v0  ;;  %v1048_v53 = vsel %vm1035_vm5, %v977_v25, %v1047_v47 }
 0x2da   : > { %v991_v41 = vmax.f32 %v989_v58, %v990_v28  ;;  %v1049_v13 = vsel %vm1037_vm6, %v984_v63, %v1048_v53  ;;  %v994_v35 = vmax.f32 %v992_v52, %v993_v2  ;;  %v1010_v55 = vmax.f32 %v1008_v50, %v1009_v49  ;;  %v1268_v53 = vld [vmem:[%s1907_s28 + $0x8] sm:$0x1] }
 0x2db   : > { %v1127_v48 = vcombine.high %v1125_v60, %v1125_v60  ;;  %v1141_v56 = vrot.slane %v1125_v60, %v1898_v0  ;;  %v1148_v59 = vrot.slane %v1126_v8, %v1898_v0  ;;  %v1156_v44 = vcombine.high %v1134_v11, %v1134_v11 }
 0x2dc   : > { %v1225_v10 = vpack.c.bf16 %v1134_v11, %v1134_v11  ;;  %v1050_v23 = vsel %vm1039_vm7, %v991_v41, %v1049_v13  ;;  %v995_v62 = vrot.slane %v994_v35, 2  ;;  %v1011_v40 = vrot.slane %v1010_v55, 1 }
 0x2dd   : > { %v1155_v3 = vrot.slane %v1127_v48, %v1898_v0  ;;  %v1157_v4 = vcombine.high %v1141_v56, %v1141_v56  ;;  %v1158_v6 = vcombine.high %v1148_v59, %v1148_v59  ;;  %v1226_v22 = vpack.c.bf16 %v1148_v59, %v1148_v59 }
 0x2de   : > { %v1227_v16 = vpack.c.bf16 %v1156_v44, %v1156_v44  ;;  %v1229_v17 = vpack.c.bf16 %v1141_v56, %v1141_v56  ;;  %v1245_v18 = vsel %vm1918_vm13, %v1225_v10, %v1244_v46  ;;  %v996_v38 = vmax.f32 %v994_v35, %v995_v62  ;;  %v1271_v44 = vld [vmem:[%s1907_s28 + $0x9] sm:$0x1]  ;;  %v1274_v46 = vld [vmem:[%s1907_s28 + $0xa] sm:$0x1]  ;;  %v1280_v10 = vld [vmem:[%s1907_s28 + $0xc] sm:$0x1] }
 0x2df   : > { %v1159_v26 = vcombine.high %v1155_v3, %v1155_v3  ;;  %v1228_v27 = vpack.c.bf16 %v1158_v6, %v1158_v6  ;;  %v1230_v30 = vpack.c.bf16 %v1155_v3, %v1155_v3  ;;  %v1231_v31 = vpack.c.bf16 %v1157_v4, %v1157_v4  ;;  %1246 = vst [vmem:[%s1907_s28] sm:$0x1] %v1245_v18  ;;  %v1277_v3 = vld [vmem:[%s1907_s28 + $0xb] sm:$0x1]  ;;  %v1283_v4 = vld [vmem:[%s1907_s28 + $0xd] sm:$0x1] }
 0x2e0   : > { %v1248_v34 = vsel %vm1918_vm13, %v1226_v22, %v1247_v29  ;;  %v1251_v32 = vsel %vm1918_vm13, %v1227_v16, %v1250_v9  ;;  %v1257_v57 = vsel %vm1918_vm13, %v1229_v17, %v1256_v15  ;;  %v997_v42 = vrot.slane %v996_v38, 1  ;;  %v1286_v6 = vld [vmem:[%s1907_s28 + $0xe] sm:$0x1]  ;;  %v1289_v18 = vld [vmem:[%s1907_s28 + $0xf] sm:$0x1] }
 0x2e1   : > { %v1232_v7 = vpack.c.bf16 %v1159_v26, %v1159_v26  ;;  %1249 = vst [vmem:[%s1907_s28 + $0x1] sm:$0x1] %v1248_v34  ;;  %1252 = vst [vmem:[%s1907_s28 + $0x2] sm:$0x1] %v1251_v32  ;;  %v1254_v14 = vsel %vm1918_vm13, %v1228_v27, %v1253_v19  ;;  %v1260_v36 = vsel %vm1918_vm13, %v1230_v30, %v1259_v24 }
 0x2e2   : > { %1258 = vst [vmem:[%s1907_s28 + $0x4] sm:$0x1] %v1257_v57  ;;  %v1263_v37 = vsel %vm1918_vm13, %v1231_v31, %v1262_v20  ;;  %1255 = vst [vmem:[%s1907_s28 + $0x3] sm:$0x1] %v1254_v14  ;;  %v998_v21 = vmax.f32 %v996_v38, %v997_v42  ;;  %v1005_v45 = vmax.f32 %v1003_v54, %v1004_v39 }
 0x2e3   : > { %1261 = vst [vmem:[%s1907_s28 + $0x5] sm:$0x1] %v1260_v36  ;;  %1264 = vst [vmem:[%s1907_s28 + $0x6] sm:$0x1] %v1263_v37  ;;  %v1266_v12 = vsel %vm1918_vm13, %v1232_v7, %v1265_v33  ;;  %v1012_v58 = vmax.f32 %v1010_v55, %v1011_v40 }
 0x2e4   : > { %1267 = vst [vmem:[%s1907_s28 + $0x7] sm:$0x1] %v1266_v12  ;;  %v1051_v61 = vsel %vm1041_vm8, %v998_v21, %v1050_v23 }
 0x2e5   : > { %v1052_v5 = vsel %vm1043_vm9, %v1005_v45, %v1051_v61 }
 0x2e6   : > { %v1053_v51 = vsel %vm1045_vm10, %v1012_v58, %v1052_v5 }
 0x2e7   : > { %1057 = vst.msk [vmem:[#allocation2 + $0x8] sm:$0xff] %vm572_vm3, %v1053_v51 }
 0x2ee   : > { %v1108_v43 = vld [vmem:[#allocation2 + $0x8] sm:$0xff] }
 0x2ef   : > { %v1160_v25 = vcombine.high %v1108_v43, %v1108_v43  ;;  %v1167_v28 = vrot.slane %v1108_v43, %v1898_v0 }
 0x2f1   : > { %v1174_v50 = vrot.slane %v1160_v25, %v1898_v0  ;;  %v1175_v52 = vcombine.high %v1167_v28, %v1167_v28  ;;  %v1183_v60 = vrot.slane %v1167_v28, %v1898_v0 }
 0x2f3   : > { %v1176_v8 = vcombine.high %v1174_v50, %v1174_v50  ;;  %v1190_v11 = vrot.slane %v1174_v50, %v1898_v0  ;;  %v1197_v47 = vrot.slane %v1175_v52, %v1898_v0  ;;  %v1205_v63 = vcombine.high %v1183_v60, %v1183_v60 }
 0x2f4   : > { %v1233_v54 = vpack.c.bf16 %v1183_v60, %v1183_v60 }
 0x2f5   : > { %v1204_v41 = vrot.slane %v1176_v8, %v1898_v0  ;;  %v1206_v48 = vcombine.high %v1190_v11, %v1190_v11  ;;  %v1207_v56 = vcombine.high %v1197_v47, %v1197_v47  ;;  %v1234_v59 = vpack.c.bf16 %v1197_v47, %v1197_v47 }
 0x2f6   : > { %v1235_v13 = vpack.c.bf16 %v1205_v63, %v1205_v63  ;;  %v1237_v49 = vpack.c.bf16 %v1190_v11, %v1190_v11  ;;  %v1269_v2 = vsel %vm1918_vm13, %v1233_v54, %v1268_v53 }
 0x2f7   : > { %v1208_v0 = vcombine.high %v1204_v41, %v1204_v41  ;;  %v1236_v22 = vpack.c.bf16 %v1207_v56, %v1207_v56  ;;  %v1238_v29 = vpack.c.bf16 %v1204_v41, %v1204_v41  ;;  %v1239_v9 = vpack.c.bf16 %v1206_v48, %v1206_v48  ;;  %1270 = vst [vmem:[%s1907_s28 + $0x8] sm:$0x1] %v1269_v2 }
 0x2f8   : > { %v1272_v15 = vsel %vm1918_vm13, %v1234_v59, %v1271_v44  ;;  %v1275_v16 = vsel %vm1918_vm13, %v1235_v13, %v1274_v46  ;;  %v1281_v17 = vsel %vm1918_vm13, %v1237_v49, %v1280_v10 }
 0x2f9   : > { %v1240_v19 = vpack.c.bf16 %v1208_v0, %v1208_v0  ;;  %1273 = vst [vmem:[%s1907_s28 + $0x9] sm:$0x1] %v1272_v15  ;;  %1276 = vst [vmem:[%s1907_s28 + $0xa] sm:$0x1] %v1275_v16  ;;  %v1278_v24 = vsel %vm1918_vm13, %v1236_v22, %v1277_v3  ;;  %v1284_v20 = vsel %vm1918_vm13, %v1238_v29, %v1283_v4 }
 0x2fa   : > { %1282 = vst [vmem:[%s1907_s28 + $0xc] sm:$0x1] %v1281_v17  ;;  %v1287_v23 = vsel %vm1918_vm13, %v1239_v9, %v1286_v6  ;;  %1279 = vst [vmem:[%s1907_s28 + $0xb] sm:$0x1] %v1278_v24 }
 0x2fb   : > { %1285 = vst [vmem:[%s1907_s28 + $0xd] sm:$0x1] %v1284_v20  ;;  %1288 = vst [vmem:[%s1907_s28 + $0xe] sm:$0x1] %v1287_v23  ;;  %v1290_v26 = vsel %vm1918_vm13, %v1240_v19, %v1289_v18 }
 0x2fc   : > { %1291 = vst [vmem:[%s1907_s28 + $0xf] sm:$0x1] %v1290_v26 }
 0x2fd PF: > { %s17_s26 = sadd.s32 1, %s1586_s26   ;;  %s2018_s24 = smov %s1582_s25 }
 0x2fe   : > { %p14_p5 = scmp.ge.s32.totalorder %s17_s26, 4   ;;  %s2019_s25 = smov %s2021_s27 }
 0x300   :  { %16 = sbr.rel (!%p14_p5) target bundleno = 2 (0x2), region = 86 }

// kernel: _lambda_.29
= control target key start
LH: loop header
LB: loop body
LE: loop exit
PB: predicated region body
PF: predicated region fallthrough
CT: control target
= control target key end

     0   :  { %s493_s12 = smov 0   ;;  %s495_s13 = smov 0   ;;  %s545_s0 = inlined_call_operand.vmem [shape: bf16[2,16,64], index: 0, kind: input, shape index: {}]   ;;  %s546_s1 = inlined_call_operand.vmem [shape: bf16[64,16], index: 1, kind: input, shape index: {}]   ;;  %s547_s2 = inlined_call_operand.vmem [shape: f32[1,16], index: 2, kind: input, shape index: {}]   ;;  %s548_s3 = inlined_call_operand.vmem [shape: bf16[2,1,16], index: 3, kind: output, shape index: {}]  }
   0x1   :  { %s497_s14 = smov 0  }
   0x2 LB: > { %s25_s15 = sadd.s32 1, %s465_s13  ;;  %p386_p0 = scmp.ge.s32.totalorder %s469_s14, 1  ;;  %s469_s14 = sphi %s497_s14, %s13_s14   ;;  %s465_s13 = sphi %s495_s13, %s550_s13   ;;  %s461_s12 = sphi %s493_s12, %s549_s12  }
   0x3   : > { %p27_p1 = scmp.ge.s32.totalorder %s25_s15, 2  ;;  %p156_p2 = scmp.lt.s32.totalorder %s469_s14, 3 }
   0x5   : > { %s552_s15 = smov (%p27_p1, %s25_s15), 0  ;;  %p157_p3 = pnand %p386_p0, %p156_p2 }
   0x6   : > { %v442_v0 = vld [vmem:[%s546_s1] sm:$0xff] (!%p157_p3)   ;;  %v471_v1 = vmov (!%p157_p3), 0.0   ;;  %v443_v2 = vld [vmem:[%s546_s1 + $0x8] sm:$0xff] (!%p157_p3)   ;;  %vm472_vm0 = vmmov (!%p157_p3), 0   ;;  %p183_p4 = scmp.lt.s32.totalorder (!%p157_p3), %s461_s12, 1  ;;  %v444_v3 = vld [vmem:[%s546_s1 + $0x10] sm:$0xff] (!%p157_p3)  }
   0x7   : > { %160 = sbr.rel (%p157_p3) target bundleno = 268 (0x10c), region = 32  ;;  %404 = vmatprep.subr.bf16.mxu0 (!%p157_p3), %v471_v1  ;;  %412 = vmatprep.mubr.msk.bf16.mxu0 (!%p157_p3), %vm472_vm0, %v471_v1  ;;  %v445_v4 = vld [vmem:[%s546_s1 + $0x18] sm:$0xff] (!%p157_p3)   ;;  %vm242_vm1 = vcmask (!%p157_p3), 523264   ;;  %v389_v6 = vld [vmem:[%s547_s2] ss:$0 sm:$0xff] (!%p157_p3)  ;;  %vm289_vm2 = vcmask (!%p157_p3), 130048  }
   0x8   : > { %405 = vmatpush3.bf16.msra.mxu0 (!%p157_p3), %v442_v0  ;;  %vm303_vm3 = vcmask (!%p157_p3), 122880   ;;  %vm316_vm4 = vsmask.f32 (!%p157_p3), 256 }
   0x9   : > { %406 = vmatprep.subr.bf16.mxu0 (!%p157_p3), %v471_v1  ;;  %vm317_vm5 = vmand (!%p157_p3), %vm303_vm3, %vm316_vm4 }
   0xc   : > { %407 = vmatpush3.bf16.msra.mxu0 (!%p157_p3), %v443_v2 }
   0xd   : > { %408 = vmatprep.subr.bf16.mxu0 (!%p157_p3), %v471_v1 }
   0xe   : > { %s554_s12 = smov (!%p183_p4, %s461_s12), 1 }
   0xf   : > { %s398_s22 = sshll.u32 %s554_s12, 3  ;;  %s194_s5 = scalar_lea.vmem %s548_s3, %s554_s12 }
  0x10   : > { %s190_s25 = scalar_lea.vmem %s545_s0, %s398_s22  ;;  %409 = vmatpush3.bf16.msra.mxu0 %v444_v3  ;;  %v318_v24 = vld [vmem:[%s194_s5] sm:$0x1] }
  0x11   : > { %410 = vmatprep.subr.bf16.mxu0 %v471_v1  ;;  %v446_v5 = vld [vmem:[%s190_s25] sm:$0xff]  }
  0x14   : > { %411 = vmatpush3.bf16.msra.mxu0 %v445_v4 }
  0x17   : > { %413 = vmatmul.mubr.msk.bf16.vlgmr.msra.gmra.mrb[0].mxu0 %vm242_vm1, %v446_v5 }
  0xea   : > { %v280_v7 = vpop.f32.mrb[0].mxu0 }
  0xeb   : > { %v281_v8 = vadd.f32 %v389_v6, %v280_v7  ;;  %v414_v9 = vpop.f32.mrb[1].mxu0 }
  0xec   : > { %v283_v10 = vpop.f32.mrb[2].mxu0 }
  0xed   : > { %v287_v11 = vmax.f32 %v281_v8, 0.0  ;;  %v284_v12 = vadd.f32 %v389_v6, %v283_v10  ;;  %v415_v13 = vpop.f32.mrb[3].mxu0 }
  0xef   : > { %v288_v14 = vmax.f32 %v284_v12, 0.0  ;;  %v290_v15 = vsel %vm289_vm2, %v287_v11, -inf }
  0xf1   : > { %v291_v16 = vsel %vm289_vm2, %v288_v14, -inf }
  0xf2   : > { %v292_v17 = vmax.f32 %v290_v15, %v291_v16 }
  0xf4   : > { %v293_v18 = vrot.slane %v292_v17, 4 }
  0xf6   : > { %v294_v19 = vmax.f32 %v292_v17, %v293_v18 }
  0xf8   : > { %v295_v20 = vrot.slane %v294_v19, 2 }
  0xfa   : > { %v296_v21 = vmax.f32 %v294_v19, %v295_v20 }
  0xfc   : > { %v297_v22 = vrot.slane %v296_v21, 1 }
  0xfe   : > { %v298_v23 = vmax.f32 %v296_v21, %v297_v22 }
 0x100   : > { %304 = vst.msk [vmem:[#allocation2] sm:$0x1] %vm303_vm3, %v298_v23 }
 0x107   : > { %v313_v25 = vld [vmem:[#allocation2] sm:$0x1] }
 0x108   : > { %v314_v26 = vpack.c.bf16 %v313_v25, %v313_v25 }
 0x10a   : > { %v319_v27 = vsel %vm317_vm5, %v314_v26, %v318_v24 }
 0x10b   : > { %320 = vst [vmem:[%s194_s5] sm:$0x1] %v319_v27 }
 0x10c PF: > { %s13_s14 = sadd.s32 1, %s469_s14   ;;  %s549_s12 = smov %s465_s13 }
 0x10d   : > { %p10_p5 = scmp.ge.s32.totalorder %s13_s14, 4   ;;  %s550_s13 = smov %s552_s15 }
 0x10f   :  { %12 = sbr.rel (!%p10_p5) target bundleno = 2 (0x2), region = 70 }

// kernel: _lambda_.31
= control target key start
LH: loop header
LB: loop body
LE: loop exit
PB: predicated region body
PF: predicated region fallthrough
CT: control target
= control target key end

     0   :  { %s539_s12 = smov 0   ;;  %s541_s13 = smov 0   ;;  %s594_s0 = inlined_call_operand.vmem [shape: bf16[2,64,16], index: 0, kind: input, shape index: {}]   ;;  %s595_s1 = inlined_call_operand.vmem [shape: bf16[16,16], index: 1, kind: input, shape index: {}]   ;;  %s596_s2 = inlined_call_operand.vmem [shape: f32[1,16], index: 2, kind: input, shape index: {}]   ;;  %s597_s3 = inlined_call_operand.vmem [shape: bf16[2,1,16], index: 3, kind: output, shape index: {}]  }
   0x1   :  { %s543_s14 = smov 0  }
   0x2 LB: > { %s25_s15 = sadd.s32 1, %s513_s13  ;;  %p433_p0 = scmp.ge.s32.totalorder %s517_s14, 1  ;;  %s517_s14 = sphi %s543_s14, %s13_s14   ;;  %s513_s13 = sphi %s541_s13, %s599_s13   ;;  %s509_s12 = sphi %s539_s12, %s598_s12  }
   0x3   : > { %p27_p1 = scmp.ge.s32.totalorder %s25_s15, 2  ;;  %p156_p2 = scmp.lt.s32.totalorder %s517_s14, 3 }
   0x5   : > { %s601_s15 = smov (%p27_p1, %s25_s15), 0  ;;  %p157_p3 = pnand %p433_p0, %p156_p2 }
   0x6   : > { %v490_v0 = vld [vmem:[%s595_s1] sm:$0xff] (!%p157_p3)   ;;  %p183_p4 = scmp.lt.s32.totalorder (!%p157_p3), %s509_s12, 1  ;;  %vm239_vm0 = vcmask (!%p157_p3), 130048   ;;  %vm350_vm1 = vcmask (!%p157_p3), 122880   ;;  %vm363_vm2 = vsmask.f32 (!%p157_p3), 256 }
   0x7   : > { %160 = sbr.rel (%p157_p3) target bundleno = 270 (0x10e), region = 32  ;;  %454 = vmatprep.subr.bf16.mxu0 (!%p157_p3), %v490_v0  ;;  %464 = vmatprep.subr.bf16.mxu1 (!%p157_p3), %v490_v0  ;;  %v436_v5 = vld [vmem:[%s596_s2] ss:$0 sm:$0xff] (!%p157_p3)  ;;  %vm364_vm3 = vmand (!%p157_p3), %vm350_vm1, %vm363_vm2 }
   0x8   : > { %455 = vmatpush3.bf16.msra.mxu0 (!%p157_p3), %v490_v0  ;;  %465 = vmatpush3.bf16.msra.mxu1 (!%p157_p3), %v490_v0 }
   0xe   : > { %s603_s12 = smov (!%p183_p4, %s509_s12), 1 }
   0xf   : > { %s448_s18 = sshll.u32 %s603_s12, 5  ;;  %s194_s26 = scalar_lea.vmem %s597_s3, %s603_s12 }
  0x10   : > { %s190_s21 = scalar_lea.vmem %s594_s0, %s448_s18  ;;  %v365_v52 = vld [vmem:[%s194_s26] sm:$0x1] }
  0x11   : > { %v491_v1 = vld [vmem:[%s190_s21] sm:$0xff]   ;;  %v492_v2 = vld [vmem:[%s190_s21 + $0x10] sm:$0xff]   ;;  %v493_v3 = vld [vmem:[%s190_s21 + $0x8] sm:$0xff]  }
  0x12   : > { %456 = vmatprep.mubr.msk.bf16.mxu0 %vm239_vm0, %v491_v1  ;;  %460 = vmatprep.mubr.msk.bf16.mxu1 %vm239_vm0, %v492_v2  ;;  %v494_v4 = vld [vmem:[%s190_s21 + $0x18] sm:$0xff]  }
  0x13   : > { %457 = vmatmul.mubr.msk.bf16.vlgmr.msra.gmra.mrb[0].mxu0 %vm239_vm0, %v493_v3  ;;  %461 = vmatmul.mubr.msk.bf16.vlgmr.msra.gmra.mrb[0].mxu1 %vm239_vm0, %v494_v4 }
  0xe6   : > { %v458_v6 = vpop.f32.mrb[0].mxu0  ;;  %v462_v8 = vpop.f32.mrb[0].mxu1 }
  0xe7   : > { %v295_v7 = vadd.f32 %v458_v6, %v436_v5  ;;  %v286_v9 = vpop.f32.mrb[1].mxu0  ;;  %v311_v10 = vadd.f32 %v462_v8, %v436_v5  ;;  %v302_v12 = vpop.f32.mrb[1].mxu1 }
  0xe8   : > { %v287_v11 = vadd.f32 %v436_v5, %v286_v9  ;;  %v459_v13 = vpop.f32.mrb[2].mxu0  ;;  %v303_v15 = vadd.f32 %v436_v5, %v302_v12  ;;  %v463_v17 = vpop.f32.mrb[2].mxu1 }
  0xe9   : > { %v319_v14 = vmax.f32 %v295_v7, 0.0  ;;  %v298_v16 = vadd.f32 %v459_v13, %v436_v5  ;;  %v289_v18 = vpop.f32.mrb[3].mxu0  ;;  %v323_v19 = vmax.f32 %v311_v10, 0.0  ;;  %v314_v21 = vadd.f32 %v463_v17, %v436_v5  ;;  %v305_v23 = vpop.f32.mrb[3].mxu1 }
  0xea   : > { %v317_v20 = vmax.f32 %v287_v11, 0.0  ;;  %v290_v22 = vadd.f32 %v436_v5, %v289_v18  ;;  %v321_v25 = vmax.f32 %v303_v15, 0.0  ;;  %v306_v27 = vadd.f32 %v436_v5, %v305_v23 }
  0xeb   : > { %v327_v24 = vsel %vm239_vm0, %v319_v14, -inf  ;;  %v320_v26 = vmax.f32 %v298_v16, 0.0  ;;  %v333_v28 = vsel %vm239_vm0, %v323_v19, -inf  ;;  %v324_v30 = vmax.f32 %v314_v21, 0.0 }
  0xec   : > { %v325_v29 = vsel %vm239_vm0, %v317_v20, -inf  ;;  %v318_v31 = vmax.f32 %v290_v22, 0.0  ;;  %v334_v32 = vmax.f32 %v327_v24, %v333_v28  ;;  %v329_v33 = vsel %vm239_vm0, %v321_v25, -inf }
  0xed   : > { %v328_v34 = vsel %vm239_vm0, %v320_v26, -inf  ;;  %v322_v35 = vmax.f32 %v306_v27, 0.0  ;;  %v330_v36 = vmax.f32 %v325_v29, %v329_v33  ;;  %v335_v37 = vsel %vm239_vm0, %v324_v30, -inf }
  0xee   : > { %v326_v38 = vsel %vm239_vm0, %v318_v31, -inf  ;;  %v336_v39 = vmax.f32 %v328_v34, %v335_v37 }
  0xef   : > { %v331_v40 = vsel %vm239_vm0, %v322_v35, -inf }
  0xf0   : > { %v332_v41 = vmax.f32 %v326_v38, %v331_v40  ;;  %v338_v42 = vmax.f32 %v334_v32, %v336_v39 }
  0xf2   : > { %v337_v43 = vmax.f32 %v330_v36, %v332_v41 }
  0xf4   : > { %v339_v44 = vmax.f32 %v337_v43, %v338_v42 }
  0xf6   : > { %v340_v45 = vrot.slane %v339_v44, 4 }
  0xf8   : > { %v341_v46 = vmax.f32 %v339_v44, %v340_v45 }
  0xfa   : > { %v342_v47 = vrot.slane %v341_v46, 2 }
  0xfc   : > { %v343_v48 = vmax.f32 %v341_v46, %v342_v47 }
  0xfe   : > { %v344_v49 = vrot.slane %v343_v48, 1 }
 0x100   : > { %v345_v50 = vmax.f32 %v343_v48, %v344_v49 }
 0x102   : > { %351 = vst.msk [vmem:[#allocation2] sm:$0x1] %vm350_vm1, %v345_v50 }
 0x109   : > { %v360_v51 = vld [vmem:[#allocation2] sm:$0x1] }
 0x10a   : > { %v361_v53 = vpack.c.bf16 %v360_v51, %v360_v51 }
 0x10c   : > { %v366_v54 = vsel %vm364_vm3, %v361_v53, %v365_v52 }
 0x10d   : > { %367 = vst [vmem:[%s194_s26] sm:$0x1] %v366_v54 }
 0x10e PF: > { %s13_s14 = sadd.s32 1, %s517_s14   ;;  %s598_s12 = smov %s513_s13 }
 0x10f   : > { %p10_p5 = scmp.ge.s32.totalorder %s13_s14, 4   ;;  %s599_s13 = smov %s601_s15 }
 0x111   :  { %12 = sbr.rel (!%p10_p5) target bundleno = 2 (0x2), region = 70 }

// kernel: _lambda_.34
= control target key start
LH: loop header
LB: loop body
LE: loop exit
PB: predicated region body
PF: predicated region fallthrough
CT: control target
= control target key end

     0   :  { %v164_v0 = vmov 0.0   ;;  %vm165_vm0 = vmmov 0   ;;  %vm33_vm1 = vcmask 130048   ;;  %s214_s3 = inlined_call_operand.vmem [shape: bf16[16,128], index: 3, kind: input, shape index: {}]   ;;  %s215_s2 = inlined_call_operand.vmem [shape: bf16[16,128], index: 2, kind: input, shape index: {}]   ;;  %s216_s1 = inlined_call_operand.vmem [shape: bf16[2,16], index: 1, kind: input, shape index: {}]   ;;  %s217_s0 = inlined_call_operand.vmem [shape: bf16[2,16], index: 0, kind: input, shape index: {}]   ;;  %s218_s4 = inlined_call_operand.vmem [shape: f32[1,128], index: 4, kind: input, shape index: {}]   ;;  %s219_s5 = inlined_call_operand.vmem [shape: f32[2,128], index: 5, kind: output, shape index: {}]  }
   0x1   :  { %148 = vmatprep.subr.bf16.mxu0 %v164_v0  ;;  %154 = vmatprep.subr.bf16.mxu1 %v164_v0  ;;  %v162_v1 = vld [vmem:[%s214_s3] sm:$0xff]  }
   0x2   :  { %v163_v2 = vld [vmem:[%s215_s2] sm:$0xff]   ;;  %150 = vmatprep.mubr.msk.bf16.mxu0 %vm165_vm0, %v164_v0  ;;  %156 = vmatprep.mubr.msk.bf16.mxu1 %vm165_vm0, %v164_v0 }
   0x3   :  { %149 = vmatpush3.bf16.msra.mxu0 %v162_v1  ;;  %v22_v3 = vld [vmem:[%s216_s1] sm:$0x1]  ;;  %155 = vmatpush3.bf16.msra.mxu1 %v163_v2 }
   0x4   :  { %v21_v4 = vld [vmem:[%s217_s0] sm:$0x1] }
   0x5   :  { %v143_v7 = vld [vmem:[%s218_s4] ss:$0 sm:$0xff] }
   0x6   :  { %151 = vmatmul.mubr.msk.bf16.vlgmr.msra.gmra.mrb[0].mxu0 %vm33_vm1, %v22_v3  ;;  %157 = vmatmul.mubr.msk.bf16.vlgmr.msra.gmra.mrb[0].mxu1 %vm33_vm1, %v21_v4 }
  0xd9   :  { %v71_v5 = vpop.f32.mrb[0].mxu0  ;;  %v120_v6 = vpop.f32.mrb[0].mxu1 }
  0xda   :  { %v152_v8 = vpop.f32.mrb[1].mxu0  ;;  %v121_v9 = vadd.f32 %v120_v6, %v71_v5  ;;  %v158_v10 = vpop.f32.mrb[1].mxu1 }
  0xdb   :  { %v74_v11 = vpop.f32.mrb[2].mxu0  ;;  %v123_v12 = vpop.f32.mrb[2].mxu1 }
  0xdc   :  { %v153_v13 = vpop.f32.mrb[3].mxu0  ;;  %v133_v14 = vadd.f32 %v143_v7, %v121_v9  ;;  %v159_v15 = vpop.f32.mrb[3].mxu1 }
  0xde   :  { %134 = vst [vmem:[%s219_s5] sm:$0x3] %v133_v14 }

// kernel: _lambda_.32
= control target key start
LH: loop header
LB: loop body
LE: loop exit
PB: predicated region body
PF: predicated region fallthrough
CT: control target
= control target key end

     0   :  { %v237_v0 = vmov 0.0   ;;  %vm238_vm0 = vmmov 0   ;;  %vm40_vm1 = vcmask 130048   ;;  %vm195_vm2 = vcmask 122880   ;;  %s303_s4 = inlined_call_operand.vmem [shape: bf16[16,16], index: 4, kind: input, shape index: {}]   ;;  %s304_s3 = inlined_call_operand.vmem [shape: bf16[16,16], index: 3, kind: input, shape index: {}]   ;;  %s305_s1 = inlined_call_operand.vmem [shape: bf16[2,16], index: 1, kind: input, shape index: {}]   ;;  %s306_s0 = inlined_call_operand.vmem [shape: bf16[2,16], index: 0, kind: input, shape index: {}]   ;;  %s307_s5 = inlined_call_operand.vmem [shape: bf16[16,16], index: 5, kind: input, shape index: {}]   ;;  %s308_s2 = inlined_call_operand.vmem [shape: bf16[2,16], index: 2, kind: input, shape index: {}]   ;;  %s309_s6 = inlined_call_operand.vmem [shape: f32[1,16], index: 6, kind: input, shape index: {}]   ;;  %s310_s7 = inlined_call_operand.vmem [shape: bf16[2,16], index: 7, kind: output, shape index: {}]  }
   0x1   :  { %214 = vmatprep.subr.bf16.mxu0 %v237_v0  ;;  %v234_v1 = vld [vmem:[%s303_s4] sm:$0xff]   ;;  %220 = vmatprep.subr.bf16.mxu1 %v237_v0 }
   0x2   :  { %v235_v2 = vld [vmem:[%s304_s3] sm:$0xff]   ;;  %216 = vmatprep.mubr.msk.bf16.mxu0 %vm238_vm0, %v237_v0  ;;  %222 = vmatprep.mubr.msk.bf16.mxu1 %vm238_vm0, %v237_v0 }
   0x3   :  { %215 = vmatpush3.bf16.msra.mxu0 %v234_v1  ;;  %v28_v3 = vld [vmem:[%s305_s1] sm:$0x1]  ;;  %221 = vmatpush3.bf16.msra.mxu1 %v235_v2 }
   0x4   :  { %226 = vmatprep.subr.bf16.mxu0 %v237_v0  ;;  %v27_v4 = vld [vmem:[%s306_s0] sm:$0x1] }
   0x5   :  { %v236_v5 = vld [vmem:[%s307_s5] sm:$0xff]  }
   0x6   :  { %217 = vmatmul.mubr.msk.bf16.vlgmr.msra.gmra.mrb[0].mxu0 %vm40_vm1, %v28_v3  ;;  %223 = vmatmul.mubr.msk.bf16.vlgmr.msra.gmra.mrb[0].mxu1 %vm40_vm1, %v27_v4  ;;  %v29_v6 = vld [vmem:[%s308_s2] sm:$0x1] }
   0x7   :  { %227 = vmatpush3.bf16.msra.mxu0 %v236_v5  ;;  %228 = vmatprep.mubr.msk.bf16.mxu0 %vm238_vm0, %v237_v0  ;;  %v207_v17 = vld [vmem:[%s309_s6] ss:$0 sm:$0xff] }
   0xe   :  { %229 = vmatmul.mubr.msk.bf16.vlgmr.msra.gmra.mrb[4].mxu0 %vm40_vm1, %v29_v6 }
  0xd9   :  { %v78_v7 = vpop.f32.mrb[0].mxu0  ;;  %v127_v9 = vpop.f32.mrb[0].mxu1 }
  0xda   :  { %v218_v8 = vpop.f32.mrb[1].mxu0  ;;  %v128_v10 = vadd.f32 %v127_v9, %v78_v7  ;;  %v224_v12 = vpop.f32.mrb[1].mxu1 }
  0xdb   :  { %v81_v11 = vpop.f32.mrb[2].mxu0  ;;  %v130_v14 = vpop.f32.mrb[2].mxu1 }
  0xdc   :  { %v219_v13 = vpop.f32.mrb[3].mxu0  ;;  %v225_v15 = vpop.f32.mrb[3].mxu1 }
  0xe1   :  { %v178_v16 = vpop.f32.mrb[4].mxu0 }
  0xe2   :  { %v184_v18 = vadd.f32 %v178_v16, %v128_v10  ;;  %v230_v19 = vpop.f32.mrb[5].mxu0 }
  0xe3   :  { %v181_v20 = vpop.f32.mrb[6].mxu0 }
  0xe4   :  { %v192_v21 = vadd.f32 %v207_v17, %v184_v18  ;;  %v231_v22 = vpop.f32.mrb[7].mxu0 }
  0xe6   :  { %v193_v23 = vmax.f32 %v192_v21, 0.0 }
  0xe8   :  { %v194_v24 = vpack.c.bf16 %v193_v23, %v193_v23 }
  0xea   :  { %196 = vst.msk [vmem:[%s310_s7] sm:$0x1] %vm195_vm2, %v194_v24 }

// kernel: _lambda_.33
= control target key start
LH: loop header
LB: loop body
LE: loop exit
PB: predicated region body
PF: predicated region fallthrough
CT: control target
= control target key end

     0   :  { %v216_v0 = vmov 0.0   ;;  %vm217_vm0 = vmmov 0   ;;  %vm62_vm1 = vcmask 523264   ;;  %vm123_vm2 = vcmask 130048   ;;  %s275_s1 = inlined_call_operand.vmem [shape: bf16[64,16], index: 1, kind: input, shape index: {}]   ;;  %s276_s0 = inlined_call_operand.vmem [shape: f32[2,64], index: 0, kind: input, shape index: {}]   ;;  %s277_s3 = inlined_call_operand.vmem [shape: bf16[16,16], index: 3, kind: input, shape index: {}]   ;;  %s278_s2 = inlined_call_operand.vmem [shape: f32[1,16], index: 2, kind: input, shape index: {}]   ;;  %s279_s4 = inlined_call_operand.vmem [shape: f32[1,16], index: 4, kind: input, shape index: {}]   ;;  %s280_s5 = inlined_call_operand.vmem [shape: bf16[2,16], index: 5, kind: output, shape index: {}]  }
   0x1   :  { %191 = vmatprep.subr.bf16.mxu0 %v216_v0  ;;  %v211_v1 = vld [vmem:[%s275_s1] sm:$0xff]   ;;  %199 = vmatprep.mubr.msk.bf16.mxu0 %vm217_vm0, %v216_v0  ;;  %v212_v2 = vld [vmem:[%s275_s1 + $0x8] sm:$0xff]   ;;  %v213_v3 = vld [vmem:[%s275_s1 + $0x10] sm:$0xff]   ;;  %vm169_vm3 = vcmask 122880  }
   0x2   :  { %203 = vmatprep.subr.bf16.mxu1 %v216_v0  ;;  %205 = vmatprep.mubr.msk.bf16.mxu1 %vm217_vm0, %v216_v0  ;;  %v214_v4 = vld [vmem:[%s275_s1 + $0x18] sm:$0xff]   ;;  %v21_v5 = vld [vmem:[%s276_s0] sm:$0x3] }
   0x3   :  { %192 = vmatpush3.bf16.msra.mxu0 %v211_v1  ;;  %v30_v6 = vpack.c.bf16 %v21_v5, %v21_v5  ;;  %v215_v7 = vld [vmem:[%s277_s3] sm:$0xff]  }
   0x4   :  { %193 = vmatprep.subr.bf16.mxu0 %v216_v0  ;;  %204 = vmatpush3.bf16.msra.mxu1 %v215_v7  ;;  %v175_v8 = vld [vmem:[%s278_s2] ss:$0 sm:$0xff] }
   0x5   :  { %v181_v16 = vld [vmem:[%s279_s4] ss:$0 sm:$0xff] }
   0x7   :  { %194 = vmatpush3.bf16.msra.mxu0 %v212_v2 }
   0x8   :  { %195 = vmatprep.subr.bf16.mxu0 %v216_v0 }
   0xb   :  { %196 = vmatpush3.bf16.msra.mxu0 %v213_v3 }
   0xc   :  { %197 = vmatprep.subr.bf16.mxu0 %v216_v0 }
   0xf   :  { %198 = vmatpush3.bf16.msra.mxu0 %v214_v4 }
  0x12   :  { %200 = vmatmul.mubr.msk.bf16.vlgmr.msra.gmra.mrb[0].mxu0 %vm62_vm1, %v30_v6 }
  0xe5   :  { %v100_v9 = vpop.f32.mrb[0].mxu0 }
  0xe6   :  { %v101_v10 = vadd.f32 %v175_v8, %v100_v9  ;;  %v201_v11 = vpop.f32.mrb[1].mxu0 }
  0xe7   :  { %v103_v12 = vpop.f32.mrb[2].mxu0 }
  0xe8   :  { %v106_v13 = vmax.f32 %v101_v10, 0.0  ;;  %v202_v14 = vpop.f32.mrb[3].mxu0 }
  0xea   :  { %v110_v15 = vpack.c.bf16 %v106_v13, %v106_v13 }
  0xec   :  { %206 = vmatmul.mubr.msk.bf16.vlgmr.msra.gmra.mrb[0].mxu1 %vm123_vm2, %v110_v15 }
 0x1bf   :  { %v161_v17 = vpop.f32.mrb[0].mxu1 }
 0x1c0   :  { %v162_v18 = vadd.f32 %v181_v16, %v161_v17  ;;  %v207_v19 = vpop.f32.mrb[1].mxu1 }
 0x1c1   :  { %v164_v20 = vpop.f32.mrb[2].mxu1 }
 0x1c2   :  { %v167_v21 = vmax.f32 %v162_v18, 0.0  ;;  %v208_v22 = vpop.f32.mrb[3].mxu1 }
 0x1c4   :  { %v168_v23 = vpack.c.bf16 %v167_v21, %v167_v21 }
 0x1c6   :  { %170 = vst.msk [vmem:[%s280_s5] sm:$0x1] %vm169_vm3, %v168_v23 }

// kernel: _lambda_.23
= control target key start
LH: loop header
LB: loop body
LE: loop exit
PB: predicated region body
PF: predicated region fallthrough
CT: control target
= control target key end

     0   :  { %s584_s12 = smov 0   ;;  %s586_s13 = smov 0   ;;  %s636_s0 = inlined_call_operand.vmem [shape: f32[2,32,3], index: 0, kind: input, shape index: {}]   ;;  %s637_s1 = inlined_call_operand.vmem [shape: f32[2,32,1], index: 1, kind: input, shape index: {}]   ;;  %s638_s2 = inlined_call_operand.vmem [shape: f32[2,3,16], index: 2, kind: input, shape index: {}]   ;;  %s639_s3 = inlined_call_operand.vmem [shape: f32[2,32,16], index: 3, kind: output, shape index: {}]  }
   0x1   :  { %s588_s14 = smov 0  }
   0x2 LB: > { %s25_s15 = sadd.s32 1, %s555_s13  ;;  %p490_p0 = scmp.ge.s32.totalorder %s559_s14, 1  ;;  %s559_s14 = sphi %s588_s14, %s13_s14   ;;  %s555_s13 = sphi %s586_s13, %s641_s13   ;;  %s551_s12 = sphi %s584_s12, %s640_s12  }
   0x3   : > { %p27_p1 = scmp.ge.s32.totalorder %s25_s15, 2  ;;  %p175_p2 = scmp.lt.s32.totalorder %s559_s14, 3 }
   0x5   : > { %s643_s15 = smov (%p27_p1, %s25_s15), 0  ;;  %p176_p3 = pnand %p490_p0, %p175_p2 }
   0x6   : > { %p214_p4 = scmp.lt.s32.totalorder (!%p176_p3), %s551_s12, 1  ;;  %v561_v0 = vmov (!%p176_p3), 1   ;;  %v562_v1 = vmov (!%p176_p3), 0   ;;  %v563_v6 = vmov (!%p176_p3), 2   ;;  %vm337_vm0 = vcmask (!%p176_p3), 124928  }
   0x7   : > { %179 = sbr.rel (%p176_p3) target bundleno = 188 (0xbc), region = 32  ;;  %531 = vset.pattern.permute.xlu0 (!%p176_p3), %v561_v0  ;;  %530 = vset.pattern.permute.xlu1 (!%p176_p3), %v562_v1  ;;  %v268_v16 = vlaneseq (!%p176_p3)  ;;  %vm377_vm1 = vcmask (!%p176_p3), 130048  }
   0x9   : > { %v269_v19 = vshrl.u32 (!%p176_p3), %v268_v16, 7 }
   0xb   : > { %v270_v22 = vsub.s32 (!%p176_p3), 0, %v269_v19  ;;  %v294_v25 = vsub.s32 (!%p176_p3), 1, %v269_v19  ;;  %v322_v26 = vsub.s32 (!%p176_p3), 2, %v269_v19 }
   0xe   : > { %s645_s12 = smov (!%p214_p4, %s551_s12), 1 }
   0xf   : > { %s605_s16 = sshll.u32 %s645_s12, 5  ;;  %s495_s23 = sshll.u32 %s645_s12, 2 }
  0x10   : > { %s218_s19 = scalar_lea.vmem %s636_s0, %s605_s16  ;;  %s223_s22 = scalar_lea.vmem %s637_s1, %s605_s16 }
  0x11   : > { %v241_v2 = vld [vmem:[%s218_s19 + $0x10] sm:$0xff]  ;;  %v239_v3 = vld [vmem:[%s218_s19] sm:$0xff]  ;;  %v242_v4 = vld [vmem:[%s218_s19 + $0x18] sm:$0xff]  ;;  %s230_s26 = scalar_lea.vmem %s638_s2, %s495_s23  ;;  %s238_s29 = scalar_lea.vmem %s639_s3, %s605_s16 }
  0x12   : > { %260 = vperm.xlu1 %530, %v241_v2   ;;  %277 = vperm.xlu0 %531, %v239_v3   ;;  %v240_v5 = vld [vmem:[%s218_s19 + $0x8] sm:$0xff]  ;;  %v243_v7 = vld [vmem:[%s223_s22] sm:$0xff]  ;;  %v246_v8 = vld [vmem:[%s223_s22 + $0x18] sm:$0xff] }
  0x13   : > { %v244_v9 = vld [vmem:[%s223_s22 + $0x8] sm:$0xff]  ;;  %v245_v10 = vld [vmem:[%s223_s22 + $0x10] sm:$0xff]  ;;  %v247_v11 = vld [vmem:[%s230_s26] sm:$0x7] }
  0x14   : > { %v336_v12 = vmul.f32 %v247_v11, %v247_v11  ;;  %v271_v28 = vrot.slane %v247_v11, %v270_v22  ;;  %v295_v31 = vrot.slane %v247_v11, %v294_v25  ;;  %v323_v32 = vrot.slane %v247_v11, %v322_v26 }
  0x16   : > { %265 = vperm.xlu1 %530, %v242_v4   ;;  %289 = vperm.xlu0 %531, %v242_v4   ;;  %v338_v15 = vsel %vm337_vm0, %v336_v12, 0.0 }
  0x17   : > { %v339_v17 = vrot.slane %v338_v15, 4 }
  0x19   : > { %v340_v21 = vadd.f32 %v339_v17, %v338_v15 }
  0x1a   : > { %532 = vset.pattern.permute.xlu1 %v561_v0  ;;  %534 = vset.pattern.permute.xlu0 %v563_v6 }
  0x1b   : > { %281 = vperm.xlu1 %532, %v240_v5   ;;  %309 = vperm.xlu0 %534, %v240_v5   ;;  %v341_v27 = vrot.slane %v340_v21, 2 }
  0x1d   : > { %v342_v34 = vadd.f32 %v341_v27, %v340_v21 }
  0x1f   : > { %285 = vperm.xlu1 %532, %v241_v2   ;;  %535 = vset.pattern.permute.xlu0 %v562_v1  ;;  %v343_v41 = vrot.slane %v342_v34, 1 }
  0x20   : > { %250 = vperm.xlu0 %535, %v239_v3  }
  0x21   : > { %v344_v49 = vadd.f32 %v343_v41, %v342_v34 }
  0x23   : > { %533 = vset.pattern.permute.xlu1 %v563_v6 }
  0x24   : > { %305 = vperm.xlu1 %533, %v239_v3   ;;  %255 = vperm.xlu0 %535, %v240_v5  }
  0x28   : > { %313 = vperm.xlu1 %533, %v241_v2   ;;  %347 = vperm.xlu0 %535, %v243_v7  }
  0x2c   : > { %317 = vperm.xlu1 %533, %v242_v4   ;;  %362 = vperm.xlu0 %535, %v246_v8  }
  0x30   : > { %536 = vset.pattern.permute.xlu1 %v562_v1 }
  0x31   : > { %352 = vperm.xlu1 %536, %v244_v9  }
  0x35   : > { %357 = vperm.xlu1 %536, %v245_v10  }
  0x91   : > { %v261_v13 = vpop.permute.xlu1 %260  ;;  %v278_v14 = vpop.permute.xlu0 %277 }
  0x92   : > { %v296_v35 = vmul.f32 %v295_v31, %v278_v14  ;;  %v274_v54 = vmul.f32 %v271_v28, %v261_v13 }
  0x95   : > { %v266_v18 = vpop.permute.xlu1 %265  ;;  %v290_v20 = vpop.permute.xlu0 %289 }
  0x96   : > { %v275_v46 = vmul.f32 %v271_v28, %v266_v18  ;;  %v299_v47 = vmul.f32 %v295_v31, %v290_v20 }
  0x98   : > { %v303_v58 = vadd.f32 %v299_v47, %v275_v46 }
  0x9a   : > { %v282_v23 = vpop.permute.xlu1 %281  ;;  %v310_v24 = vpop.permute.xlu0 %309 }
  0x9b   : > { %v297_v42 = vmul.f32 %v295_v31, %v282_v23  ;;  %v325_v50 = vmul.f32 %v323_v32, %v310_v24 }
  0x9e   : > { %v286_v29 = vpop.permute.xlu1 %285 }
  0x9f   : > { %v251_v30 = vpop.permute.xlu0 %250  ;;  %v298_v51 = vmul.f32 %v295_v31, %v286_v29 }
  0xa0   : > { %v272_v33 = vmul.f32 %v271_v28, %v251_v30 }
  0xa1   : > { %v302_v61 = vadd.f32 %v298_v51, %v274_v54 }
  0xa2   : > { %v300_v38 = vadd.f32 %v296_v35, %v272_v33 }
  0xa3   : > { %v306_v36 = vpop.permute.xlu1 %305  ;;  %v256_v37 = vpop.permute.xlu0 %255 }
  0xa4   : > { %v324_v39 = vmul.f32 %v323_v32, %v306_v36  ;;  %v273_v40 = vmul.f32 %v271_v28, %v256_v37 }
  0xa6   : > { %v328_v43 = vadd.f32 %v324_v39, %v300_v38  ;;  %v301_v44 = vadd.f32 %v297_v42, %v273_v40 }
  0xa7   : > { %v314_v45 = vpop.permute.xlu1 %313  ;;  %v348_v52 = vpop.permute.xlu0 %347 }
  0xa8   : > { %v332_v48 = vmul.f32 2.0, %v328_v43  ;;  %v326_v55 = vmul.f32 %v323_v32, %v314_v45  ;;  %v329_v57 = vadd.f32 %v325_v50, %v301_v44 }
  0xaa   : > { %v365_v53 = vsub.f32 %v332_v48, %v348_v52  ;;  %v330_v0 = vadd.f32 %v326_v55, %v302_v61  ;;  %v333_v1 = vmul.f32 2.0, %v329_v57 }
  0xab   : > { %v318_v56 = vpop.permute.xlu1 %317  ;;  %v363_v4 = vpop.permute.xlu0 %362 }
  0xac   : > { %v369_v59 = vsub.f32 %v365_v53, %v344_v49  ;;  %v327_v60 = vmul.f32 %v323_v32, %v318_v56  ;;  %v334_v8 = vmul.f32 2.0, %v330_v0 }
  0xae   : > { %v373_v62 = vmin.f32 %v369_v59, 0.0  ;;  %v331_v63 = vadd.f32 %v327_v60, %v303_v58 }
  0xb0   : > { %378 = vst.msk [vmem:[%s238_s29] sm:$0xff] %vm377_vm1, %v373_v62  ;;  %v335_v2 = vmul.f32 2.0, %v331_v63  ;;  %v353_v3 = vpop.permute.xlu1 %352 }
  0xb1   : > { %v366_v5 = vsub.f32 %v333_v1, %v353_v3 }
  0xb2   : > { %v368_v6 = vsub.f32 %v335_v2, %v363_v4 }
  0xb3   : > { %v370_v7 = vsub.f32 %v366_v5, %v344_v49 }
  0xb4   : > { %v372_v9 = vsub.f32 %v368_v6, %v344_v49  ;;  %v358_v10 = vpop.permute.xlu1 %357 }
  0xb5   : > { %v374_v11 = vmin.f32 %v370_v7, 0.0  ;;  %v367_v12 = vsub.f32 %v334_v8, %v358_v10 }
  0xb6   : > { %v376_v13 = vmin.f32 %v372_v9, 0.0 }
  0xb7   : > { %379 = vst.msk [vmem:[%s238_s29 + $0x8] sm:$0xff] %vm377_vm1, %v374_v11  ;;  %v371_v14 = vsub.f32 %v367_v12, %v344_v49 }
  0xb8   : > { %381 = vst.msk [vmem:[%s238_s29 + $0x18] sm:$0xff] %vm377_vm1, %v376_v13 }
  0xb9   : > { %v375_v15 = vmin.f32 %v371_v14, 0.0 }
  0xbb   : > { %380 = vst.msk [vmem:[%s238_s29 + $0x10] sm:$0xff] %vm377_vm1, %v375_v15 }
  0xbc PF: > { %s13_s14 = sadd.s32 1, %s559_s14   ;;  %s640_s12 = smov %s555_s13 }
  0xbd   : > { %p10_p5 = scmp.ge.s32.totalorder %s13_s14, 4   ;;  %s641_s13 = smov %s643_s15 }
  0xbf   :  { %12 = sbr.rel (!%p10_p5) target bundleno = 2 (0x2), region = 68 }

// kernel: _lambda_.19
= control target key start
LH: loop header
LB: loop body
LE: loop exit
PB: predicated region body
PF: predicated region fallthrough
CT: control target
= control target key end

     0   :  { %s704_s12 = smov 0   ;;  %s706_s13 = smov 0   ;;  %s802_s0 = inlined_call_operand.vmem [shape: f32[2,64,3], index: 0, kind: input, shape index: {}]   ;;  %s803_s1 = inlined_call_operand.vmem [shape: f32[2,64,1], index: 1, kind: input, shape index: {}]   ;;  %s804_s2 = inlined_call_operand.vmem [shape: f32[2,3,32], index: 2, kind: input, shape index: {}]   ;;  %s805_s3 = inlined_call_operand.vmem [shape: f32[2,64,32], index: 3, kind: output, shape index: {}]  }
   0x1   :  { %s708_s14 = smov 0  }
   0x2 LB: > { %s25_s15 = sadd.s32 1, %s675_s13  ;;  %p610_p0 = scmp.ge.s32.totalorder %s679_s14, 1  ;;  %s679_s14 = sphi %s708_s14, %s13_s14   ;;  %s675_s13 = sphi %s706_s13, %s807_s13   ;;  %s671_s12 = sphi %s704_s12, %s806_s12  }
   0x3   : > { %p27_p1 = scmp.ge.s32.totalorder %s25_s15, 2  ;;  %p175_p2 = scmp.lt.s32.totalorder %s679_s14, 3 }
   0x5   : > { %s809_s15 = smov (%p27_p1, %s25_s15), 0  ;;  %p176_p3 = pnand %p610_p0, %p175_p2 }
   0x6   : > { %p214_p4 = scmp.lt.s32.totalorder (!%p176_p3), %s671_s12, 1  ;;  %v681_v0 = vmov (!%p176_p3), 1   ;;  %v682_v1 = vmov (!%p176_p3), 0   ;;  %v683_v8 = vmov (!%p176_p3), 2   ;;  %vm421_vm0 = vcmask (!%p176_p3), 256000  }
   0x7   : > { %179 = sbr.rel (%p176_p3) target bundleno = 220 (0xdc), region = 32  ;;  %651 = vset.pattern.permute.xlu0 (!%p176_p3), %v681_v0  ;;  %650 = vset.pattern.permute.xlu1 (!%p176_p3), %v682_v1  ;;  %v296_v32 = vlaneseq (!%p176_p3)  ;;  %vm493_vm1 = vcmask (!%p176_p3), 261120  }
   0x9   : > { %v297_v36 = vshrl.u32 (!%p176_p3), %v296_v32, 7 }
   0xb   : > { %v298_v40 = vsub.s32 (!%p176_p3), 0, %v297_v36  ;;  %v342_v43 = vsub.s32 (!%p176_p3), 1, %v297_v36  ;;  %v394_v44 = vsub.s32 (!%p176_p3), 2, %v297_v36 }
   0xe   : > { %s811_s12 = smov (!%p214_p4, %s671_s12), 1 }
   0xf   : > { %s725_s16 = sshll.u32 %s811_s12, 6  ;;  %s615_s23 = sshll.u32 %s811_s12, 2 }
  0x10   : > { %s218_s19 = scalar_lea.vmem %s802_s0, %s725_s16  ;;  %s223_s22 = scalar_lea.vmem %s803_s1, %s725_s16 }
  0x11   : > { %v241_v2 = vld [vmem:[%s218_s19 + $0x10] sm:$0xff]  ;;  %v239_v3 = vld [vmem:[%s218_s19] sm:$0xff]  ;;  %v242_v4 = vld [vmem:[%s218_s19 + $0x18] sm:$0xff]  ;;  %s230_s26 = scalar_lea.vmem %s804_s2, %s615_s23  ;;  %s762_s29 = scalar_lea.vmem %s805_s3, %s725_s16 }
  0x12   : > { %268 = vperm.xlu1 %650, %v241_v2   ;;  %309 = vperm.xlu0 %651, %v239_v3   ;;  %v244_v5 = vld [vmem:[%s218_s19 + $0x28] sm:$0xff]  ;;  %v246_v6 = vld [vmem:[%s218_s19 + $0x38] sm:$0xff]  ;;  %v243_v9 = vld [vmem:[%s218_s19 + $0x20] sm:$0xff] }
  0x13   : > { %v240_v7 = vld [vmem:[%s218_s19 + $0x8] sm:$0xff]  ;;  %v245_v10 = vld [vmem:[%s218_s19 + $0x30] sm:$0xff]  ;;  %v247_v11 = vld [vmem:[%s223_s22] sm:$0xff] }
  0x14   : > { %v250_v12 = vld [vmem:[%s223_s22 + $0x18] sm:$0xff]  ;;  %v252_v13 = vld [vmem:[%s223_s22 + $0x28] sm:$0xff]  ;;  %v249_v16 = vld [vmem:[%s223_s22 + $0x10] sm:$0xff] }
  0x15   : > { %v248_v14 = vld [vmem:[%s223_s22 + $0x8] sm:$0xff]  ;;  %v254_v15 = vld [vmem:[%s223_s22 + $0x38] sm:$0xff]  ;;  %v251_v17 = vld [vmem:[%s223_s22 + $0x20] sm:$0xff] }
  0x16   : > { %273 = vperm.xlu1 %650, %v242_v4   ;;  %321 = vperm.xlu0 %651, %v242_v4   ;;  %v253_v18 = vld [vmem:[%s223_s22 + $0x30] sm:$0xff]  ;;  %v255_v28 = vld [vmem:[%s230_s26] sm:$0x7] }
  0x17   : > { %v420_v30 = vmul.f32 %v255_v28, %v255_v28  ;;  %v299_v45 = vrot.slane %v255_v28, %v298_v40  ;;  %v343_v49 = vrot.slane %v255_v28, %v342_v43  ;;  %v747_v50 = vrot.slane %v255_v28, %v394_v44 }
  0x19   : > { %v422_v34 = vsel %vm421_vm0, %v420_v30, 0.0 }
  0x1a   : > { %283 = vperm.xlu1 %650, %v244_v5   ;;  %329 = vperm.xlu0 %651, %v244_v5   ;;  %v423_v37 = vrot.slane %v422_v34, 4 }
  0x1c   : > { %v424_v41 = vadd.f32 %v423_v37, %v422_v34 }
  0x1e   : > { %293 = vperm.xlu1 %650, %v246_v6   ;;  %337 = vperm.xlu0 %651, %v246_v6   ;;  %v425_v46 = vrot.slane %v424_v41, 2 }
  0x20   : > { %v426_v52 = vadd.f32 %v425_v46, %v424_v41 }
  0x22   : > { %652 = vset.pattern.permute.xlu1 %v681_v0  ;;  %654 = vset.pattern.permute.xlu0 %v683_v8  ;;  %v427_v61 = vrot.slane %v426_v52, 1 }
  0x23   : > { %313 = vperm.xlu1 %652, %v240_v7   ;;  %365 = vperm.xlu0 %654, %v240_v7  }
  0x27   : > { %317 = vperm.xlu1 %652, %v241_v2   ;;  %377 = vperm.xlu0 %654, %v243_v9  }
  0x2b   : > { %325 = vperm.xlu1 %652, %v243_v9   ;;  %385 = vperm.xlu0 %654, %v245_v10  }
  0x2f   : > { %333 = vperm.xlu1 %652, %v245_v10   ;;  %655 = vset.pattern.permute.xlu0 %v682_v1 }
  0x30   : > { %258 = vperm.xlu0 %655, %v239_v3  }
  0x33   : > { %653 = vset.pattern.permute.xlu1 %v683_v8 }
  0x34   : > { %361 = vperm.xlu1 %653, %v239_v3   ;;  %263 = vperm.xlu0 %655, %v240_v7  }
  0x38   : > { %369 = vperm.xlu1 %653, %v241_v2   ;;  %278 = vperm.xlu0 %655, %v243_v9  }
  0x3c   : > { %373 = vperm.xlu1 %653, %v242_v4   ;;  %288 = vperm.xlu0 %655, %v245_v10   ;;  %v751_v10 = vadd.f32 %v427_v61, %v426_v52 }
  0x40   : > { %381 = vperm.xlu1 %653, %v244_v5   ;;  %431 = vperm.xlu0 %655, %v247_v11  }
  0x44   : > { %389 = vperm.xlu1 %653, %v246_v6   ;;  %446 = vperm.xlu0 %655, %v250_v12  }
  0x48   : > { %656 = vset.pattern.permute.xlu1 %v682_v1  ;;  %456 = vperm.xlu0 %655, %v252_v13  }
  0x49   : > { %436 = vperm.xlu1 %656, %v248_v14  }
  0x4c   : > { %466 = vperm.xlu0 %655, %v254_v15  }
  0x4d   : > { %441 = vperm.xlu1 %656, %v249_v16  }
  0x51   : > { %451 = vperm.xlu1 %656, %v251_v17  }
  0x55   : > { %461 = vperm.xlu1 %656, %v253_v18  }
  0x91   : > { %v735_v19 = vpop.permute.xlu1 %268  ;;  %v310_v20 = vpop.permute.xlu0 %309 }
  0x92   : > { %v344_v53 = vmul.f32 %v343_v49, %v310_v20  ;;  %v302_v20 = vmul.f32 %v299_v45, %v735_v19 }
  0x95   : > { %v274_v21 = vpop.permute.xlu1 %273  ;;  %v322_v22 = vpop.permute.xlu0 %321 }
  0x96   : > { %v303_v57 = vmul.f32 %v299_v45, %v274_v21  ;;  %v347_v58 = vmul.f32 %v343_v49, %v322_v22 }
  0x98   : > { %v355_v3 = vadd.f32 %v347_v58, %v303_v57 }
  0x99   : > { %v284_v23 = vpop.permute.xlu1 %283  ;;  %v330_v24 = vpop.permute.xlu0 %329 }
  0x9a   : > { %v305_v4 = vmul.f32 %v299_v45, %v284_v23  ;;  %v349_v5 = vmul.f32 %v343_v49, %v330_v24 }
  0x9c   : > { %v357_v15 = vadd.f32 %v349_v5, %v305_v4 }
  0x9d   : > { %v294_v25 = vpop.permute.xlu1 %293  ;;  %v338_v26 = vpop.permute.xlu0 %337 }
  0x9e   : > { %v307_v16 = vmul.f32 %v299_v45, %v294_v25  ;;  %v351_v17 = vmul.f32 %v343_v49, %v338_v26 }
  0xa2   : > { %v314_v27 = vpop.permute.xlu1 %313  ;;  %v366_v29 = vpop.permute.xlu0 %365 }
  0xa3   : > { %v345_v0 = vmul.f32 %v343_v49, %v314_v27  ;;  %v397_v11 = vmul.f32 %v747_v50, %v366_v29 }
  0xa6   : > { %v318_v31 = vpop.permute.xlu1 %317  ;;  %v741_v33 = vpop.permute.xlu0 %377 }
  0xa7   : > { %v346_v12 = vmul.f32 %v343_v49, %v318_v31  ;;  %v359_v31 = vadd.f32 %v351_v17, %v307_v16 }
  0xa9   : > { %v354_v25 = vadd.f32 %v346_v12, %v302_v20 }
  0xaa   : > { %v326_v35 = vpop.permute.xlu1 %325  ;;  %v743_v38 = vpop.permute.xlu0 %385 }
  0xab   : > { %v348_v26 = vmul.f32 %v343_v49, %v326_v35  ;;  %v400_v35 = vmul.f32 %v747_v50, %v741_v33  ;;  %v402_v33 = vmul.f32 %v747_v50, %v743_v38 }
  0xae   : > { %v745_v39 = vpop.permute.xlu1 %333 }
  0xaf   : > { %v259_v42 = vpop.permute.xlu0 %258 }
  0xb0   : > { %v300_v51 = vmul.f32 %v299_v45, %v259_v42 }
  0xb2   : > { %v352_v59 = vadd.f32 %v344_v53, %v300_v51 }
  0xb3   : > { %v362_v47 = vpop.permute.xlu1 %361  ;;  %v264_v48 = vpop.permute.xlu0 %263 }
  0xb4   : > { %v396_v54 = vmul.f32 %v747_v50, %v362_v47  ;;  %v301_v60 = vmul.f32 %v299_v45, %v264_v48  ;;  %v350_v48 = vmul.f32 %v343_v49, %v745_v39 }
  0xb6   : > { %v404_v62 = vadd.f32 %v396_v54, %v352_v59  ;;  %v353_v6 = vadd.f32 %v345_v0, %v301_v60 }
  0xb7   : > { %v370_v55 = vpop.permute.xlu1 %369  ;;  %v279_v56 = vpop.permute.xlu0 %278 }
  0xb8   : > { %v412_v9 = vmul.f32 2.0, %v404_v62  ;;  %v398_v21 = vmul.f32 %v747_v50, %v370_v55  ;;  %v304_v22 = vmul.f32 %v299_v45, %v279_v56  ;;  %v405_v23 = vadd.f32 %v397_v11, %v353_v6 }
  0xba   : > { %v406_v36 = vadd.f32 %v398_v21, %v354_v25  ;;  %v356_v37 = vadd.f32 %v348_v26, %v304_v22  ;;  %v413_v40 = vmul.f32 2.0, %v405_v23 }
  0xbb   : > { %v374_v63 = vpop.permute.xlu1 %373  ;;  %v289_v2 = vpop.permute.xlu0 %288 }
  0xbc   : > { %v399_v1 = vmul.f32 %v747_v50, %v374_v63  ;;  %v306_v41 = vmul.f32 %v299_v45, %v289_v2  ;;  %v414_v54 = vmul.f32 2.0, %v406_v36  ;;  %v408_v45 = vadd.f32 %v400_v35, %v356_v37 }
  0xbe   : > { %v407_v7 = vadd.f32 %v399_v1, %v355_v3  ;;  %v358_v55 = vadd.f32 %v350_v48, %v306_v41  ;;  %v416_v1 = vmul.f32 2.0, %v408_v45 }
  0xbf   : > { %v382_v8 = vpop.permute.xlu1 %381  ;;  %v432_v14 = vpop.permute.xlu0 %431 }
  0xc0   : > { %v401_v13 = vmul.f32 %v747_v50, %v382_v8  ;;  %v469_v18 = vsub.f32 %v412_v9, %v432_v14  ;;  %v415_v29 = vmul.f32 2.0, %v407_v7  ;;  %v410_v38 = vadd.f32 %v402_v33, %v358_v55 }
  0xc2   : > { %v409_v24 = vadd.f32 %v401_v13, %v357_v15  ;;  %v477_v27 = vsub.f32 %v469_v18, %v751_v10  ;;  %v418_v6 = vmul.f32 2.0, %v410_v38 }
  0xc3   : > { %v390_v28 = vpop.permute.xlu1 %389  ;;  %v447_v30 = vpop.permute.xlu0 %446 }
  0xc4   : > { %v403_v19 = vmul.f32 %v747_v50, %v390_v28  ;;  %v485_v32 = vmin.f32 %v477_v27, 0.0  ;;  %v472_v34 = vsub.f32 %v415_v29, %v447_v30  ;;  %v417_v44 = vmul.f32 2.0, %v409_v24 }
  0xc6   : > { %494 = vst.msk [vmem:[%s762_s29] sm:$0xff] %vm493_vm1, %v485_v32  ;;  %v411_v42 = vadd.f32 %v403_v19, %v359_v31  ;;  %v480_v43 = vsub.f32 %v472_v34, %v751_v10 }
  0xc7   : > { %v457_v46 = vpop.permute.xlu0 %456 }
  0xc8   : > { %v437_v47 = vpop.permute.xlu1 %436  ;;  %v488_v51 = vmin.f32 %v480_v43, 0.0  ;;  %v474_v52 = vsub.f32 %v417_v44, %v457_v46  ;;  %v419_v58 = vmul.f32 2.0, %v411_v42 }
  0xc9   : > { %v470_v53 = vsub.f32 %v413_v40, %v437_v47 }
  0xca   : > { %497 = vst.msk [vmem:[%s762_s29 + $0x18] sm:$0xff] %vm493_vm1, %v488_v51  ;;  %v482_v56 = vsub.f32 %v474_v52, %v751_v10 }
  0xcb   : > { %v478_v57 = vsub.f32 %v470_v53, %v751_v10  ;;  %v467_v59 = vpop.permute.xlu0 %466 }
  0xcc   : > { %v442_v39 = vpop.permute.xlu1 %441  ;;  %v490_v49 = vmin.f32 %v482_v56, 0.0  ;;  %v476_v61 = vsub.f32 %v419_v58, %v467_v59 }
  0xcd   : > { %v486_v60 = vmin.f32 %v478_v57, 0.0  ;;  %v471_v62 = vsub.f32 %v414_v54, %v442_v39 }
  0xce   : > { %499 = vst.msk [vmem:[%s762_s29 + $0x28] sm:$0xff] %vm493_vm1, %v490_v49  ;;  %v484_v63 = vsub.f32 %v476_v61, %v751_v10 }
  0xcf   : > { %495 = vst.msk [vmem:[%s762_s29 + $0x8] sm:$0xff] %vm493_vm1, %v486_v60  ;;  %v479_v0 = vsub.f32 %v471_v62, %v751_v10 }
  0xd0   : > { %v452_v50 = vpop.permute.xlu1 %451  ;;  %v492_v2 = vmin.f32 %v484_v63, 0.0 }
  0xd1   : > { %v487_v3 = vmin.f32 %v479_v0, 0.0  ;;  %v473_v4 = vsub.f32 %v416_v1, %v452_v50 }
  0xd2   : > { %501 = vst.msk [vmem:[%s762_s29 + $0x38] sm:$0xff] %vm493_vm1, %v492_v2 }
  0xd3   : > { %496 = vst.msk [vmem:[%s762_s29 + $0x10] sm:$0xff] %vm493_vm1, %v487_v3  ;;  %v481_v5 = vsub.f32 %v473_v4, %v751_v10 }
  0xd4   : > { %v462_v7 = vpop.permute.xlu1 %461 }
  0xd5   : > { %v489_v8 = vmin.f32 %v481_v5, 0.0  ;;  %v475_v9 = vsub.f32 %v418_v6, %v462_v7 }
  0xd7   : > { %498 = vst.msk [vmem:[%s762_s29 + $0x20] sm:$0xff] %vm493_vm1, %v489_v8  ;;  %v483_v11 = vsub.f32 %v475_v9, %v751_v10 }
  0xd9   : > { %v491_v12 = vmin.f32 %v483_v11, 0.0 }
  0xdb   : > { %500 = vst.msk [vmem:[%s762_s29 + $0x30] sm:$0xff] %vm493_vm1, %v491_v12 }
  0xdc PF: > { %s13_s14 = sadd.s32 1, %s679_s14   ;;  %s806_s12 = smov %s675_s13 }
  0xdd   : > { %p10_p5 = scmp.ge.s32.totalorder %s13_s14, 4   ;;  %s807_s13 = smov %s809_s15 }
  0xdf   :  { %12 = sbr.rel (!%p10_p5) target bundleno = 2 (0x2), region = 68 }

// kernel: _lambda_.27
= control target key start
LH: loop header
LB: loop body
LE: loop exit
PB: predicated region body
PF: predicated region fallthrough
CT: control target
= control target key end

     0   :  { %s995_s30 = smov 0   ;;  %s1070_s0 = inlined_call_operand.vmem [shape: bf16[64,32], index: 0, kind: input, shape index: {}]   ;;  %s1071_s1 = inlined_call_operand.vmem [shape: f32[64,64], index: 1, kind: input, shape index: {}]   ;;  %s1072_s2 = inlined_call_operand.vmem [shape: bf16[32,32], index: 2, kind: input, shape index: {}]   ;;  %s1073_s3 = inlined_call_operand.vmem [shape: bf16[64,32], index: 3, kind: input, shape index: {}]   ;;  %s1074_s4 = inlined_call_operand.vmem [shape: f32[1,32], index: 4, kind: input, shape index: {}]   ;;  %s1075_s5 = inlined_call_operand.vmem [shape: bf16[32,32], index: 5, kind: input, shape index: {}]   ;;  %s1076_s6 = inlined_call_operand.vmem [shape: f32[1,32], index: 6, kind: input, shape index: {}]   ;;  %s1077_s7 = inlined_call_operand.vmem [shape: bf16[32,32], index: 7, kind: input, shape index: {}]   ;;  %s1078_s8 = inlined_call_operand.vmem [shape: f32[1,32], index: 8, kind: input, shape index: {}]   ;;  %s1079_s9 = inlined_call_operand.vmem [shape: bf16[64,32], index: 9, kind: output, shape index: {}]  }
   0x1 LB: > { %s815_s10 = sadd.s32 4294967295, %s943_s30   ;;  %p819_p0 = scmp.ge.s32.totalorder %s943_s30, 1  ;;  %s943_s30 = sphi %s995_s30, %s19_s30  }
   0x2   : > { %p299_p1 = scmp.lt.s32.totalorder %s943_s30, 3 }
   0x4   : > { %p300_p2 = pnand %p819_p0, %p299_p1 }
   0x5   : > { %v925_v0 = vld [vmem:[%s1073_s3] sm:$0xff] (!%p300_p2)   ;;  %s820_s13 = sshll.u32 (!%p300_p2), %s815_s10, 2  ;;  %v926_v1 = vld [vmem:[%s1073_s3 + $0x8] sm:$0xff] (!%p300_p2)   ;;  %v927_v2 = vld [vmem:[%s1073_s3 + $0x10] sm:$0xff] (!%p300_p2)   ;;  %vm405_vm0 = vcmask (!%p300_p2), 523264   ;;  %vm483_vm1 = vcmask (!%p300_p2), 261120  }
   0x6   : > { %303 = sbr.rel (%p300_p2) target bundleno = 702 (0x2be), region = 56  ;;  %p341_p3 = scmp.lt.s32.totalorder (!%p300_p2), %s820_s13, 7  ;;  %877 = vmatprep.subr.bf16.mxu0 (!%p300_p2), %v925_v0  ;;  %v928_v5 = vld [vmem:[%s1073_s3 + $0x18] sm:$0xff] (!%p300_p2)   ;;  %v929_v9 = vld [vmem:[%s1072_s2] sm:$0xff] (!%p300_p2)   ;;  %v930_v12 = vld [vmem:[%s1072_s2 + $0x8] sm:$0xff] (!%p300_p2)   ;;  %vm742_vm2 = vcmask (!%p300_p2), 257024  }
   0x7   : > { %878 = vmatpush3.bf16.msra.mxu0 (!%p300_p2), %v925_v0  ;;  %v933_v14 = vld [vmem:[%s1075_s5] sm:$0xff] (!%p300_p2)   ;;  %v934_v15 = vld [vmem:[%s1075_s5 + $0x8] sm:$0xff] (!%p300_p2)  }
   0x8   : > { %879 = vmatprep.subr.bf16.mxu0 (!%p300_p2), %v926_v1  ;;  %897 = vmatprep.subr.bf16.mxu1 (!%p300_p2), %v933_v14  ;;  %v838_v16 = vld [vmem:[%s1074_s4] ss:$0 sm:$0xff] (!%p300_p2)  ;;  %v936_v32 = vld [vmem:[%s1077_s7 + $0x8] sm:$0xff] (!%p300_p2)  }
   0x9   : > { %898 = vmatpush3.bf16.msra.mxu1 (!%p300_p2), %v933_v14  ;;  %v935_v31 = vld [vmem:[%s1077_s7] sm:$0xff] (!%p300_p2)  }
   0xa   : > { %899 = vmatprep.subr.bf16.mxu1 (!%p300_p2), %v934_v15  ;;  %v839_v33 = vld [vmem:[%s1076_s6] ss:$0 sm:$0xff] (!%p300_p2) }
   0xb   : > { %880 = vmatpush3.bf16.msra.mxu0 (!%p300_p2), %v926_v1  ;;  %v844_v48 = vld [vmem:[%s1078_s8] ss:$0 sm:$0xff] (!%p300_p2) }
   0xc   : > { %881 = vmatprep.subr.bf16.mxu0 (!%p300_p2), %v927_v2 }
   0xd   : > { %s1081_s13 = smov (!%p341_p3, %s820_s13), 7  ;;  %900 = vmatpush3.bf16.msra.mxu1 %v934_v15 }
   0xe   : > { %s821_s18 = sshll.u32 %s1081_s13, 2  ;;  %s823_s19 = sshll.u32 %s1081_s13, 3  ;;  %905 = vmatprep.subr.bf16.mxu1 %v935_v31 }
   0xf   : > { %s350_s22 = scalar_lea.vmem %s1071_s1, %s823_s19  ;;  %s344_s25 = scalar_lea.vmem %s1070_s0, %s821_s18  ;;  %882 = vmatpush3.bf16.msra.mxu0 %v927_v2 }
  0x10   : > { %v363_v3 = vld [vmem:[%s350_s22] sm:$0xff]  ;;  %v364_v4 = vld [vmem:[%s350_s22 + $0x8] sm:$0xff]  ;;  %v365_v7 = vld [vmem:[%s350_s22 + $0x10] sm:$0xff]  ;;  %883 = vmatprep.subr.bf16.mxu0 %v928_v5  ;;  %s356_s10 = scalar_lea.vmem %s1079_s9, %s821_s18 }
  0x11   : > { %v379_v6 = vpack.c.bf16 %v364_v4, %v363_v3  ;;  %v366_v8 = vld [vmem:[%s350_s22 + $0x18] sm:$0xff]  ;;  %v931_v11 = vld [vmem:[%s344_s25] sm:$0xff]   ;;  %v932_v13 = vld [vmem:[%s344_s25 + $0x8] sm:$0xff]  }
  0x12   : > { %v380_v10 = vpack.c.bf16 %v366_v8, %v365_v7 }
  0x13   : > { %885 = vmatprep.mubr.msk.bf16.mxu0 %vm405_vm0, %v379_v6  ;;  %884 = vmatpush3.bf16.msra.mxu0 %v928_v5 }
  0x14   : > { %889 = vmatprep.subr.bf16.mxu0 %v929_v9 }
  0x16   : > { %886 = vmatmul.mubr.msk.bf16.vlgmr.msra.gmra.mrb[0].mxu0 %vm405_vm0, %v380_v10 }
  0x17   : > { %890 = vmatpush3.bf16.msra.mxu0 %v929_v9  ;;  %893 = vmatprep.mubr.msk.bf16.mxu0 %vm483_vm1, %v931_v11 }
  0x18   : > { %891 = vmatprep.subr.bf16.mxu0 %v930_v12 }
  0x1b   : > { %892 = vmatpush3.bf16.msra.mxu0 %v930_v12 }
  0x22   : > { %894 = vmatmul.mubr.msk.bf16.vlgmr.msra.gmra.mrb[0].mxu0 %vm483_vm1, %v932_v13 }
  0xf5   : > { %v895_v17 = vpop.f32.mrb[0].mxu0 }
  0xf6   : > { %v524_v18 = vpop.f32.mrb[1].mxu0  ;;  %v548_v21 = vadd.f32 %v895_v17, %v838_v16 }
  0xf7   : > { %v546_v19 = vadd.f32 %v838_v16, %v524_v18  ;;  %v896_v20 = vpop.f32.mrb[2].mxu0 }
  0xf8   : > { %v549_v22 = vadd.f32 %v896_v20, %v838_v16  ;;  %v527_v23 = vpop.f32.mrb[3].mxu0  ;;  %v552_v28 = vmax.f32 %v548_v21, 0.0 }
  0xf9   : > { %v547_v24 = vadd.f32 %v838_v16, %v527_v23  ;;  %v550_v26 = vmax.f32 %v546_v19, 0.0 }
  0xfa   : > { %v553_v25 = vmax.f32 %v549_v22, 0.0 }
  0xfb   : > { %v551_v27 = vmax.f32 %v547_v24, 0.0 }
  0xfc   : > { %v565_v30 = vpack.c.bf16 %v553_v25, %v552_v28 }
  0xfd   : > { %v564_v29 = vpack.c.bf16 %v551_v27, %v550_v26 }
  0xff   : > { %901 = vmatprep.mubr.msk.bf16.mxu1 %vm483_vm1, %v564_v29 }
 0x100   : > { %902 = vmatmul.mubr.msk.bf16.vlgmr.msra.gmra.mrb[0].mxu1 %vm483_vm1, %v565_v30 }
 0x101   : > { %906 = vmatpush3.bf16.msra.mxu1 %v935_v31 }
 0x102   : > { %907 = vmatprep.subr.bf16.mxu1 %v936_v32 }
 0x105   : > { %908 = vmatpush3.bf16.msra.mxu1 %v936_v32 }
 0x1d3   : > { %v903_v34 = vpop.f32.mrb[0].mxu1 }
 0x1d4   : > { %v633_v35 = vadd.f32 %v903_v34, %v839_v33  ;;  %v624_v36 = vpop.f32.mrb[1].mxu1 }
 0x1d5   : > { %v625_v37 = vadd.f32 %v839_v33, %v624_v36  ;;  %v904_v38 = vpop.f32.mrb[2].mxu1 }
 0x1d6   : > { %v636_v39 = vadd.f32 %v904_v38, %v839_v33  ;;  %v627_v40 = vpop.f32.mrb[3].mxu1  ;;  %v641_v42 = vmax.f32 %v633_v35, 0.0 }
 0x1d7   : > { %v628_v41 = vadd.f32 %v839_v33, %v627_v40  ;;  %v639_v44 = vmax.f32 %v625_v37, 0.0 }
 0x1d8   : > { %v642_v43 = vmax.f32 %v636_v39, 0.0 }
 0x1d9   : > { %v640_v45 = vmax.f32 %v628_v41, 0.0 }
 0x1da   : > { %v644_v46 = vpack.c.bf16 %v642_v43, %v641_v42 }
 0x1db   : > { %v643_v47 = vpack.c.bf16 %v640_v45, %v639_v44 }
 0x1dd   : > { %909 = vmatprep.mubr.msk.bf16.mxu1 %vm483_vm1, %v643_v47 }
 0x1de   : > { %910 = vmatmul.mubr.msk.bf16.vlgmr.msra.gmra.mrb[4].mxu1 %vm483_vm1, %v644_v46 }
 0x2b1   : > { %v911_v49 = vpop.f32.mrb[4].mxu1 }
 0x2b2   : > { %v712_v50 = vadd.f32 %v911_v49, %v844_v48  ;;  %v703_v51 = vpop.f32.mrb[5].mxu1 }
 0x2b3   : > { %v704_v52 = vadd.f32 %v844_v48, %v703_v51  ;;  %v912_v53 = vpop.f32.mrb[6].mxu1 }
 0x2b4   : > { %v720_v54 = vadd.f32 %v712_v50, %v552_v28  ;;  %v715_v55 = vadd.f32 %v912_v53, %v844_v48  ;;  %v706_v56 = vpop.f32.mrb[7].mxu1 }
 0x2b5   : > { %v718_v57 = vadd.f32 %v704_v52, %v550_v26  ;;  %v707_v58 = vadd.f32 %v844_v48, %v706_v56 }
 0x2b6   : > { %v721_v59 = vadd.f32 %v715_v55, %v553_v25  ;;  %v724_v62 = vmax.f32 %v720_v54, 0.0 }
 0x2b7   : > { %v722_v60 = vmax.f32 %v718_v57, 0.0  ;;  %v719_v61 = vadd.f32 %v707_v58, %v551_v27 }
 0x2b8   : > { %v725_v0 = vmax.f32 %v721_v59, 0.0  ;;  %v857_v3 = vpack.c.bf16 %v724_v62, %v724_v62 }
 0x2b9   : > { %v855_v63 = vpack.c.bf16 %v722_v60, %v722_v60  ;;  %v723_v1 = vmax.f32 %v719_v61, 0.0 }
 0x2ba   : > { %v858_v4 = vpack.c.bf16 %v725_v0, %v725_v0  ;;  %745 = vst.msk [vmem:[%s356_s10 + $0x8] sm:$0xf] %vm742_vm2, %v857_v3 }
 0x2bb   : > { %743 = vst.msk [vmem:[%s356_s10] sm:$0xf] %vm742_vm2, %v855_v63  ;;  %v856_v2 = vpack.c.bf16 %v723_v1, %v723_v1 }
 0x2bc   : > { %746 = vst.msk [vmem:[%s356_s10 + $0xc] sm:$0xf] %vm742_vm2, %v858_v4 }
 0x2bd   : > { %744 = vst.msk [vmem:[%s356_s10 + $0x4] sm:$0xf] %vm742_vm2, %v856_v2 }
 0x2be PF: > { %s19_s30 = sadd.s32 1, %s943_s30  }
 0x2bf   : > { %p16_p4 = scmp.ge.s32.totalorder %s19_s30, 4  }
 0x2c1   :  { %18 = sbr.rel (!%p16_p4) target bundleno = 1 (0x1), region = 89 }

// kernel: _lambda_.28
= control target key start
LH: loop header
LB: loop body
LE: loop exit
PB: predicated region body
PF: predicated region fallthrough
CT: control target
= control target key end

     0   :  { %s1156_s30 = smov 0   ;;  %s1300_s0 = inlined_call_operand.vmem [shape: bf16[128,16], index: 0, kind: input, shape index: {}]   ;;  %s1301_s1 = inlined_call_operand.vmem [shape: f32[128,32], index: 1, kind: input, shape index: {}]   ;;  %s1302_s2 = inlined_call_operand.vmem [shape: bf16[16,32], index: 2, kind: input, shape index: {}]   ;;  %s1303_s3 = inlined_call_operand.vmem [shape: bf16[32,32], index: 3, kind: input, shape index: {}]   ;;  %s1304_s4 = inlined_call_operand.vmem [shape: f32[1,32], index: 4, kind: input, shape index: {}]   ;;  %s1305_s5 = inlined_call_operand.vmem [shape: bf16[32,32], index: 5, kind: input, shape index: {}]   ;;  %s1306_s6 = inlined_call_operand.vmem [shape: f32[1,32], index: 6, kind: input, shape index: {}]   ;;  %s1307_s7 = inlined_call_operand.vmem [shape: bf16[32,32], index: 7, kind: input, shape index: {}]   ;;  %s1308_s8 = inlined_call_operand.vmem [shape: f32[1,32], index: 8, kind: input, shape index: {}]   ;;  %s1309_s9 = inlined_call_operand.vmem [shape: bf16[128,32], index: 9, kind: output, shape index: {}]  }
   0x1 LB: > { %s943_s10 = sadd.s32 4294967295, %s1104_s30   ;;  %p947_p0 = scmp.ge.s32.totalorder %s1104_s30, 1  ;;  %s1104_s30 = sphi %s1156_s30, %s19_s30  }
   0x2   : > { %p299_p1 = scmp.lt.s32.totalorder %s1104_s30, 3 }
   0x4   : > { %p300_p2 = pnand %p947_p0, %p299_p1 }
   0x5   : > { %v1087_v0 = vld [vmem:[%s1303_s3] sm:$0xff] (!%p300_p2)   ;;  %s948_s13 = sshll.u32 (!%p300_p2), %s943_s10, 3  ;;  %v1088_v1 = vld [vmem:[%s1303_s3 + $0x8] sm:$0xff] (!%p300_p2)   ;;  %vm397_vm0 = vcmask (!%p300_p2), 261120   ;;  %vm501_vm1 = vcmask (!%p300_p2), 130048   ;;  %vm866_vm2 = vcmask (!%p300_p2), 257024  }
   0x6   : > { %303 = sbr.rel (%p300_p2) target bundleno = 712 (0x2c8), region = 56  ;;  %p341_p3 = scmp.lt.s32.totalorder (!%p300_p2), %s948_s13, 15  ;;  %1025 = vmatprep.subr.bf16.mxu0 (!%p300_p2), %v1087_v0  ;;  %v1089_v2 = vld [vmem:[%s1302_s2] sm:$0xff] (!%p300_p2)   ;;  %v1095_v20 = vld [vmem:[%s1305_s5 + $0x8] sm:$0xff] (!%p300_p2)  }
   0x7   : > { %1026 = vmatpush3.bf16.msra.mxu0 (!%p300_p2), %v1087_v0  ;;  %v1094_v19 = vld [vmem:[%s1305_s5] sm:$0xff] (!%p300_p2)   ;;  %v1097_v51 = vld [vmem:[%s1307_s7 + $0x8] sm:$0xff] (!%p300_p2)  }
   0x8   : > { %1027 = vmatprep.subr.bf16.mxu0 (!%p300_p2), %v1088_v1  ;;  %1047 = vmatprep.subr.bf16.mxu1 (!%p300_p2), %v1094_v19  ;;  %v1096_v21 = vld [vmem:[%s1307_s7] sm:$0xff] (!%p300_p2)  }
   0x9   : > { %1048 = vmatpush3.bf16.msra.mxu1 (!%p300_p2), %v1094_v19  ;;  %v969_v22 = vld [vmem:[%s1304_s4] ss:$0 sm:$0xff] (!%p300_p2) }
   0xa   : > { %1049 = vmatprep.subr.bf16.mxu1 (!%p300_p2), %v1095_v20  ;;  %v970_v52 = vld [vmem:[%s1306_s6] ss:$0 sm:$0xff] (!%p300_p2) }
   0xb   : > { %1028 = vmatpush3.bf16.msra.mxu0 (!%p300_p2), %v1088_v1 }
   0xc   : > { %1037 = vmatprep.subr.bf16.mxu0 (!%p300_p2), %v1089_v2 }
   0xd   : > { %s1311_s13 = smov (!%p341_p3, %s948_s13), 15  ;;  %1050 = vmatpush3.bf16.msra.mxu1 %v1095_v20 }
   0xe   : > { %s949_s18 = sshll.u32 %s1311_s13, 2  ;;  %s951_s19 = sshll.u32 %s1311_s13, 3  ;;  %1059 = vmatprep.subr.bf16.mxu1 %v1096_v21 }
   0xf   : > { %s350_s22 = scalar_lea.vmem %s1301_s1, %s951_s19  ;;  %s344_s25 = scalar_lea.vmem %s1300_s0, %s949_s18 }
  0x10   : > { %v367_v3 = vld [vmem:[%s350_s22] sm:$0xff]  ;;  %v368_v4 = vld [vmem:[%s350_s22 + $0x8] sm:$0xff]  ;;  %v369_v5 = vld [vmem:[%s350_s22 + $0x10] sm:$0xff]  ;;  %s1269_s24 = scalar_lea.vmem %s1309_s9, %s949_s18 }
  0x11   : > { %v381_v6 = vpack.c.bf16 %v368_v4, %v367_v3  ;;  %v370_v7 = vld [vmem:[%s350_s22 + $0x18] sm:$0xff]  ;;  %v371_v8 = vld [vmem:[%s350_s22 + $0x20] sm:$0xff]  ;;  %v372_v9 = vld [vmem:[%s350_s22 + $0x28] sm:$0xff] }
  0x12   : > { %v382_v10 = vpack.c.bf16 %v370_v7, %v369_v5  ;;  %v383_v11 = vpack.c.bf16 %v372_v9, %v371_v8  ;;  %v373_v12 = vld [vmem:[%s350_s22 + $0x30] sm:$0xff]  ;;  %v374_v13 = vld [vmem:[%s350_s22 + $0x38] sm:$0xff]  ;;  %v1090_v15 = vld [vmem:[%s344_s25] sm:$0xff]  }
  0x13   : > { %1029 = vmatprep.mubr.msk.bf16.mxu0 %vm397_vm0, %v381_v6  ;;  %v384_v14 = vpack.c.bf16 %v374_v13, %v373_v12  ;;  %v1091_v16 = vld [vmem:[%s344_s25 + $0x8] sm:$0xff]   ;;  %v1092_v17 = vld [vmem:[%s344_s25 + $0x10] sm:$0xff]   ;;  %v1093_v18 = vld [vmem:[%s344_s25 + $0x18] sm:$0xff]  }
  0x14   : > { %1030 = vmatmul.mubr.msk.bf16.vlgmr.msra.gmra.mrb[0].mxu0 %vm397_vm0, %v382_v10 }
  0x15   : > { %1038 = vmatpush3.bf16.msra.mxu0 %v1089_v2  ;;  %1033 = vmatprep.mubr.msk.bf16.mxu0 %vm397_vm0, %v383_v11 }
  0x1c   : > { %1034 = vmatmul.mubr.msk.bf16.gmra.mrb[4].mxu0 %vm397_vm0, %v384_v14 }
  0x1d   : > { %1039 = vmatprep.mubr.msk.bf16.mxu0 %vm501_vm1, %v1090_v15 }
  0x24   : > { %1040 = vmatmul.mubr.msk.bf16.vlgmr.msra.gmra.mrb[0].mxu0 %vm501_vm1, %v1091_v16 }
  0x25   : > { %1043 = vmatprep.mubr.msk.bf16.mxu0 %vm501_vm1, %v1092_v17  ;;  %v977_v17 = vld [vmem:[%s1308_s8] ss:$0 sm:$0xff] }
  0x2c   : > { %1044 = vmatmul.mubr.msk.bf16.gmra.mrb[4].mxu0 %vm501_vm1, %v1093_v18 }
  0xf7   : > { %v1041_v23 = vpop.f32.mrb[0].mxu0 }
  0xf8   : > { %v548_v24 = vpop.f32.mrb[1].mxu0  ;;  %v1203_v27 = vadd.f32 %v1041_v23, %v969_v22 }
  0xf9   : > { %v1201_v25 = vadd.f32 %v969_v22, %v548_v24  ;;  %v1042_v26 = vpop.f32.mrb[2].mxu0 }
  0xfa   : > { %v1205_v28 = vadd.f32 %v1042_v26, %v969_v22  ;;  %v551_v29 = vpop.f32.mrb[3].mxu0  ;;  %v596_v34 = vmax.f32 %v1203_v27, 0.0 }
  0xfb   : > { %v1207_v30 = vadd.f32 %v969_v22, %v551_v29  ;;  %v594_v32 = vmax.f32 %v1201_v25, 0.0 }
  0xfc   : > { %v597_v31 = vmax.f32 %v1205_v28, 0.0 }
  0xfd   : > { %v595_v33 = vmax.f32 %v1207_v30, 0.0 }
  0xfe   : > { %v613_v37 = vpack.c.bf16 %v597_v31, %v596_v34 }
  0xff   : > { %v1045_v35 = vpop.f32.mrb[4].mxu0  ;;  %v612_v36 = vpack.c.bf16 %v595_v33, %v594_v32 }
 0x100   : > { %v564_v38 = vpop.f32.mrb[5].mxu0  ;;  %v1224_v41 = vadd.f32 %v1045_v35, %v969_v22 }
 0x101   : > { %v1221_v39 = vadd.f32 %v969_v22, %v564_v38  ;;  %v1046_v40 = vpop.f32.mrb[6].mxu0  ;;  %1051 = vmatprep.mubr.msk.bf16.mxu1 %vm397_vm0, %v612_v36 }
 0x102   : > { %v1226_v42 = vadd.f32 %v1046_v40, %v969_v22  ;;  %v567_v43 = vpop.f32.mrb[7].mxu0  ;;  %1052 = vmatmul.mubr.msk.bf16.vlgmr.msra.gmra.mrb[0].mxu1 %vm397_vm0, %v613_v37  ;;  %v600_v48 = vmax.f32 %v1224_v41, 0.0 }
 0x103   : > { %v1229_v44 = vadd.f32 %v969_v22, %v567_v43  ;;  %1060 = vmatpush3.bf16.msra.mxu1 %v1096_v21  ;;  %v598_v46 = vmax.f32 %v1221_v39, 0.0 }
 0x104   : > { %v601_v45 = vmax.f32 %v1226_v42, 0.0  ;;  %1061 = vmatprep.subr.bf16.mxu1 %v1097_v51 }
 0x105   : > { %v599_v47 = vmax.f32 %v1229_v44, 0.0 }
 0x106   : > { %v615_v50 = vpack.c.bf16 %v601_v45, %v600_v48 }
 0x107   : > { %v614_v49 = vpack.c.bf16 %v599_v47, %v598_v46  ;;  %1062 = vmatpush3.bf16.msra.mxu1 %v1097_v51 }
 0x109   : > { %1055 = vmatprep.mubr.msk.bf16.mxu1 %vm397_vm0, %v614_v49 }
 0x10a   : > { %1056 = vmatmul.mubr.msk.bf16.gmra.mrb[4].mxu1 %vm397_vm0, %v615_v50 }
 0x1d5   : > { %v1053_v53 = vpop.f32.mrb[0].mxu1 }
 0x1d6   : > { %v689_v54 = vadd.f32 %v1053_v53, %v970_v52  ;;  %v680_v55 = vpop.f32.mrb[1].mxu1 }
 0x1d7   : > { %v681_v56 = vadd.f32 %v970_v52, %v680_v55  ;;  %v1054_v57 = vpop.f32.mrb[2].mxu1 }
 0x1d8   : > { %v692_v58 = vadd.f32 %v1054_v57, %v970_v52  ;;  %v683_v59 = vpop.f32.mrb[3].mxu1  ;;  %v713_v61 = vmax.f32 %v689_v54, 0.0 }
 0x1d9   : > { %v684_v60 = vadd.f32 %v970_v52, %v683_v59  ;;  %v711_v63 = vmax.f32 %v681_v56, 0.0 }
 0x1da   : > { %v714_v62 = vmax.f32 %v692_v58, 0.0 }
 0x1db   : > { %v712_v0 = vmax.f32 %v684_v60, 0.0 }
 0x1dc   : > { %v720_v1 = vpack.c.bf16 %v714_v62, %v713_v61 }
 0x1dd   : > { %v719_v2 = vpack.c.bf16 %v712_v0, %v711_v63  ;;  %v1057_v3 = vpop.f32.mrb[4].mxu1 }
 0x1de   : > { %v705_v4 = vadd.f32 %v1057_v3, %v970_v52  ;;  %v696_v5 = vpop.f32.mrb[5].mxu1 }
 0x1df   : > { %v697_v6 = vadd.f32 %v970_v52, %v696_v5  ;;  %v1058_v7 = vpop.f32.mrb[6].mxu1  ;;  %1063 = vmatprep.mubr.msk.bf16.mxu1 %vm397_vm0, %v719_v2 }
 0x1e0   : > { %v708_v8 = vadd.f32 %v1058_v7, %v970_v52  ;;  %v699_v9 = vpop.f32.mrb[7].mxu1  ;;  %1064 = vmatmul.mubr.msk.bf16.vlgmr.msra.gmra.mrb[8].mxu1 %vm397_vm0, %v720_v1  ;;  %v717_v11 = vmax.f32 %v705_v4, 0.0 }
 0x1e1   : > { %v700_v10 = vadd.f32 %v970_v52, %v699_v9  ;;  %v715_v13 = vmax.f32 %v697_v6, 0.0 }
 0x1e2   : > { %v718_v12 = vmax.f32 %v708_v8, 0.0 }
 0x1e3   : > { %v716_v14 = vmax.f32 %v700_v10, 0.0 }
 0x1e4   : > { %v722_v15 = vpack.c.bf16 %v718_v12, %v717_v11 }
 0x1e5   : > { %v721_v16 = vpack.c.bf16 %v716_v14, %v715_v13 }
 0x1e7   : > { %1067 = vmatprep.mubr.msk.bf16.mxu1 %vm397_vm0, %v721_v16 }
 0x1e8   : > { %1068 = vmatmul.mubr.msk.bf16.gmra.mrb[12].mxu1 %vm397_vm0, %v722_v15 }
 0x2b3   : > { %v1065_v18 = vpop.f32.mrb[8].mxu1 }
 0x2b4   : > { %v796_v19 = vadd.f32 %v1065_v18, %v977_v17  ;;  %v787_v20 = vpop.f32.mrb[9].mxu1 }
 0x2b5   : > { %v788_v21 = vadd.f32 %v977_v17, %v787_v20  ;;  %v1066_v22 = vpop.f32.mrb[10].mxu1 }
 0x2b6   : > { %v820_v23 = vadd.f32 %v796_v19, %v596_v34  ;;  %v799_v24 = vadd.f32 %v1066_v22, %v977_v17  ;;  %v790_v26 = vpop.f32.mrb[11].mxu1 }
 0x2b7   : > { %v818_v29 = vadd.f32 %v788_v21, %v594_v32  ;;  %v791_v35 = vadd.f32 %v977_v17, %v790_v26 }
 0x2b8   : > { %v828_v36 = vmax.f32 %v820_v23, 0.0  ;;  %v821_v37 = vadd.f32 %v799_v24, %v597_v31 }
 0x2b9   : > { %v826_v27 = vmax.f32 %v818_v29, 0.0  ;;  %v819_v25 = vadd.f32 %v791_v35, %v595_v33 }
 0x2ba   : > { %v996_v32 = vpack.c.bf16 %v828_v36, %v828_v36  ;;  %v829_v34 = vmax.f32 %v821_v37, 0.0 }
 0x2bb   : > { %v994_v38 = vpack.c.bf16 %v826_v27, %v826_v27  ;;  %v827_v28 = vmax.f32 %v819_v25, 0.0  ;;  %v1069_v31 = vpop.f32.mrb[12].mxu1 }
 0x2bc   : > { %869 = vst.msk [vmem:[%s1269_s24 + $0x8] sm:$0xf] %vm866_vm2, %v996_v32  ;;  %v997_v40 = vpack.c.bf16 %v829_v34, %v829_v34  ;;  %v812_v43 = vadd.f32 %v1069_v31, %v977_v17  ;;  %v803_v49 = vpop.f32.mrb[13].mxu1 }
 0x2bd   : > { %867 = vst.msk [vmem:[%s1269_s24] sm:$0xf] %vm866_vm2, %v994_v38  ;;  %v995_v50 = vpack.c.bf16 %v827_v28, %v827_v28  ;;  %v804_v51 = vadd.f32 %v977_v17, %v803_v49  ;;  %v1070_v52 = vpop.f32.mrb[14].mxu1 }
 0x2be   : > { %870 = vst.msk [vmem:[%s1269_s24 + $0xc] sm:$0xf] %vm866_vm2, %v997_v40  ;;  %v824_v30 = vadd.f32 %v812_v43, %v600_v48  ;;  %v815_v33 = vadd.f32 %v1070_v52, %v977_v17  ;;  %v806_v53 = vpop.f32.mrb[15].mxu1 }
 0x2bf   : > { %868 = vst.msk [vmem:[%s1269_s24 + $0x4] sm:$0xf] %vm866_vm2, %v995_v50  ;;  %v822_v54 = vadd.f32 %v804_v51, %v598_v46  ;;  %v807_v55 = vadd.f32 %v977_v17, %v806_v53 }
 0x2c0   : > { %v832_v56 = vmax.f32 %v824_v30, 0.0  ;;  %v825_v57 = vadd.f32 %v815_v33, %v601_v45 }
 0x2c1   : > { %v830_v58 = vmax.f32 %v822_v54, 0.0  ;;  %v823_v41 = vadd.f32 %v807_v55, %v599_v47 }
 0x2c2   : > { %v1000_v48 = vpack.c.bf16 %v832_v56, %v832_v56  ;;  %v833_v59 = vmax.f32 %v825_v57, 0.0 }
 0x2c3   : > { %v998_v60 = vpack.c.bf16 %v830_v58, %v830_v58  ;;  %v831_v61 = vmax.f32 %v823_v41, 0.0 }
 0x2c4   : > { %873 = vst.msk [vmem:[%s1269_s24 + $0x18] sm:$0xf] %vm866_vm2, %v1000_v48  ;;  %v1001_v62 = vpack.c.bf16 %v833_v59, %v833_v59 }
 0x2c5   : > { %871 = vst.msk [vmem:[%s1269_s24 + $0x10] sm:$0xf] %vm866_vm2, %v998_v60  ;;  %v999_v39 = vpack.c.bf16 %v831_v61, %v831_v61 }
 0x2c6   : > { %874 = vst.msk [vmem:[%s1269_s24 + $0x1c] sm:$0xf] %vm866_vm2, %v1001_v62 }
 0x2c7   : > { %872 = vst.msk [vmem:[%s1269_s24 + $0x14] sm:$0xf] %vm866_vm2, %v999_v39 }
 0x2c8 PF: > { %s19_s30 = sadd.s32 1, %s1104_s30  }
 0x2c9   : > { %p16_p4 = scmp.ge.s32.totalorder %s19_s30, 4  }
 0x2cb   :  { %18 = sbr.rel (!%p16_p4) target bundleno = 1 (0x1), region = 89 }

// kernel: _lambda_.35
= control target key start
LH: loop header
LB: loop body
LE: loop exit
PB: predicated region body
PF: predicated region fallthrough
CT: control target
= control target key end

     0   :  { %s791_s18 = smov 0   ;;  %s793_s19 = smov 0   ;;  %s886_s0 = inlined_call_operand.vmem [shape: bf16[2,64,32], index: 0, kind: input, shape index: {}]   ;;  %s887_s1 = inlined_call_operand.vmem [shape: f32[2,1,128], index: 1, kind: input, shape index: {}]   ;;  %s888_s2 = inlined_call_operand.vmem [shape: bf16[32,128], index: 2, kind: input, shape index: {}]   ;;  %s889_s3 = inlined_call_operand.vmem [shape: bf16[128,3], index: 3, kind: input, shape index: {}]   ;;  %s890_s4 = inlined_call_operand.vmem [shape: f32[1,3], index: 4, kind: input, shape index: {}]   ;;  %s891_s5 = inlined_call_operand.vmem [shape: f32[2,64,3], index: 5, kind: output, shape index: {}]  }
   0x1   :  { %s795_s20 = smov 0   ;;  %s797_s21 = smov 0  }
   0x2   :  { %s799_s22 = smov 0  }
   0x3 LB: > { %s24_s23 = sadd.s32 1, %s751_s20  ;;  %s27_s24 = sadd.s32 1, %s755_s21  ;;  %s759_s22 = sphi %s799_s22, %s15_s22   ;;  %s755_s21 = sphi %s797_s21, %s895_s21   ;;  %s751_s20 = sphi %s795_s20, %s894_s20   ;;  %s747_s19 = sphi %s793_s19, %s893_s19   ;;  %s743_s18 = sphi %s791_s18, %s892_s18  }
   0x4   : > { %p25_p0 = scmp.ge.s32.totalorder %s24_s23, 2  ;;  %p602_p1 = scmp.ge.s32.totalorder %s759_s22, 1 }
   0x5   : > { %p216_p2 = scmp.lt.s32.totalorder %s759_s22, 5 }
   0x6   : > { %s897_s23 = smov (%p25_p0, %s24_s23), 0  ;;  %s899_s24 = smov (!%p25_p0, %s27_s24), %s755_s21 }
   0x7   : > { %p217_p3 = pnand %p602_p1, %p216_p2  ;;  %p29_p4 = scmp.ge.s32.totalorder %s899_s24, 2 }
   0x8   : > { %v709_v0 = vld [vmem:[%s888_s2] sm:$0xff] (!%p217_p3)   ;;  %s603_s27 = sshll.u32 (!%p217_p3), %s743_s18, 2  ;;  %v710_v1 = vld [vmem:[%s888_s2 + $0x8] sm:$0xff] (!%p217_p3)   ;;  %p256_p5 = scmp.lt.s32.totalorder (!%p217_p3), %s747_s19, 1  ;;  %vm316_vm0 = vcmask (!%p217_p3), 261120   ;;  %v715_v4 = vld [vmem:[%s889_s3 + $0x10] sm:$0xff] (!%p217_p3)  }
   0x9   : > { %s901_s24 = smov (%p29_p4, %s899_s24), 0  ;;  %220 = sbr.rel (%p217_p3) target bundleno = 461 (0x1cd), region = 40 }
   0xa   : > { %641 = vmatprep.subr.bf16.mxu0 (!%p217_p3), %v709_v0  ;;  %p258_p6 = scmp.lt.s32.totalorder (!%p217_p3), %s603_s27, 7  ;;  %v713_v2 = vld [vmem:[%s889_s3] sm:$0xff] (!%p217_p3)   ;;  %v714_v3 = vld [vmem:[%s889_s3 + $0x8] sm:$0xff] (!%p217_p3)   ;;  %v716_v7 = vld [vmem:[%s889_s3 + $0x18] sm:$0xff] (!%p217_p3)   ;;  %vm494_vm1 = vcmask (!%p217_p3), 23552  }
   0xb   : > { %642 = vmatpush3.bf16.msra.mxu0 (!%p217_p3), %v709_v0  ;;  %649 = vmatprep.subr.bf16.mxu1 (!%p217_p3), %v713_v2  ;;  %v717_v8 = vld [vmem:[%s889_s3 + $0x20] sm:$0xff] (!%p217_p3)   ;;  %v718_v9 = vld [vmem:[%s889_s3 + $0x28] sm:$0xff] (!%p217_p3)   ;;  %v719_v10 = vld [vmem:[%s889_s3 + $0x30] sm:$0xff] (!%p217_p3)  }
   0xc   : > { %643 = vmatprep.subr.bf16.mxu0 (!%p217_p3), %v710_v1  ;;  %650 = vmatpush3.bf16.msra.mxu1 (!%p217_p3), %v713_v2  ;;  %v720_v11 = vld [vmem:[%s889_s3 + $0x38] sm:$0xff] (!%p217_p3)   ;;  %v616_v23 = vld [vmem:[%s890_s4] ss:$0 sm:$0xff] (!%p217_p3) }
   0xd   : > { %651 = vmatprep.subr.bf16.mxu1 (!%p217_p3), %v714_v3 }
   0xf   : > { %644 = vmatpush3.bf16.msra.mxu0 (!%p217_p3), %v710_v1 }
  0x10   : > { %s903_s19 = smov (!%p256_p5, %s747_s19), 1  ;;  %s905_s27 = smov (!%p258_p6, %s603_s27), 7  ;;  %652 = vmatpush3.bf16.msra.mxu1 %v714_v3 }
  0x11   : > { %s604_s9 = sshll.u32 %s903_s19, 3  ;;  %653 = vmatprep.subr.bf16.mxu1 %v715_v4 }
  0x12   : > { %s836_s10 = sadd.s32 %s604_s9, %s905_s27 }
  0x13   : > { %s605_s11 = sshll.u32 %s836_s10, 2  ;;  %s608_s12 = sshll.u32 %s836_s10, 3 }
  0x14   : > { %s263_s16 = scalar_lea.vmem %s886_s0, %s605_s11  ;;  %654 = vmatpush3.bf16.msra.mxu1 %v715_v4  ;;  %s267_s11 = scalar_lea.vmem %s887_s1, %s903_s19 }
  0x15   : > { %v711_v5 = vld [vmem:[%s263_s16] sm:$0xff]   ;;  %v712_v6 = vld [vmem:[%s263_s16 + $0x8] sm:$0xff]   ;;  %655 = vmatprep.subr.bf16.mxu1 %v716_v7  ;;  %s276_s16 = scalar_lea.vmem %s891_s5, %s608_s12 }
  0x16   : > { %645 = vmatprep.mubr.msk.bf16.mxu0 %vm316_vm0, %v711_v5  ;;  %v609_v12 = vld [vmem:[%s267_s11] ss:$0 sm:$0xff] }
  0x17   : > { %646 = vmatmul.mubr.msk.bf16.vlgmr.msra.gmra.mrb[0].mxu0 %vm316_vm0, %v712_v6 }
  0x18   : > { %656 = vmatpush3.bf16.msra.mxu1 %v716_v7 }
  0x19   : > { %657 = vmatprep.subr.bf16.mxu1 %v717_v8 }
  0x1c   : > { %658 = vmatpush3.bf16.msra.mxu1 %v717_v8 }
  0x1d   : > { %659 = vmatprep.subr.bf16.mxu1 %v718_v9 }
  0x20   : > { %660 = vmatpush3.bf16.msra.mxu1 %v718_v9 }
  0x21   : > { %661 = vmatprep.subr.bf16.mxu1 %v719_v10 }
  0x24   : > { %662 = vmatpush3.bf16.msra.mxu1 %v719_v10 }
  0x25   : > { %663 = vmatprep.subr.bf16.mxu1 %v720_v11 }
  0x28   : > { %664 = vmatpush3.bf16.msra.mxu1 %v720_v11 }
  0xea   : > { %v647_v13 = vpop.f32.mrb[0].mxu0 }
  0xeb   : > { %v366_v14 = vadd.f32 %v647_v13, %v609_v12  ;;  %v357_v15 = vpop.f32.mrb[1].mxu0 }
  0xec   : > { %v358_v16 = vadd.f32 %v609_v12, %v357_v15  ;;  %v648_v17 = vpop.f32.mrb[2].mxu0 }
  0xed   : > { %v369_v18 = vadd.f32 %v648_v17, %v609_v12  ;;  %v360_v19 = vpop.f32.mrb[3].mxu0 }
  0xee   : > { %v361_v20 = vadd.f32 %v609_v12, %v360_v19 }
  0xef   : > { %v373_v21 = vpack.c.bf16 %v369_v18, %v366_v14 }
  0xf0   : > { %v372_v22 = vpack.c.bf16 %v361_v20, %v358_v16 }
  0xf2   : > { %665 = vmatprep.mubr.bf16.mxu1 %v372_v22 }
  0xf3   : > { %666 = vmatmul.mubr.bf16.vlgmr.msra.gmra.mrb[0].mxu1 %v373_v21 }
 0x1c6   : > { %v667_v24 = vpop.f32.mrb[0].mxu1 }
 0x1c7   : > { %v488_v25 = vadd.f32 %v667_v24, %v616_v23  ;;  %v479_v26 = vpop.f32.mrb[1].mxu1 }
 0x1c8   : > { %v480_v27 = vadd.f32 %v616_v23, %v479_v26  ;;  %v668_v28 = vpop.f32.mrb[2].mxu1 }
 0x1c9   : > { %497 = vst.msk [vmem:[%s276_s16 + $0x10] sm:$0xff] %vm494_vm1, %v488_v25  ;;  %v491_v29 = vadd.f32 %v668_v28, %v616_v23  ;;  %v482_v30 = vpop.f32.mrb[3].mxu1 }
 0x1ca   : > { %495 = vst.msk [vmem:[%s276_s16] sm:$0xff] %vm494_vm1, %v480_v27  ;;  %v483_v31 = vadd.f32 %v616_v23, %v482_v30 }
 0x1cb   : > { %498 = vst.msk [vmem:[%s276_s16 + $0x18] sm:$0xff] %vm494_vm1, %v491_v29 }
 0x1cc   : > { %496 = vst.msk [vmem:[%s276_s16 + $0x8] sm:$0xff] %vm494_vm1, %v483_v31 }
 0x1cd PF: > { %s15_s22 = sadd.s32 1, %s759_s22   ;;  %s892_s18 = smov %s751_s20 }
 0x1ce   : > { %p12_p7 = scmp.ge.s32.totalorder %s15_s22, 6   ;;  %s893_s19 = smov %s755_s21 }
 0x1cf   : > { %s894_s20 = smov %s897_s23  ;;  %s895_s21 = smov %s901_s24 }
 0x1d0   :  { %14 = sbr.rel (!%p12_p7) target bundleno = 3 (0x3), region = 73 }

</bundles_post_ra>
